<compile_context>
chip_gen: v7x
topology: tpu7x:2x2x1
jax: 0.10.0
libtpu: 0.0.40
codegen_flags: <defaults>
</compile_context>

<pallas_src>
import jax
import jax.numpy as jnp
from jax.experimental import pallas as pl
from jax.experimental.pallas import tpu as pltpu

EPS = 1e-5
LANE = 128
VMEM_LIMIT_BYTES = 48 * 1024 * 1024   # fits v7x (64 MiB physical) with headroom


# ---------------------------------------------------------------------------
# small helpers
# ---------------------------------------------------------------------------
def _silu(x):
    return x * jax.nn.sigmoid(x)


def _affine_silu(y, scale, shift):
    # y*scale + shift == (y - mean) * rsqrt(var + eps) * gamma + beta
    return _silu(y * scale + shift)


def _round_up(v, m):
    return (v + m - 1) // m * m


def _pick_row_tile(m, target):
    """Largest row tile that divides m, is a multiple of 8 and is <= target."""
    if m <= target:
        return m
    t = min(target, m) // 8 * 8
    while t >= 8:
        if m % t == 0:
            return t
        t -= 8
    return m            # no aligned divisor -> single full block (always legal)


def _ce(flops, bytes_accessed, transcendentals=0):
    return pl.CostEstimate(flops=int(flops), transcendentals=int(transcendentals),
                           bytes_accessed=int(bytes_accessed))


# ---------------------------------------------------------------------------
# Pallas kernels
# ---------------------------------------------------------------------------
def _write_stats(y, s_ref, q_ref):
    # per-tile partial BatchNorm statistics (f32 sum and sum-of-squares)
    s_ref[...] = jnp.sum(y, axis=0, keepdims=True)[None]
    q_ref[...] = jnp.sum(y * y, axis=0, keepdims=True)[None]


def _head_kernel(x_ref, w1_ref, w2_ref, t_ref, y2_ref, s1_ref, q1_ref, s2_ref, q2_ref):
    """Raw cv1 and cv2 1x1 convs on one row tile (+ partial BN stats)."""
    xb = x_ref[...]                                   # bf16 (TM, C1p)
    t = jnp.dot(xb, w1_ref[...], preferred_element_type=jnp.float32)
    y2 = jnp.dot(xb, w2_ref[...], preferred_element_type=jnp.float32)
    t_ref[...] = t
    y2_ref[...] = y2
    _write_stats(t, s1_ref, q1_ref)
    _write_stats(y2, s2_ref, q2_ref)


def _bn_mm_kernel(raw_ref, sc_ref, sh_ref, w_ref, act_ref, out_ref, s_ref, q_ref):
    """Apply pending BN+SiLU to `raw`, keep the activation, then fuse the next
    1x1-conv matmul (+ its partial stats) — one HBM round trip per layer."""
    act = _affine_silu(raw_ref[...], sc_ref[...], sh_ref[...])
    act_ref[...] = act
    y = jnp.dot(act.astype(jnp.bfloat16), w_ref[...],
                preferred_element_type=jnp.float32)
    out_ref[...] = y
    _write_stats(y, s_ref, q_ref)


def _res_bn_mm_kernel(base_ref, raw_ref, sc_ref, sh_ref, w_ref,
                      act_ref, out_ref, s_ref, q_ref):
    """Bottleneck tail: t_new = t + SiLU(BN(v_raw)); then the next matmul
    (next bottleneck's 1x1, or cv3 after the last one)."""
    act = base_ref[...] + _affine_silu(raw_ref[...], sc_ref[...], sh_ref[...])
    act_ref[...] = act
    y = jnp.dot(act.astype(jnp.bfloat16), w_ref[...],
                preferred_element_type=jnp.float32)
    out_ref[...] = y
    _write_stats(y, s_ref, q_ref)


def _conv3x3_kernel(u_ref, sc_ref, sh_ref, w_ref, v_ref, s_ref, q_ref, pad_ref):
    """Fused 3x3 / pad=1 / stride=1 conv for one image: SiLU(BN(u_raw)),
    zero-pad in VMEM scratch, accumulate 9 shifted (H*W, C) x (C, C) matmuls.
    No HBM im2col is ever materialized."""
    _, H, W, C = u_ref.shape
    act = _affine_silu(u_ref[0], sc_ref[...], sh_ref[...])     # (H, W, C) f32
    pad_ref[...] = jnp.zeros_like(pad_ref)
    pad_ref[1:H + 1, 1:W + 1, :] = act
    acc = jnp.zeros((H * W, C), jnp.float32)
    for k in range(9):
        dy, dx = k // 3, k % 3
        tap = pad_ref[dy:dy + H, dx:dx + W, :].reshape(H * W, C).astype(jnp.bfloat16)
        acc = acc + jnp.dot(tap, w_ref[k], preferred_element_type=jnp.float32)
    v_ref[0] = acc.reshape(H, W, C)
    _write_stats(acc, s_ref, q_ref)


def _cat_mm_kernel(y1_ref, y2_ref, sc1_ref, sh1_ref, sc2_ref, sh2_ref,
                   w4a_ref, w4b_ref, out_ref, s_ref, q_ref):
    """cv4(SiLU(BN(cat(y1, y2)))) raw output.  The concat-BN is per-channel so
    it factors into per-half affines with cv4's weight split — no lane concat.
    z1 is folded into the accumulator before z2 exists (low VMEM pressure)."""
    z1 = _affine_silu(y1_ref[...], sc1_ref[...], sh1_ref[...])
    h = jnp.dot(z1.astype(jnp.bfloat16), w4a_ref[...],
                preferred_element_type=jnp.float32)
    z2 = _affine_silu(y2_ref[...], sc2_ref[...], sh2_ref[...])
    h = h + jnp.dot(z2.astype(jnp.bfloat16), w4b_ref[...],
                    preferred_element_type=jnp.float32)
    out_ref[...] = h
    _write_stats(h, s_ref, q_ref)


def _bn_act_kernel(raw_ref, sc_ref, sh_ref, out_ref):
    out_ref[...] = _affine_silu(raw_ref[...], sc_ref[...], sh_ref[...])


# ---------------------------------------------------------------------------
# glue: BN-stat finalize + parameter padding / bf16 cast
# ---------------------------------------------------------------------------
def _finalize_stats(s_part, q_part, m_rows, gamma, beta):
    """Per-tile (sum, sumsq) partials -> per-channel (scale, shift) for the
    fused training-mode BatchNorm affine.  Tiny O(C) math, plain jnp."""
    tot_s = jnp.sum(s_part, axis=(0, 1))
    tot_q = jnp.sum(q_part, axis=(0, 1))
    mean = tot_s / m_rows
    var = jnp.maximum(tot_q / m_rows - mean * mean, 0.0)   # biased, like torch
    inv = jax.lax.rsqrt(var + EPS)
    scale = gamma[0] * inv
    shift = beta[0] - mean * scale
    return scale[None, :], shift[None, :]


def _pad2(w2, r, c):
    return jnp.pad(w2, ((0, r - w2.shape[0]), (0, c - w2.shape[1])))


def _padvec(v, c):
    return jnp.pad(v, ((0, 0), (0, c - v.shape[1])))


def _prepare_params(p, c1p, cp, c2p):
    """Zero-pad channel axes to multiples of 128 and cast weights to bf16."""
    c_ = p["w_cv1"].shape[1]
    bf = jnp.bfloat16
    prm = {
        "w_cv1": _pad2(p["w_cv1"], c1p, cp).astype(bf),
        "w_cv2": _pad2(p["w_cv2"], c1p, cp).astype(bf),
        "w_cv3": _pad2(p["w_cv3"], cp, cp).astype(bf),
        "w4a": _pad2(p["w_cv4"][:c_], cp, c2p).astype(bf),
        "w4b": _pad2(p["w_cv4"][c_:], cp, c2p).astype(bf),
        "g_cv1": _padvec(p["g_cv1"], cp), "b_cv1": _padvec(p["b_cv1"], cp),
        "g_bn1": _padvec(p["g_bn"][:, :c_], cp), "b_bn1": _padvec(p["b_bn"][:, :c_], cp),
        "g_bn2": _padvec(p["g_bn"][:, c_:], cp), "b_bn2": _padvec(p["b_bn"][:, c_:], cp),
        "g_cv4": _padvec(p["g_cv4"], c2p), "b_cv4": _padvec(p["b_cv4"], c2p),
    }
    bots = []
    for (wb1, gb1, bb1, wb2, gb2, bb2) in p["bottlenecks"]:
        wb2p = jnp.pad(wb2, ((0, 0), (0, 0), (0, cp - c_), (0, cp - c_)))
        bots.append((_pad2(wb1, cp, cp).astype(bf),
                     _padvec(gb1, cp), _padvec(bb1, cp),
                     wb2p.reshape(9, cp, cp).astype(bf),
                     _padvec(gb2, cp), _padvec(bb2, cp)))
    prm["bottlenecks"] = bots
    return prm


# ---------------------------------------------------------------------------
# BottleneckCSP forward (Pallas-backed)
# ---------------------------------------------------------------------------
def bottleneck_csp_forward(x_nchw, p, row_tile=2048):
    N, C1, H, W = x_nchw.shape
    M = N * H * W
    c_ = p["w_cv1"].shape[1]
    c2 = p["w_cv4"].shape[1]
    n = len(p["bottlenecks"])
    c1p, cp, c2p = _round_up(C1, LANE), _round_up(c_, LANE), _round_up(c2, LANE)

    prm = _prepare_params(p, c1p, cp, c2p)
    tm = _pick_row_tile(M, row_tile)
    gm = M // tm

    # NCHW -> NHWC -> lane-dense (M, C1p) bf16 matmul operand.
    # TODO(synk): the NCHW<->NHWC boundary transposes stay in XLA (NCHW-facing API).
    x2d = jnp.pad(jnp.transpose(x_nchw, (0, 2, 3, 1)).reshape(M, C1),
                  ((0, 0), (0, c1p - C1))).astype(jnp.bfloat16)

    cparams = pltpu.CompilerParams(dimension_semantics=("parallel",),
                                   vmem_limit_bytes=VMEM_LIMIT_BYTES)

    row_f32 = jax.ShapeDtypeStruct((M, cp), jnp.float32)
    stat_f32 = jax.ShapeDtypeStruct((gm, 1, cp), jnp.float32)
    row_spec = pl.BlockSpec((tm, cp), lambda i: (i, 0))
    stat_spec = pl.BlockSpec((1, 1, cp), lambda i: (i, 0, 0))
    vec_spec = pl.BlockSpec((1, cp), lambda i: (0, 0))
    wgt_spec = pl.BlockSpec((cp, cp), lambda i: (0, 0))

    # ---- head: t_raw = x @ Wcv1, y2_raw = x @ Wcv2 (+ per-tile BN stats) ----
    t_raw, y2_raw, s_t, q_t, s_y2, q_y2 = pl.pallas_call(
        _head_kernel,
        out_shape=(row_f32, row_f32, stat_f32, stat_f32, stat_f32, stat_f32),
        grid=(gm,),
        in_specs=[pl.BlockSpec((tm, c1p), lambda i: (i, 0)),
                  pl.BlockSpec((c1p, cp), lambda i: (0, 0)),
                  pl.BlockSpec((c1p, cp), lambda i: (0, 0))],
        out_specs=(row_spec, row_spec, stat_spec, stat_spec, stat_spec, stat_spec),
        compiler_params=cparams,
        cost_estimate=_ce(4 * M * c1p * cp,
                          M * c1p * 2 + 2 * c1p * cp * 2 + 2 * M * cp * 4),
    )(x2d, prm["w_cv1"], prm["w_cv2"])

    # ---- cv1's BN+SiLU fused with the first 1x1 of the bottleneck chain -----
    sc0, sh0 = _finalize_stats(s_t, q_t, M, prm["g_cv1"], prm["b_cv1"])
    w_first = prm["bottlenecks"][0][0] if n >= 1 else prm["w_cv3"]
    t_act, cur_raw, cs, cq = pl.pallas_call(
        _bn_mm_kernel,
        out_shape=(row_f32, row_f32, stat_f32, stat_f32),
        grid=(gm,),
        in_specs=[row_spec, vec_spec, vec_spec, wgt_spec],
        out_specs=(row_spec, row_spec, stat_spec, stat_spec),
        input_output_aliases={0: 0},
        compiler_params=cparams,
        cost_estimate=_ce(2 * M * cp * cp, 3 * M * cp * 4 + cp * cp * 2,
                          transcendentals=M * cp),
    )(t_raw, sc0, sh0, w_first)

    # ---- bottleneck chain ---------------------------------------------------
    for j in range(n):
        _, gb1, bb1, wb2p, gb2, bb2 = prm["bottlenecks"][j]

        # fused 3x3 conv (applies the 1x1's BN+SiLU; pads in VMEM; 9 tap matmuls)
        sc_u, sh_u = _finalize_stats(cs, cq, M, gb1, bb1)
        v4d, vs, vq = pl.pallas_call(
            _conv3x3_kernel,
            out_shape=(jax.ShapeDtypeStruct((N, H, W, cp), jnp.float32),
                       jax.ShapeDtypeStruct((N, 1, cp), jnp.float32),
                       jax.ShapeDtypeStruct((N, 1, cp), jnp.float32)),
            grid=(N,),
            in_specs=[pl.BlockSpec((1, H, W, cp), lambda b: (b, 0, 0, 0)),
                      pl.BlockSpec((1, cp), lambda b: (0, 0)),
                      pl.BlockSpec((1, cp), lambda b: (0, 0)),
                      pl.BlockSpec((9, cp, cp), lambda b: (0, 0, 0))],
            out_specs=(pl.BlockSpec((1, H, W, cp), lambda b: (b, 0, 0, 0)),
                       pl.BlockSpec((1, 1, cp), lambda b: (b, 0, 0)),
                       pl.BlockSpec((1, 1, cp), lambda b: (b, 0, 0))),
            scratch_shapes=[pltpu.VMEM((H + 2, W + 2, cp), jnp.float32)],
            compiler_params=cparams,
            cost_estimate=_ce(18 * M * cp * cp, 2 * M * cp * 4 + 9 * cp * cp * 2,
                              transcendentals=M * cp),
        )(cur_raw.reshape(N, H, W, cp), sc_u, sh_u, wb2p)

        # residual add + next matmul (next bottleneck's 1x1, or cv3 after last)
        sc_v, sh_v = _finalize_stats(vs, vq, M, gb2, bb2)
        w_next = prm["bottlenecks"][j + 1][0] if j + 1 < n else prm["w_cv3"]
        t_act, cur_raw, cs, cq = pl.pallas_call(
            _res_bn_mm_kernel,
            out_shape=(row_f32, row_f32, stat_f32, stat_f32),
            grid=(gm,),
            in_specs=[row_spec, row_spec, vec_spec, vec_spec, wgt_spec],
            out_specs=(row_spec, row_spec, stat_spec, stat_spec),
            input_output_aliases={0: 0},
            compiler_params=cparams,
            cost_estimate=_ce(2 * M * cp * cp, 4 * M * cp * 4 + cp * cp * 2,
                              transcendentals=M * cp),
        )(t_act, v4d.reshape(M, cp), sc_v, sh_v, w_next)

    # cur_raw is now y1_raw = cv3(m(cv1(x))); y2_raw = cv2(x) from the head.
    # ---- concat-BN halves + cv4 matmul (split weight, no lane concat) -------
    sc_y1, sh_y1 = _finalize_stats(cs, cq, M, prm["g_bn1"], prm["b_bn1"])
    sc_y2, sh_y2 = _finalize_stats(s_y2, q_y2, M, prm["g_bn2"], prm["b_bn2"])
    out_raw, s_o, q_o = pl.pallas_call(
        _cat_mm_kernel,
        out_shape=(jax.ShapeDtypeStruct((M, c2p), jnp.float32),
                   jax.ShapeDtypeStruct((gm, 1, c2p), jnp.float32),
                   jax.ShapeDtypeStruct((gm, 1, c2p), jnp.float32)),
        grid=(gm,),
        in_specs=[row_spec, row_spec, vec_spec, vec_spec, vec_spec, vec_spec,
                  pl.BlockSpec((cp, c2p), lambda i: (0, 0)),
                  pl.BlockSpec((cp, c2p), lambda i: (0, 0))],
        out_specs=(pl.BlockSpec((tm, c2p), lambda i: (i, 0)),
                   pl.BlockSpec((1, 1, c2p), lambda i: (i, 0, 0)),
                   pl.BlockSpec((1, 1, c2p), lambda i: (i, 0, 0))),
        compiler_params=cparams,
        cost_estimate=_ce(4 * M * cp * c2p,
                          2 * M * cp * 4 + M * c2p * 4 + 2 * cp * c2p * 2,
                          transcendentals=2 * M * cp),
    )(cur_raw, y2_raw, sc_y1, sh_y1, sc_y2, sh_y2, prm["w4a"], prm["w4b"])

    # ---- final cv4 BN + SiLU -------------------------------------------------
    sc_o, sh_o = _finalize_stats(s_o, q_o, M, prm["g_cv4"], prm["b_cv4"])
    out2d = pl.pallas_call(
        _bn_act_kernel,
        out_shape=jax.ShapeDtypeStruct((M, c2p), jnp.float32),
        grid=(gm,),
        in_specs=[pl.BlockSpec((tm, c2p), lambda i: (i, 0)),
                  pl.BlockSpec((1, c2p), lambda i: (0, 0)),
                  pl.BlockSpec((1, c2p), lambda i: (0, 0))],
        out_specs=pl.BlockSpec((tm, c2p), lambda i: (i, 0)),
        input_output_aliases={0: 0},
        compiler_params=cparams,
        cost_estimate=_ce(2 * M * c2p, 2 * M * c2p * 4, transcendentals=M * c2p),
    )(out_raw, sc_o, sh_o)

    return out2d[:, :c2].reshape(N, H, W, c2).transpose(0, 3, 1, 2)


# ---------------------------------------------------------------------------
# pure-JAX reference mirroring the kernel numerics (bf16 MXU inputs, f32
# accumulation, training-mode batch-stat BN) for a tight self-consistency check
# ---------------------------------------------------------------------------
def reference_forward(x_nchw, p):
    N, C1, H, W = x_nchw.shape
    M = N * H * W
    c_ = p["w_cv1"].shape[1]
    c2 = p["w_cv4"].shape[1]
    x2d = jnp.transpose(x_nchw, (0, 2, 3, 1)).reshape(M, C1).astype(jnp.bfloat16)

    def mm(a, w):
        return jnp.dot(a.astype(jnp.bfloat16), w.astype(jnp.bfloat16),
                       preferred_element_type=jnp.float32)

    def bn_silu(y, g, b):
        mean = jnp.mean(y, axis=0, keepdims=True)
        var = jnp.maximum(jnp.mean(y * y, axis=0, keepdims=True) - mean * mean, 0.0)
        inv = jax.lax.rsqrt(var + EPS)
        return _silu(y * (g * inv) + (b - mean * g * inv))

    def conv3x3(u_act, w):  # u_act (M, c_) f32, w (3, 3, c_, c_)
        u = u_act.astype(jnp.bfloat16).reshape(N, H, W, c_)
        up = jnp.pad(u, ((0, 0), (1, 1), (1, 1), (0, 0)))
        acc = jnp.zeros((N, H, W, c_), jnp.float32)
        for dy in range(3):
            for dx in range(3):
                acc = acc + jnp.dot(up[:, dy:dy + H, dx:dx + W, :],
                                    w[dy, dx].astype(jnp.bfloat16),
                                    preferred_element_type=jnp.float32)
        return acc.reshape(M, c_)

    t_raw = mm(x2d, p["w_cv1"])
    y2_raw = mm(x2d, p["w_cv2"])
    t_act = bn_silu(t_raw, p["g_cv1"], p["b_cv1"])
    for (wb1, gb1, bb1, wb2, gb2, bb2) in p["bottlenecks"]:
        u_raw = mm(t_act, wb1)
        v_raw = conv3x3(bn_silu(u_raw, gb1, bb1), wb2)
        t_act = t_act + bn_silu(v_raw, gb2, bb2)
    y1_raw = mm(t_act, p["w_cv3"])
    z1 = bn_silu(y1_raw, p["g_bn"][:, :c_], p["b_bn"][:, :c_])
    z2 = bn_silu(y2_raw, p["g_bn"][:, c_:], p["b_bn"][:, c_:])
    out_raw = mm(z1, p["w_cv4"][:c_]) + mm(z2, p["w_cv4"][c_:])
    out = bn_silu(out_raw, p["g_cv4"], p["b_cv4"])
    return out.reshape(N, H, W, c2).transpose(0, 3, 1, 2)


# ---------------------------------------------------------------------------
# deterministic parameter init (shapes follow BottleneckCSP.__init__, g=1)
# ---------------------------------------------------------------------------
def init_params(key, c1, c2, n=1, e=0.5):
    c_ = int(c2 * e)
    keys = iter(jax.random.split(key, 16 + 8 * n))

    def w(shape, scale=0.2):
        return scale * jax.random.normal(next(keys), shape, jnp.float32)

    def bn(c):
        g = 1.0 + 0.1 * jax.random.normal(next(keys), (1, c), jnp.float32)
        b = 0.1 * jax.random.normal(next(keys), (1, c), jnp.float32)
        return g, b

    g_cv1, b_cv1 = bn(c_)
    bottlenecks = []
    for _ in range(n):
        wb1 = w((c_, c_))
        gb1, bb1 = bn(c_)
        wb2 = w((3, 3, c_, c_))          # (kh, kw, cin, cout)
        gb2, bb2 = bn(c_)
        bottlenecks.append((wb1, gb1, bb1, wb2, gb2, bb2))
    g_bn, b_bn = bn(2 * c_)
    g_cv4, b_cv4 = bn(c2)
    return {
        "w_cv1": w((c1, c_)), "g_cv1": g_cv1, "b_cv1": b_cv1,
        "w_cv2": w((c1, c_)),                      # plain Conv2d, no bias
        "w_cv3": w((c_, c_)),                      # plain Conv2d, no bias
        "w_cv4": w((2 * c_, c2)), "g_cv4": g_cv4, "b_cv4": b_cv4,
        "g_bn": g_bn, "b_bn": b_bn,
        "bottlenecks": bottlenecks,
    }


if __name__ == "__main__":
    key = jax.random.PRNGKey(0)
    kx, kp = jax.random.split(key)

    N, C1, C2, H, W = 2, 8, 8, 16, 16          # c_ = 4 (padded to 128 lanes)
    x = jax.random.normal(kx, (N, C1, H, W), jnp.float32)
    params = init_params(kp, C1, C2, n=2, e=0.5)

    # row_tile=256 -> a 2-step pipelined parallel grid over M = 512 rows here.
    fwd = jax.jit(lambda xx, pp: bottleneck_csp_forward(xx, pp, row_tile=256))
    out = jax.block_until_ready(fwd(x, params))
    assert out.shape == (N, C2, H, W), out.shape

    ref = jax.block_until_ready(reference_forward(x, params))
    err = float(jnp.max(jnp.abs(out - ref)))
    assert jnp.allclose(out, ref, rtol=2e-3, atol=2e-3), err

    print("KERNEL_OK")
</pallas_src>

<mosaic_0001>
module attributes {stable_mosaic.version = 11 : i64} {
  func.func @_head_kernel(%arg0: i32, %arg1: memref<256x128xbf16, #tpu.memory_space<vmem>>, %arg2: memref<128x128xbf16, #tpu.memory_space<vmem>>, %arg3: memref<128x128xbf16, #tpu.memory_space<vmem>>, %arg4: memref<256x128xf32, #tpu.memory_space<vmem>>, %arg5: memref<256x128xf32, #tpu.memory_space<vmem>>, %arg6: memref<1x1x128xf32, #tpu.memory_space<vmem>>, %arg7: memref<1x1x128xf32, #tpu.memory_space<vmem>>, %arg8: memref<1x1x128xf32, #tpu.memory_space<vmem>>, %arg9: memref<1x1x128xf32, #tpu.memory_space<vmem>>) attributes {dimension_semantics = [#tpu.dimension_semantics<parallel>], iteration_bounds = array<i64: 2>, scalar_prefetch = 0 : i64, scratch_operands = 0 : i64, tpu.core_type = #tpu.core_type<tc>, window_params = [{transform_indices = @transform_0, window_bounds = array<i64: 256, 128>}, {pipeline_mode = #tpu.pipeline_mode<synchronous>, transform_indices = @transform_1, window_bounds = array<i64: 128, 128>}, {pipeline_mode = #tpu.pipeline_mode<synchronous>, transform_indices = @transform_2, window_bounds = array<i64: 128, 128>}, {transform_indices = @transform_3, window_bounds = array<i64: 256, 128>}, {transform_indices = @transform_4, window_bounds = array<i64: 256, 128>}, {transform_indices = @transform_5, window_bounds = array<i64: 1, 1, 128>}, {transform_indices = @transform_6, window_bounds = array<i64: 1, 1, 128>}, {transform_indices = @transform_7, window_bounds = array<i64: 1, 1, 128>}, {transform_indices = @transform_8, window_bounds = array<i64: 1, 1, 128>}]} {
    %c0 = arith.constant 0 : index
    %c0_0 = arith.constant 0 : index
    %0 = vector.load %arg1[%c0, %c0_0] : memref<256x128xbf16, #tpu.memory_space<vmem>>, vector<256x128xbf16>
    %c0_1 = arith.constant 0 : index
    %c0_2 = arith.constant 0 : index
    %1 = vector.load %arg2[%c0_1, %c0_2] : memref<128x128xbf16, #tpu.memory_space<vmem>>, vector<128x128xbf16>
    %cst = arith.constant dense<0.000000e+00> : vector<256x128xf32>
    %2 = tpu.matmul %0, %1, %cst {dimension_numbers = #tpu.dot_dimension_numbers<[1], [0], [0], [1], [0, 0, 1, 1], [], []>} : vector<256x128xbf16>, vector<128x128xbf16>, vector<256x128xf32> -> vector<256x128xf32>
    %c0_3 = arith.constant 0 : index
    %c0_4 = arith.constant 0 : index
    %3 = vector.load %arg3[%c0_3, %c0_4] : memref<128x128xbf16, #tpu.memory_space<vmem>>, vector<128x128xbf16>
    %cst_5 = arith.constant dense<0.000000e+00> : vector<256x128xf32>
    %4 = tpu.matmul %0, %3, %cst_5 {dimension_numbers = #tpu.dot_dimension_numbers<[1], [0], [0], [1], [0, 0, 1, 1], [], []>} : vector<256x128xbf16>, vector<128x128xbf16>, vector<256x128xf32> -> vector<256x128xf32>
    %c0_6 = arith.constant 0 : index
    %c0_7 = arith.constant 0 : index
    %5 = vector.load %arg4[%c0_6, %c0_7] : memref<256x128xf32, #tpu.memory_space<vmem>>, vector<256x128xf32>
    tpu.vector_store %arg4[%c0_6, %c0_7], %2 {strides = array<i32>} : memref<256x128xf32, #tpu.memory_space<vmem>>, vector<256x128xf32>,
    %c0_8 = arith.constant 0 : index
    %c0_9 = arith.constant 0 : index
    %6 = vector.load %arg5[%c0_8, %c0_9] : memref<256x128xf32, #tpu.memory_space<vmem>>, vector<256x128xf32>
    tpu.vector_store %arg5[%c0_8, %c0_9], %4 {strides = array<i32>} : memref<256x128xf32, #tpu.memory_space<vmem>>, vector<256x128xf32>,
    %cst_10 = arith.constant dense<0.000000e+00> : vector<128xf32>
    %7 = vector.multi_reduction <add>, %2, %cst_10 [0] : vector<256x128xf32> to vector<128xf32>
    %8 = vector.shape_cast %7 : vector<128xf32> to vector<1x128xf32>
    %9 = vector.shape_cast %8 : vector<1x128xf32> to vector<1x1x128xf32>
    %c0_11 = arith.constant 0 : index
    %c0_12 = arith.constant 0 : index
    %c0_13 = arith.constant 0 : index
    %10 = vector.load %arg6[%c0_11, %c0_12, %c0_13] : memref<1x1x128xf32, #tpu.memory_space<vmem>>, vector<1x1x128xf32>
    tpu.vector_store %arg6[%c0_11, %c0_12, %c0_13], %9 {strides = array<i32>} : memref<1x1x128xf32, #tpu.memory_space<vmem>>, vector<1x1x128xf32>,
    %11 = arith.mulf %2, %2 : vector<256x128xf32>
    %cst_14 = arith.constant dense<0.000000e+00> : vector<128xf32>
    %12 = vector.multi_reduction <add>, %11, %cst_14 [0] : vector<256x128xf32> to vector<128xf32>
    %13 = vector.shape_cast %12 : vector<128xf32> to vector<1x128xf32>
    %14 = vector.shape_cast %13 : vector<1x128xf32> to vector<1x1x128xf32>
    %c0_15 = arith.constant 0 : index
    %c0_16 = arith.constant 0 : index
    %c0_17 = arith.constant 0 : index
    %15 = vector.load %arg7[%c0_15, %c0_16, %c0_17] : memref<1x1x128xf32, #tpu.memory_space<vmem>>, vector<1x1x128xf32>
    tpu.vector_store %arg7[%c0_15, %c0_16, %c0_17], %14 {strides = array<i32>} : memref<1x1x128xf32, #tpu.memory_space<vmem>>, vector<1x1x128xf32>,
    %cst_18 = arith.constant dense<0.000000e+00> : vector<128xf32>
    %16 = vector.multi_reduction <add>, %4, %cst_18 [0] : vector<256x128xf32> to vector<128xf32>
    %17 = vector.shape_cast %16 : vector<128xf32> to vector<1x128xf32>
    %18 = vector.shape_cast %17 : vector<1x128xf32> to vector<1x1x128xf32>
    %c0_19 = arith.constant 0 : index
    %c0_20 = arith.constant 0 : index
    %c0_21 = arith.constant 0 : index
    %19 = vector.load %arg8[%c0_19, %c0_20, %c0_21] : memref<1x1x128xf32, #tpu.memory_space<vmem>>, vector<1x1x128xf32>
    tpu.vector_store %arg8[%c0_19, %c0_20, %c0_21], %18 {strides = array<i32>} : memref<1x1x128xf32, #tpu.memory_space<vmem>>, vector<1x1x128xf32>,
    %20 = arith.mulf %4, %4 : vector<256x128xf32>
    %cst_22 = arith.constant dense<0.000000e+00> : vector<128xf32>
    %21 = vector.multi_reduction <add>, %20, %cst_22 [0] : vector<256x128xf32> to vector<128xf32>
    %22 = vector.shape_cast %21 : vector<128xf32> to vector<1x128xf32>
    %23 = vector.shape_cast %22 : vector<1x128xf32> to vector<1x1x128xf32>
    %c0_23 = arith.constant 0 : index
    %c0_24 = arith.constant 0 : index
    %c0_25 = arith.constant 0 : index
    %24 = vector.load %arg9[%c0_23, %c0_24, %c0_25] : memref<1x1x128xf32, #tpu.memory_space<vmem>>, vector<1x1x128xf32>
    tpu.vector_store %arg9[%c0_23, %c0_24, %c0_25], %23 {strides = array<i32>} : memref<1x1x128xf32, #tpu.memory_space<vmem>>, vector<1x1x128xf32>,
    return
  }
  func.func @transform_0(%arg0: i32) -> (i32, i32) {
    %c0_i32 = arith.constant 0 : i32
    %c0_i32_0 = arith.constant 0 : i32
    return %arg0, %c0_i32 : i32, i32
  }
  func.func @transform_1(%arg0: i32) -> (i32, i32) {
    %c0_i32 = arith.constant 0 : i32
    %c0_i32_0 = arith.constant 0 : i32
    %c0_i32_1 = arith.constant 0 : i32
    return %c0_i32, %c0_i32_0 : i32, i32
  }
  func.func @transform_2(%arg0: i32) -> (i32, i32) {
    %c0_i32 = arith.constant 0 : i32
    %c0_i32_0 = arith.constant 0 : i32
    %c0_i32_1 = arith.constant 0 : i32
    return %c0_i32, %c0_i32_0 : i32, i32
  }
  func.func @transform_3(%arg0: i32) -> (i32, i32) {
    %c0_i32 = arith.constant 0 : i32
    %c0_i32_0 = arith.constant 0 : i32
    return %arg0, %c0_i32 : i32, i32
  }
  func.func @transform_4(%arg0: i32) -> (i32, i32) {
    %c0_i32 = arith.constant 0 : i32
    %c0_i32_0 = arith.constant 0 : i32
    return %arg0, %c0_i32 : i32, i32
  }
  func.func @transform_5(%arg0: i32) -> (i32, i32, i32) {
    %c0_i32 = arith.constant 0 : i32
    %c0_i32_0 = arith.constant 0 : i32
    %c0_i32_1 = arith.constant 0 : i32
    return %arg0, %c0_i32, %c0_i32_0 : i32, i32, i32
  }
  func.func @transform_6(%arg0: i32) -> (i32, i32, i32) {
    %c0_i32 = arith.constant 0 : i32
    %c0_i32_0 = arith.constant 0 : i32
    %c0_i32_1 = arith.constant 0 : i32
    return %arg0, %c0_i32, %c0_i32_0 : i32, i32, i32
  }
  func.func @transform_7(%arg0: i32) -> (i32, i32, i32) {
    %c0_i32 = arith.constant 0 : i32
    %c0_i32_0 = arith.constant 0 : i32
    %c0_i32_1 = arith.constant 0 : i32
    return %arg0, %c0_i32, %c0_i32_0 : i32, i32, i32
  }
  func.func @transform_8(%arg0: i32) -> (i32, i32, i32) {
    %c0_i32 = arith.constant 0 : i32
    %c0_i32_0 = arith.constant 0 : i32
    %c0_i32_1 = arith.constant 0 : i32
    return %arg0, %c0_i32, %c0_i32_0 : i32, i32, i32
  }
}

module attributes {stable_mosaic.version = 11 : i64} {
  func.func @_bn_mm_kernel(%arg0: i32, %arg1: memref<256x128xf32, #tpu.memory_space<vmem>>, %arg2: memref<1x128xf32, #tpu.memory_space<vmem>>, %arg3: memref<1x128xf32, #tpu.memory_space<vmem>>, %arg4: memref<128x128xbf16, #tpu.memory_space<vmem>>, %arg5: memref<256x128xf32, #tpu.memory_space<vmem>>, %arg6: memref<256x128xf32, #tpu.memory_space<vmem>>, %arg7: memref<1x1x128xf32, #tpu.memory_space<vmem>>, %arg8: memref<1x1x128xf32, #tpu.memory_space<vmem>>) attributes {dimension_semantics = [#tpu.dimension_semantics<parallel>], iteration_bounds = array<i64: 2>, scalar_prefetch = 0 : i64, scratch_operands = 0 : i64, tpu.core_type = #tpu.core_type<tc>, window_params = [{transform_indices = @transform_0, window_bounds = array<i64: 256, 128>}, {pipeline_mode = #tpu.pipeline_mode<synchronous>, transform_indices = @transform_1, window_bounds = array<i64: 1, 128>}, {pipeline_mode = #tpu.pipeline_mode<synchronous>, transform_indices = @transform_2, window_bounds = array<i64: 1, 128>}, {pipeline_mode = #tpu.pipeline_mode<synchronous>, transform_indices = @transform_3, window_bounds = array<i64: 128, 128>}, {transform_indices = @transform_4, window_bounds = array<i64: 256, 128>}, {transform_indices = @transform_5, window_bounds = array<i64: 256, 128>}, {transform_indices = @transform_6, window_bounds = array<i64: 1, 1, 128>}, {transform_indices = @transform_7, window_bounds = array<i64: 1, 1, 128>}]} {
    %c0 = arith.constant 0 : index
    %c0_0 = arith.constant 0 : index
    %0 = vector.load %arg1[%c0, %c0_0] : memref<256x128xf32, #tpu.memory_space<vmem>>, vector<256x128xf32>
    %c0_1 = arith.constant 0 : index
    %c0_2 = arith.constant 0 : index
    %1 = vector.load %arg2[%c0_1, %c0_2] : memref<1x128xf32, #tpu.memory_space<vmem>>, vector<1x128xf32>
    %c0_3 = arith.constant 0 : index
    %c0_4 = arith.constant 0 : index
    %2 = vector.load %arg3[%c0_3, %c0_4] : memref<1x128xf32, #tpu.memory_space<vmem>>, vector<1x128xf32>
    %3 = vector.broadcast %1 : vector<1x128xf32> to vector<256x128xf32>
    %4 = arith.mulf %0, %3 : vector<256x128xf32>
    %5 = vector.broadcast %2 : vector<1x128xf32> to vector<256x128xf32>
    %6 = arith.addf %4, %5 : vector<256x128xf32>
    %7 = arith.negf %6 : vector<256x128xf32>
    %8 = math.exp %7 : vector<256x128xf32>
    %cst = arith.constant 1.000000e+00 : f32
    %9 = vector.broadcast %cst : f32 to vector<256x128xf32>
    %10 = arith.addf %9, %8 : vector<256x128xf32>
    %11 = arith.divf %9, %10 : vector<256x128xf32>
    %12 = arith.mulf %6, %11 : vector<256x128xf32>
    %c0_5 = arith.constant 0 : index
    %c0_6 = arith.constant 0 : index
    %13 = vector.load %arg5[%c0_5, %c0_6] : memref<256x128xf32, #tpu.memory_space<vmem>>, vector<256x128xf32>
    tpu.vector_store %arg5[%c0_5, %c0_6], %12 {strides = array<i32>} : memref<256x128xf32, #tpu.memory_space<vmem>>, vector<256x128xf32>,
    %14 = arith.truncf %12 : vector<256x128xf32> to vector<256x128xbf16>
    %c0_7 = arith.constant 0 : index
    %c0_8 = arith.constant 0 : index
    %15 = vector.load %arg4[%c0_7, %c0_8] : memref<128x128xbf16, #tpu.memory_space<vmem>>, vector<128x128xbf16>
    %cst_9 = arith.constant dense<0.000000e+00> : vector<256x128xf32>
    %16 = tpu.matmul %14, %15, %cst_9 {dimension_numbers = #tpu.dot_dimension_numbers<[1], [0], [0], [1], [0, 0, 1, 1], [], []>} : vector<256x128xbf16>, vector<128x128xbf16>, vector<256x128xf32> -> vector<256x128xf32>
    %c0_10 = arith.constant 0 : index
    %c0_11 = arith.constant 0 : index
    %17 = vector.load %arg6[%c0_10, %c0_11] : memref<256x128xf32, #tpu.memory_space<vmem>>, vector<256x128xf32>
    tpu.vector_store %arg6[%c0_10, %c0_11], %16 {strides = array<i32>} : memref<256x128xf32, #tpu.memory_space<vmem>>, vector<256x128xf32>,
    %cst_12 = arith.constant dense<0.000000e+00> : vector<128xf32>
    %18 = vector.multi_reduction <add>, %16, %cst_12 [0] : vector<256x128xf32> to vector<128xf32>
    %19 = vector.shape_cast %18 : vector<128xf32> to vector<1x128xf32>
    %20 = vector.shape_cast %19 : vector<1x128xf32> to vector<1x1x128xf32>
    %c0_13 = arith.constant 0 : index
    %c0_14 = arith.constant 0 : index
    %c0_15 = arith.constant 0 : index
    %21 = vector.load %arg7[%c0_13, %c0_14, %c0_15] : memref<1x1x128xf32, #tpu.memory_space<vmem>>, vector<1x1x128xf32>
    tpu.vector_store %arg7[%c0_13, %c0_14, %c0_15], %20 {strides = array<i32>} : memref<1x1x128xf32, #tpu.memory_space<vmem>>, vector<1x1x128xf32>,
    %22 = arith.mulf %16, %16 : vector<256x128xf32>
    %cst_16 = arith.constant dense<0.000000e+00> : vector<128xf32>
    %23 = vector.multi_reduction <add>, %22, %cst_16 [0] : vector<256x128xf32> to vector<128xf32>
    %24 = vector.shape_cast %23 : vector<128xf32> to vector<1x128xf32>
    %25 = vector.shape_cast %24 : vector<1x128xf32> to vector<1x1x128xf32>
    %c0_17 = arith.constant 0 : index
    %c0_18 = arith.constant 0 : index
    %c0_19 = arith.constant 0 : index
    %26 = vector.load %arg8[%c0_17, %c0_18, %c0_19] : memref<1x1x128xf32, #tpu.memory_space<vmem>>, vector<1x1x128xf32>
    tpu.vector_store %arg8[%c0_17, %c0_18, %c0_19], %25 {strides = array<i32>} : memref<1x1x128xf32, #tpu.memory_space<vmem>>, vector<1x1x128xf32>,
    return
  }
  func.func @transform_0(%arg0: i32) -> (i32, i32) {
    %c0_i32 = arith.constant 0 : i32
    %c0_i32_0 = arith.constant 0 : i32
    return %arg0, %c0_i32 : i32, i32
  }
  func.func @transform_1(%arg0: i32) -> (i32, i32) {
    %c0_i32 = arith.constant 0 : i32
    %c0_i32_0 = arith.constant 0 : i32
    %c0_i32_1 = arith.constant 0 : i32
    return %c0_i32, %c0_i32_0 : i32, i32
  }
  func.func @transform_2(%arg0: i32) -> (i32, i32) {
    %c0_i32 = arith.constant 0 : i32
    %c0_i32_0 = arith.constant 0 : i32
    %c0_i32_1 = arith.constant 0 : i32
    return %c0_i32, %c0_i32_0 : i32, i32
  }
  func.func @transform_3(%arg0: i32) -> (i32, i32) {
    %c0_i32 = arith.constant 0 : i32
    %c0_i32_0 = arith.constant 0 : i32
    %c0_i32_1 = arith.constant 0 : i32
    return %c0_i32, %c0_i32_0 : i32, i32
  }
  func.func @transform_4(%arg0: i32) -> (i32, i32) {
    %c0_i32 = arith.constant 0 : i32
    %c0_i32_0 = arith.constant 0 : i32
    return %arg0, %c0_i32 : i32, i32
  }
  func.func @transform_5(%arg0: i32) -> (i32, i32) {
    %c0_i32 = arith.constant 0 : i32
    %c0_i32_0 = arith.constant 0 : i32
    return %arg0, %c0_i32 : i32, i32
  }
  func.func @transform_6(%arg0: i32) -> (i32, i32, i32) {
    %c0_i32 = arith.constant 0 : i32
    %c0_i32_0 = arith.constant 0 : i32
    %c0_i32_1 = arith.constant 0 : i32
    return %arg0, %c0_i32, %c0_i32_0 : i32, i32, i32
  }
  func.func @transform_7(%arg0: i32) -> (i32, i32, i32) {
    %c0_i32 = arith.constant 0 : i32
    %c0_i32_0 = arith.constant 0 : i32
    %c0_i32_1 = arith.constant 0 : i32
    return %arg0, %c0_i32, %c0_i32_0 : i32, i32, i32
  }
}

module attributes {stable_mosaic.version = 11 : i64} {
  func.func @_conv3x3_kernel(%arg0: i32, %arg1: memref<1x16x16x128xf32, #tpu.memory_space<vmem>>, %arg2: memref<1x128xf32, #tpu.memory_space<vmem>>, %arg3: memref<1x128xf32, #tpu.memory_space<vmem>>, %arg4: memref<9x128x128xbf16, #tpu.memory_space<vmem>>, %arg5: memref<1x16x16x128xf32, #tpu.memory_space<vmem>>, %arg6: memref<1x1x128xf32, #tpu.memory_space<vmem>>, %arg7: memref<1x1x128xf32, #tpu.memory_space<vmem>>, %arg8: memref<18x18x128xf32, #tpu.memory_space<vmem>>) attributes {dimension_semantics = [#tpu.dimension_semantics<parallel>], iteration_bounds = array<i64: 2>, scalar_prefetch = 0 : i64, scratch_operands = 1 : i64, tpu.core_type = #tpu.core_type<tc>, window_params = [{transform_indices = @transform_0, window_bounds = array<i64: 1, 16, 16, 128>}, {pipeline_mode = #tpu.pipeline_mode<synchronous>, transform_indices = @transform_1, window_bounds = array<i64: 1, 128>}, {pipeline_mode = #tpu.pipeline_mode<synchronous>, transform_indices = @transform_2, window_bounds = array<i64: 1, 128>}, {pipeline_mode = #tpu.pipeline_mode<synchronous>, transform_indices = @transform_3, window_bounds = array<i64: 9, 128, 128>}, {transform_indices = @transform_4, window_bounds = array<i64: 1, 16, 16, 128>}, {transform_indices = @transform_5, window_bounds = array<i64: 1, 1, 128>}, {transform_indices = @transform_6, window_bounds = array<i64: 1, 1, 128>}]} {
    %c0 = arith.constant 0 : index
    %c0_0 = arith.constant 0 : index
    %c0_1 = arith.constant 0 : index
    %c0_2 = arith.constant 0 : index
    %0 = vector.load %arg1[%c0, %c0_0, %c0_1, %c0_2] : memref<1x16x16x128xf32, #tpu.memory_space<vmem>>, vector<1x16x16x128xf32>
    %1 = vector.shape_cast %0 : vector<1x16x16x128xf32> to vector<16x16x128xf32>
    %c0_3 = arith.constant 0 : index
    %c0_4 = arith.constant 0 : index
    %2 = vector.load %arg2[%c0_3, %c0_4] : memref<1x128xf32, #tpu.memory_space<vmem>>, vector<1x128xf32>
    %c0_5 = arith.constant 0 : index
    %c0_6 = arith.constant 0 : index
    %3 = vector.load %arg3[%c0_5, %c0_6] : memref<1x128xf32, #tpu.memory_space<vmem>>, vector<1x128xf32>
    %4 = vector.shape_cast %2 : vector<1x128xf32> to vector<1x1x128xf32>
    %5 = vector.broadcast %4 : vector<1x1x128xf32> to vector<16x16x128xf32>
    %6 = arith.mulf %1, %5 : vector<16x16x128xf32>
    %7 = vector.shape_cast %3 : vector<1x128xf32> to vector<1x1x128xf32>
    %8 = vector.broadcast %7 : vector<1x1x128xf32> to vector<16x16x128xf32>
    %9 = arith.addf %6, %8 : vector<16x16x128xf32>
    %10 = arith.negf %9 : vector<16x16x128xf32>
    %11 = math.exp %10 : vector<16x16x128xf32>
    %cst = arith.constant 1.000000e+00 : f32
    %12 = vector.broadcast %cst : f32 to vector<16x16x128xf32>
    %13 = arith.addf %12, %11 : vector<16x16x128xf32>
    %14 = arith.divf %12, %13 : vector<16x16x128xf32>
    %15 = arith.mulf %9, %14 : vector<16x16x128xf32>
    %cst_7 = arith.constant 0.000000e+00 : f32
    %16 = vector.broadcast %cst_7 : f32 to vector<18x18x128xf32>
    %c0_8 = arith.constant 0 : index
    %c0_9 = arith.constant 0 : index
    %c0_10 = arith.constant 0 : index
    %17 = vector.load %arg8[%c0_8, %c0_9, %c0_10] : memref<18x18x128xf32, #tpu.memory_space<vmem>>, vector<18x18x128xf32>
    tpu.vector_store %arg8[%c0_8, %c0_9, %c0_10], %16 {strides = array<i32>} : memref<18x18x128xf32, #tpu.memory_space<vmem>>, vector<18x18x128xf32>,
    %c1 = arith.constant 1 : index
    %c1_11 = arith.constant 1 : index
    %c0_12 = arith.constant 0 : index
    %18 = vector.load %arg8[%c1, %c1_11, %c0_12] : memref<18x18x128xf32, #tpu.memory_space<vmem>>, vector<16x16x128xf32>
    tpu.vector_store %arg8[%c1, %c1_11, %c0_12], %15 {strides = array<i32>} : memref<18x18x128xf32, #tpu.memory_space<vmem>>, vector<16x16x128xf32>,
    %cst_13 = arith.constant 0.000000e+00 : f32
    %19 = vector.broadcast %cst_13 : f32 to vector<256x128xf32>
    %c0_14 = arith.constant 0 : index
    %c0_15 = arith.constant 0 : index
    %c0_16 = arith.constant 0 : index
    %20 = vector.load %arg8[%c0_14, %c0_15, %c0_16] : memref<18x18x128xf32, #tpu.memory_space<vmem>>, vector<16x16x128xf32>
    %21 = vector.shape_cast %20 : vector<16x16x128xf32> to vector<256x128xf32>
    %22 = arith.truncf %21 : vector<256x128xf32> to vector<256x128xbf16>
    %c0_17 = arith.constant 0 : index
    %c0_18 = arith.constant 0 : index
    %c0_19 = arith.constant 0 : index
    %23 = vector.load %arg4[%c0_17, %c0_18, %c0_19] : memref<9x128x128xbf16, #tpu.memory_space<vmem>>, vector<1x128x128xbf16>
    %24 = vector.shape_cast %23 : vector<1x128x128xbf16> to vector<128x128xbf16>
    %cst_20 = arith.constant dense<0.000000e+00> : vector<256x128xf32>
    %25 = tpu.matmul %22, %24, %cst_20 {dimension_numbers = #tpu.dot_dimension_numbers<[1], [0], [0], [1], [0, 0, 1, 1], [], []>} : vector<256x128xbf16>, vector<128x128xbf16>, vector<256x128xf32> -> vector<256x128xf32>
    %26 = arith.addf %19, %25 : vector<256x128xf32>
    %c0_21 = arith.constant 0 : index
    %c1_22 = arith.constant 1 : index
    %c0_23 = arith.constant 0 : index
    %27 = vector.load %arg8[%c0_21, %c1_22, %c0_23] : memref<18x18x128xf32, #tpu.memory_space<vmem>>, vector<16x16x128xf32>
    %28 = vector.shape_cast %27 : vector<16x16x128xf32> to vector<256x128xf32>
    %29 = arith.truncf %28 : vector<256x128xf32> to vector<256x128xbf16>
    %c1_24 = arith.constant 1 : index
    %c0_25 = arith.constant 0 : index
    %c0_26 = arith.constant 0 : index
    %30 = vector.load %arg4[%c1_24, %c0_25, %c0_26] : memref<9x128x128xbf16, #tpu.memory_space<vmem>>, vector<1x128x128xbf16>
    %31 = vector.shape_cast %30 : vector<1x128x128xbf16> to vector<128x128xbf16>
    %cst_27 = arith.constant dense<0.000000e+00> : vector<256x128xf32>
    %32 = tpu.matmul %29, %31, %cst_27 {dimension_numbers = #tpu.dot_dimension_numbers<[1], [0], [0], [1], [0, 0, 1, 1], [], []>} : vector<256x128xbf16>, vector<128x128xbf16>, vector<256x128xf32> -> vector<256x128xf32>
    %33 = arith.addf %26, %32 : vector<256x128xf32>
    %c0_28 = arith.constant 0 : index
    %c2 = arith.constant 2 : index
    %c0_29 = arith.constant 0 : index
    %34 = vector.load %arg8[%c0_28, %c2, %c0_29] : memref<18x18x128xf32, #tpu.memory_space<vmem>>, vector<16x16x128xf32>
    %35 = vector.shape_cast %34 : vector<16x16x128xf32> to vector<256x128xf32>
    %36 = arith.truncf %35 : vector<256x128xf32> to vector<256x128xbf16>
    %c2_30 = arith.constant 2 : index
    %c0_31 = arith.constant 0 : index
    %c0_32 = arith.constant 0 : index
    %37 = vector.load %arg4[%c2_30, %c0_31, %c0_32] : memref<9x128x128xbf16, #tpu.memory_space<vmem>>, vector<1x128x128xbf16>
    %38 = vector.shape_cast %37 : vector<1x128x128xbf16> to vector<128x128xbf16>
    %cst_33 = arith.constant dense<0.000000e+00> : vector<256x128xf32>
    %39 = tpu.matmul %36, %38, %cst_33 {dimension_numbers = #tpu.dot_dimension_numbers<[1], [0], [0], [1], [0, 0, 1, 1], [], []>} : vector<256x128xbf16>, vector<128x128xbf16>, vector<256x128xf32> -> vector<256x128xf32>
    %40 = arith.addf %33, %39 : vector<256x128xf32>
    %c1_34 = arith.constant 1 : index
    %c0_35 = arith.constant 0 : index
    %c0_36 = arith.constant 0 : index
    %41 = vector.load %arg8[%c1_34, %c0_35, %c0_36] : memref<18x18x128xf32, #tpu.memory_space<vmem>>, vector<16x16x128xf32>
    %42 = vector.shape_cast %41 : vector<16x16x128xf32> to vector<256x128xf32>
    %43 = arith.truncf %42 : vector<256x128xf32> to vector<256x128xbf16>
    %c3 = arith.constant 3 : index
    %c0_37 = arith.constant 0 : index
    %c0_38 = arith.constant 0 : index
    %44 = vector.load %arg4[%c3, %c0_37, %c0_38] : memref<9x128x128xbf16, #tpu.memory_space<vmem>>, vector<1x128x128xbf16>
    %45 = vector.shape_cast %44 : vector<1x128x128xbf16> to vector<128x128xbf16>
    %cst_39 = arith.constant dense<0.000000e+00> : vector<256x128xf32>
    %46 = tpu.matmul %43, %45, %cst_39 {dimension_numbers = #tpu.dot_dimension_numbers<[1], [0], [0], [1], [0, 0, 1, 1], [], []>} : vector<256x128xbf16>, vector<128x128xbf16>, vector<256x128xf32> -> vector<256x128xf32>
    %47 = arith.addf %40, %46 : vector<256x128xf32>
    %c1_40 = arith.constant 1 : index
    %c1_41 = arith.constant 1 : index
    %c0_42 = arith.constant 0 : index
    %48 = vector.load %arg8[%c1_40, %c1_41, %c0_42] : memref<18x18x128xf32, #tpu.memory_space<vmem>>, vector<16x16x128xf32>
    %49 = vector.shape_cast %48 : vector<16x16x128xf32> to vector<256x128xf32>
    %50 = arith.truncf %49 : vector<256x128xf32> to vector<256x128xbf16>
    %c4 = arith.constant 4 : index
    %c0_43 = arith.constant 0 : index
    %c0_44 = arith.constant 0 : index
    %51 = vector.load %arg4[%c4, %c0_43, %c0_44] : memref<9x128x128xbf16, #tpu.memory_space<vmem>>, vector<1x128x128xbf16>
    %52 = vector.shape_cast %51 : vector<1x128x128xbf16> to vector<128x128xbf16>
    %cst_45 = arith.constant dense<0.000000e+00> : vector<256x128xf32>
    %53 = tpu.matmul %50, %52, %cst_45 {dimension_numbers = #tpu.dot_dimension_numbers<[1], [0], [0], [1], [0, 0, 1, 1], [], []>} : vector<256x128xbf16>, vector<128x128xbf16>, vector<256x128xf32> -> vector<256x128xf32>
    %54 = arith.addf %47, %53 : vector<256x128xf32>
    %c1_46 = arith.constant 1 : index
    %c2_47 = arith.constant 2 : index
    %c0_48 = arith.constant 0 : index
    %55 = vector.load %arg8[%c1_46, %c2_47, %c0_48] : memref<18x18x128xf32, #tpu.memory_space<vmem>>, vector<16x16x128xf32>
    %56 = vector.shape_cast %55 : vector<16x16x128xf32> to vector<256x128xf32>
    %57 = arith.truncf %56 : vector<256x128xf32> to vector<256x128xbf16>
    %c5 = arith.constant 5 : index
    %c0_49 = arith.constant 0 : index
    %c0_50 = arith.constant 0 : index
    %58 = vector.load %arg4[%c5, %c0_49, %c0_50] : memref<9x128x128xbf16, #tpu.memory_space<vmem>>, vector<1x128x128xbf16>
    %59 = vector.shape_cast %58 : vector<1x128x128xbf16> to vector<128x128xbf16>
    %cst_51 = arith.constant dense<0.000000e+00> : vector<256x128xf32>
    %60 = tpu.matmul %57, %59, %cst_51 {dimension_numbers = #tpu.dot_dimension_numbers<[1], [0], [0], [1], [0, 0, 1, 1], [], []>} : vector<256x128xbf16>, vector<128x128xbf16>, vector<256x128xf32> -> vector<256x128xf32>
    %61 = arith.addf %54, %60 : vector<256x128xf32>
    %c2_52 = arith.constant 2 : index
    %c0_53 = arith.constant 0 : index
    %c0_54 = arith.constant 0 : index
    %62 = vector.load %arg8[%c2_52, %c0_53, %c0_54] : memref<18x18x128xf32, #tpu.memory_space<vmem>>, vector<16x16x128xf32>
    %63 = vector.shape_cast %62 : vector<16x16x128xf32> to vector<256x128xf32>
    %64 = arith.truncf %63 : vector<256x128xf32> to vector<256x128xbf16>
    %c6 = arith.constant 6 : index
    %c0_55 = arith.constant 0 : index
    %c0_56 = arith.constant 0 : index
    %65 = vector.load %arg4[%c6, %c0_55, %c0_56] : memref<9x128x128xbf16, #tpu.memory_space<vmem>>, vector<1x128x128xbf16>
    %66 = vector.shape_cast %65 : vector<1x128x128xbf16> to vector<128x128xbf16>
    %cst_57 = arith.constant dense<0.000000e+00> : vector<256x128xf32>
    %67 = tpu.matmul %64, %66, %cst_57 {dimension_numbers = #tpu.dot_dimension_numbers<[1], [0], [0], [1], [0, 0, 1, 1], [], []>} : vector<256x128xbf16>, vector<128x128xbf16>, vector<256x128xf32> -> vector<256x128xf32>
    %68 = arith.addf %61, %67 : vector<256x128xf32>
    %c2_58 = arith.constant 2 : index
    %c1_59 = arith.constant 1 : index
    %c0_60 = arith.constant 0 : index
    %69 = vector.load %arg8[%c2_58, %c1_59, %c0_60] : memref<18x18x128xf32, #tpu.memory_space<vmem>>, vector<16x16x128xf32>
    %70 = vector.shape_cast %69 : vector<16x16x128xf32> to vector<256x128xf32>
    %71 = arith.truncf %70 : vector<256x128xf32> to vector<256x128xbf16>
    %c7 = arith.constant 7 : index
    %c0_61 = arith.constant 0 : index
    %c0_62 = arith.constant 0 : index
    %72 = vector.load %arg4[%c7, %c0_61, %c0_62] : memref<9x128x128xbf16, #tpu.memory_space<vmem>>, vector<1x128x128xbf16>
    %73 = vector.shape_cast %72 : vector<1x128x128xbf16> to vector<128x128xbf16>
    %cst_63 = arith.constant dense<0.000000e+00> : vector<256x128xf32>
    %74 = tpu.matmul %71, %73, %cst_63 {dimension_numbers = #tpu.dot_dimension_numbers<[1], [0], [0], [1], [0, 0, 1, 1], [], []>} : vector<256x128xbf16>, vector<128x128xbf16>, vector<256x128xf32> -> vector<256x128xf32>
    %75 = arith.addf %68, %74 : vector<256x128xf32>
    %c2_64 = arith.constant 2 : index
    %c2_65 = arith.constant 2 : index
    %c0_66 = arith.constant 0 : index
    %76 = vector.load %arg8[%c2_64, %c2_65, %c0_66] : memref<18x18x128xf32, #tpu.memory_space<vmem>>, vector<16x16x128xf32>
    %77 = vector.shape_cast %76 : vector<16x16x128xf32> to vector<256x128xf32>
    %78 = arith.truncf %77 : vector<256x128xf32> to vector<256x128xbf16>
    %c8 = arith.constant 8 : index
    %c0_67 = arith.constant 0 : index
    %c0_68 = arith.constant 0 : index
    %79 = vector.load %arg4[%c8, %c0_67, %c0_68] : memref<9x128x128xbf16, #tpu.memory_space<vmem>>, vector<1x128x128xbf16>
    %80 = vector.shape_cast %79 : vector<1x128x128xbf16> to vector<128x128xbf16>
    %cst_69 = arith.constant dense<0.000000e+00> : vector<256x128xf32>
    %81 = tpu.matmul %78, %80, %cst_69 {dimension_numbers = #tpu.dot_dimension_numbers<[1], [0], [0], [1], [0, 0, 1, 1], [], []>} : vector<256x128xbf16>, vector<128x128xbf16>, vector<256x128xf32> -> vector<256x128xf32>
    %82 = arith.addf %75, %81 : vector<256x128xf32>
    %83 = vector.shape_cast %82 : vector<256x128xf32> to vector<16x16x128xf32>
    %c0_70 = arith.constant 0 : index
    %c0_71 = arith.constant 0 : index
    %c0_72 = arith.constant 0 : index
    %c0_73 = arith.constant 0 : index
    %84 = vector.load %arg5[%c0_70, %c0_71, %c0_72, %c0_73] : memref<1x16x16x128xf32, #tpu.memory_space<vmem>>, vector<1x16x16x128xf32>
    %85 = vector.shape_cast %84 : vector<1x16x16x128xf32> to vector<16x16x128xf32>
    %86 = vector.shape_cast %83 : vector<16x16x128xf32> to vector<1x16x16x128xf32>
    tpu.vector_store %arg5[%c0_70, %c0_71, %c0_72, %c0_73], %86 {strides = array<i32>} : memref<1x16x16x128xf32, #tpu.memory_space<vmem>>, vector<1x16x16x128xf32>,
    %cst_74 = arith.constant dense<0.000000e+00> : vector<128xf32>
    %87 = vector.multi_reduction <add>, %82, %cst_74 [0] : vector<256x128xf32> to vector<128xf32>
    %88 = vector.shape_cast %87 : vector<128xf32> to vector<1x128xf32>
    %89 = vector.shape_cast %88 : vector<1x128xf32> to vector<1x1x128xf32>
    %c0_75 = arith.constant 0 : index
    %c0_76 = arith.constant 0 : index
    %c0_77 = arith.constant 0 : index
    %90 = vector.load %arg6[%c0_75, %c0_76, %c0_77] : memref<1x1x128xf32, #tpu.memory_space<vmem>>, vector<1x1x128xf32>
    tpu.vector_store %arg6[%c0_75, %c0_76, %c0_77], %89 {strides = array<i32>} : memref<1x1x128xf32, #tpu.memory_space<vmem>>, vector<1x1x128xf32>,
    %91 = arith.mulf %82, %82 : vector<256x128xf32>
    %cst_78 = arith.constant dense<0.000000e+00> : vector<128xf32>
    %92 = vector.multi_reduction <add>, %91, %cst_78 [0] : vector<256x128xf32> to vector<128xf32>
    %93 = vector.shape_cast %92 : vector<128xf32> to vector<1x128xf32>
    %94 = vector.shape_cast %93 : vector<1x128xf32> to vector<1x1x128xf32>
    %c0_79 = arith.constant 0 : index
    %c0_80 = arith.constant 0 : index
    %c0_81 = arith.constant 0 : index
    %95 = vector.load %arg7[%c0_79, %c0_80, %c0_81] : memref<1x1x128xf32, #tpu.memory_space<vmem>>, vector<1x1x128xf32>
    tpu.vector_store %arg7[%c0_79, %c0_80, %c0_81], %94 {strides = array<i32>} : memref<1x1x128xf32, #tpu.memory_space<vmem>>, vector<1x1x128xf32>,
    return
  }
  func.func @transform_0(%arg0: i32) -> (i32, i32, i32, i32) {
    %c0_i32 = arith.constant 0 : i32
    %c0_i32_0 = arith.constant 0 : i32
    %c0_i32_1 = arith.constant 0 : i32
    %c0_i32_2 = arith.constant 0 : i32
    return %arg0, %c0_i32, %c0_i32_0, %c0_i32_1 : i32, i32, i32, i32
  }
  func.func @transform_1(%arg0: i32) -> (i32, i32) {
    %c0_i32 = arith.constant 0 : i32
    %c0_i32_0 = arith.constant 0 : i32
    %c0_i32_1 = arith.constant 0 : i32
    return %c0_i32, %c0_i32_0 : i32, i32
  }
  func.func @transform_2(%arg0: i32) -> (i32, i32) {
    %c0_i32 = arith.constant 0 : i32
    %c0_i32_0 = arith.constant 0 : i32
    %c0_i32_1 = arith.constant 0 : i32
    return %c0_i32, %c0_i32_0 : i32, i32
  }
  func.func @transform_3(%arg0: i32) -> (i32, i32, i32) {
    %c0_i32 = arith.constant 0 : i32
    %c0_i32_0 = arith.constant 0 : i32
    %c0_i32_1 = arith.constant 0 : i32
    %c0_i32_2 = arith.constant 0 : i32
    return %c0_i32, %c0_i32_0, %c0_i32_1 : i32, i32, i32
  }
  func.func @transform_4(%arg0: i32) -> (i32, i32, i32, i32) {
    %c0_i32 = arith.constant 0 : i32
    %c0_i32_0 = arith.constant 0 : i32
    %c0_i32_1 = arith.constant 0 : i32
    %c0_i32_2 = arith.constant 0 : i32
    return %arg0, %c0_i32, %c0_i32_0, %c0_i32_1 : i32, i32, i32, i32
  }
  func.func @transform_5(%arg0: i32) -> (i32, i32, i32) {
    %c0_i32 = arith.constant 0 : i32
    %c0_i32_0 = arith.constant 0 : i32
    %c0_i32_1 = arith.constant 0 : i32
    return %arg0, %c0_i32, %c0_i32_0 : i32, i32, i32
  }
  func.func @transform_6(%arg0: i32) -> (i32, i32, i32) {
    %c0_i32 = arith.constant 0 : i32
    %c0_i32_0 = arith.constant 0 : i32
    %c0_i32_1 = arith.constant 0 : i32
    return %arg0, %c0_i32, %c0_i32_0 : i32, i32, i32
  }
}

module attributes {stable_mosaic.version = 11 : i64} {
  func.func @_res_bn_mm_kernel(%arg0: i32, %arg1: memref<256x128xf32, #tpu.memory_space<vmem>>, %arg2: memref<256x128xf32, #tpu.memory_space<vmem>>, %arg3: memref<1x128xf32, #tpu.memory_space<vmem>>, %arg4: memref<1x128xf32, #tpu.memory_space<vmem>>, %arg5: memref<128x128xbf16, #tpu.memory_space<vmem>>, %arg6: memref<256x128xf32, #tpu.memory_space<vmem>>, %arg7: memref<256x128xf32, #tpu.memory_space<vmem>>, %arg8: memref<1x1x128xf32, #tpu.memory_space<vmem>>, %arg9: memref<1x1x128xf32, #tpu.memory_space<vmem>>) attributes {dimension_semantics = [#tpu.dimension_semantics<parallel>], iteration_bounds = array<i64: 2>, scalar_prefetch = 0 : i64, scratch_operands = 0 : i64, tpu.core_type = #tpu.core_type<tc>, window_params = [{transform_indices = @transform_0, window_bounds = array<i64: 256, 128>}, {transform_indices = @transform_1, window_bounds = array<i64: 256, 128>}, {pipeline_mode = #tpu.pipeline_mode<synchronous>, transform_indices = @transform_2, window_bounds = array<i64: 1, 128>}, {pipeline_mode = #tpu.pipeline_mode<synchronous>, transform_indices = @transform_3, window_bounds = array<i64: 1, 128>}, {pipeline_mode = #tpu.pipeline_mode<synchronous>, transform_indices = @transform_4, window_bounds = array<i64: 128, 128>}, {transform_indices = @transform_5, window_bounds = array<i64: 256, 128>}, {transform_indices = @transform_6, window_bounds = array<i64: 256, 128>}, {transform_indices = @transform_7, window_bounds = array<i64: 1, 1, 128>}, {transform_indices = @transform_8, window_bounds = array<i64: 1, 1, 128>}]} {
    %c0 = arith.constant 0 : index
    %c0_0 = arith.constant 0 : index
    %0 = vector.load %arg1[%c0, %c0_0] : memref<256x128xf32, #tpu.memory_space<vmem>>, vector<256x128xf32>
    %c0_1 = arith.constant 0 : index
    %c0_2 = arith.constant 0 : index
    %1 = vector.load %arg2[%c0_1, %c0_2] : memref<256x128xf32, #tpu.memory_space<vmem>>, vector<256x128xf32>
    %c0_3 = arith.constant 0 : index
    %c0_4 = arith.constant 0 : index
    %2 = vector.load %arg3[%c0_3, %c0_4] : memref<1x128xf32, #tpu.memory_space<vmem>>, vector<1x128xf32>
    %c0_5 = arith.constant 0 : index
    %c0_6 = arith.constant 0 : index
    %3 = vector.load %arg4[%c0_5, %c0_6] : memref<1x128xf32, #tpu.memory_space<vmem>>, vector<1x128xf32>
    %4 = vector.broadcast %2 : vector<1x128xf32> to vector<256x128xf32>
    %5 = arith.mulf %1, %4 : vector<256x128xf32>
    %6 = vector.broadcast %3 : vector<1x128xf32> to vector<256x128xf32>
    %7 = arith.addf %5, %6 : vector<256x128xf32>
    %8 = arith.negf %7 : vector<256x128xf32>
    %9 = math.exp %8 : vector<256x128xf32>
    %cst = arith.constant 1.000000e+00 : f32
    %10 = vector.broadcast %cst : f32 to vector<256x128xf32>
    %11 = arith.addf %10, %9 : vector<256x128xf32>
    %12 = arith.divf %10, %11 : vector<256x128xf32>
    %13 = arith.mulf %7, %12 : vector<256x128xf32>
    %14 = arith.addf %0, %13 : vector<256x128xf32>
    %c0_7 = arith.constant 0 : index
    %c0_8 = arith.constant 0 : index
    %15 = vector.load %arg6[%c0_7, %c0_8] : memref<256x128xf32, #tpu.memory_space<vmem>>, vector<256x128xf32>
    tpu.vector_store %arg6[%c0_7, %c0_8], %14 {strides = array<i32>} : memref<256x128xf32, #tpu.memory_space<vmem>>, vector<256x128xf32>,
    %16 = arith.truncf %14 : vector<256x128xf32> to vector<256x128xbf16>
    %c0_9 = arith.constant 0 : index
    %c0_10 = arith.constant 0 : index
    %17 = vector.load %arg5[%c0_9, %c0_10] : memref<128x128xbf16, #tpu.memory_space<vmem>>, vector<128x128xbf16>
    %cst_11 = arith.constant dense<0.000000e+00> : vector<256x128xf32>
    %18 = tpu.matmul %16, %17, %cst_11 {dimension_numbers = #tpu.dot_dimension_numbers<[1], [0], [0], [1], [0, 0, 1, 1], [], []>} : vector<256x128xbf16>, vector<128x128xbf16>, vector<256x128xf32> -> vector<256x128xf32>
    %c0_12 = arith.constant 0 : index
    %c0_13 = arith.constant 0 : index
    %19 = vector.load %arg7[%c0_12, %c0_13] : memref<256x128xf32, #tpu.memory_space<vmem>>, vector<256x128xf32>
    tpu.vector_store %arg7[%c0_12, %c0_13], %18 {strides = array<i32>} : memref<256x128xf32, #tpu.memory_space<vmem>>, vector<256x128xf32>,
    %cst_14 = arith.constant dense<0.000000e+00> : vector<128xf32>
    %20 = vector.multi_reduction <add>, %18, %cst_14 [0] : vector<256x128xf32> to vector<128xf32>
    %21 = vector.shape_cast %20 : vector<128xf32> to vector<1x128xf32>
    %22 = vector.shape_cast %21 : vector<1x128xf32> to vector<1x1x128xf32>
    %c0_15 = arith.constant 0 : index
    %c0_16 = arith.constant 0 : index
    %c0_17 = arith.constant 0 : index
    %23 = vector.load %arg8[%c0_15, %c0_16, %c0_17] : memref<1x1x128xf32, #tpu.memory_space<vmem>>, vector<1x1x128xf32>
    tpu.vector_store %arg8[%c0_15, %c0_16, %c0_17], %22 {strides = array<i32>} : memref<1x1x128xf32, #tpu.memory_space<vmem>>, vector<1x1x128xf32>,
    %24 = arith.mulf %18, %18 : vector<256x128xf32>
    %cst_18 = arith.constant dense<0.000000e+00> : vector<128xf32>
    %25 = vector.multi_reduction <add>, %24, %cst_18 [0] : vector<256x128xf32> to vector<128xf32>
    %26 = vector.shape_cast %25 : vector<128xf32> to vector<1x128xf32>
    %27 = vector.shape_cast %26 : vector<1x128xf32> to vector<1x1x128xf32>
    %c0_19 = arith.constant 0 : index
    %c0_20 = arith.constant 0 : index
    %c0_21 = arith.constant 0 : index
    %28 = vector.load %arg9[%c0_19, %c0_20, %c0_21] : memref<1x1x128xf32, #tpu.memory_space<vmem>>, vector<1x1x128xf32>
    tpu.vector_store %arg9[%c0_19, %c0_20, %c0_21], %27 {strides = array<i32>} : memref<1x1x128xf32, #tpu.memory_space<vmem>>, vector<1x1x128xf32>,
    return
  }
  func.func @transform_0(%arg0: i32) -> (i32, i32) {
    %c0_i32 = arith.constant 0 : i32
    %c0_i32_0 = arith.constant 0 : i32
    return %arg0, %c0_i32 : i32, i32
  }
  func.func @transform_1(%arg0: i32) -> (i32, i32) {
    %c0_i32 = arith.constant 0 : i32
    %c0_i32_0 = arith.constant 0 : i32
    return %arg0, %c0_i32 : i32, i32
  }
  func.func @transform_2(%arg0: i32) -> (i32, i32) {
    %c0_i32 = arith.constant 0 : i32
    %c0_i32_0 = arith.constant 0 : i32
    %c0_i32_1 = arith.constant 0 : i32
    return %c0_i32, %c0_i32_0 : i32, i32
  }
  func.func @transform_3(%arg0: i32) -> (i32, i32) {
    %c0_i32 = arith.constant 0 : i32
    %c0_i32_0 = arith.constant 0 : i32
    %c0_i32_1 = arith.constant 0 : i32
    return %c0_i32, %c0_i32_0 : i32, i32
  }
  func.func @transform_4(%arg0: i32) -> (i32, i32) {
    %c0_i32 = arith.constant 0 : i32
    %c0_i32_0 = arith.constant 0 : i32
    %c0_i32_1 = arith.constant 0 : i32
    return %c0_i32, %c0_i32_0 : i32, i32
  }
  func.func @transform_5(%arg0: i32) -> (i32, i32) {
    %c0_i32 = arith.constant 0 : i32
    %c0_i32_0 = arith.constant 0 : i32
    return %arg0, %c0_i32 : i32, i32
  }
  func.func @transform_6(%arg0: i32) -> (i32, i32) {
    %c0_i32 = arith.constant 0 : i32
    %c0_i32_0 = arith.constant 0 : i32
    return %arg0, %c0_i32 : i32, i32
  }
  func.func @transform_7(%arg0: i32) -> (i32, i32, i32) {
    %c0_i32 = arith.constant 0 : i32
    %c0_i32_0 = arith.constant 0 : i32
    %c0_i32_1 = arith.constant 0 : i32
    return %arg0, %c0_i32, %c0_i32_0 : i32, i32, i32
  }
  func.func @transform_8(%arg0: i32) -> (i32, i32, i32) {
    %c0_i32 = arith.constant 0 : i32
    %c0_i32_0 = arith.constant 0 : i32
    %c0_i32_1 = arith.constant 0 : i32
    return %arg0, %c0_i32, %c0_i32_0 : i32, i32, i32
  }
}

module attributes {stable_mosaic.version = 11 : i64} {
  func.func @_bn_act_kernel(%arg0: i32, %arg1: memref<256x128xf32, #tpu.memory_space<vmem>>, %arg2: memref<1x128xf32, #tpu.memory_space<vmem>>, %arg3: memref<1x128xf32, #tpu.memory_space<vmem>>, %arg4: memref<256x128xf32, #tpu.memory_space<vmem>>) attributes {dimension_semantics = [#tpu.dimension_semantics<parallel>], iteration_bounds = array<i64: 2>, scalar_prefetch = 0 : i64, scratch_operands = 0 : i64, tpu.core_type = #tpu.core_type<tc>, window_params = [{transform_indices = @transform_0, window_bounds = array<i64: 256, 128>}, {pipeline_mode = #tpu.pipeline_mode<synchronous>, transform_indices = @transform_1, window_bounds = array<i64: 1, 128>}, {pipeline_mode = #tpu.pipeline_mode<synchronous>, transform_indices = @transform_2, window_bounds = array<i64: 1, 128>}, {transform_indices = @transform_3, window_bounds = array<i64: 256, 128>}]} {
    %c0 = arith.constant 0 : index
    %c0_0 = arith.constant 0 : index
    %0 = vector.load %arg1[%c0, %c0_0] : memref<256x128xf32, #tpu.memory_space<vmem>>, vector<256x128xf32>
    %c0_1 = arith.constant 0 : index
    %c0_2 = arith.constant 0 : index
    %1 = vector.load %arg2[%c0_1, %c0_2] : memref<1x128xf32, #tpu.memory_space<vmem>>, vector<1x128xf32>
    %c0_3 = arith.constant 0 : index
    %c0_4 = arith.constant 0 : index
    %2 = vector.load %arg3[%c0_3, %c0_4] : memref<1x128xf32, #tpu.memory_space<vmem>>, vector<1x128xf32>
    %3 = vector.broadcast %1 : vector<1x128xf32> to vector<256x128xf32>
    %4 = arith.mulf %0, %3 : vector<256x128xf32>
    %5 = vector.broadcast %2 : vector<1x128xf32> to vector<256x128xf32>
    %6 = arith.addf %4, %5 : vector<256x128xf32>
    %7 = arith.negf %6 : vector<256x128xf32>
    %8 = math.exp %7 : vector<256x128xf32>
    %cst = arith.constant 1.000000e+00 : f32
    %9 = vector.broadcast %cst : f32 to vector<256x128xf32>
    %10 = arith.addf %9, %8 : vector<256x128xf32>
    %11 = arith.divf %9, %10 : vector<256x128xf32>
    %12 = arith.mulf %6, %11 : vector<256x128xf32>
    %c0_5 = arith.constant 0 : index
    %c0_6 = arith.constant 0 : index
    %13 = vector.load %arg4[%c0_5, %c0_6] : memref<256x128xf32, #tpu.memory_space<vmem>>, vector<256x128xf32>
    tpu.vector_store %arg4[%c0_5, %c0_6], %12 {strides = array<i32>} : memref<256x128xf32, #tpu.memory_space<vmem>>, vector<256x128xf32>,
    return
  }
  func.func @transform_0(%arg0: i32) -> (i32, i32) {
    %c0_i32 = arith.constant 0 : i32
    %c0_i32_0 = arith.constant 0 : i32
    return %arg0, %c0_i32 : i32, i32
  }
  func.func @transform_1(%arg0: i32) -> (i32, i32) {
    %c0_i32 = arith.constant 0 : i32
    %c0_i32_0 = arith.constant 0 : i32
    %c0_i32_1 = arith.constant 0 : i32
    return %c0_i32, %c0_i32_0 : i32, i32
  }
  func.func @transform_2(%arg0: i32) -> (i32, i32) {
    %c0_i32 = arith.constant 0 : i32
    %c0_i32_0 = arith.constant 0 : i32
    %c0_i32_1 = arith.constant 0 : i32
    return %c0_i32, %c0_i32_0 : i32, i32
  }
  func.func @transform_3(%arg0: i32) -> (i32, i32) {
    %c0_i32 = arith.constant 0 : i32
    %c0_i32_0 = arith.constant 0 : i32
    return %arg0, %c0_i32 : i32, i32
  }
}

module attributes {stable_mosaic.version = 11 : i64} {
  func.func @_cat_mm_kernel(%arg0: i32, %arg1: memref<256x128xf32, #tpu.memory_space<vmem>>, %arg2: memref<256x128xf32, #tpu.memory_space<vmem>>, %arg3: memref<1x128xf32, #tpu.memory_space<vmem>>, %arg4: memref<1x128xf32, #tpu.memory_space<vmem>>, %arg5: memref<1x128xf32, #tpu.memory_space<vmem>>, %arg6: memref<1x128xf32, #tpu.memory_space<vmem>>, %arg7: memref<128x128xbf16, #tpu.memory_space<vmem>>, %arg8: memref<128x128xbf16, #tpu.memory_space<vmem>>, %arg9: memref<256x128xf32, #tpu.memory_space<vmem>>, %arg10: memref<1x1x128xf32, #tpu.memory_space<vmem>>, %arg11: memref<1x1x128xf32, #tpu.memory_space<vmem>>) attributes {dimension_semantics = [#tpu.dimension_semantics<parallel>], iteration_bounds = array<i64: 2>, scalar_prefetch = 0 : i64, scratch_operands = 0 : i64, tpu.core_type = #tpu.core_type<tc>, window_params = [{transform_indices = @transform_0, window_bounds = array<i64: 256, 128>}, {transform_indices = @transform_1, window_bounds = array<i64: 256, 128>}, {pipeline_mode = #tpu.pipeline_mode<synchronous>, transform_indices = @transform_2, window_bounds = array<i64: 1, 128>}, {pipeline_mode = #tpu.pipeline_mode<synchronous>, transform_indices = @transform_3, window_bounds = array<i64: 1, 128>}, {pipeline_mode = #tpu.pipeline_mode<synchronous>, transform_indices = @transform_4, window_bounds = array<i64: 1, 128>}, {pipeline_mode = #tpu.pipeline_mode<synchronous>, transform_indices = @transform_5, window_bounds = array<i64: 1, 128>}, {pipeline_mode = #tpu.pipeline_mode<synchronous>, transform_indices = @transform_6, window_bounds = array<i64: 128, 128>}, {pipeline_mode = #tpu.pipeline_mode<synchronous>, transform_indices = @transform_7, window_bounds = array<i64: 128, 128>}, {transform_indices = @transform_8, window_bounds = array<i64: 256, 128>}, {transform_indices = @transform_9, window_bounds = array<i64: 1, 1, 128>}, {transform_indices = @transform_10, window_bounds = array<i64: 1, 1, 128>}]} {
    %c0 = arith.constant 0 : index
    %c0_0 = arith.constant 0 : index
    %0 = vector.load %arg1[%c0, %c0_0] : memref<256x128xf32, #tpu.memory_space<vmem>>, vector<256x128xf32>
    %c0_1 = arith.constant 0 : index
    %c0_2 = arith.constant 0 : index
    %1 = vector.load %arg3[%c0_1, %c0_2] : memref<1x128xf32, #tpu.memory_space<vmem>>, vector<1x128xf32>
    %c0_3 = arith.constant 0 : index
    %c0_4 = arith.constant 0 : index
    %2 = vector.load %arg4[%c0_3, %c0_4] : memref<1x128xf32, #tpu.memory_space<vmem>>, vector<1x128xf32>
    %3 = vector.broadcast %1 : vector<1x128xf32> to vector<256x128xf32>
    %4 = arith.mulf %0, %3 : vector<256x128xf32>
    %5 = vector.broadcast %2 : vector<1x128xf32> to vector<256x128xf32>
    %6 = arith.addf %4, %5 : vector<256x128xf32>
    %7 = arith.negf %6 : vector<256x128xf32>
    %8 = math.exp %7 : vector<256x128xf32>
    %cst = arith.constant 1.000000e+00 : f32
    %9 = vector.broadcast %cst : f32 to vector<256x128xf32>
    %10 = arith.addf %9, %8 : vector<256x128xf32>
    %11 = arith.divf %9, %10 : vector<256x128xf32>
    %12 = arith.mulf %6, %11 : vector<256x128xf32>
    %13 = arith.truncf %12 : vector<256x128xf32> to vector<256x128xbf16>
    %c0_5 = arith.constant 0 : index
    %c0_6 = arith.constant 0 : index
    %14 = vector.load %arg7[%c0_5, %c0_6] : memref<128x128xbf16, #tpu.memory_space<vmem>>, vector<128x128xbf16>
    %cst_7 = arith.constant dense<0.000000e+00> : vector<256x128xf32>
    %15 = tpu.matmul %13, %14, %cst_7 {dimension_numbers = #tpu.dot_dimension_numbers<[1], [0], [0], [1], [0, 0, 1, 1], [], []>} : vector<256x128xbf16>, vector<128x128xbf16>, vector<256x128xf32> -> vector<256x128xf32>
    %c0_8 = arith.constant 0 : index
    %c0_9 = arith.constant 0 : index
    %16 = vector.load %arg2[%c0_8, %c0_9] : memref<256x128xf32, #tpu.memory_space<vmem>>, vector<256x128xf32>
    %c0_10 = arith.constant 0 : index
    %c0_11 = arith.constant 0 : index
    %17 = vector.load %arg5[%c0_10, %c0_11] : memref<1x128xf32, #tpu.memory_space<vmem>>, vector<1x128xf32>
    %c0_12 = arith.constant 0 : index
    %c0_13 = arith.constant 0 : index
    %18 = vector.load %arg6[%c0_12, %c0_13] : memref<1x128xf32, #tpu.memory_space<vmem>>, vector<1x128xf32>
    %19 = vector.broadcast %17 : vector<1x128xf32> to vector<256x128xf32>
    %20 = arith.mulf %16, %19 : vector<256x128xf32>
    %21 = vector.broadcast %18 : vector<1x128xf32> to vector<256x128xf32>
    %22 = arith.addf %20, %21 : vector<256x128xf32>
    %23 = arith.negf %22 : vector<256x128xf32>
    %24 = math.exp %23 : vector<256x128xf32>
    %cst_14 = arith.constant 1.000000e+00 : f32
    %25 = vector.broadcast %cst_14 : f32 to vector<256x128xf32>
    %26 = arith.addf %25, %24 : vector<256x128xf32>
    %27 = arith.divf %25, %26 : vector<256x128xf32>
    %28 = arith.mulf %22, %27 : vector<256x128xf32>
    %29 = arith.truncf %28 : vector<256x128xf32> to vector<256x128xbf16>
    %c0_15 = arith.constant 0 : index
    %c0_16 = arith.constant 0 : index
    %30 = vector.load %arg8[%c0_15, %c0_16] : memref<128x128xbf16, #tpu.memory_space<vmem>>, vector<128x128xbf16>
    %cst_17 = arith.constant dense<0.000000e+00> : vector<256x128xf32>
    %31 = tpu.matmul %29, %30, %cst_17 {dimension_numbers = #tpu.dot_dimension_numbers<[1], [0], [0], [1], [0, 0, 1, 1], [], []>} : vector<256x128xbf16>, vector<128x128xbf16>, vector<256x128xf32> -> vector<256x128xf32>
    %32 = arith.addf %15, %31 : vector<256x128xf32>
    %c0_18 = arith.constant 0 : index
    %c0_19 = arith.constant 0 : index
    %33 = vector.load %arg9[%c0_18, %c0_19] : memref<256x128xf32, #tpu.memory_space<vmem>>, vector<256x128xf32>
    tpu.vector_store %arg9[%c0_18, %c0_19], %32 {strides = array<i32>} : memref<256x128xf32, #tpu.memory_space<vmem>>, vector<256x128xf32>,
    %cst_20 = arith.constant dense<0.000000e+00> : vector<128xf32>
    %34 = vector.multi_reduction <add>, %32, %cst_20 [0] : vector<256x128xf32> to vector<128xf32>
    %35 = vector.shape_cast %34 : vector<128xf32> to vector<1x128xf32>
    %36 = vector.shape_cast %35 : vector<1x128xf32> to vector<1x1x128xf32>
    %c0_21 = arith.constant 0 : index
    %c0_22 = arith.constant 0 : index
    %c0_23 = arith.constant 0 : index
    %37 = vector.load %arg10[%c0_21, %c0_22, %c0_23] : memref<1x1x128xf32, #tpu.memory_space<vmem>>, vector<1x1x128xf32>
    tpu.vector_store %arg10[%c0_21, %c0_22, %c0_23], %36 {strides = array<i32>} : memref<1x1x128xf32, #tpu.memory_space<vmem>>, vector<1x1x128xf32>,
    %38 = arith.mulf %32, %32 : vector<256x128xf32>
    %cst_24 = arith.constant dense<0.000000e+00> : vector<128xf32>
    %39 = vector.multi_reduction <add>, %38, %cst_24 [0] : vector<256x128xf32> to vector<128xf32>
    %40 = vector.shape_cast %39 : vector<128xf32> to vector<1x128xf32>
    %41 = vector.shape_cast %40 : vector<1x128xf32> to vector<1x1x128xf32>
    %c0_25 = arith.constant 0 : index
    %c0_26 = arith.constant 0 : index
    %c0_27 = arith.constant 0 : index
    %42 = vector.load %arg11[%c0_25, %c0_26, %c0_27] : memref<1x1x128xf32, #tpu.memory_space<vmem>>, vector<1x1x128xf32>
    tpu.vector_store %arg11[%c0_25, %c0_26, %c0_27], %41 {strides = array<i32>} : memref<1x1x128xf32, #tpu.memory_space<vmem>>, vector<1x1x128xf32>,
    return
  }
  func.func @transform_0(%arg0: i32) -> (i32, i32) {
    %c0_i32 = arith.constant 0 : i32
    %c0_i32_0 = arith.constant 0 : i32
    return %arg0, %c0_i32 : i32, i32
  }
  func.func @transform_1(%arg0: i32) -> (i32, i32) {
    %c0_i32 = arith.constant 0 : i32
    %c0_i32_0 = arith.constant 0 : i32
    return %arg0, %c0_i32 : i32, i32
  }
  func.func @transform_2(%arg0: i32) -> (i32, i32) {
    %c0_i32 = arith.constant 0 : i32
    %c0_i32_0 = arith.constant 0 : i32
    %c0_i32_1 = arith.constant 0 : i32
    return %c0_i32, %c0_i32_0 : i32, i32
  }
  func.func @transform_3(%arg0: i32) -> (i32, i32) {
    %c0_i32 = arith.constant 0 : i32
    %c0_i32_0 = arith.constant 0 : i32
    %c0_i32_1 = arith.constant 0 : i32
    return %c0_i32, %c0_i32_0 : i32, i32
  }
  func.func @transform_4(%arg0: i32) -> (i32, i32) {
    %c0_i32 = arith.constant 0 : i32
    %c0_i32_0 = arith.constant 0 : i32
    %c0_i32_1 = arith.constant 0 : i32
    return %c0_i32, %c0_i32_0 : i32, i32
  }
  func.func @transform_5(%arg0: i32) -> (i32, i32) {
    %c0_i32 = arith.constant 0 : i32
    %c0_i32_0 = arith.constant 0 : i32
    %c0_i32_1 = arith.constant 0 : i32
    return %c0_i32, %c0_i32_0 : i32, i32
  }
  func.func @transform_6(%arg0: i32) -> (i32, i32) {
    %c0_i32 = arith.constant 0 : i32
    %c0_i32_0 = arith.constant 0 : i32
    %c0_i32_1 = arith.constant 0 : i32
    return %c0_i32, %c0_i32_0 : i32, i32
  }
  func.func @transform_7(%arg0: i32) -> (i32, i32) {
    %c0_i32 = arith.constant 0 : i32
    %c0_i32_0 = arith.constant 0 : i32
    %c0_i32_1 = arith.constant 0 : i32
    return %c0_i32, %c0_i32_0 : i32, i32
  }
  func.func @transform_8(%arg0: i32) -> (i32, i32) {
    %c0_i32 = arith.constant 0 : i32
    %c0_i32_0 = arith.constant 0 : i32
    return %arg0, %c0_i32 : i32, i32
  }
  func.func @transform_9(%arg0: i32) -> (i32, i32, i32) {
    %c0_i32 = arith.constant 0 : i32
    %c0_i32_0 = arith.constant 0 : i32
    %c0_i32_1 = arith.constant 0 : i32
    return %arg0, %c0_i32, %c0_i32_0 : i32, i32, i32
  }
  func.func @transform_10(%arg0: i32) -> (i32, i32, i32) {
    %c0_i32 = arith.constant 0 : i32
    %c0_i32_0 = arith.constant 0 : i32
    %c0_i32_1 = arith.constant 0 : i32
    return %arg0, %c0_i32, %c0_i32_0 : i32, i32, i32
  }
}

</mosaic_0001>

<bundles_post_ra>
// kernel: _lambda_.9
= control target key start
LH: loop header
LB: loop body
LE: loop exit
PB: predicated region body
PF: predicated region fallthrough
CT: control target
= control target key end

     0   :  { %s1535_s24 = smov 0   ;;  %s1921_s0 = inlined_call_operand.vmem [shape: f32[512,128], index: 0, kind: input, shape index: {}, may-alias: {0,4}]   ;;  %s1922_s1 = inlined_call_operand.vmem [shape: f32[1,128], index: 1, kind: input, shape index: {}]   ;;  %s1923_s2 = inlined_call_operand.vmem [shape: f32[1,128], index: 2, kind: input, shape index: {}]   ;;  %s1924_s3 = inlined_call_operand.vmem [shape: bf16[128,128], index: 3, kind: input, shape index: {}]   ;;  %s1925_s4 = inlined_call_operand.vmem [shape: f32[512,128], index: 4, kind: output, shape index: {0}, may-alias: {0,4}]   ;;  %s1926_s5 = inlined_call_operand.vmem [shape: f32[512,128], index: 5, kind: output, shape index: {1}]   ;;  %s1927_s6 = inlined_call_operand.vmem [shape: f32[2,1,128], index: 6, kind: output, shape index: {2}]   ;;  %s1928_s7 = inlined_call_operand.vmem [shape: f32[2,1,128], index: 7, kind: output, shape index: {3}]  }
   0x1 LB: > { %s1541_s25 = sadd.s32 4294967295, %s1493_s24   ;;  %p1204_p0 = scmp.ge.s32.totalorder %s1493_s24, 1  ;;  %s1493_s24 = sphi %s1535_s24, %s18_s24  }
   0x2   : > { %p245_p1 = scmp.lt.s32.totalorder %s1493_s24, 3 }
   0x4   : > { %p246_p2 = pnand %p1204_p0, %p245_p1 }
   0x5   : > { %v1351_v0 = vld [vmem:[%s1924_s3] sm:$0xff] (!%p246_p2)   ;;  %s1205_s28 = sshll.u32 (!%p246_p2), %s1541_s25, 5  ;;  %v1352_v1 = vld [vmem:[%s1924_s3 + $0x8] sm:$0xff] (!%p246_p2)   ;;  %v1353_v2 = vld [vmem:[%s1924_s3 + $0x10] sm:$0xff] (!%p246_p2)   ;;  %p306_p4 = scmp.lt.s32.totalorder (!%p246_p2), %s1541_s25, 1 }
   0x6   : > { %249 = sbr.rel (%p246_p2) target bundleno = 348 (0x15c), region = 36  ;;  %p289_p3 = scmp.lt.s32.totalorder (!%p246_p2), %s1205_s28, 63  ;;  %1279 = vmatprep.subr.bf16.mxu0 (!%p246_p2), %v1351_v0  ;;  %1327 = vmatprep.subr.bf16.mxu1 (!%p246_p2), %v1351_v0  ;;  %v1354_v3 = vld [vmem:[%s1924_s3 + $0x18] sm:$0xff] (!%p246_p2)   ;;  %v1571_v6 = vld [vmem:[%s1922_s1] ss:$0 sm:$0xff] (!%p246_p2)  ;;  %v1356_v42 = vld [vmem:[%s1924_s3 + $0x28] sm:$0xff] (!%p246_p2)  }
   0x7   : > { %1280 = vmatpush3.bf16.msra.mxu0 (!%p246_p2), %v1351_v0  ;;  %1335 = vmatpush3.bf16.msra.mxu1 (!%p246_p2), %v1351_v0  ;;  %v1576_v7 = vld [vmem:[%s1923_s2] ss:$0 sm:$0xff] (!%p246_p2)  ;;  %v1357_v54 = vld [vmem:[%s1924_s3 + $0x30] sm:$0xff] (!%p246_p2)   ;;  %v1358_v63 = vld [vmem:[%s1924_s3 + $0x38] sm:$0xff] (!%p246_p2)  }
   0x8   : > { %1281 = vmatprep.subr.bf16.mxu0 (!%p246_p2), %v1352_v1  ;;  %1328 = vmatprep.subr.bf16.mxu1 (!%p246_p2), %v1352_v1  ;;  %v1355_v21 = vld [vmem:[%s1924_s3 + $0x20] sm:$0xff] (!%p246_p2)  }
   0xb   : > { %1282 = vmatpush3.bf16.msra.mxu0 (!%p246_p2), %v1352_v1  ;;  %1336 = vmatpush3.bf16.msra.mxu1 (!%p246_p2), %v1352_v1 }
   0xc   : > { %1283 = vmatprep.subr.bf16.mxu0 (!%p246_p2), %v1353_v2  ;;  %1329 = vmatprep.subr.bf16.mxu1 (!%p246_p2), %v1353_v2 }
   0xd   : > { %s1930_s28 = smov (!%p289_p3, %s1205_s28), 63  ;;  %s1932_s25 = smov (!%p306_p4, %s1541_s25), 1 }
   0xe   : > { %s1555_s10 = sshll.u32 %s1930_s28, 3  ;;  %s308_s15 = scalar_lea.vmem %s1927_s6, %s1932_s25 }
   0xf   : > { %s1561_s13 = scalar_lea.vmem %s1921_s0, %s1555_s10  ;;  %1284 = vmatpush3.bf16.msra.mxu0 %v1353_v2  ;;  %1337 = vmatpush3.bf16.msra.mxu1 %v1353_v2  ;;  %s1717_s9 = scalar_lea.vmem %s1925_s4, %s1555_s10 }
  0x10   : > { %v313_v4 = vld [vmem:[%s1561_s13] sm:$0xff]  ;;  %v314_v5 = vld [vmem:[%s1561_s13 + $0x8] sm:$0xff]  ;;  %v315_v10 = vld [vmem:[%s1561_s13 + $0x10] sm:$0xff]  ;;  %1285 = vmatprep.subr.bf16.mxu0 %v1354_v3  ;;  %1330 = vmatprep.subr.bf16.mxu1 %v1354_v3  ;;  %s311_s18 = scalar_lea.vmem %s1928_s7, %s1932_s25 }
  0x11   : > { %v353_v8 = vmul.f32 %v1571_v6, %v313_v4  ;;  %v354_v9 = vmul.f32 %v1571_v6, %v314_v5  ;;  %v316_v11 = vld [vmem:[%s1561_s13 + $0x18] sm:$0xff]  ;;  %v355_v12 = vmul.f32 %v1571_v6, %v315_v10  ;;  %v317_v14 = vld [vmem:[%s1561_s13 + $0x20] sm:$0xff]  ;;  %v318_v15 = vld [vmem:[%s1561_s13 + $0x28] sm:$0xff] }
  0x12   : > { %v356_v13 = vmul.f32 %v1571_v6, %v316_v11  ;;  %v319_v16 = vld [vmem:[%s1561_s13 + $0x30] sm:$0xff]  ;;  %v357_v19 = vmul.f32 %v1571_v6, %v317_v14  ;;  %v320_v20 = vld [vmem:[%s1561_s13 + $0x38] sm:$0xff]  ;;  %v358_v24 = vmul.f32 %v1571_v6, %v318_v15  ;;  %v321_v26 = vld [vmem:[%s1561_s13 + $0x40] sm:$0xff] }
  0x13   : > { %v1588_v17 = vadd.f32 %v1576_v7, %v353_v8  ;;  %v1591_v18 = vadd.f32 %v1576_v7, %v354_v9  ;;  %v1599_v22 = vadd.f32 %v1576_v7, %v355_v12  ;;  %v359_v25 = vmul.f32 %v1571_v6, %v319_v16  ;;  %v322_v31 = vld [vmem:[%s1561_s13 + $0x48] sm:$0xff]  ;;  %v323_v36 = vld [vmem:[%s1561_s13 + $0x50] sm:$0xff]  ;;  %1286 = vmatpush3.bf16.msra.mxu0 %v1354_v3  ;;  %v324_v40 = vld [vmem:[%s1561_s13 + $0x58] sm:$0xff] }
  0x14   : > { %v1602_v23 = vadd.f32 %v1576_v7, %v356_v13  ;;  %v1610_v29 = vadd.f32 %v1576_v7, %v357_v19  ;;  %v360_v30 = vmul.f32 %v1571_v6, %v320_v20  ;;  %v1617_v34 = vadd.f32 %v1576_v7, %v358_v24  ;;  %1338 = vmatpush3.bf16.msra.mxu1 %v1354_v3  ;;  %v325_v41 = vld [vmem:[%s1561_s13 + $0x60] sm:$0xff]  ;;  %v326_v60 = vld [vmem:[%s1561_s13 + $0x68] sm:$0xff]  ;;  %v327_v61 = vld [vmem:[%s1561_s13 + $0x70] sm:$0xff] }
  0x15   : > { %v1213_v27 = vmul.f32 -1.442695, %v1588_v17  ;;  %v1214_v28 = vmul.f32 -1.442695, %v1591_v18  ;;  %v1215_v32 = vmul.f32 -1.442695, %v1599_v22  ;;  %v1620_v35 = vadd.f32 %v1576_v7, %v359_v25  ;;  %1287 = vmatprep.subr.bf16.mxu0 %v1355_v21  ;;  %1331 = vmatprep.subr.bf16.mxu1 %v1355_v21 }
  0x16   : > { %v1216_v33 = vmul.f32 -1.442695, %v1602_v23  ;;  %v1217_v37 = vmul.f32 -1.442695, %v1610_v29  ;;  %v1625_v38 = vadd.f32 %v1576_v7, %v360_v30  ;;  %v361_v39 = vmul.f32 %v1571_v6, %v321_v26  ;;  %v328_v0 = vld [vmem:[%s1561_s13 + $0x78] sm:$0xff]  ;;  %v329_v4 = vld [vmem:[%s1561_s13 + $0x80] sm:$0xff] }
  0x17   : > { %1359 = vpow2.f32 %v1213_v27  ;;  %v1218_v43 = vmul.f32 -1.442695, %v1617_v34  ;;  %v1219_v44 = vmul.f32 -1.442695, %v1620_v35  ;;  %v362_v45 = vmul.f32 %v1571_v6, %v322_v31  ;;  %1288 = vmatpush3.bf16.msra.mxu0 %v1355_v21  ;;  %v330_v12 = vld [vmem:[%s1561_s13 + $0x88] sm:$0xff]  ;;  %v331_v13 = vld [vmem:[%s1561_s13 + $0x90] sm:$0xff] }
  0x18   : > { %1361 = vpow2.f32 %v1214_v28  ;;  %v1220_v46 = vmul.f32 -1.442695, %v1625_v38  ;;  %v1638_v47 = vadd.f32 %v1576_v7, %v361_v39  ;;  %v363_v48 = vmul.f32 %v1571_v6, %v323_v36  ;;  %1339 = vmatpush3.bf16.msra.mxu1 %v1355_v21  ;;  %1289 = vmatprep.subr.bf16.mxu0 %v1356_v42  ;;  %v332_v25 = vld [vmem:[%s1561_s13 + $0x98] sm:$0xff] }
  0x19   : > { %1363 = vpow2.f32 %v1215_v32  ;;  %v1642_v49 = vadd.f32 %v1576_v7, %v362_v45  ;;  %v364_v50 = vmul.f32 %v1571_v6, %v324_v40  ;;  %v365_v51 = vmul.f32 %v1571_v6, %v325_v41  ;;  %1332 = vmatprep.subr.bf16.mxu1 %v1356_v42  ;;  %v333_v41 = vld [vmem:[%s1561_s13 + $0xa0] sm:$0xff] }
  0x1a   : > { %1365 = vpow2.f32 %v1216_v33  ;;  %v1221_v52 = vmul.f32 -1.442695, %v1638_v47  ;;  %v1648_v53 = vadd.f32 %v1576_v7, %v363_v48  ;;  %v366_v2 = vmul.f32 %v1571_v6, %v326_v60 }
  0x1b   : > { %1367 = vpow2.f32 %v1217_v37  ;;  %v1222_v55 = vmul.f32 -1.442695, %v1642_v49  ;;  %v1655_v56 = vadd.f32 %v1576_v7, %v364_v50  ;;  %v1658_v57 = vadd.f32 %v1576_v7, %v365_v51  ;;  %1290 = vmatpush3.bf16.msra.mxu0 %v1356_v42 }
  0x1c   : > { %1369 = vpow2.f32 %v1218_v43  ;;  %v1223_v58 = vmul.f32 -1.442695, %v1648_v53  ;;  %1340 = vmatpush3.bf16.msra.mxu1 %v1356_v42  ;;  %1291 = vmatprep.subr.bf16.mxu0 %v1357_v54  ;;  %v367_v3 = vmul.f32 %v1571_v6, %v327_v61  ;;  %v368_v11 = vmul.f32 %v1571_v6, %v328_v0 }
  0x1d   : > { %1371 = vpow2.f32 %v1219_v44  ;;  %v1224_v59 = vmul.f32 -1.442695, %v1655_v56  ;;  %v1225_v62 = vmul.f32 -1.442695, %v1658_v57  ;;  %1333 = vmatprep.subr.bf16.mxu1 %v1357_v54  ;;  %v369_v16 = vmul.f32 %v1571_v6, %v329_v4 }
  0x1e   : > { %1373 = vpow2.f32 %v1220_v46  ;;  %v1677_v21 = vadd.f32 %v1576_v7, %v366_v2  ;;  %v1680_v24 = vadd.f32 %v1576_v7, %v367_v3  ;;  %v370_v28 = vmul.f32 %v1571_v6, %v330_v12 }
  0x1f   : > { %1375 = vpow2.f32 %v1221_v52  ;;  %1292 = vmatpush3.bf16.msra.mxu0 %v1357_v54  ;;  %v371_v30 = vmul.f32 %v1571_v6, %v331_v13  ;;  %v1686_v33 = vadd.f32 %v1576_v7, %v368_v11  ;;  %v1689_v39 = vadd.f32 %v1576_v7, %v369_v16  ;;  %v334_v52 = vld [vmem:[%s1561_s13 + $0xa8] sm:$0xff] }
  0x20   : > { %1377 = vpow2.f32 %v1222_v55  ;;  %1341 = vmatpush3.bf16.msra.mxu1 %v1357_v54  ;;  %1293 = vmatprep.subr.bf16.mxu0 %v1358_v63  ;;  %v372_v40 = vmul.f32 %v1571_v6, %v332_v25  ;;  %v1226_v44 = vmul.f32 -1.442695, %v1677_v21  ;;  %v1227_v45 = vmul.f32 -1.442695, %v1680_v24  ;;  %v335_v54 = vld [vmem:[%s1561_s13 + $0xb0] sm:$0xff]  ;;  %v338_v13 = vld [vmem:[%s1561_s13 + $0xc8] sm:$0xff] }
  0x21   : > { %v1360_v1 = vpop.eup %1359  ;;  %1379 = vpow2.f32 %v1223_v58  ;;  %1334 = vmatprep.subr.bf16.mxu1 %v1358_v63  ;;  %v1696_v50 = vadd.f32 %v1576_v7, %v370_v28  ;;  %v1699_v51 = vadd.f32 %v1576_v7, %v371_v30  ;;  %v373_v60 = vmul.f32 %v1571_v6, %v333_v41  ;;  %v1731_v25 = vld [vmem:[%s1561_s13 + $0xd8] sm:$0xff] }
  0x22   : > { %v1362_v5 = vpop.eup %1361  ;;  %v519_v8 = vadd.f32 1.0, %v1360_v1  ;;  %1381 = vpow2.f32 %v1224_v59  ;;  %v1228_v59 = vmul.f32 -1.442695, %v1686_v33  ;;  %v1707_v0 = vadd.f32 %v1576_v7, %v372_v40  ;;  %v336_v1 = vld [vmem:[%s1561_s13 + $0xb8] sm:$0xff] }
  0x23   : > { %v1364_v9 = vpop.eup %1363  ;;  %v520_v10 = vadd.f32 1.0, %v1362_v5  ;;  %1383 = vpow2.f32 %v1225_v62  ;;  %1294 = vmatpush3.bf16.msra.mxu0 %v1358_v63  ;;  %v374_v4 = vmul.f32 %v1571_v6, %v334_v52  ;;  %v375_v5 = vmul.f32 %v1571_v6, %v335_v54 }
  0x24   : > { %v1366_v14 = vpop.eup %1365  ;;  %1385 = vrcp.f32 %v519_v8  ;;  %v521_v15 = vadd.f32 1.0, %v1364_v9  ;;  %1342 = vmatpush3.bf16.msra.mxu1 %v1358_v63  ;;  %v1229_v63 = vmul.f32 -1.442695, %v1689_v39  ;;  %v337_v8 = vld [vmem:[%s1561_s13 + $0xc0] sm:$0xff]  ;;  %v1230_v11 = vmul.f32 -1.442695, %v1696_v50 }
  0x25   : > { %v1368_v19 = vpop.eup %1367  ;;  %1387 = vrcp.f32 %v520_v10  ;;  %v522_v20 = vadd.f32 1.0, %v1366_v14  ;;  %v1231_v12 = vmul.f32 -1.442695, %v1699_v51  ;;  %v1724_v16 = vadd.f32 %v1576_v7, %v373_v60 }
  0x26   : > { %v1370_v26 = vpop.eup %1369  ;;  %1389 = vrcp.f32 %v521_v15  ;;  %v523_v27 = vadd.f32 1.0, %v1368_v19  ;;  %v376_v19 = vmul.f32 %v1571_v6, %v336_v1  ;;  %v1232_v30 = vmul.f32 -1.442695, %v1707_v0 }
  0x27   : > { %v1372_v31 = vpop.eup %1371  ;;  %1391 = vrcp.f32 %v522_v20  ;;  %v524_v32 = vadd.f32 1.0, %v1370_v26  ;;  %v1728_v20 = vld [vmem:[%s1561_s13 + $0xd0] sm:$0xff]  ;;  %v1734_v26 = vld [vmem:[%s1561_s13 + $0xe0] sm:$0xff]  ;;  %v1750_v41 = vadd.f32 %v1576_v7, %v374_v4  ;;  %v1233_v52 = vmul.f32 -1.442695, %v1724_v16 }
  0x28   : > { %v1374_v36 = vpop.eup %1373  ;;  %1393 = vrcp.f32 %v523_v27  ;;  %v525_v37 = vadd.f32 1.0, %v1372_v31  ;;  %v1740_v31 = vld [vmem:[%s1561_s13 + $0xe8] sm:$0xff]  ;;  %v1762_v54 = vadd.f32 %v1576_v7, %v376_v19 }
  0x29   : > { %v1376_v42 = vpop.eup %1375  ;;  %1395 = vrcp.f32 %v524_v32  ;;  %v526_v43 = vadd.f32 1.0, %v1374_v36  ;;  %v1743_v32 = vld [vmem:[%s1561_s13 + $0xf0] sm:$0xff]  ;;  %v1746_v36 = vld [vmem:[%s1561_s13 + $0xf8] sm:$0xff]  ;;  %v1234_v60 = vmul.f32 -1.442695, %v1750_v41  ;;  %s1876_s13 = scalar_lea.vmem %s1926_s5, %s1555_s10 }
  0x2a   : > { %v1378_v46 = vpop.eup %1377  ;;  %1397 = vrcp.f32 %v525_v37  ;;  %v527_v48 = vadd.f32 1.0, %v1376_v42 }
  0x2b   : > { %v1380_v55 = vpop.eup %1379  ;;  %1399 = vrcp.f32 %v526_v43  ;;  %v528_v58 = vadd.f32 1.0, %v1378_v46  ;;  %v378_v46 = vmul.f32 %v1571_v6, %v338_v13 }
  0x2c   : > { %v1382_v61 = vpop.eup %1381  ;;  %1401 = vrcp.f32 %v527_v48  ;;  %v529_v62 = vadd.f32 1.0, %v1380_v55 }
  0x2d   : > { %v1384_v2 = vpop.eup %1383  ;;  %1403 = vrcp.f32 %v528_v58  ;;  %v530_v3 = vadd.f32 1.0, %v1382_v61  ;;  %v1776_v1 = vadd.f32 %v1576_v7, %v378_v46  ;;  %v381_v46 = vmul.f32 %v1571_v6, %v1734_v26 }
  0x2e   : > { %v1386_v9 = vpop.eup %1385  ;;  %1405 = vrcp.f32 %v529_v62  ;;  %v531_v10 = vadd.f32 1.0, %v1384_v2  ;;  %v384_v26 = vmul.f32 %v1571_v6, %v1746_v36 }
  0x2f   : > { %v1388_v14 = vpop.eup %1387  ;;  %v615_v15 = vmul.f32 %v1386_v9, %v1588_v17  ;;  %1407 = vrcp.f32 %v530_v3  ;;  %v377_v17 = vmul.f32 %v1571_v6, %v337_v8  ;;  %v1236_v3 = vmul.f32 -1.442695, %v1762_v54 }
  0x30   : > { %v1390_v27 = vpop.eup %1389  ;;  %v616_v28 = vmul.f32 %v1388_v14, %v1591_v18  ;;  %1409 = vpow2.f32 %v1226_v44  ;;  %v1753_v18 = vadd.f32 %v1576_v7, %v375_v5 }
  0x31   : > { %v1392_v37 = vpop.eup %1391  ;;  %v617_v40 = vmul.f32 %v1390_v27, %v1599_v22  ;;  %1411 = vrcp.f32 %v531_v10  ;;  %647 = vst [vmem:[%s1717_s9] sm:$0xff] %v615_v15 }
  0x32   : > { %v1394_v42 = vpop.eup %1393  ;;  %v679_v43 = vpack.c.bf16 %v616_v28, %v615_v15  ;;  %v618_v44 = vmul.f32 %v1392_v37, %v1602_v23  ;;  %1413 = vpow2.f32 %v1227_v45  ;;  %648 = vst [vmem:[%s1717_s9 + $0x8] sm:$0xff] %v616_v28  ;;  %v1767_v45 = vadd.f32 %v1576_v7, %v377_v17 }
  0x33   : > { %v1396_v48 = vpop.eup %1395  ;;  %v619_v22 = vmul.f32 %v1394_v42, %v1610_v29  ;;  %1415 = vpow2.f32 %v1228_v59  ;;  %649 = vst [vmem:[%s1717_s9 + $0x10] sm:$0xff] %v617_v40  ;;  %v1235_v61 = vmul.f32 -1.442695, %v1753_v18  ;;  %v380_v42 = vmul.f32 %v1571_v6, %v1731_v25 }
  0x34   : > { %v1398_v55 = vpop.eup %1397  ;;  %1295 = vmatprep.mubr.bf16.mxu0 %v679_v43  ;;  %v680_v58 = vpack.c.bf16 %v618_v44, %v617_v40  ;;  %v620_v23 = vmul.f32 %v1396_v48, %v1617_v34  ;;  %1417 = vpow2.f32 %v1229_v63  ;;  %650 = vst [vmem:[%s1717_s9 + $0x18] sm:$0xff] %v618_v44  ;;  %v383_v25 = vmul.f32 %v1571_v6, %v1743_v32 }
  0x35   : > { %v1400_v29 = vpop.eup %1399  ;;  %v621_v59 = vmul.f32 %v1398_v55, %v1620_v35  ;;  %1419 = vpow2.f32 %v1230_v11  ;;  %651 = vst [vmem:[%s1717_s9 + $0x20] sm:$0xff] %v619_v22  ;;  %v382_v55 = vmul.f32 %v1571_v6, %v1740_v31  ;;  %v1816_v31 = vadd.f32 %v1576_v7, %v381_v46 }
  0x36   : > { %v1402_v62 = vpop.eup %1401  ;;  %1296 = vmatmul.mubr.bf16.vlgmr.msra.gmra.mrb[0].mxu0 %v680_v58  ;;  %v681_v34 = vpack.c.bf16 %v620_v23, %v619_v22  ;;  %v622_v63 = vmul.f32 %v1400_v29, %v1625_v38  ;;  %1421 = vpow2.f32 %v1231_v12  ;;  %652 = vst [vmem:[%s1717_s9 + $0x28] sm:$0xff] %v620_v23  ;;  %v1237_v38 = vmul.f32 -1.442695, %v1767_v45 }
  0x37   : > { %v1404_v35 = vpop.eup %1403  ;;  %v623_v2 = vmul.f32 %v1402_v62, %v1638_v47  ;;  %1423 = vpow2.f32 %v1232_v30  ;;  %653 = vst [vmem:[%s1717_s9 + $0x30] sm:$0xff] %v621_v59  ;;  %v1238_v12 = vmul.f32 -1.442695, %v1776_v1 }
  0x38   : > { %v1406_v4 = vpop.eup %1405  ;;  %1299 = vmatprep.mubr.bf16.mxu0 %v681_v34  ;;  %v624_v5 = vmul.f32 %v1404_v35, %v1642_v49  ;;  %1425 = vpow2.f32 %v1233_v52  ;;  %654 = vst [vmem:[%s1717_s9 + $0x38] sm:$0xff] %v622_v63  ;;  %v682_v10 = vpack.c.bf16 %v622_v63, %v621_v59  ;;  %v1820_v35 = vadd.f32 %v1576_v7, %v382_v55 }
  0x39   : > { %v1408_v8 = vpop.eup %1407  ;;  %v625_v9 = vmul.f32 %v1406_v4, %v1648_v53  ;;  %1427 = vpow2.f32 %v1234_v60  ;;  %655 = vst [vmem:[%s1717_s9 + $0x40] sm:$0xff] %v623_v2  ;;  %v1811_v60 = vadd.f32 %v1576_v7, %v380_v42 }
  0x3a   : > { %v1410_v47 = vpop.eup %1409  ;;  %v626_v11 = vmul.f32 %v1408_v8, %v1655_v56  ;;  %1429 = vpow2.f32 %v1235_v61  ;;  %656 = vst [vmem:[%s1717_s9 + $0x48] sm:$0xff] %v624_v5  ;;  %v683_v13 = vpack.c.bf16 %v624_v5, %v623_v2  ;;  %v379_v56 = vmul.f32 %v1571_v6, %v1728_v20 }
  0x3b   : > { %v1412_v49 = vpop.eup %1411  ;;  %v532_v14 = vadd.f32 1.0, %v1410_v47  ;;  %1431 = vpow2.f32 %v1236_v3  ;;  %657 = vst [vmem:[%s1717_s9 + $0x50] sm:$0xff] %v625_v9  ;;  %v1823_v6 = vadd.f32 %v1576_v7, %v383_v25  ;;  %v1240_v5 = vmul.f32 -1.442695, %v1811_v60 }
  0x3c   : > { %v1414_v15 = vpop.eup %1413  ;;  %v1792_v53 = vmul.f32 %v1412_v49, %v1658_v57  ;;  %1433 = vpow2.f32 %v1237_v38  ;;  %658 = vst [vmem:[%s1717_s9 + $0x58] sm:$0xff] %v626_v11  ;;  %v1802_v20 = vadd.f32 %v1576_v7, %v379_v56  ;;  %v684_v22 = vpack.c.bf16 %v626_v11, %v625_v9 }
  0x3d   : > { %v1416_v19 = vpop.eup %1415  ;;  %1435 = vrcp.f32 %v532_v14  ;;  %v533_v27 = vadd.f32 1.0, %v1414_v15  ;;  %v1828_v38 = vadd.f32 %v1576_v7, %v384_v26  ;;  %v1241_v47 = vmul.f32 -1.442695, %v1816_v31 }
  0x3e   : > { %v1418_v28 = vpop.eup %1417  ;;  %1300 = vmatmul.mubr.bf16.gmra.mrb[4].mxu0 %v682_v10  ;;  %v534_v30 = vadd.f32 1.0, %v1416_v19  ;;  %1437 = vpow2.f32 %v1238_v12  ;;  %659 = vst [vmem:[%s1717_s9 + $0x60] sm:$0xff] %v1792_v53  ;;  %v1239_v32 = vmul.f32 -1.442695, %v1802_v20 }
  0x3f   : > { %v1420_v17 = vpop.eup %1419  ;;  %1303 = vmatprep.mubr.bf16.mxu0 %v683_v13  ;;  %1439 = vrcp.f32 %v533_v27  ;;  %v535_v37 = vadd.f32 1.0, %v1418_v28  ;;  %v1243_v13 = vmul.f32 -1.442695, %v1823_v6 }
  0x40   : > { %v1422_v57 = vpop.eup %1421  ;;  %1441 = vrcp.f32 %v534_v30  ;;  %v536_v40 = vadd.f32 1.0, %v1420_v17 }
  0x41   : > { %v1424_v43 = vpop.eup %1423  ;;  %1443 = vrcp.f32 %v535_v37  ;;  %v537_v44 = vadd.f32 1.0, %v1422_v57 }
  0x42   : > { %v1426_v48 = vpop.eup %1425  ;;  %1445 = vrcp.f32 %v536_v40  ;;  %v538_v52 = vadd.f32 1.0, %v1424_v43 }
  0x43   : > { %v1428_v58 = vpop.eup %1427  ;;  %1447 = vrcp.f32 %v537_v44  ;;  %v539_v23 = vadd.f32 1.0, %v1426_v48 }
  0x44   : > { %v1430_v29 = vpop.eup %1429  ;;  %1449 = vrcp.f32 %v538_v52  ;;  %v540_v59 = vadd.f32 1.0, %v1428_v58 }
  0x45   : > { %v1432_v61 = vpop.eup %1431  ;;  %1451 = vrcp.f32 %v539_v23  ;;  %v541_v62 = vadd.f32 1.0, %v1430_v29 }
  0x46   : > { %v1434_v34 = vpop.eup %1433  ;;  %1304 = vmatmul.mubr.bf16.gmra.mrb[8].mxu0 %v684_v22  ;;  %1453 = vrcp.f32 %v540_v59  ;;  %v542_v63 = vadd.f32 1.0, %v1432_v61 }
  0x47   : > { %v1436_v2 = vpop.eup %1435  ;;  %1455 = vrcp.f32 %v541_v62  ;;  %v543_v3 = vadd.f32 1.0, %v1434_v34 }
  0x48   : > { %v1438_v36 = vpop.eup %1437  ;;  %v628_v4 = vmul.f32 %v1436_v2, %v1677_v21  ;;  %1457 = vrcp.f32 %v542_v63  ;;  %v1242_v21 = vmul.f32 -1.442695, %v1820_v35 }
  0x49   : > { %v1440_v8 = vpop.eup %1439  ;;  %v544_v9 = vadd.f32 1.0, %v1438_v36  ;;  %1459 = vrcp.f32 %v543_v3 }
  0x4a   : > { %v1442_v10 = vpop.eup %1441  ;;  %v685_v11 = vpack.c.bf16 %v628_v4, %v1792_v53  ;;  %v629_v12 = vmul.f32 %v1440_v8, %v1680_v24  ;;  %1461 = vpow2.f32 %v1239_v32  ;;  %660 = vst [vmem:[%s1717_s9 + $0x68] sm:$0xff] %v628_v4  ;;  %v1244_v53 = vmul.f32 -1.442695, %v1828_v38 }
  0x4b   : > { %v1444_v49 = vpop.eup %1443  ;;  %v630_v7 = vmul.f32 %v1442_v10, %v1686_v33  ;;  %1463 = vrcp.f32 %v544_v9 }
  0x4c   : > { %v1446_v14 = vpop.eup %1445  ;;  %1307 = vmatprep.mubr.bf16.mxu0 %v685_v11  ;;  %v631_v15 = vmul.f32 %v1444_v49, %v1689_v39  ;;  %1465 = vpow2.f32 %v1240_v5  ;;  %661 = vst [vmem:[%s1717_s9 + $0x70] sm:$0xff] %v629_v12 }
  0x4d   : > { %v1448_v24 = vpop.eup %1447  ;;  %v686_v19 = vpack.c.bf16 %v630_v7, %v629_v12  ;;  %v632_v27 = vmul.f32 %v1446_v14, %v1696_v50  ;;  %1467 = vpow2.f32 %v1241_v47  ;;  %662 = vst [vmem:[%s1717_s9 + $0x78] sm:$0xff] %v630_v7 }
  0x4e   : > { %v1450_v33 = vpop.eup %1449  ;;  %v633_v56 = vmul.f32 %v1448_v24, %v1699_v51  ;;  %1469 = vpow2.f32 %v1242_v21  ;;  %663 = vst [vmem:[%s1717_s9 + $0x80] sm:$0xff] %v631_v15 }
  0x4f   : > { %v1452_v28 = vpop.eup %1451  ;;  %1308 = vmatmul.mubr.bf16.gmra.mrb[12].mxu0 %v686_v19  ;;  %v687_v39 = vpack.c.bf16 %v632_v27, %v631_v15  ;;  %v634_v30 = vmul.f32 %v1450_v33, %v1707_v0  ;;  %1471 = vpow2.f32 %v1243_v13  ;;  %664 = vst [vmem:[%s1717_s9 + $0x88] sm:$0xff] %v632_v27 }
  0x50   : > { %v1454_v17 = vpop.eup %1453  ;;  %v635_v50 = vmul.f32 %v1452_v28, %v1724_v16  ;;  %1473 = vpow2.f32 %v1244_v53  ;;  %665 = vst [vmem:[%s1717_s9 + $0x90] sm:$0xff] %v633_v56 }
  0x51   : > { %v1456_v37 = vpop.eup %1455  ;;  %1311 = vmatprep.mubr.bf16.mxu1 %v687_v39  ;;  %v688_v51 = vpack.c.bf16 %v634_v30, %v633_v56  ;;  %v636_v57 = vmul.f32 %v1454_v17, %v1750_v41  ;;  %666 = vst [vmem:[%s1717_s9 + $0x98] sm:$0xff] %v634_v30 }
  0x52   : > { %v1458_v40 = vpop.eup %1457  ;;  %v637_v42 = vmul.f32 %v1456_v37, %v1753_v18  ;;  %667 = vst [vmem:[%s1717_s9 + $0xa0] sm:$0xff] %v635_v50 }
  0x53   : > { %v1460_v0 = vpop.eup %1459  ;;  %1312 = vmatmul.mubr.bf16.vlgmr.msra.gmra.mrb[0].mxu1 %v688_v51  ;;  %v689_v43 = vpack.c.bf16 %v636_v57, %v635_v50  ;;  %v638_v16 = vmul.f32 %v1458_v40, %v1762_v54  ;;  %668 = vst [vmem:[%s1717_s9 + $0xa8] sm:$0xff] %v636_v57 }
  0x54   : > { %v1462_v44 = vpop.eup %1461  ;;  %v639_v46 = vmul.f32 %v1460_v0, %v1767_v45  ;;  %669 = vst [vmem:[%s1717_s9 + $0xb0] sm:$0xff] %v637_v42 }
  0x55   : > { %v1464_v48 = vpop.eup %1463  ;;  %1315 = vmatprep.mubr.bf16.mxu1 %v689_v43  ;;  %v545_v41 = vadd.f32 1.0, %v1462_v44  ;;  %670 = vst [vmem:[%s1717_s9 + $0xb8] sm:$0xff] %v638_v16  ;;  %v690_v55 = vpack.c.bf16 %v638_v16, %v637_v42 }
  0x56   : > { %v1466_v22 = vpop.eup %1465  ;;  %v640_v18 = vmul.f32 %v1464_v48, %v1776_v1  ;;  %671 = vst [vmem:[%s1717_s9 + $0xc0] sm:$0xff] %v639_v46 }
  0x57   : > { %v1468_v52 = vpop.eup %1467  ;;  %v546_v58 = vadd.f32 1.0, %v1466_v22  ;;  %1475 = vrcp.f32 %v545_v41 }
  0x58   : > { %v1470_v23 = vpop.eup %1469  ;;  %v691_v54 = vpack.c.bf16 %v640_v18, %v639_v46  ;;  %v547_v25 = vadd.f32 1.0, %v1468_v52  ;;  %672 = vst [vmem:[%s1717_s9 + $0xc8] sm:$0xff] %v640_v18 }
  0x59   : > { %v1472_v29 = vpop.eup %1471  ;;  %1477 = vrcp.f32 %v546_v58  ;;  %v548_v45 = vadd.f32 1.0, %v1470_v23 }
  0x5a   : > { %v1474_v59 = vpop.eup %1473  ;;  %1479 = vrcp.f32 %v547_v25  ;;  %v549_v26 = vadd.f32 1.0, %v1472_v29 }
  0x5b   : > { %1316 = vmatmul.mubr.bf16.gmra.mrb[4].mxu1 %v690_v55  ;;  %1481 = vrcp.f32 %v548_v45  ;;  %v550_v1 = vadd.f32 1.0, %v1474_v59 }
  0x5c   : > { %1319 = vmatprep.mubr.bf16.mxu1 %v691_v54  ;;  %1483 = vrcp.f32 %v549_v26 }
  0x5d   : > { %1485 = vrcp.f32 %v550_v1 }
  0x61   : > { %v1476_v61 = vpop.eup %1475 }
  0x62   : > { %v641_v62 = vmul.f32 %v1476_v61, %v1802_v20 }
  0x63   : > { %v1478_v34 = vpop.eup %1477 }
  0x64   : > { %v1480_v63 = vpop.eup %1479  ;;  %v642_v32 = vmul.f32 %v1478_v34, %v1811_v60  ;;  %673 = vst [vmem:[%s1717_s9 + $0xd0] sm:$0xff] %v641_v62 }
  0x65   : > { %v1482_v2 = vpop.eup %1481  ;;  %v643_v3 = vmul.f32 %v1480_v63, %v1816_v31 }
  0x66   : > { %v1484_v36 = vpop.eup %1483  ;;  %v692_v4 = vpack.c.bf16 %v642_v32, %v641_v62  ;;  %v644_v5 = vmul.f32 %v1482_v2, %v1820_v35  ;;  %674 = vst [vmem:[%s1717_s9 + $0xd8] sm:$0xff] %v642_v32 }
  0x67   : > { %v1486_v8 = vpop.eup %1485  ;;  %v645_v20 = vmul.f32 %v1484_v36, %v1823_v6  ;;  %675 = vst [vmem:[%s1717_s9 + $0xe0] sm:$0xff] %v643_v3 }
  0x68   : > { %1320 = vmatmul.mubr.bf16.gmra.mrb[8].mxu1 %v692_v4  ;;  %v693_v9 = vpack.c.bf16 %v644_v5, %v643_v3  ;;  %v646_v47 = vmul.f32 %v1486_v8, %v1828_v38  ;;  %676 = vst [vmem:[%s1717_s9 + $0xe8] sm:$0xff] %v644_v5 }
  0x69   : > { %677 = vst [vmem:[%s1717_s9 + $0xf0] sm:$0xff] %v645_v20 }
  0x6a   : > { %1323 = vmatprep.mubr.bf16.mxu1 %v693_v9  ;;  %678 = vst [vmem:[%s1717_s9 + $0xf8] sm:$0xff] %v646_v47  ;;  %v694_v60 = vpack.c.bf16 %v646_v47, %v645_v20 }
  0x70   : > { %1324 = vmatmul.mubr.bf16.gmra.mrb[12].mxu1 %v694_v60 }
 0x109   : > { %v1297_v31 = vpop.f32.mrb[0].mxu0 }
 0x10a   : > { %922 = vst [vmem:[%s1876_s13 + $0x10] sm:$0xff] %v1297_v31  ;;  %v793_v35 = vpop.f32.mrb[1].mxu0  ;;  %v992_v21 = vmul.f32 %v1297_v31, %v1297_v31 }
 0x10b   : > { %920 = vst [vmem:[%s1876_s13] sm:$0xff] %v793_v35  ;;  %v1298_v6 = vpop.f32.mrb[2].mxu0  ;;  %v990_v10 = vmul.f32 %v793_v35, %v793_v35 }
 0x10c   : > { %923 = vst [vmem:[%s1876_s13 + $0x18] sm:$0xff] %v1298_v6  ;;  %v796_v38 = vpop.f32.mrb[3].mxu0  ;;  %v993_v13 = vmul.f32 %v1298_v6, %v1298_v6 }
 0x10d   : > { %921 = vst [vmem:[%s1876_s13 + $0x8] sm:$0xff] %v796_v38  ;;  %v952_v11 = vadd.f32 %v796_v38, %v793_v35  ;;  %v991_v12 = vmul.f32 %v796_v38, %v796_v38 }
 0x10f   : > { %v953_v49 = vadd.f32 %v1297_v31, %v952_v11  ;;  %v1022_v7 = vadd.f32 %v991_v12, %v990_v10 }
 0x111   : > { %v1023_v14 = vadd.f32 %v1022_v7, %v992_v21  ;;  %v1301_v15 = vpop.f32.mrb[4].mxu0  ;;  %v954_v53 = vadd.f32 %v1298_v6, %v953_v49 }
 0x112   : > { %926 = vst [vmem:[%s1876_s13 + $0x30] sm:$0xff] %v1301_v15  ;;  %v809_v24 = vpop.f32.mrb[5].mxu0  ;;  %v996_v50 = vmul.f32 %v1301_v15, %v1301_v15 }
 0x113   : > { %924 = vst [vmem:[%s1876_s13 + $0x20] sm:$0xff] %v809_v24  ;;  %v955_v19 = vadd.f32 %v954_v53, %v809_v24  ;;  %v994_v27 = vmul.f32 %v809_v24, %v809_v24  ;;  %v1024_v33 = vadd.f32 %v1023_v14, %v993_v13  ;;  %v1302_v56 = vpop.f32.mrb[6].mxu0 }
 0x114   : > { %927 = vst [vmem:[%s1876_s13 + $0x38] sm:$0xff] %v1302_v56  ;;  %v812_v28 = vpop.f32.mrb[7].mxu0  ;;  %v997_v57 = vmul.f32 %v1302_v56, %v1302_v56 }
 0x115   : > { %v1025_v39 = vadd.f32 %v1024_v33, %v994_v27  ;;  %925 = vst [vmem:[%s1876_s13 + $0x28] sm:$0xff] %v812_v28  ;;  %v956_v30 = vadd.f32 %v955_v19, %v812_v28  ;;  %v995_v17 = vmul.f32 %v812_v28, %v812_v28 }
 0x117   : > { %v957_v37 = vadd.f32 %v1301_v15, %v956_v30  ;;  %v1026_v51 = vadd.f32 %v1025_v39, %v995_v17 }
 0x119   : > { %v1027_v40 = vadd.f32 %v1026_v51, %v996_v50  ;;  %v1305_v42 = vpop.f32.mrb[8].mxu0  ;;  %v958_v0 = vadd.f32 %v1302_v56, %v957_v37 }
 0x11a   : > { %930 = vst [vmem:[%s1876_s13 + $0x50] sm:$0xff] %v1305_v42  ;;  %v825_v43 = vpop.f32.mrb[9].mxu0  ;;  %v1000_v55 = vmul.f32 %v1305_v42, %v1305_v42 }
 0x11b   : > { %928 = vst [vmem:[%s1876_s13 + $0x40] sm:$0xff] %v825_v43  ;;  %v959_v16 = vadd.f32 %v958_v0, %v825_v43  ;;  %v998_v44 = vmul.f32 %v825_v43, %v825_v43  ;;  %v1028_v46 = vadd.f32 %v1027_v40, %v997_v57  ;;  %v1306_v48 = vpop.f32.mrb[10].mxu0 }
 0x11c   : > { %931 = vst [vmem:[%s1876_s13 + $0x58] sm:$0xff] %v1306_v48  ;;  %v828_v41 = vpop.f32.mrb[11].mxu0  ;;  %v1001_v54 = vmul.f32 %v1306_v48, %v1306_v48 }
 0x11d   : > { %v1029_v22 = vadd.f32 %v1028_v46, %v998_v44  ;;  %929 = vst [vmem:[%s1876_s13 + $0x48] sm:$0xff] %v828_v41  ;;  %v960_v18 = vadd.f32 %v959_v16, %v828_v41  ;;  %v999_v52 = vmul.f32 %v828_v41, %v828_v41 }
 0x11f   : > { %v961_v58 = vadd.f32 %v1305_v42, %v960_v18  ;;  %v1030_v23 = vadd.f32 %v1029_v22, %v999_v52 }
 0x121   : > { %v1031_v25 = vadd.f32 %v1030_v23, %v1000_v55  ;;  %v962_v29 = vadd.f32 %v1306_v48, %v961_v58 }
 0x122   : > { %v1309_v45 = vpop.f32.mrb[12].mxu0 }
 0x123   : > { %934 = vst [vmem:[%s1876_s13 + $0x70] sm:$0xff] %v1309_v45  ;;  %v841_v59 = vpop.f32.mrb[13].mxu0  ;;  %v1032_v26 = vadd.f32 %v1031_v25, %v1001_v54  ;;  %v1004_v4 = vmul.f32 %v1309_v45, %v1309_v45 }
 0x124   : > { %932 = vst [vmem:[%s1876_s13 + $0x60] sm:$0xff] %v841_v59  ;;  %v963_v1 = vadd.f32 %v962_v29, %v841_v59  ;;  %v1002_v61 = vmul.f32 %v841_v59, %v841_v59  ;;  %v1310_v62 = vpop.f32.mrb[14].mxu0 }
 0x125   : > { %935 = vst [vmem:[%s1876_s13 + $0x78] sm:$0xff] %v1310_v62  ;;  %v844_v34 = vpop.f32.mrb[15].mxu0  ;;  %v1005_v47 = vmul.f32 %v1310_v62, %v1310_v62 }
 0x126   : > { %v1033_v63 = vadd.f32 %v1032_v26, %v1002_v61  ;;  %933 = vst [vmem:[%s1876_s13 + $0x68] sm:$0xff] %v844_v34  ;;  %v964_v32 = vadd.f32 %v963_v1, %v844_v34  ;;  %v1003_v2 = vmul.f32 %v844_v34, %v844_v34  ;;  %v1313_v3 = vpop.f32.mrb[0].mxu1 }
 0x127   : > { %938 = vst [vmem:[%s1876_s13 + $0x90] sm:$0xff] %v1313_v3  ;;  %v857_v36 = vpop.f32.mrb[1].mxu1  ;;  %v1008_v7 = vmul.f32 %v1313_v3, %v1313_v3 }
 0x128   : > { %v965_v5 = vadd.f32 %v1309_v45, %v964_v32  ;;  %v1034_v8 = vadd.f32 %v1033_v63, %v1003_v2  ;;  %936 = vst [vmem:[%s1876_s13 + $0x80] sm:$0xff] %v857_v36  ;;  %v1314_v20 = vpop.f32.mrb[2].mxu1  ;;  %v1006_v35 = vmul.f32 %v857_v36, %v857_v36 }
 0x129   : > { %939 = vst [vmem:[%s1876_s13 + $0x98] sm:$0xff] %v1314_v20  ;;  %v860_v9 = vpop.f32.mrb[3].mxu1  ;;  %v1009_v24 = vmul.f32 %v1314_v20, %v1314_v20 }
 0x12a   : > { %v1035_v60 = vadd.f32 %v1034_v8, %v1004_v4  ;;  %v966_v31 = vadd.f32 %v1310_v62, %v965_v5  ;;  %937 = vst [vmem:[%s1876_s13 + $0x88] sm:$0xff] %v860_v9  ;;  %v1007_v12 = vmul.f32 %v860_v9, %v860_v9 }
 0x12c   : > { %v967_v6 = vadd.f32 %v966_v31, %v857_v36  ;;  %v1036_v38 = vadd.f32 %v1035_v60, %v1005_v47 }
 0x12e   : > { %v1037_v10 = vadd.f32 %v1036_v38, %v1006_v35  ;;  %v968_v11 = vadd.f32 %v967_v6, %v860_v9  ;;  %v1317_v21 = vpop.f32.mrb[4].mxu1 }
 0x12f   : > { %942 = vst [vmem:[%s1876_s13 + $0xb0] sm:$0xff] %v1317_v21  ;;  %v873_v49 = vpop.f32.mrb[5].mxu1  ;;  %v1012_v50 = vmul.f32 %v1317_v21, %v1317_v21 }
 0x130   : > { %v969_v13 = vadd.f32 %v1313_v3, %v968_v11  ;;  %v1038_v14 = vadd.f32 %v1037_v10, %v1007_v12  ;;  %940 = vst [vmem:[%s1876_s13 + $0xa0] sm:$0xff] %v873_v49  ;;  %v1318_v15 = vpop.f32.mrb[6].mxu1  ;;  %v1010_v33 = vmul.f32 %v873_v49, %v873_v49 }
 0x131   : > { %943 = vst [vmem:[%s1876_s13 + $0xb8] sm:$0xff] %v1318_v15  ;;  %v876_v53 = vpop.f32.mrb[7].mxu1  ;;  %v1013_v57 = vmul.f32 %v1318_v15, %v1318_v15 }
 0x132   : > { %v1039_v19 = vadd.f32 %v1038_v14, %v1008_v7  ;;  %v970_v27 = vadd.f32 %v1314_v20, %v969_v13  ;;  %941 = vst [vmem:[%s1876_s13 + $0xa8] sm:$0xff] %v876_v53  ;;  %v1011_v17 = vmul.f32 %v876_v53, %v876_v53 }
 0x134   : > { %v971_v56 = vadd.f32 %v970_v27, %v873_v49  ;;  %v1040_v28 = vadd.f32 %v1039_v19, %v1009_v24 }
 0x136   : > { %v1041_v39 = vadd.f32 %v1040_v28, %v1010_v33  ;;  %v972_v30 = vadd.f32 %v971_v56, %v876_v53 }
 0x138   : > { %v973_v37 = vadd.f32 %v1317_v21, %v972_v30  ;;  %v1042_v51 = vadd.f32 %v1041_v39, %v1011_v17 }
 0x13a   : > { %v1043_v40 = vadd.f32 %v1042_v51, %v1012_v50  ;;  %v974_v42 = vadd.f32 %v1318_v15, %v973_v37 }
 0x13b   : > { %v1321_v0 = vpop.f32.mrb[8].mxu1 }
 0x13c   : > { %946 = vst [vmem:[%s1876_s13 + $0xd0] sm:$0xff] %v1321_v0  ;;  %v889_v43 = vpop.f32.mrb[9].mxu1  ;;  %v1044_v16 = vadd.f32 %v1043_v40, %v1013_v57  ;;  %v1016_v55 = vmul.f32 %v1321_v0, %v1321_v0 }
 0x13d   : > { %944 = vst [vmem:[%s1876_s13 + $0xc0] sm:$0xff] %v889_v43  ;;  %v975_v44 = vadd.f32 %v974_v42, %v889_v43  ;;  %v1014_v46 = vmul.f32 %v889_v43, %v889_v43  ;;  %v1322_v48 = vpop.f32.mrb[10].mxu1 }
 0x13e   : > { %947 = vst [vmem:[%s1876_s13 + $0xd8] sm:$0xff] %v1322_v48  ;;  %v892_v41 = vpop.f32.mrb[11].mxu1  ;;  %v1017_v54 = vmul.f32 %v1322_v48, %v1322_v48 }
 0x13f   : > { %v1045_v22 = vadd.f32 %v1044_v16, %v1014_v46  ;;  %945 = vst [vmem:[%s1876_s13 + $0xc8] sm:$0xff] %v892_v41  ;;  %v976_v18 = vadd.f32 %v975_v44, %v892_v41  ;;  %v1015_v52 = vmul.f32 %v892_v41, %v892_v41 }
 0x141   : > { %v977_v58 = vadd.f32 %v1321_v0, %v976_v18  ;;  %v1046_v23 = vadd.f32 %v1045_v22, %v1015_v52 }
 0x143   : > { %v1047_v25 = vadd.f32 %v1046_v23, %v1016_v55  ;;  %v1325_v29 = vpop.f32.mrb[12].mxu1  ;;  %v978_v45 = vadd.f32 %v1322_v48, %v977_v58 }
 0x144   : > { %950 = vst [vmem:[%s1876_s13 + $0xf0] sm:$0xff] %v1325_v29  ;;  %v905_v59 = vpop.f32.mrb[13].mxu1  ;;  %v1020_v3 = vmul.f32 %v1325_v29, %v1325_v29 }
 0x145   : > { %948 = vst [vmem:[%s1876_s13 + $0xe0] sm:$0xff] %v905_v59  ;;  %v979_v26 = vadd.f32 %v978_v45, %v905_v59  ;;  %v1018_v1 = vmul.f32 %v905_v59, %v905_v59  ;;  %v1048_v61 = vadd.f32 %v1047_v25, %v1017_v54  ;;  %v1326_v62 = vpop.f32.mrb[14].mxu1 }
 0x146   : > { %951 = vst [vmem:[%s1876_s13 + $0xf8] sm:$0xff] %v1326_v62  ;;  %v908_v34 = vpop.f32.mrb[15].mxu1  ;;  %v1021_v5 = vmul.f32 %v1326_v62, %v1326_v62 }
 0x147   : > { %v1049_v63 = vadd.f32 %v1048_v61, %v1018_v1  ;;  %949 = vst [vmem:[%s1876_s13 + $0xe8] sm:$0xff] %v908_v34  ;;  %v980_v32 = vadd.f32 %v979_v26, %v908_v34  ;;  %v1019_v2 = vmul.f32 %v908_v34, %v908_v34 }
 0x149   : > { %v981_v36 = vadd.f32 %v1325_v29, %v980_v32  ;;  %v1050_v4 = vadd.f32 %v1049_v63, %v1019_v2 }
 0x14b   : > { %v982_v8 = vadd.f32 %v1326_v62, %v981_v36  ;;  %v1051_v20 = vadd.f32 %v1050_v4, %v1020_v3 }
 0x14d   : > { %v983_v9 = vrot.slane %v982_v8, 4  ;;  %v1052_v47 = vadd.f32 %v1051_v20, %v1021_v5 }
 0x14f   : > { %v984_v60 = vadd.f32 %v983_v9, %v982_v8  ;;  %v1053_v31 = vrot.slane %v1052_v47, 4 }
 0x151   : > { %v985_v35 = vrot.slane %v984_v60, 2  ;;  %v1054_v6 = vadd.f32 %v1053_v31, %v1052_v47 }
 0x153   : > { %v986_v38 = vadd.f32 %v985_v35, %v984_v60  ;;  %v1055_v10 = vrot.slane %v1054_v6, 2 }
 0x155   : > { %v987_v11 = vrot.slane %v986_v38, 1  ;;  %v1056_v12 = vadd.f32 %v1055_v10, %v1054_v6 }
 0x157   : > { %v988_v21 = vadd.f32 %v987_v11, %v986_v38  ;;  %v1057_v49 = vrot.slane %v1056_v12, 1 }
 0x159   : > { %989 = vst [vmem:[%s308_s15] sm:$0x1] %v988_v21  ;;  %v1058_v7 = vadd.f32 %v1057_v49, %v1056_v12 }
 0x15b   : > { %1059 = vst [vmem:[%s311_s18] sm:$0x1] %v1058_v7 }
 0x15c PF: > { %s18_s24 = sadd.s32 1, %s1493_s24  }
 0x15d   : > { %p15_p5 = scmp.ge.s32.totalorder %s18_s24, 4  }
 0x15f   :  { %17 = sbr.rel (!%p15_p5) target bundleno = 1 (0x1), region = 102 }

// kernel: _lambda_.11
= control target key start
LH: loop header
LB: loop body
LE: loop exit
PB: predicated region body
PF: predicated region fallthrough
CT: control target
= control target key end

     0   :  { %s1667_s27 = smov 0   ;;  %s2186_s0 = inlined_call_operand.vmem [shape: f32[512,128], index: 0, kind: input, shape index: {}, may-alias: {0,5}]   ;;  %s2187_s1 = inlined_call_operand.vmem [shape: f32[512,128], index: 1, kind: input, shape index: {}]   ;;  %s2188_s2 = inlined_call_operand.vmem [shape: f32[1,128], index: 2, kind: input, shape index: {}]   ;;  %s2189_s3 = inlined_call_operand.vmem [shape: f32[1,128], index: 3, kind: input, shape index: {}]   ;;  %s2190_s4 = inlined_call_operand.vmem [shape: bf16[128,128], index: 4, kind: input, shape index: {}]   ;;  %s2191_s5 = inlined_call_operand.vmem [shape: f32[512,128], index: 5, kind: output, shape index: {0}, may-alias: {0,5}]   ;;  %s2192_s6 = inlined_call_operand.vmem [shape: f32[512,128], index: 6, kind: output, shape index: {1}]   ;;  %s2193_s7 = inlined_call_operand.vmem [shape: f32[2,1,128], index: 7, kind: output, shape index: {2}]   ;;  %s2194_s8 = inlined_call_operand.vmem [shape: f32[2,1,128], index: 8, kind: output, shape index: {3}]  }
   0x1 LB: > { %s1673_s28 = sadd.s32 4294967295, %s1620_s27   ;;  %p1329_p0 = scmp.ge.s32.totalorder %s1620_s27, 1  ;;  %s1620_s27 = sphi %s1667_s27, %s19_s27  }
   0x2   : > { %p281_p1 = scmp.lt.s32.totalorder %s1620_s27, 3 }
   0x4   : > { %p282_p2 = pnand %p1329_p0, %p281_p1 }
   0x6   : > { %285 = sbr.rel (%p282_p2) target bundleno = 353 (0x161), region = 40 }
   0xd   : > { %v1478_v0 = vld [vmem:[%s2190_s4] sm:$0xff]   ;;  %s1330_s9 = sshll.u32 %s1673_s28, 5  ;;  %v1479_v1 = vld [vmem:[%s2190_s4 + $0x8] sm:$0xff]   ;;  %v1480_v2 = vld [vmem:[%s2190_s4 + $0x10] sm:$0xff]   ;;  %p355_p4 = scmp.lt.s32.totalorder %s1673_s28, 1 }
   0xe   : > { %p332_p3 = scmp.lt.s32.totalorder %s1330_s9, 63  ;;  %1406 = vmatprep.subr.bf16.mxu0 %v1478_v0  ;;  %1454 = vmatprep.subr.bf16.mxu1 %v1478_v0  ;;  %v1481_v3 = vld [vmem:[%s2190_s4 + $0x18] sm:$0xff]   ;;  %v1703_v6 = vld [vmem:[%s2188_s2] ss:$0 sm:$0xff]  ;;  %v1483_v34 = vld [vmem:[%s2190_s4 + $0x28] sm:$0xff]  }
   0xf   : > { %1407 = vmatpush3.bf16.msra.mxu0 %v1478_v0  ;;  %1462 = vmatpush3.bf16.msra.mxu1 %v1478_v0  ;;  %v1708_v7 = vld [vmem:[%s2189_s3] ss:$0 sm:$0xff]  ;;  %v1484_v52 = vld [vmem:[%s2190_s4 + $0x30] sm:$0xff]   ;;  %s2227_s28 = smov (!%p355_p4, %s1673_s28), 1 }
  0x10   : > { %s2225_s9 = smov (!%p332_p3, %s1330_s9), 63  ;;  %1408 = vmatprep.subr.bf16.mxu0 %v1479_v1  ;;  %1455 = vmatprep.subr.bf16.mxu1 %v1479_v1  ;;  %v1482_v13 = vld [vmem:[%s2190_s4 + $0x20] sm:$0xff]   ;;  %s357_s23 = scalar_lea.vmem %s2193_s7, %s2227_s28 }
  0x11   : > { %s1687_s14 = sshll.u32 %s2225_s9, 3  ;;  %s360_s26 = scalar_lea.vmem %s2194_s8, %s2227_s28 }
  0x12   : > { %s1693_s17 = scalar_lea.vmem %s2187_s1, %s1687_s14  ;;  %s1854_s15 = scalar_lea.vmem %s2186_s0, %s1687_s14 }
  0x13   : > { %1409 = vmatpush3.bf16.msra.mxu0 %v1479_v1  ;;  %1463 = vmatpush3.bf16.msra.mxu1 %v1479_v1  ;;  %v394_v4 = vld [vmem:[%s1693_s17] sm:$0xff]  ;;  %v395_v5 = vld [vmem:[%s1693_s17 + $0x8] sm:$0xff]  ;;  %v396_v10 = vld [vmem:[%s1693_s17 + $0x10] sm:$0xff]  ;;  %s1895_s19 = scalar_lea.vmem %s2191_s5, %s1687_s14  ;;  %s2141_s21 = scalar_lea.vmem %s2192_s6, %s1687_s14 }
  0x14   : > { %1410 = vmatprep.subr.bf16.mxu0 %v1480_v2  ;;  %1456 = vmatprep.subr.bf16.mxu1 %v1480_v2  ;;  %v434_v8 = vmul.f32 %v1703_v6, %v394_v4  ;;  %v435_v9 = vmul.f32 %v1703_v6, %v395_v5  ;;  %v397_v11 = vld [vmem:[%s1693_s17 + $0x18] sm:$0xff]  ;;  %v436_v12 = vmul.f32 %v1703_v6, %v396_v10  ;;  %v398_v17 = vld [vmem:[%s1693_s17 + $0x20] sm:$0xff]  ;;  %v399_v18 = vld [vmem:[%s1693_s17 + $0x28] sm:$0xff] }
  0x15   : > { %v437_v16 = vmul.f32 %v1703_v6, %v397_v11  ;;  %v438_v20 = vmul.f32 %v1703_v6, %v398_v17  ;;  %v439_v21 = vmul.f32 %v1703_v6, %v399_v18  ;;  %v400_v22 = vld [vmem:[%s1693_s17 + $0x30] sm:$0xff]  ;;  %v401_v23 = vld [vmem:[%s1693_s17 + $0x38] sm:$0xff]  ;;  %v402_v32 = vld [vmem:[%s1693_s17 + $0x40] sm:$0xff] }
  0x16   : > { %v1719_v14 = vadd.f32 %v1708_v7, %v434_v8  ;;  %v1722_v15 = vadd.f32 %v1708_v7, %v435_v9  ;;  %v1728_v19 = vadd.f32 %v1708_v7, %v436_v12  ;;  %v440_v27 = vmul.f32 %v1703_v6, %v400_v22  ;;  %v403_v33 = vld [vmem:[%s1693_s17 + $0x48] sm:$0xff]  ;;  %v404_v38 = vld [vmem:[%s1693_s17 + $0x50] sm:$0xff]  ;;  %v405_v39 = vld [vmem:[%s1693_s17 + $0x58] sm:$0xff] }
  0x17   : > { %1411 = vmatpush3.bf16.msra.mxu0 %v1480_v2  ;;  %1464 = vmatpush3.bf16.msra.mxu1 %v1480_v2  ;;  %v1737_v26 = vadd.f32 %v1708_v7, %v437_v16  ;;  %v1742_v29 = vadd.f32 %v1708_v7, %v438_v20  ;;  %v1745_v30 = vadd.f32 %v1708_v7, %v439_v21  ;;  %v406_v46 = vld [vmem:[%s1693_s17 + $0x60] sm:$0xff]  ;;  %v407_v47 = vld [vmem:[%s1693_s17 + $0x68] sm:$0xff]  ;;  %v408_v51 = vld [vmem:[%s1693_s17 + $0x70] sm:$0xff] }
  0x18   : > { %1412 = vmatprep.subr.bf16.mxu0 %v1481_v3  ;;  %1457 = vmatprep.subr.bf16.mxu1 %v1481_v3  ;;  %v1340_v24 = vmul.f32 -1.442695, %v1719_v14  ;;  %v1341_v25 = vmul.f32 -1.442695, %v1722_v15  ;;  %v1342_v28 = vmul.f32 -1.442695, %v1728_v19  ;;  %v441_v31 = vmul.f32 %v1703_v6, %v401_v23 }
  0x19   : > { %v1343_v35 = vmul.f32 -1.442695, %v1737_v26  ;;  %v1755_v36 = vadd.f32 %v1708_v7, %v440_v27  ;;  %v442_v37 = vmul.f32 %v1703_v6, %v402_v32  ;;  %v1344_v40 = vmul.f32 -1.442695, %v1742_v29  ;;  %v409_v61 = vld [vmem:[%s1693_s17 + $0x78] sm:$0xff]  ;;  %v411_v8 = vld [vmem:[%s1693_s17 + $0x88] sm:$0xff] }
  0x1a   : > { %1486 = vpow2.f32 %v1340_v24  ;;  %v1345_v41 = vmul.f32 -1.442695, %v1745_v30  ;;  %v1763_v42 = vadd.f32 %v1708_v7, %v441_v31  ;;  %v443_v44 = vmul.f32 %v1703_v6, %v403_v33  ;;  %v1485_v1 = vld [vmem:[%s2190_s4 + $0x38] sm:$0xff]   ;;  %v412_v16 = vld [vmem:[%s1693_s17 + $0x90] sm:$0xff]  ;;  %v414_v27 = vld [vmem:[%s1693_s17 + $0xa0] sm:$0xff] }
  0x1b   : > { %1413 = vmatpush3.bf16.msra.mxu0 %v1481_v3  ;;  %1465 = vmatpush3.bf16.msra.mxu1 %v1481_v3  ;;  %1488 = vpow2.f32 %v1341_v25  ;;  %v1346_v43 = vmul.f32 -1.442695, %v1755_v36  ;;  %v1768_v45 = vadd.f32 %v1708_v7, %v442_v37  ;;  %v444_v49 = vmul.f32 %v1703_v6, %v404_v38  ;;  %v410_v3 = vld [vmem:[%s1693_s17 + $0x80] sm:$0xff]  ;;  %v413_v21 = vld [vmem:[%s1693_s17 + $0x98] sm:$0xff] }
  0x1c   : > { %1414 = vmatprep.subr.bf16.mxu0 %v1482_v13  ;;  %1458 = vmatprep.subr.bf16.mxu1 %v1482_v13  ;;  %1490 = vpow2.f32 %v1342_v28  ;;  %v1347_v48 = vmul.f32 -1.442695, %v1763_v42  ;;  %v445_v50 = vmul.f32 %v1703_v6, %v405_v39  ;;  %v1780_v53 = vadd.f32 %v1708_v7, %v443_v44 }
  0x1d   : > { %1492 = vpow2.f32 %v1343_v35  ;;  %v1348_v54 = vmul.f32 -1.442695, %v1768_v45  ;;  %v446_v55 = vmul.f32 %v1703_v6, %v406_v46  ;;  %v1785_v56 = vadd.f32 %v1708_v7, %v444_v49 }
  0x1e   : > { %1494 = vpow2.f32 %v1344_v40  ;;  %v1788_v57 = vadd.f32 %v1708_v7, %v445_v50  ;;  %v447_v58 = vmul.f32 %v1703_v6, %v407_v47  ;;  %v1349_v59 = vmul.f32 -1.442695, %v1780_v53  ;;  %v416_v40 = vld [vmem:[%s1693_s17 + $0xb0] sm:$0xff]  ;;  %v417_v47 = vld [vmem:[%s1693_s17 + $0xb8] sm:$0xff] }
  0x1f   : > { %1415 = vmatpush3.bf16.msra.mxu0 %v1482_v13  ;;  %1466 = vmatpush3.bf16.msra.mxu1 %v1482_v13  ;;  %1496 = vpow2.f32 %v1345_v41  ;;  %v1793_v60 = vadd.f32 %v1708_v7, %v446_v55  ;;  %v448_v62 = vmul.f32 %v1703_v6, %v408_v51  ;;  %v1350_v63 = vmul.f32 -1.442695, %v1785_v56 }
  0x20   : > { %1416 = vmatprep.subr.bf16.mxu0 %v1483_v34  ;;  %1459 = vmatprep.subr.bf16.mxu1 %v1483_v34  ;;  %1498 = vpow2.f32 %v1346_v43  ;;  %v1351_v0 = vmul.f32 -1.442695, %v1788_v57  ;;  %v1805_v4 = vadd.f32 %v1708_v7, %v447_v58  ;;  %v449_v5 = vmul.f32 %v1703_v6, %v409_v61 }
  0x21   : > { %1500 = vpow2.f32 %v1347_v48  ;;  %v1352_v2 = vmul.f32 -1.442695, %v1793_v60  ;;  %v1810_v10 = vadd.f32 %v1708_v7, %v448_v62  ;;  %v450_v13 = vmul.f32 %v1703_v6, %v410_v3 }
  0x22   : > { %1502 = vpow2.f32 %v1348_v54  ;;  %v451_v20 = vmul.f32 %v1703_v6, %v411_v8  ;;  %v1817_v24 = vmul.f32 -1.442695, %v1805_v4  ;;  %v1820_v25 = vadd.f32 %v1708_v7, %v449_v5 }
  0x23   : > { %1417 = vmatpush3.bf16.msra.mxu0 %v1483_v34  ;;  %1467 = vmatpush3.bf16.msra.mxu1 %v1483_v34  ;;  %1504 = vpow2.f32 %v1349_v59  ;;  %v1824_v32 = vmul.f32 -1.442695, %v1810_v10  ;;  %v452_v33 = vmul.f32 %v1703_v6, %v412_v16  ;;  %v415_v34 = vld [vmem:[%s1693_s17 + $0xa8] sm:$0xff]  ;;  %v1829_v38 = vadd.f32 %v1708_v7, %v450_v13 }
  0x24   : > { %1418 = vmatprep.subr.bf16.mxu0 %v1484_v52  ;;  %1460 = vmatprep.subr.bf16.mxu1 %v1484_v52  ;;  %v1487_v9 = vpop.eup %1486  ;;  %1506 = vpow2.f32 %v1350_v63  ;;  %v453_v39 = vmul.f32 %v1703_v6, %v413_v21  ;;  %v1834_v44 = vadd.f32 %v1708_v7, %v451_v20  ;;  %v454_v46 = vmul.f32 %v1703_v6, %v414_v27  ;;  %v419_v20 = vld [vmem:[%s1693_s17 + $0xc8] sm:$0xff] }
  0x25   : > { %v1489_v11 = vpop.eup %1488  ;;  %v600_v12 = vadd.f32 1.0, %v1487_v9  ;;  %1508 = vpow2.f32 %v1351_v0  ;;  %v1839_v50 = vmul.f32 -1.442695, %v1820_v25  ;;  %v455_v51 = vmul.f32 %v1703_v6, %v415_v34 }
  0x26   : > { %v1491_v17 = vpop.eup %1490  ;;  %v601_v18 = vadd.f32 1.0, %v1489_v11  ;;  %1510 = vpow2.f32 %v1352_v2  ;;  %v1843_v55 = vadd.f32 %v1708_v7, %v452_v33  ;;  %v456_v58 = vmul.f32 %v1703_v6, %v416_v40  ;;  %v363_v33 = vld [vmem:[%s1854_s15 + $0x8] sm:$0xff] }
  0x27   : > { %1419 = vmatpush3.bf16.msra.mxu0 %v1484_v52  ;;  %1468 = vmatpush3.bf16.msra.mxu1 %v1484_v52  ;;  %v1493_v22 = vpop.eup %1492  ;;  %1512 = vrcp.f32 %v600_v12  ;;  %v602_v23 = vadd.f32 1.0, %v1491_v17  ;;  %v1847_v62 = vadd.f32 %v1708_v7, %v453_v39  ;;  %v457_v63 = vmul.f32 %v1703_v6, %v417_v47  ;;  %v418_v12 = vld [vmem:[%s1693_s17 + $0xc0] sm:$0xff]  ;;  %v1901_v47 = vld [vmem:[%s1854_s15 + $0x30] sm:$0xff] }
  0x28   : > { %1420 = vmatprep.subr.bf16.mxu0 %v1485_v1  ;;  %1461 = vmatprep.subr.bf16.mxu1 %v1485_v1  ;;  %v1495_v28 = vpop.eup %1494  ;;  %1514 = vrcp.f32 %v601_v18  ;;  %v603_v31 = vadd.f32 1.0, %v1493_v22  ;;  %v1857_v2 = vmul.f32 -1.442695, %v1829_v38  ;;  %v1860_v3 = vadd.f32 %v1708_v7, %v454_v46  ;;  %v362_v22 = vld [vmem:[%s1854_s15] sm:$0xff]  ;;  %v367_v46 = vld [vmem:[%s1854_s15 + $0x28] sm:$0xff] }
  0x29   : > { %v1497_v35 = vpop.eup %1496  ;;  %1516 = vrcp.f32 %v602_v23  ;;  %v604_v37 = vadd.f32 1.0, %v1495_v28  ;;  %2198 = vst [vmem:[#allocation2_spill] sm:$0xff] %v1847_v62  ;;  %v1863_v9 = vmul.f32 -1.442695, %v1834_v44  ;;  %v1866_v11 = vadd.f32 %v1708_v7, %v455_v51  ;;  %v1910_v51 = vld [vmem:[%s1854_s15 + $0x48] sm:$0xff] }
  0x2a   : > { %v1499_v41 = vpop.eup %1498  ;;  %1518 = vrcp.f32 %v603_v31  ;;  %v605_v43 = vadd.f32 1.0, %v1497_v35  ;;  %2199 = vst [vmem:[#allocation3_spill] sm:$0xff] %v1860_v3  ;;  %v1870_v17 = vmul.f32 -1.442695, %v1843_v55  ;;  %v1873_v18 = vadd.f32 %v1708_v7, %v456_v58  ;;  %v364_v35 = vld [vmem:[%s1854_s15 + $0x10] sm:$0xff]  ;;  %v1922_v58 = vld [vmem:[%s1854_s15 + $0x68] sm:$0xff] }
  0x2b   : > { %1421 = vmatpush3.bf16.msra.mxu0 %v1485_v1  ;;  %1469 = vmatpush3.bf16.msra.mxu1 %v1485_v1  ;;  %v1501_v48 = vpop.eup %1500  ;;  %1520 = vrcp.f32 %v604_v37  ;;  %v606_v49 = vadd.f32 1.0, %v1499_v41  ;;  %2200 = vst [vmem:[#allocation4_spill] sm:$0xff] %v1866_v11  ;;  %v1878_v27 = vmul.f32 -1.442695, %v1847_v62  ;;  %v1881_v28 = vadd.f32 %v1708_v7, %v457_v63  ;;  %v365_v37 = vld [vmem:[%s1854_s15 + $0x18] sm:$0xff]  ;;  %v1932_v63 = vld [vmem:[%s1854_s15 + $0x80] sm:$0xff] }
  0x2c   : > { %v1503_v52 = vpop.eup %1502  ;;  %1522 = vrcp.f32 %v605_v43  ;;  %v607_v54 = vadd.f32 1.0, %v1501_v48  ;;  %v1888_v39 = vmul.f32 -1.442695, %v1860_v3  ;;  %v458_v40 = vmul.f32 %v1703_v6, %v418_v12  ;;  %v366_v43 = vld [vmem:[%s1854_s15 + $0x20] sm:$0xff]  ;;  %v1904_v48 = vld [vmem:[%s1854_s15 + $0x38] sm:$0xff]  ;;  %v1947_v12 = vld [vmem:[%s1854_s15 + $0xa8] sm:$0xff] }
  0x2d   : > { %v1505_v59 = vpop.eup %1504  ;;  %1524 = vrcp.f32 %v606_v49  ;;  %v608_v61 = vadd.f32 1.0, %v1503_v52  ;;  %v1907_v49 = vld [vmem:[%s1854_s15 + $0x40] sm:$0xff]  ;;  %v1913_v52 = vld [vmem:[%s1854_s15 + $0x50] sm:$0xff]  ;;  %2204 = vst [vmem:[#allocation8_spill] sm:$0xff] %v1947_v12 }
  0x2e   : > { %v1507_v0 = vpop.eup %1506  ;;  %1526 = vrcp.f32 %v607_v54  ;;  %v609_v1 = vadd.f32 1.0, %v1505_v59  ;;  %v1919_v54 = vld [vmem:[%s1854_s15 + $0x60] sm:$0xff]  ;;  %v1926_v59 = vld [vmem:[%s1854_s15 + $0x70] sm:$0xff] }
  0x2f   : > { %v1509_v5 = vpop.eup %1508  ;;  %1528 = vrcp.f32 %v608_v61  ;;  %v610_v8 = vadd.f32 1.0, %v1507_v0  ;;  %v1929_v61 = vld [vmem:[%s1854_s15 + $0x78] sm:$0xff]  ;;  %v1935_v0 = vld [vmem:[%s1854_s15 + $0x88] sm:$0xff] }
  0x30   : > { %v1511_v13 = vpop.eup %1510  ;;  %1530 = vrcp.f32 %v609_v1  ;;  %v611_v16 = vadd.f32 1.0, %v1509_v5  ;;  %v1938_v1 = vld [vmem:[%s1854_s15 + $0x90] sm:$0xff]  ;;  %v1941_v5 = vld [vmem:[%s1854_s15 + $0x98] sm:$0xff] }
  0x31   : > { %v1513_v21 = vpop.eup %1512  ;;  %1532 = vrcp.f32 %v610_v8  ;;  %v612_v23 = vadd.f32 1.0, %v1511_v13  ;;  %2201 = vst [vmem:[#allocation5_spill] sm:$0xff] %v1938_v1  ;;  %2202 = vst [vmem:[#allocation6_spill] sm:$0xff] %v1941_v5  ;;  %v1944_v8 = vld [vmem:[%s1854_s15 + $0xa0] sm:$0xff]  ;;  %v1953_v13 = vld [vmem:[%s1854_s15 + $0xb0] sm:$0xff]  ;;  %v459_v5 = vmul.f32 %v1703_v6, %v419_v20 }
  0x32   : > { %v1515_v31 = vpop.eup %1514  ;;  %v696_v34 = vmul.f32 %v1513_v21, %v1719_v14  ;;  %1534 = vrcp.f32 %v611_v16  ;;  %2203 = vst [vmem:[#allocation7_spill] sm:$0xff] %v1944_v8  ;;  %2205 = vst [vmem:[#allocation9_spill] sm:$0xff] %v1953_v13  ;;  %v1956_v16 = vld [vmem:[%s1854_s15 + $0xb8] sm:$0xff]  ;;  %v1959_v21 = vld [vmem:[%s1854_s15 + $0xc0] sm:$0xff]  ;;  %v1363_v20 = vmul.f32 -1.442695, %v1881_v28 }
  0x33   : > { %v1517_v41 = vpop.eup %1516  ;;  %v697_v14 = vmul.f32 %v1515_v31, %v1722_v15  ;;  %v1916_v15 = vld [vmem:[%s1854_s15 + $0x58] sm:$0xff]  ;;  %1536 = vpow2.f32 %v1817_v24  ;;  %v1950_v24 = vmul.f32 -1.442695, %v1866_v11  ;;  %2206 = vst [vmem:[#allocation10_spill] sm:$0xff] %v1956_v16  ;;  %2207 = vst [vmem:[#allocation11_spill] sm:$0xff] %v1959_v21  ;;  %v1962_v31 = vld [vmem:[%s1854_s15 + $0xc8] sm:$0xff] }
  0x34   : > { %2208 = vst [vmem:[#allocation12_spill] sm:$0xff] %v1962_v31  ;;  %v1519_v3 = vpop.eup %1518  ;;  %v728_v8 = vadd.f32 %v696_v34, %v362_v22  ;;  %v698_v12 = vmul.f32 %v1517_v41, %v1728_v19  ;;  %1538 = vrcp.f32 %v612_v23  ;;  %v1362_v11 = vmul.f32 -1.442695, %v1873_v18  ;;  %v1968_v1 = vld [vmem:[%s1854_s15 + $0xd0] sm:$0xff]  ;;  %v1971_v16 = vld [vmem:[%s1854_s15 + $0xd8] sm:$0xff]  ;;  %v1974_v21 = vld [vmem:[%s1854_s15 + $0xe0] sm:$0xff] }
  0x35   : > { %2209 = vst [vmem:[#allocation13_spill] sm:$0xff] %v1974_v21  ;;  %v1521_v13 = vpop.eup %1520  ;;  %v729_v31 = vadd.f32 %v697_v14, %v363_v33  ;;  %v699_v62 = vmul.f32 %v1519_v3, %v1737_v26  ;;  %1540 = vpow2.f32 %v1824_v32  ;;  %v1980_v19 = vld [vmem:[%s1854_s15 + $0xe8] sm:$0xff]  ;;  %v1983_v22 = vld [vmem:[%s1854_s15 + $0xf0] sm:$0xff]  ;;  %v1986_v23 = vld [vmem:[%s1854_s15 + $0xf8] sm:$0xff]  ;;  %v1991_v26 = vadd.f32 %v1708_v7, %v458_v40 }
  0x36   : > { %2210 = vst [vmem:[#allocation14_spill] sm:$0xff] %v1986_v23  ;;  %v1523_v34 = vpop.eup %1522  ;;  %v730_v41 = vadd.f32 %v698_v12, %v364_v35  ;;  %v700_v21 = vmul.f32 %v1521_v13, %v1742_v29  ;;  %1542 = vpow2.f32 %v1839_v50  ;;  %760 = vst [vmem:[%s1895_s19] sm:$0xff] %v728_v8  ;;  %v2000_v29 = vadd.f32 %v1708_v7, %v459_v5 }
  0x37   : > { %v1525_v32 = vpop.eup %1524  ;;  %v792_v3 = vpack.c.bf16 %v729_v31, %v728_v8  ;;  %v731_v33 = vadd.f32 %v699_v62, %v365_v37  ;;  %v701_v14 = vmul.f32 %v1523_v34, %v1745_v30  ;;  %1544 = vpow2.f32 %v1857_v2  ;;  %761 = vst [vmem:[%s1895_s19 + $0x8] sm:$0xff] %v729_v31 }
  0x38   : > { %v1527_v23 = vpop.eup %1526  ;;  %v732_v35 = vadd.f32 %v700_v21, %v366_v43  ;;  %v702_v12 = vmul.f32 %v1525_v32, %v1755_v36  ;;  %1546 = vpow2.f32 %v1863_v9  ;;  %762 = vst [vmem:[%s1895_s19 + $0x10] sm:$0xff] %v730_v41  ;;  %v1364_v40 = vmul.f32 -1.442695, %v1991_v26 }
  0x39   : > { %v1529_v50 = vpop.eup %1528  ;;  %1422 = vmatprep.mubr.bf16.mxu0 %v792_v3  ;;  %v793_v62 = vpack.c.bf16 %v731_v33, %v730_v41  ;;  %v733_v37 = vadd.f32 %v701_v14, %v367_v46  ;;  %v703_v30 = vmul.f32 %v1527_v23, %v1763_v42  ;;  %1548 = vpow2.f32 %v1870_v17  ;;  %763 = vst [vmem:[%s1895_s19 + $0x18] sm:$0xff] %v731_v33  ;;  %v421_v23 = vld [vmem:[%s1693_s17 + $0xd8] sm:$0xff]  ;;  %v422_v41 = vld [vmem:[%s1693_s17 + $0xe0] sm:$0xff]  ;;  %v423_v33 = vld [vmem:[%s1693_s17 + $0xe8] sm:$0xff] }
  0x3a   : > { %v1531_v2 = vpop.eup %1530  ;;  %v734_v36 = vadd.f32 %v702_v12, %v1901_v47  ;;  %v704_v9 = vmul.f32 %v1529_v50, %v1768_v45  ;;  %1550 = vpow2.f32 %v1878_v27  ;;  %764 = vst [vmem:[%s1895_s19 + $0x20] sm:$0xff] %v732_v35  ;;  %v424_v12 = vld [vmem:[%s1693_s17 + $0xf0] sm:$0xff]  ;;  %v425_v50 = vld [vmem:[%s1693_s17 + $0xf8] sm:$0xff] }
  0x3b   : > { %v1533_v43 = vpop.eup %1532  ;;  %1423 = vmatmul.mubr.bf16.vlgmr.msra.gmra.mrb[0].mxu0 %v793_v62  ;;  %v794_v46 = vpack.c.bf16 %v733_v37, %v732_v35  ;;  %v735_v42 = vadd.f32 %v703_v30, %v1904_v48  ;;  %v705_v17 = vmul.f32 %v1531_v2, %v1780_v53  ;;  %1552 = vpow2.f32 %v1888_v39  ;;  %765 = vst [vmem:[%s1895_s19 + $0x28] sm:$0xff] %v733_v37 }
  0x3c   : > { %v1535_v47 = vpop.eup %1534  ;;  %v736_v45 = vadd.f32 %v704_v9, %v1907_v49  ;;  %v706_v27 = vmul.f32 %v1533_v43, %v1785_v56  ;;  %1554 = vpow2.f32 %v1950_v24  ;;  %766 = vst [vmem:[%s1895_s19 + $0x30] sm:$0xff] %v734_v36  ;;  %v1365_v39 = vmul.f32 -1.442695, %v2000_v29  ;;  %v420_v24 = vld [vmem:[%s1693_s17 + $0xd0] sm:$0xff] }
  0x3d   : > { %v1537_v5 = vpop.eup %1536  ;;  %1426 = vmatprep.mubr.bf16.mxu0 %v794_v46  ;;  %v737_v8 = vadd.f32 %v705_v17, %v1910_v51  ;;  %v707_v53 = vmul.f32 %v1535_v47, %v1788_v57  ;;  %1556 = vpow2.f32 %v1362_v11  ;;  %767 = vst [vmem:[%s1895_s19 + $0x38] sm:$0xff] %v735_v42  ;;  %v795_v21 = vpack.c.bf16 %v735_v42, %v734_v36 }
  0x3e   : > { %v1539_v48 = vpop.eup %1538  ;;  %v2024_v49 = vadd.f32 %v706_v27, %v1913_v52  ;;  %v613_v56 = vadd.f32 1.0, %v1537_v5  ;;  %1558 = vpow2.f32 %v1363_v20  ;;  %768 = vst [vmem:[%s1895_s19 + $0x40] sm:$0xff] %v736_v45  ;;  %v462_v30 = vmul.f32 %v1703_v6, %v422_v41 }
  0x3f   : > { %v1541_v13 = vpop.eup %1540  ;;  %v2029_v51 = vadd.f32 %v707_v53, %v1916_v15  ;;  %v708_v57 = vmul.f32 %v1539_v48, %v1793_v60  ;;  %1560 = vpow2.f32 %v1364_v40  ;;  %769 = vst [vmem:[%s1895_s19 + $0x48] sm:$0xff] %v737_v8  ;;  %v796_v52 = vpack.c.bf16 %v737_v8, %v736_v45 }
  0x40   : > { %v1543_v11 = vpop.eup %1542  ;;  %1562 = vrcp.f32 %v613_v56  ;;  %v614_v31 = vadd.f32 1.0, %v1541_v13  ;;  %770 = vst [vmem:[%s1895_s19 + $0x50] sm:$0xff] %v2024_v49  ;;  %v460_v60 = vmul.f32 %v1703_v6, %v420_v24  ;;  %v463_v40 = vmul.f32 %v1703_v6, %v423_v33 }
  0x41   : > { %v1545_v20 = vpop.eup %1544  ;;  %v2037_v34 = vadd.f32 %v708_v57, %v1919_v54  ;;  %v615_v15 = vadd.f32 1.0, %v1543_v11  ;;  %1564 = vpow2.f32 %v1365_v39  ;;  %771 = vst [vmem:[%s1895_s19 + $0x58] sm:$0xff] %v2029_v51  ;;  %v461_v54 = vmul.f32 %v1703_v6, %v421_v23 }
  0x42   : > { %v1547_v32 = vpop.eup %1546  ;;  %1566 = vrcp.f32 %v614_v31  ;;  %v616_v3 = vadd.f32 1.0, %v1545_v20  ;;  %v2051_v9 = vadd.f32 %v1708_v7, %v460_v60  ;;  %v464_v42 = vmul.f32 %v1703_v6, %v424_v12 }
  0x43   : > { %v1549_v14 = vpop.eup %1548  ;;  %1427 = vmatmul.mubr.bf16.gmra.mrb[4].mxu0 %v795_v21  ;;  %1568 = vrcp.f32 %v615_v15  ;;  %v617_v35 = vadd.f32 1.0, %v1547_v32  ;;  %772 = vst [vmem:[%s1895_s19 + $0x60] sm:$0xff] %v2037_v34  ;;  %v465_v17 = vmul.f32 %v1703_v6, %v425_v50  ;;  %v797_v45 = vpack.c.bf16 %v2029_v51, %v2024_v49 }
  0x44   : > { %v1551_v62 = vpop.eup %1550  ;;  %1430 = vmatprep.mubr.bf16.mxu0 %v796_v52  ;;  %1570 = vrcp.f32 %v616_v3  ;;  %v618_v37 = vadd.f32 1.0, %v1549_v14  ;;  %v2059_v5 = vadd.f32 %v1708_v7, %v461_v54  ;;  %v2062_v39 = vadd.f32 %v1708_v7, %v462_v30  ;;  %v2211_v30 = vld [vmem:[#allocation2_spill] sm:$0xff] }
  0x45   : > { %v1553_v2 = vpop.eup %1552  ;;  %1572 = vrcp.f32 %v617_v35  ;;  %v619_v36 = vadd.f32 1.0, %v1551_v62  ;;  %v1366_v6 = vmul.f32 -1.442695, %v2051_v9  ;;  %v2066_v24 = vadd.f32 %v1708_v7, %v463_v40  ;;  %v2213_v40 = vld [vmem:[#allocation3_spill] sm:$0xff] }
  0x46   : > { %v1555_v43 = vpop.eup %1554  ;;  %1574 = vrcp.f32 %v618_v37  ;;  %v620_v46 = vadd.f32 1.0, %v1553_v2  ;;  %v2069_v21 = vadd.f32 %v1708_v7, %v464_v42  ;;  %v2072_v51 = vadd.f32 %v1708_v7, %v465_v17  ;;  %v2215_v17 = vld [vmem:[#allocation4_spill] sm:$0xff] }
  0x47   : > { %v1557_v47 = vpop.eup %1556  ;;  %1576 = vrcp.f32 %v619_v36  ;;  %v621_v27 = vadd.f32 1.0, %v1555_v43  ;;  %v1367_v52 = vmul.f32 -1.442695, %v2059_v5  ;;  %v1368_v20 = vmul.f32 -1.442695, %v2062_v39 }
  0x48   : > { %v1559_v8 = vpop.eup %1558  ;;  %1578 = vrcp.f32 %v620_v46  ;;  %v622_v53 = vadd.f32 1.0, %v1557_v47  ;;  %v1369_v7 = vmul.f32 -1.442695, %v2066_v24  ;;  %v1370_v3 = vmul.f32 -1.442695, %v2069_v21  ;;  %v2214_v46 = vld [vmem:[#allocation6_spill] sm:$0xff] }
  0x49   : > { %v1561_v48 = vpop.eup %1560  ;;  %1580 = vrcp.f32 %v621_v27  ;;  %v623_v56 = vadd.f32 1.0, %v1559_v8  ;;  %v1371_v33 = vmul.f32 -1.442695, %v2072_v51 }
  0x4a   : > { %v1563_v49 = vpop.eup %1562  ;;  %1582 = vrcp.f32 %v622_v53  ;;  %v624_v13 = vadd.f32 1.0, %v1561_v48 }
  0x4b   : > { %v1565_v57 = vpop.eup %1564  ;;  %1431 = vmatmul.mubr.bf16.gmra.mrb[8].mxu0 %v797_v45  ;;  %v709_v11 = vmul.f32 %v1563_v49, %v1805_v4  ;;  %1584 = vrcp.f32 %v623_v56  ;;  %v2216_v45 = vld [vmem:[#allocation7_spill] sm:$0xff]  ;;  %v2217_v56 = vld [vmem:[#allocation8_spill] sm:$0xff] }
  0x4c   : > { %v1567_v31 = vpop.eup %1566  ;;  %v625_v23 = vadd.f32 1.0, %v1565_v57  ;;  %1586 = vrcp.f32 %v624_v13  ;;  %v2218_v57 = vld [vmem:[#allocation9_spill] sm:$0xff] }
  0x4d   : > { %v1569_v15 = vpop.eup %1568  ;;  %v741_v60 = vadd.f32 %v709_v11, %v1922_v58  ;;  %v710_v41 = vmul.f32 %v1567_v31, %v1810_v10  ;;  %1588 = vpow2.f32 %v1366_v6 }
  0x4e   : > { %v1571_v32 = vpop.eup %1570  ;;  %v711_v4 = vmul.f32 %v1569_v15, %v1820_v25  ;;  %1590 = vrcp.f32 %v625_v23  ;;  %v2219_v23 = vld [vmem:[#allocation10_spill] sm:$0xff] }
  0x4f   : > { %v1573_v14 = vpop.eup %1572  ;;  %v798_v35 = vpack.c.bf16 %v741_v60, %v2037_v34  ;;  %v742_v54 = vadd.f32 %v710_v41, %v1926_v59  ;;  %v712_v58 = vmul.f32 %v1571_v32, %v1829_v38  ;;  %1592 = vpow2.f32 %v1367_v52  ;;  %773 = vst [vmem:[%s1895_s19 + $0x68] sm:$0xff] %v741_v60 }
  0x50   : > { %v1575_v10 = vpop.eup %1574  ;;  %v743_v12 = vadd.f32 %v711_v4, %v1929_v61  ;;  %v713_v25 = vmul.f32 %v1573_v14, %v1834_v44  ;;  %1594 = vpow2.f32 %v1368_v20  ;;  %v2212_v61 = vld [vmem:[#allocation5_spill] sm:$0xff] }
  0x51   : > { %v1577_v50 = vpop.eup %1576  ;;  %1434 = vmatprep.mubr.bf16.mxu0 %v798_v35  ;;  %v744_v62 = vadd.f32 %v712_v58, %v1932_v63  ;;  %v714_v34 = vmul.f32 %v1575_v10, %v1843_v55  ;;  %1596 = vpow2.f32 %v1369_v7  ;;  %774 = vst [vmem:[%s1895_s19 + $0x70] sm:$0xff] %v742_v54 }
  0x52   : > { %v1579_v59 = vpop.eup %1578  ;;  %v799_v38 = vpack.c.bf16 %v743_v12, %v742_v54  ;;  %v745_v37 = vadd.f32 %v713_v25, %v1935_v0  ;;  %v715_v2 = vmul.f32 %v1577_v50, %v2211_v30  ;;  %1598 = vpow2.f32 %v1370_v3  ;;  %775 = vst [vmem:[%s1895_s19 + $0x78] sm:$0xff] %v743_v12  ;;  %v2221_v3 = vld [vmem:[#allocation12_spill] sm:$0xff] }
  0x53   : > { %v1581_v44 = vpop.eup %1580  ;;  %v746_v36 = vadd.f32 %v714_v34, %v2212_v61  ;;  %v716_v43 = vmul.f32 %v1579_v59, %v2213_v40  ;;  %1600 = vpow2.f32 %v1371_v33  ;;  %776 = vst [vmem:[%s1895_s19 + $0x80] sm:$0xff] %v744_v62  ;;  %v2222_v40 = vld [vmem:[#allocation13_spill] sm:$0xff] }
  0x54   : > { %v1583_v55 = vpop.eup %1582  ;;  %1435 = vmatmul.mubr.bf16.gmra.mrb[12].mxu0 %v799_v38  ;;  %v800_v63 = vpack.c.bf16 %v745_v37, %v744_v62  ;;  %v747_v42 = vadd.f32 %v715_v2, %v2214_v46  ;;  %v717_v0 = vmul.f32 %v1581_v44, %v2215_v17  ;;  %777 = vst [vmem:[%s1895_s19 + $0x88] sm:$0xff] %v745_v37 }
  0x55   : > { %v1585_v47 = vpop.eup %1584  ;;  %v748_v27 = vadd.f32 %v716_v43, %v2216_v45  ;;  %v718_v8 = vmul.f32 %v1583_v55, %v1873_v18  ;;  %778 = vst [vmem:[%s1895_s19 + $0x90] sm:$0xff] %v746_v36 }
  0x56   : > { %v1587_v53 = vpop.eup %1586  ;;  %1438 = vmatprep.mubr.bf16.mxu1 %v800_v63  ;;  %v801_v48 = vpack.c.bf16 %v747_v42, %v746_v36  ;;  %v749_v6 = vadd.f32 %v717_v0, %v2217_v56  ;;  %v719_v49 = vmul.f32 %v1585_v47, %v1881_v28  ;;  %779 = vst [vmem:[%s1895_s19 + $0x98] sm:$0xff] %v747_v42  ;;  %v2220_v28 = vld [vmem:[#allocation11_spill] sm:$0xff] }
  0x57   : > { %v1589_v13 = vpop.eup %1588  ;;  %v750_v11 = vadd.f32 %v718_v8, %v2218_v57  ;;  %v720_v52 = vmul.f32 %v1587_v53, %v1991_v26  ;;  %780 = vst [vmem:[%s1895_s19 + $0xa0] sm:$0xff] %v748_v27 }
  0x58   : > { %v1591_v31 = vpop.eup %1590  ;;  %1439 = vmatmul.mubr.bf16.vlgmr.msra.gmra.mrb[0].mxu1 %v801_v48  ;;  %v802_v18 = vpack.c.bf16 %v749_v6, %v748_v27  ;;  %v751_v20 = vadd.f32 %v719_v49, %v2219_v23  ;;  %v626_v15 = vadd.f32 1.0, %v1589_v13  ;;  %781 = vst [vmem:[%s1895_s19 + $0xa8] sm:$0xff] %v749_v6 }
  0x59   : > { %v1593_v60 = vpop.eup %1592  ;;  %v721_v41 = vmul.f32 %v1591_v31, %v2000_v29  ;;  %v752_v7 = vadd.f32 %v720_v52, %v2220_v28  ;;  %782 = vst [vmem:[%s1895_s19 + $0xb0] sm:$0xff] %v750_v11 }
  0x5a   : > { %v1595_v32 = vpop.eup %1594  ;;  %1442 = vmatprep.mubr.bf16.mxu1 %v802_v18  ;;  %v627_v26 = vadd.f32 1.0, %v1593_v60  ;;  %1602 = vrcp.f32 %v626_v15  ;;  %783 = vst [vmem:[%s1895_s19 + $0xb8] sm:$0xff] %v751_v20  ;;  %v803_v54 = vpack.c.bf16 %v751_v20, %v750_v11 }
  0x5b   : > { %v1597_v4 = vpop.eup %1596  ;;  %v753_v33 = vadd.f32 %v721_v41, %v2221_v3  ;;  %v628_v14 = vadd.f32 1.0, %v1595_v32  ;;  %784 = vst [vmem:[%s1895_s19 + $0xc0] sm:$0xff] %v752_v7 }
  0x5c   : > { %v1599_v35 = vpop.eup %1598  ;;  %1604 = vrcp.f32 %v627_v26  ;;  %v629_v58 = vadd.f32 1.0, %v1597_v4 }
  0x5d   : > { %v1601_v10 = vpop.eup %1600  ;;  %v804_v29 = vpack.c.bf16 %v753_v33, %v752_v7  ;;  %1606 = vrcp.f32 %v628_v14  ;;  %v630_v12 = vadd.f32 1.0, %v1599_v35  ;;  %785 = vst [vmem:[%s1895_s19 + $0xc8] sm:$0xff] %v753_v33 }
  0x5e   : > { %1608 = vrcp.f32 %v629_v58  ;;  %v631_v25 = vadd.f32 1.0, %v1601_v10 }
  0x5f   : > { %1610 = vrcp.f32 %v630_v12 }
  0x60   : > { %1443 = vmatmul.mubr.bf16.gmra.mrb[4].mxu1 %v803_v54  ;;  %1612 = vrcp.f32 %v631_v25 }
  0x61   : > { %1446 = vmatprep.mubr.bf16.mxu1 %v804_v29 }
  0x64   : > { %v1603_v50 = vpop.eup %1602 }
  0x65   : > { %v722_v62 = vmul.f32 %v1603_v50, %v2051_v9 }
  0x66   : > { %v1605_v34 = vpop.eup %1604 }
  0x67   : > { %v1607_v59 = vpop.eup %1606  ;;  %v723_v38 = vmul.f32 %v1605_v34, %v2059_v5  ;;  %v754_v37 = vadd.f32 %v722_v62, %v1968_v1 }
  0x68   : > { %v1609_v30 = vpop.eup %1608  ;;  %v724_v2 = vmul.f32 %v1607_v59, %v2062_v39 }
  0x69   : > { %v1611_v44 = vpop.eup %1610  ;;  %v755_v61 = vadd.f32 %v723_v38, %v1971_v16  ;;  %v725_v36 = vmul.f32 %v1609_v30, %v2066_v24  ;;  %786 = vst [vmem:[%s1895_s19 + $0xd0] sm:$0xff] %v754_v37  ;;  %v2223_v24 = vld [vmem:[#allocation14_spill] sm:$0xff] }
  0x6a   : > { %v1613_v9 = vpop.eup %1612  ;;  %v756_v43 = vadd.f32 %v724_v2, %v2222_v40  ;;  %v726_v5 = vmul.f32 %v1611_v44, %v2069_v21 }
  0x6b   : > { %v805_v55 = vpack.c.bf16 %v755_v61, %v754_v37  ;;  %v757_v1 = vadd.f32 %v725_v36, %v1980_v19  ;;  %v727_v39 = vmul.f32 %v1613_v9, %v2072_v51  ;;  %787 = vst [vmem:[%s1895_s19 + $0xd8] sm:$0xff] %v755_v61 }
  0x6c   : > { %v758_v63 = vadd.f32 %v726_v5, %v1983_v22  ;;  %788 = vst [vmem:[%s1895_s19 + $0xe0] sm:$0xff] %v756_v43 }
  0x6d   : > { %1447 = vmatmul.mubr.bf16.gmra.mrb[8].mxu1 %v805_v55  ;;  %v806_v16 = vpack.c.bf16 %v757_v1, %v756_v43  ;;  %v759_v46 = vadd.f32 %v727_v39, %v2223_v24  ;;  %789 = vst [vmem:[%s1895_s19 + $0xe8] sm:$0xff] %v757_v1 }
  0x6e   : > { %790 = vst [vmem:[%s1895_s19 + $0xf0] sm:$0xff] %v758_v63 }
  0x6f   : > { %1450 = vmatprep.mubr.bf16.mxu1 %v806_v16  ;;  %791 = vst [vmem:[%s1895_s19 + $0xf8] sm:$0xff] %v759_v46  ;;  %v807_v42 = vpack.c.bf16 %v759_v46, %v758_v63 }
  0x75   : > { %1451 = vmatmul.mubr.bf16.gmra.mrb[12].mxu1 %v807_v42 }
 0x10e   : > { %v1424_v19 = vpop.f32.mrb[0].mxu0 }
 0x10f   : > { %1035 = vst [vmem:[%s2141_s21 + $0x10] sm:$0xff] %v1424_v19  ;;  %v906_v22 = vpop.f32.mrb[1].mxu0  ;;  %v1105_v45 = vmul.f32 %v1424_v19, %v1424_v19 }
 0x110   : > { %1033 = vst [vmem:[%s2141_s21] sm:$0xff] %v906_v22  ;;  %v1425_v21 = vpop.f32.mrb[2].mxu0  ;;  %v1103_v17 = vmul.f32 %v906_v22, %v906_v22 }
 0x111   : > { %1036 = vst [vmem:[%s2141_s21 + $0x18] sm:$0xff] %v1425_v21  ;;  %v909_v51 = vpop.f32.mrb[3].mxu0  ;;  %v1106_v53 = vmul.f32 %v1425_v21, %v1425_v21 }
 0x112   : > { %1034 = vst [vmem:[%s2141_s21 + $0x8] sm:$0xff] %v909_v51  ;;  %v1065_v0 = vadd.f32 %v909_v51, %v906_v22  ;;  %v1104_v47 = vmul.f32 %v909_v51, %v909_v51 }
 0x114   : > { %v1066_v27 = vadd.f32 %v1424_v19, %v1065_v0  ;;  %v1135_v8 = vadd.f32 %v1104_v47, %v1103_v17 }
 0x116   : > { %v1136_v48 = vadd.f32 %v1135_v8, %v1105_v45  ;;  %v1428_v56 = vpop.f32.mrb[4].mxu0  ;;  %v1067_v6 = vadd.f32 %v1425_v21, %v1066_v27 }
 0x117   : > { %1039 = vst [vmem:[%s2141_s21 + $0x30] sm:$0xff] %v1428_v56  ;;  %v922_v49 = vpop.f32.mrb[5].mxu0  ;;  %v1109_v15 = vmul.f32 %v1428_v56, %v1428_v56 }
 0x118   : > { %1037 = vst [vmem:[%s2141_s21 + $0x20] sm:$0xff] %v922_v49  ;;  %v1068_v13 = vadd.f32 %v1067_v6, %v922_v49  ;;  %v1107_v57 = vmul.f32 %v922_v49, %v922_v49  ;;  %v1137_v11 = vadd.f32 %v1136_v48, %v1106_v53  ;;  %v1429_v52 = vpop.f32.mrb[6].mxu0 }
 0x119   : > { %1040 = vst [vmem:[%s2141_s21 + $0x38] sm:$0xff] %v1429_v52  ;;  %v925_v31 = vpop.f32.mrb[7].mxu0  ;;  %v1110_v28 = vmul.f32 %v1429_v52, %v1429_v52 }
 0x11a   : > { %v1138_v18 = vadd.f32 %v1137_v11, %v1107_v57  ;;  %1038 = vst [vmem:[%s2141_s21 + $0x28] sm:$0xff] %v925_v31  ;;  %v1069_v23 = vadd.f32 %v1068_v13, %v925_v31  ;;  %v1108_v20 = vmul.f32 %v925_v31, %v925_v31 }
 0x11c   : > { %v1070_v60 = vadd.f32 %v1428_v56, %v1069_v23  ;;  %v1139_v41 = vadd.f32 %v1138_v18, %v1108_v20 }
 0x11e   : > { %v1140_v7 = vadd.f32 %v1139_v41, %v1109_v15  ;;  %v1432_v32 = vpop.f32.mrb[8].mxu0  ;;  %v1071_v26 = vadd.f32 %v1429_v52, %v1070_v60 }
 0x11f   : > { %1043 = vst [vmem:[%s2141_s21 + $0x50] sm:$0xff] %v1432_v32  ;;  %v938_v4 = vpop.f32.mrb[9].mxu0  ;;  %v1113_v12 = vmul.f32 %v1432_v32, %v1432_v32 }
 0x120   : > { %1041 = vst [vmem:[%s2141_s21 + $0x40] sm:$0xff] %v938_v4  ;;  %v1072_v3 = vadd.f32 %v1071_v26, %v938_v4  ;;  %v1111_v33 = vmul.f32 %v938_v4, %v938_v4  ;;  %v1141_v14 = vadd.f32 %v1140_v7, %v1110_v28  ;;  %v1433_v35 = vpop.f32.mrb[10].mxu0 }
 0x121   : > { %1044 = vst [vmem:[%s2141_s21 + $0x58] sm:$0xff] %v1433_v35  ;;  %v941_v54 = vpop.f32.mrb[11].mxu0  ;;  %v1114_v62 = vmul.f32 %v1433_v35, %v1433_v35 }
 0x122   : > { %v1142_v58 = vadd.f32 %v1141_v14, %v1111_v33  ;;  %1042 = vst [vmem:[%s2141_s21 + $0x48] sm:$0xff] %v941_v54  ;;  %v1073_v10 = vadd.f32 %v1072_v3, %v941_v54  ;;  %v1112_v29 = vmul.f32 %v941_v54, %v941_v54 }
 0x124   : > { %v1074_v25 = vadd.f32 %v1432_v32, %v1073_v10  ;;  %v1143_v50 = vadd.f32 %v1142_v58, %v1112_v29 }
 0x126   : > { %v1144_v34 = vadd.f32 %v1143_v50, %v1113_v12  ;;  %v1075_v59 = vadd.f32 %v1433_v35, %v1074_v25 }
 0x127   : > { %v1436_v38 = vpop.f32.mrb[12].mxu0 }
 0x128   : > { %1047 = vst [vmem:[%s2141_s21 + $0x70] sm:$0xff] %v1436_v38  ;;  %v954_v37 = vpop.f32.mrb[13].mxu0  ;;  %v1145_v30 = vadd.f32 %v1144_v34, %v1114_v62  ;;  %v1117_v1 = vmul.f32 %v1436_v38, %v1436_v38 }
 0x129   : > { %1045 = vst [vmem:[%s2141_s21 + $0x60] sm:$0xff] %v954_v37  ;;  %v1076_v2 = vadd.f32 %v1075_v59, %v954_v37  ;;  %v1115_v44 = vmul.f32 %v954_v37, %v954_v37  ;;  %v1437_v61 = vpop.f32.mrb[14].mxu0 }
 0x12a   : > { %1048 = vst [vmem:[%s2141_s21 + $0x78] sm:$0xff] %v1437_v61  ;;  %v957_v36 = vpop.f32.mrb[15].mxu0  ;;  %v1118_v46 = vmul.f32 %v1437_v61, %v1437_v61 }
 0x12b   : > { %v1146_v9 = vadd.f32 %v1145_v30, %v1115_v44  ;;  %1046 = vst [vmem:[%s2141_s21 + $0x68] sm:$0xff] %v957_v36  ;;  %v1077_v40 = vadd.f32 %v1076_v2, %v957_v36  ;;  %v1116_v43 = vmul.f32 %v957_v36, %v957_v36  ;;  %v1440_v5 = vpop.f32.mrb[0].mxu1 }
 0x12c   : > { %1051 = vst [vmem:[%s2141_s21 + $0x90] sm:$0xff] %v1440_v5  ;;  %v970_v55 = vpop.f32.mrb[1].mxu1  ;;  %v1121_v8 = vmul.f32 %v1440_v5, %v1440_v5 }
 0x12d   : > { %v1078_v39 = vadd.f32 %v1436_v38, %v1077_v40  ;;  %v1147_v63 = vadd.f32 %v1146_v9, %v1116_v43  ;;  %1049 = vst [vmem:[%s2141_s21 + $0x80] sm:$0xff] %v970_v55  ;;  %v1441_v16 = vpop.f32.mrb[2].mxu1  ;;  %v1119_v22 = vmul.f32 %v970_v55, %v970_v55 }
 0x12e   : > { %1052 = vst [vmem:[%s2141_s21 + $0x98] sm:$0xff] %v1441_v16  ;;  %v973_v24 = vpop.f32.mrb[3].mxu1  ;;  %v1122_v49 = vmul.f32 %v1441_v16, %v1441_v16 }
 0x12f   : > { %v1148_v42 = vadd.f32 %v1147_v63, %v1117_v1  ;;  %v1079_v19 = vadd.f32 %v1437_v61, %v1078_v39  ;;  %1050 = vst [vmem:[%s2141_s21 + $0x88] sm:$0xff] %v973_v24  ;;  %v1120_v47 = vmul.f32 %v973_v24, %v973_v24 }
 0x131   : > { %v1080_v21 = vadd.f32 %v1079_v19, %v970_v55  ;;  %v1149_v51 = vadd.f32 %v1148_v42, %v1118_v46 }
 0x133   : > { %v1150_v17 = vadd.f32 %v1149_v51, %v1119_v22  ;;  %v1081_v0 = vadd.f32 %v1080_v21, %v973_v24  ;;  %v1444_v45 = vpop.f32.mrb[4].mxu1 }
 0x134   : > { %1055 = vst [vmem:[%s2141_s21 + $0xb0] sm:$0xff] %v1444_v45  ;;  %v986_v27 = vpop.f32.mrb[5].mxu1  ;;  %v1125_v15 = vmul.f32 %v1444_v45, %v1444_v45 }
 0x135   : > { %v1082_v53 = vadd.f32 %v1440_v5, %v1081_v0  ;;  %v1151_v48 = vadd.f32 %v1150_v17, %v1120_v47  ;;  %1053 = vst [vmem:[%s2141_s21 + $0xa0] sm:$0xff] %v986_v27  ;;  %v1445_v56 = vpop.f32.mrb[6].mxu1  ;;  %v1123_v11 = vmul.f32 %v986_v27, %v986_v27 }
 0x136   : > { %1056 = vst [vmem:[%s2141_s21 + $0xb8] sm:$0xff] %v1445_v56  ;;  %v989_v6 = vpop.f32.mrb[7].mxu1  ;;  %v1126_v28 = vmul.f32 %v1445_v56, %v1445_v56 }
 0x137   : > { %v1152_v13 = vadd.f32 %v1151_v48, %v1121_v8  ;;  %v1083_v57 = vadd.f32 %v1441_v16, %v1082_v53  ;;  %1054 = vst [vmem:[%s2141_s21 + $0xa8] sm:$0xff] %v989_v6  ;;  %v1124_v20 = vmul.f32 %v989_v6, %v989_v6 }
 0x139   : > { %v1084_v52 = vadd.f32 %v1083_v57, %v986_v27  ;;  %v1153_v31 = vadd.f32 %v1152_v13, %v1122_v49 }
 0x13b   : > { %v1154_v18 = vadd.f32 %v1153_v31, %v1123_v11  ;;  %v1085_v23 = vadd.f32 %v1084_v52, %v989_v6 }
 0x13d   : > { %v1086_v60 = vadd.f32 %v1444_v45, %v1085_v23  ;;  %v1155_v41 = vadd.f32 %v1154_v18, %v1124_v20 }
 0x13f   : > { %v1156_v7 = vadd.f32 %v1155_v41, %v1125_v15  ;;  %v1087_v32 = vadd.f32 %v1445_v56, %v1086_v60 }
 0x140   : > { %v1448_v26 = vpop.f32.mrb[8].mxu1 }
 0x141   : > { %1059 = vst [vmem:[%s2141_s21 + $0xd0] sm:$0xff] %v1448_v26  ;;  %v1002_v4 = vpop.f32.mrb[9].mxu1  ;;  %v1157_v3 = vadd.f32 %v1156_v7, %v1126_v28  ;;  %v1129_v12 = vmul.f32 %v1448_v26, %v1448_v26 }
 0x142   : > { %1057 = vst [vmem:[%s2141_s21 + $0xc0] sm:$0xff] %v1002_v4  ;;  %v1088_v33 = vadd.f32 %v1087_v32, %v1002_v4  ;;  %v1127_v14 = vmul.f32 %v1002_v4, %v1002_v4  ;;  %v1449_v35 = vpop.f32.mrb[10].mxu1 }
 0x143   : > { %1060 = vst [vmem:[%s2141_s21 + $0xd8] sm:$0xff] %v1449_v35  ;;  %v1005_v54 = vpop.f32.mrb[11].mxu1  ;;  %v1130_v62 = vmul.f32 %v1449_v35, %v1449_v35 }
 0x144   : > { %v1158_v58 = vadd.f32 %v1157_v3, %v1127_v14  ;;  %1058 = vst [vmem:[%s2141_s21 + $0xc8] sm:$0xff] %v1005_v54  ;;  %v1089_v10 = vadd.f32 %v1088_v33, %v1005_v54  ;;  %v1128_v29 = vmul.f32 %v1005_v54, %v1005_v54 }
 0x146   : > { %v1090_v25 = vadd.f32 %v1448_v26, %v1089_v10  ;;  %v1159_v50 = vadd.f32 %v1158_v58, %v1128_v29 }
 0x148   : > { %v1160_v34 = vadd.f32 %v1159_v50, %v1129_v12  ;;  %v1452_v59 = vpop.f32.mrb[12].mxu1  ;;  %v1091_v38 = vadd.f32 %v1449_v35, %v1090_v25 }
 0x149   : > { %1063 = vst [vmem:[%s2141_s21 + $0xf0] sm:$0xff] %v1452_v59  ;;  %v1018_v37 = vpop.f32.mrb[13].mxu1  ;;  %v1133_v5 = vmul.f32 %v1452_v59, %v1452_v59 }
 0x14a   : > { %1061 = vst [vmem:[%s2141_s21 + $0xe0] sm:$0xff] %v1018_v37  ;;  %v1092_v30 = vadd.f32 %v1091_v38, %v1018_v37  ;;  %v1131_v2 = vmul.f32 %v1018_v37, %v1018_v37  ;;  %v1161_v44 = vadd.f32 %v1160_v34, %v1130_v62  ;;  %v1453_v61 = vpop.f32.mrb[14].mxu1 }
 0x14b   : > { %1064 = vst [vmem:[%s2141_s21 + $0xf8] sm:$0xff] %v1453_v61  ;;  %v1021_v36 = vpop.f32.mrb[15].mxu1  ;;  %v1134_v39 = vmul.f32 %v1453_v61, %v1453_v61 }
 0x14c   : > { %v1162_v9 = vadd.f32 %v1161_v44, %v1131_v2  ;;  %1062 = vst [vmem:[%s2141_s21 + $0xe8] sm:$0xff] %v1021_v36  ;;  %v1093_v40 = vadd.f32 %v1092_v30, %v1021_v36  ;;  %v1132_v43 = vmul.f32 %v1021_v36, %v1021_v36 }
 0x14e   : > { %v1094_v55 = vadd.f32 %v1452_v59, %v1093_v40  ;;  %v1163_v1 = vadd.f32 %v1162_v9, %v1132_v43 }
 0x150   : > { %v1095_v63 = vadd.f32 %v1453_v61, %v1094_v55  ;;  %v1164_v16 = vadd.f32 %v1163_v1, %v1133_v5 }
 0x152   : > { %v1096_v24 = vrot.slane %v1095_v63, 4  ;;  %v1165_v46 = vadd.f32 %v1164_v16, %v1134_v39 }
 0x154   : > { %v1097_v42 = vadd.f32 %v1096_v24, %v1095_v63  ;;  %v1166_v19 = vrot.slane %v1165_v46, 4 }
 0x156   : > { %v1098_v22 = vrot.slane %v1097_v42, 2  ;;  %v1167_v21 = vadd.f32 %v1166_v19, %v1165_v46 }
 0x158   : > { %v1099_v51 = vadd.f32 %v1098_v22, %v1097_v42  ;;  %v1168_v17 = vrot.slane %v1167_v21, 2 }
 0x15a   : > { %v1100_v0 = vrot.slane %v1099_v51, 1  ;;  %v1169_v47 = vadd.f32 %v1168_v17, %v1167_v21 }
 0x15c   : > { %v1101_v45 = vadd.f32 %v1100_v0, %v1099_v51  ;;  %v1170_v27 = vrot.slane %v1169_v47, 1 }
 0x15e   : > { %1102 = vst [vmem:[%s357_s23] sm:$0x1] %v1101_v45  ;;  %v1171_v8 = vadd.f32 %v1170_v27, %v1169_v47 }
 0x160   : > { %1172 = vst [vmem:[%s360_s26] sm:$0x1] %v1171_v8 }
 0x161 PF: > { %s19_s27 = sadd.s32 1, %s1620_s27  }
 0x162   : > { %p16_p5 = scmp.ge.s32.totalorder %s19_s27, 4  }
 0x164   :  { %18 = sbr.rel (!%p16_p5) target bundleno = 1 (0x1), region = 109 }

// kernel: _lambda_.8
= control target key start
LH: loop header
LB: loop body
LE: loop exit
PB: predicated region body
PF: predicated region fallthrough
CT: control target
= control target key end

     0   :  { %s1686_s27 = smov 0   ;;  %s1861_s0 = inlined_call_operand.vmem [shape: bf16[512,128], index: 0, kind: input, shape index: {}]   ;;  %s1862_s1 = inlined_call_operand.vmem [shape: bf16[128,128], index: 1, kind: input, shape index: {}]   ;;  %s1863_s2 = inlined_call_operand.vmem [shape: bf16[128,128], index: 2, kind: input, shape index: {}]   ;;  %s1864_s3 = inlined_call_operand.vmem [shape: f32[512,128], index: 3, kind: output, shape index: {0}]   ;;  %s1865_s4 = inlined_call_operand.vmem [shape: f32[512,128], index: 4, kind: output, shape index: {1}]   ;;  %s1866_s5 = inlined_call_operand.vmem [shape: f32[2,1,128], index: 5, kind: output, shape index: {2}]   ;;  %s1867_s6 = inlined_call_operand.vmem [shape: f32[2,1,128], index: 6, kind: output, shape index: {3}]   ;;  %s1868_s7 = inlined_call_operand.vmem [shape: f32[2,1,128], index: 7, kind: output, shape index: {4}]   ;;  %s1869_s8 = inlined_call_operand.vmem [shape: f32[2,1,128], index: 8, kind: output, shape index: {5}]  }
   0x1 LB: > { %s1692_s28 = sadd.s32 4294967295, %s1639_s27   ;;  %p1408_p0 = scmp.ge.s32.totalorder %s1639_s27, 1  ;;  %s1639_s27 = sphi %s1686_s27, %s19_s27  }
   0x2   : > { %p274_p1 = scmp.lt.s32.totalorder %s1639_s27, 3 }
   0x4   : > { %p275_p2 = pnand %p1408_p0, %p274_p1 }
   0x5   : > { %v1601_v0 = vld [vmem:[%s1862_s1] sm:$0xff] (!%p275_p2)   ;;  %s1409_s9 = sshll.u32 (!%p275_p2), %s1692_s28, 5  ;;  %v1603_v2 = vld [vmem:[%s1862_s1 + $0x8] sm:$0xff] (!%p275_p2)   ;;  %v1605_v4 = vld [vmem:[%s1862_s1 + $0x10] sm:$0xff] (!%p275_p2)   ;;  %p343_p4 = scmp.lt.s32.totalorder (!%p275_p2), %s1692_s28, 1 }
   0x6   : > { %278 = sbr.rel (%p275_p2) target bundleno = 331 (0x14b), region = 32  ;;  %v1602_v1 = vld [vmem:[%s1863_s2] sm:$0xff] (!%p275_p2)   ;;  %1497 = vmatprep.subr.bf16.mxu0 (!%p275_p2), %v1601_v0  ;;  %p326_p3 = scmp.lt.s32.totalorder (!%p275_p2), %s1409_s9, 63  ;;  %v1604_v3 = vld [vmem:[%s1863_s2 + $0x8] sm:$0xff] (!%p275_p2)   ;;  %v1606_v5 = vld [vmem:[%s1863_s2 + $0x10] sm:$0xff] (!%p275_p2)  }
   0x7   : > { %1545 = vmatprep.subr.bf16.mxu1 (!%p275_p2), %v1602_v1  ;;  %1498 = vmatpush3.bf16.msra.mxu0 (!%p275_p2), %v1601_v0  ;;  %v1607_v6 = vld [vmem:[%s1862_s1 + $0x18] sm:$0xff] (!%p275_p2)   ;;  %v1609_v8 = vld [vmem:[%s1862_s1 + $0x20] sm:$0xff] (!%p275_p2)   ;;  %v1611_v10 = vld [vmem:[%s1862_s1 + $0x28] sm:$0xff] (!%p275_p2)  }
   0x8   : > { %1546 = vmatpush3.bf16.msra.mxu1 (!%p275_p2), %v1602_v1  ;;  %1499 = vmatprep.subr.bf16.mxu0 (!%p275_p2), %v1603_v2  ;;  %v1608_v7 = vld [vmem:[%s1863_s2 + $0x18] sm:$0xff] (!%p275_p2)   ;;  %v1610_v9 = vld [vmem:[%s1863_s2 + $0x20] sm:$0xff] (!%p275_p2)   ;;  %v1612_v12 = vld [vmem:[%s1863_s2 + $0x28] sm:$0xff] (!%p275_p2)  }
   0x9   : > { %1547 = vmatprep.subr.bf16.mxu1 (!%p275_p2), %v1604_v3  ;;  %v1613_v13 = vld [vmem:[%s1862_s1 + $0x30] sm:$0xff] (!%p275_p2)   ;;  %v1615_v15 = vld [vmem:[%s1862_s1 + $0x38] sm:$0xff] (!%p275_p2)  }
   0xa   : > { %v1614_v14 = vld [vmem:[%s1863_s2 + $0x30] sm:$0xff] (!%p275_p2)   ;;  %v1616_v16 = vld [vmem:[%s1863_s2 + $0x38] sm:$0xff] (!%p275_p2)  }
   0xb   : > { %1500 = vmatpush3.bf16.msra.mxu0 (!%p275_p2), %v1603_v2 }
   0xc   : > { %1548 = vmatpush3.bf16.msra.mxu1 (!%p275_p2), %v1604_v3  ;;  %1501 = vmatprep.subr.bf16.mxu0 (!%p275_p2), %v1605_v4 }
   0xd   : > { %s1871_s9 = smov (!%p326_p3, %s1409_s9), 63  ;;  %1549 = vmatprep.subr.bf16.mxu1 %v1606_v5  ;;  %s1873_s28 = smov (!%p343_p4, %s1692_s28), 1 }
   0xe   : > { %s1410_s24 = sshll.u32 %s1871_s9, 2  ;;  %s1412_s25 = sshll.u32 %s1871_s9, 3 }
   0xf   : > { %1502 = vmatpush3.bf16.msra.mxu0 %v1605_v4  ;;  %s1733_s12 = scalar_lea.vmem %s1861_s0, %s1410_s24  ;;  %s1773_s30 = scalar_lea.vmem %s1864_s3, %s1412_s25 }
  0x10   : > { %1550 = vmatpush3.bf16.msra.mxu1 %v1606_v5  ;;  %1503 = vmatprep.subr.bf16.mxu0 %v1607_v6  ;;  %v1617_v11 = vld [vmem:[%s1733_s12] sm:$0xff]   ;;  %v1618_v17 = vld [vmem:[%s1733_s12 + $0x8] sm:$0xff]   ;;  %v1619_v18 = vld [vmem:[%s1733_s12 + $0x10] sm:$0xff]   ;;  %s1778_s13 = scalar_lea.vmem %s1865_s4, %s1412_s25  ;;  %s345_s14 = scalar_lea.vmem %s1866_s5, %s1873_s28 }
  0x11   : > { %1551 = vmatprep.subr.bf16.mxu1 %v1608_v7  ;;  %1513 = vmatprep.mubr.bf16.mxu0 %v1617_v11  ;;  %v1620_v19 = vld [vmem:[%s1733_s12 + $0x18] sm:$0xff]   ;;  %v1621_v20 = vld [vmem:[%s1733_s12 + $0x20] sm:$0xff]   ;;  %v1622_v21 = vld [vmem:[%s1733_s12 + $0x28] sm:$0xff]   ;;  %s351_s17 = scalar_lea.vmem %s1868_s7, %s1873_s28  ;;  %s348_s20 = scalar_lea.vmem %s1867_s6, %s1873_s28 }
  0x12   : > { %1561 = vmatprep.mubr.bf16.mxu1 %v1617_v11  ;;  %v1623_v22 = vld [vmem:[%s1733_s12 + $0x30] sm:$0xff]   ;;  %v1624_v23 = vld [vmem:[%s1733_s12 + $0x38] sm:$0xff]   ;;  %v1625_v24 = vld [vmem:[%s1733_s12 + $0x40] sm:$0xff]   ;;  %s354_s23 = scalar_lea.vmem %s1869_s8, %s1873_s28 }
  0x13   : > { %1504 = vmatpush3.bf16.msra.mxu0 %v1607_v6  ;;  %v1626_v25 = vld [vmem:[%s1733_s12 + $0x48] sm:$0xff]   ;;  %v1627_v26 = vld [vmem:[%s1733_s12 + $0x50] sm:$0xff]   ;;  %v1628_v27 = vld [vmem:[%s1733_s12 + $0x58] sm:$0xff]  }
  0x14   : > { %1552 = vmatpush3.bf16.msra.mxu1 %v1608_v7  ;;  %1505 = vmatprep.subr.bf16.mxu0 %v1609_v8  ;;  %v1629_v28 = vld [vmem:[%s1733_s12 + $0x60] sm:$0xff]   ;;  %v1630_v29 = vld [vmem:[%s1733_s12 + $0x68] sm:$0xff]   ;;  %v1631_v30 = vld [vmem:[%s1733_s12 + $0x70] sm:$0xff]  }
  0x15   : > { %1553 = vmatprep.subr.bf16.mxu1 %v1610_v9  ;;  %v1632_v31 = vld [vmem:[%s1733_s12 + $0x78] sm:$0xff]  }
  0x17   : > { %1506 = vmatpush3.bf16.msra.mxu0 %v1609_v8 }
  0x18   : > { %1554 = vmatpush3.bf16.msra.mxu1 %v1610_v9  ;;  %1507 = vmatprep.subr.bf16.mxu0 %v1611_v10 }
  0x19   : > { %1555 = vmatprep.subr.bf16.mxu1 %v1612_v12 }
  0x1b   : > { %1508 = vmatpush3.bf16.msra.mxu0 %v1611_v10 }
  0x1c   : > { %1556 = vmatpush3.bf16.msra.mxu1 %v1612_v12  ;;  %1509 = vmatprep.subr.bf16.mxu0 %v1613_v13 }
  0x1d   : > { %1557 = vmatprep.subr.bf16.mxu1 %v1614_v14 }
  0x1f   : > { %1510 = vmatpush3.bf16.msra.mxu0 %v1613_v13 }
  0x20   : > { %1558 = vmatpush3.bf16.msra.mxu1 %v1614_v14  ;;  %1511 = vmatprep.subr.bf16.mxu0 %v1615_v15 }
  0x21   : > { %1559 = vmatprep.subr.bf16.mxu1 %v1616_v16 }
  0x23   : > { %1512 = vmatpush3.bf16.msra.mxu0 %v1615_v15 }
  0x24   : > { %1560 = vmatpush3.bf16.msra.mxu1 %v1616_v16 }
  0x26   : > { %1514 = vmatmul.mubr.bf16.vlgmr.msra.gmra.mrb[0].mxu0 %v1618_v17 }
  0x27   : > { %1562 = vmatmul.mubr.bf16.vlgmr.msra.gmra.mrb[0].mxu1 %v1618_v17  ;;  %1517 = vmatprep.mubr.bf16.mxu0 %v1619_v18 }
  0x28   : > { %1565 = vmatprep.mubr.bf16.mxu1 %v1619_v18 }
  0x2e   : > { %1518 = vmatmul.mubr.bf16.gmra.mrb[4].mxu0 %v1620_v19 }
  0x2f   : > { %1566 = vmatmul.mubr.bf16.gmra.mrb[4].mxu1 %v1620_v19  ;;  %1521 = vmatprep.mubr.bf16.mxu0 %v1621_v20 }
  0x30   : > { %1569 = vmatprep.mubr.bf16.mxu1 %v1621_v20 }
  0x36   : > { %1522 = vmatmul.mubr.bf16.gmra.mrb[8].mxu0 %v1622_v21 }
  0x37   : > { %1570 = vmatmul.mubr.bf16.gmra.mrb[8].mxu1 %v1622_v21  ;;  %1525 = vmatprep.mubr.bf16.mxu0 %v1623_v22 }
  0x38   : > { %1573 = vmatprep.mubr.bf16.mxu1 %v1623_v22 }
  0x3e   : > { %1526 = vmatmul.mubr.bf16.gmra.mrb[12].mxu0 %v1624_v23 }
  0x3f   : > { %1574 = vmatmul.mubr.bf16.gmra.mrb[12].mxu1 %v1624_v23  ;;  %1529 = vmatprep.mubr.bf16.mxu0 %v1625_v24 }
  0x40   : > { %1577 = vmatprep.mubr.bf16.mxu1 %v1625_v24 }
  0x46   : > { %1530 = vmatmul.mubr.bf16.gmra.mrb[16].mxu0 %v1626_v25 }
  0x47   : > { %1578 = vmatmul.mubr.bf16.gmra.mrb[16].mxu1 %v1626_v25  ;;  %1533 = vmatprep.mubr.bf16.mxu0 %v1627_v26 }
  0x48   : > { %1581 = vmatprep.mubr.bf16.mxu1 %v1627_v26 }
  0x4e   : > { %1534 = vmatmul.mubr.bf16.gmra.mrb[20].mxu0 %v1628_v27 }
  0x4f   : > { %1582 = vmatmul.mubr.bf16.gmra.mrb[20].mxu1 %v1628_v27  ;;  %1537 = vmatprep.mubr.bf16.mxu0 %v1629_v28 }
  0x50   : > { %1585 = vmatprep.mubr.bf16.mxu1 %v1629_v28 }
  0x56   : > { %1538 = vmatmul.mubr.bf16.gmra.mrb[24].mxu0 %v1630_v29 }
  0x57   : > { %1586 = vmatmul.mubr.bf16.gmra.mrb[24].mxu1 %v1630_v29  ;;  %1541 = vmatprep.mubr.bf16.mxu0 %v1631_v30 }
  0x58   : > { %1589 = vmatprep.mubr.bf16.mxu1 %v1631_v30 }
  0x5e   : > { %1542 = vmatmul.mubr.bf16.gmra.mrb[28].mxu0 %v1632_v31 }
  0x5f   : > { %1590 = vmatmul.mubr.bf16.gmra.mrb[28].mxu1 %v1632_v31 }
  0xf9   : > { %v1515_v32 = vpop.f32.mrb[0].mxu0 }
  0xfa   : > { %936 = vst [vmem:[%s1773_s30 + $0x10] sm:$0xff] %v1515_v32  ;;  %v1563_v33 = vpop.f32.mrb[0].mxu1  ;;  %v582_v34 = vpop.f32.mrb[1].mxu0  ;;  %v1038_v46 = vmul.f32 %v1515_v32, %v1515_v32 }
  0xfb   : > { %968 = vst [vmem:[%s1778_s13 + $0x10] sm:$0xff] %v1563_v33  ;;  %934 = vst [vmem:[%s1773_s30] sm:$0xff] %v582_v34  ;;  %v807_v35 = vpop.f32.mrb[1].mxu1  ;;  %v1516_v36 = vpop.f32.mrb[2].mxu0  ;;  %v1036_v39 = vmul.f32 %v582_v34, %v582_v34  ;;  %v1146_v49 = vmul.f32 %v1563_v33, %v1563_v33 }
  0xfc   : > { %966 = vst [vmem:[%s1778_s13] sm:$0xff] %v807_v35  ;;  %937 = vst [vmem:[%s1773_s30 + $0x18] sm:$0xff] %v1516_v36  ;;  %v1564_v37 = vpop.f32.mrb[2].mxu1  ;;  %v585_v38 = vpop.f32.mrb[3].mxu0  ;;  %v1144_v43 = vmul.f32 %v807_v35, %v807_v35  ;;  %v1039_v52 = vmul.f32 %v1516_v36, %v1516_v36 }
  0xfd   : > { %969 = vst [vmem:[%s1778_s13 + $0x18] sm:$0xff] %v1564_v37  ;;  %935 = vst [vmem:[%s1773_s30 + $0x8] sm:$0xff] %v585_v38  ;;  %v998_v40 = vadd.f32 %v585_v38, %v582_v34  ;;  %v1037_v41 = vmul.f32 %v585_v38, %v585_v38  ;;  %v810_v42 = vpop.f32.mrb[3].mxu1  ;;  %v1147_v56 = vmul.f32 %v1564_v37, %v1564_v37 }
  0xfe   : > { %967 = vst [vmem:[%s1778_s13 + $0x8] sm:$0xff] %v810_v42  ;;  %v1106_v44 = vadd.f32 %v810_v42, %v807_v35  ;;  %v1145_v45 = vmul.f32 %v810_v42, %v810_v42 }
  0xff   : > { %v999_v47 = vadd.f32 %v1515_v32, %v998_v40  ;;  %v1068_v48 = vadd.f32 %v1037_v41, %v1036_v39 }
 0x100   : > { %v1107_v50 = vadd.f32 %v1563_v33, %v1106_v44  ;;  %v1176_v51 = vadd.f32 %v1145_v45, %v1144_v43 }
 0x101   : > { %v1069_v53 = vadd.f32 %v1068_v48, %v1038_v46  ;;  %v1519_v54 = vpop.f32.mrb[4].mxu0  ;;  %v1000_v55 = vadd.f32 %v1516_v36, %v999_v47 }
 0x102   : > { %v1177_v57 = vadd.f32 %v1176_v51, %v1146_v49  ;;  %940 = vst [vmem:[%s1773_s30 + $0x30] sm:$0xff] %v1519_v54  ;;  %v1567_v58 = vpop.f32.mrb[4].mxu1  ;;  %v598_v59 = vpop.f32.mrb[5].mxu0  ;;  %v1108_v60 = vadd.f32 %v1564_v37, %v1107_v50  ;;  %v1042_v14 = vmul.f32 %v1519_v54, %v1519_v54 }
 0x103   : > { %972 = vst [vmem:[%s1778_s13 + $0x30] sm:$0xff] %v1567_v58  ;;  %938 = vst [vmem:[%s1773_s30 + $0x20] sm:$0xff] %v598_v59  ;;  %v1001_v61 = vadd.f32 %v1000_v55, %v598_v59  ;;  %v1040_v62 = vmul.f32 %v598_v59, %v598_v59  ;;  %v1070_v63 = vadd.f32 %v1069_v53, %v1039_v52  ;;  %v823_v0 = vpop.f32.mrb[5].mxu1  ;;  %v1520_v1 = vpop.f32.mrb[6].mxu0 }
 0x104   : > { %970 = vst [vmem:[%s1778_s13 + $0x20] sm:$0xff] %v823_v0  ;;  %v1109_v2 = vadd.f32 %v1108_v60, %v823_v0  ;;  %v1148_v3 = vmul.f32 %v823_v0, %v823_v0  ;;  %v1178_v4 = vadd.f32 %v1177_v57, %v1147_v56  ;;  %941 = vst [vmem:[%s1773_s30 + $0x38] sm:$0xff] %v1520_v1  ;;  %v1568_v5 = vpop.f32.mrb[6].mxu1  ;;  %v601_v6 = vpop.f32.mrb[7].mxu0 }
 0x105   : > { %v1071_v7 = vadd.f32 %v1070_v63, %v1040_v62  ;;  %973 = vst [vmem:[%s1778_s13 + $0x38] sm:$0xff] %v1568_v5  ;;  %939 = vst [vmem:[%s1773_s30 + $0x28] sm:$0xff] %v601_v6  ;;  %v1002_v8 = vadd.f32 %v1001_v61, %v601_v6  ;;  %v1041_v9 = vmul.f32 %v601_v6, %v601_v6  ;;  %v826_v10 = vpop.f32.mrb[7].mxu1 }
 0x106   : > { %v1179_v11 = vadd.f32 %v1178_v4, %v1148_v3  ;;  %971 = vst [vmem:[%s1778_s13 + $0x28] sm:$0xff] %v826_v10  ;;  %v1110_v12 = vadd.f32 %v1109_v2, %v826_v10  ;;  %v1149_v13 = vmul.f32 %v826_v10, %v826_v10  ;;  %v1150_v17 = vmul.f32 %v1567_v58, %v1567_v58 }
 0x107   : > { %v1003_v15 = vadd.f32 %v1519_v54, %v1002_v8  ;;  %v1072_v16 = vadd.f32 %v1071_v7, %v1041_v9  ;;  %v1043_v20 = vmul.f32 %v1520_v1, %v1520_v1  ;;  %v1151_v24 = vmul.f32 %v1568_v5, %v1568_v5 }
 0x108   : > { %v1111_v18 = vadd.f32 %v1567_v58, %v1110_v12  ;;  %v1180_v19 = vadd.f32 %v1179_v11, %v1149_v13 }
 0x109   : > { %v1073_v21 = vadd.f32 %v1072_v16, %v1042_v14  ;;  %v1523_v22 = vpop.f32.mrb[8].mxu0  ;;  %v1004_v23 = vadd.f32 %v1520_v1, %v1003_v15 }
 0x10a   : > { %v1181_v25 = vadd.f32 %v1180_v19, %v1150_v17  ;;  %944 = vst [vmem:[%s1773_s30 + $0x50] sm:$0xff] %v1523_v22  ;;  %v1571_v26 = vpop.f32.mrb[8].mxu1  ;;  %v614_v27 = vpop.f32.mrb[9].mxu0  ;;  %v1112_v28 = vadd.f32 %v1568_v5, %v1111_v18  ;;  %v1046_v46 = vmul.f32 %v1523_v22, %v1523_v22 }
 0x10b   : > { %976 = vst [vmem:[%s1778_s13 + $0x50] sm:$0xff] %v1571_v26  ;;  %942 = vst [vmem:[%s1773_s30 + $0x40] sm:$0xff] %v614_v27  ;;  %v1005_v29 = vadd.f32 %v1004_v23, %v614_v27  ;;  %v1044_v30 = vmul.f32 %v614_v27, %v614_v27  ;;  %v1074_v31 = vadd.f32 %v1073_v21, %v1043_v20  ;;  %v839_v32 = vpop.f32.mrb[9].mxu1  ;;  %v1524_v33 = vpop.f32.mrb[10].mxu0 }
 0x10c   : > { %974 = vst [vmem:[%s1778_s13 + $0x40] sm:$0xff] %v839_v32  ;;  %v1113_v34 = vadd.f32 %v1112_v28, %v839_v32  ;;  %v1152_v35 = vmul.f32 %v839_v32, %v839_v32  ;;  %v1182_v36 = vadd.f32 %v1181_v25, %v1151_v24  ;;  %945 = vst [vmem:[%s1773_s30 + $0x58] sm:$0xff] %v1524_v33  ;;  %v1572_v37 = vpop.f32.mrb[10].mxu1  ;;  %v617_v38 = vpop.f32.mrb[11].mxu0 }
 0x10d   : > { %v1075_v39 = vadd.f32 %v1074_v31, %v1044_v30  ;;  %977 = vst [vmem:[%s1778_s13 + $0x58] sm:$0xff] %v1572_v37  ;;  %943 = vst [vmem:[%s1773_s30 + $0x48] sm:$0xff] %v617_v38  ;;  %v1006_v40 = vadd.f32 %v1005_v29, %v617_v38  ;;  %v1045_v41 = vmul.f32 %v617_v38, %v617_v38  ;;  %v842_v42 = vpop.f32.mrb[11].mxu1 }
 0x10e   : > { %v1183_v43 = vadd.f32 %v1182_v36, %v1152_v35  ;;  %975 = vst [vmem:[%s1778_s13 + $0x48] sm:$0xff] %v842_v42  ;;  %v1114_v44 = vadd.f32 %v1113_v34, %v842_v42  ;;  %v1153_v45 = vmul.f32 %v842_v42, %v842_v42  ;;  %v1154_v49 = vmul.f32 %v1571_v26, %v1571_v26 }
 0x10f   : > { %v1007_v47 = vadd.f32 %v1523_v22, %v1006_v40  ;;  %v1076_v48 = vadd.f32 %v1075_v39, %v1045_v41  ;;  %v1047_v52 = vmul.f32 %v1524_v33, %v1524_v33  ;;  %v1155_v56 = vmul.f32 %v1572_v37, %v1572_v37 }
 0x110   : > { %v1115_v50 = vadd.f32 %v1571_v26, %v1114_v44  ;;  %v1184_v51 = vadd.f32 %v1183_v43, %v1153_v45 }
 0x111   : > { %v1077_v53 = vadd.f32 %v1076_v48, %v1046_v46  ;;  %v1527_v54 = vpop.f32.mrb[12].mxu0  ;;  %v1008_v55 = vadd.f32 %v1524_v33, %v1007_v47 }
 0x112   : > { %v1185_v57 = vadd.f32 %v1184_v51, %v1154_v49  ;;  %948 = vst [vmem:[%s1773_s30 + $0x70] sm:$0xff] %v1527_v54  ;;  %v1575_v58 = vpop.f32.mrb[12].mxu1  ;;  %v630_v59 = vpop.f32.mrb[13].mxu0  ;;  %v1116_v60 = vadd.f32 %v1572_v37, %v1115_v50  ;;  %v1050_v14 = vmul.f32 %v1527_v54, %v1527_v54 }
 0x113   : > { %980 = vst [vmem:[%s1778_s13 + $0x70] sm:$0xff] %v1575_v58  ;;  %946 = vst [vmem:[%s1773_s30 + $0x60] sm:$0xff] %v630_v59  ;;  %v1009_v61 = vadd.f32 %v1008_v55, %v630_v59  ;;  %v1048_v62 = vmul.f32 %v630_v59, %v630_v59  ;;  %v1078_v63 = vadd.f32 %v1077_v53, %v1047_v52  ;;  %v855_v0 = vpop.f32.mrb[13].mxu1  ;;  %v1528_v1 = vpop.f32.mrb[14].mxu0 }
 0x114   : > { %978 = vst [vmem:[%s1778_s13 + $0x60] sm:$0xff] %v855_v0  ;;  %v1117_v2 = vadd.f32 %v1116_v60, %v855_v0  ;;  %v1156_v3 = vmul.f32 %v855_v0, %v855_v0  ;;  %v1186_v4 = vadd.f32 %v1185_v57, %v1155_v56  ;;  %949 = vst [vmem:[%s1773_s30 + $0x78] sm:$0xff] %v1528_v1  ;;  %v1576_v5 = vpop.f32.mrb[14].mxu1  ;;  %v633_v6 = vpop.f32.mrb[15].mxu0 }
 0x115   : > { %v1079_v7 = vadd.f32 %v1078_v63, %v1048_v62  ;;  %981 = vst [vmem:[%s1778_s13 + $0x78] sm:$0xff] %v1576_v5  ;;  %947 = vst [vmem:[%s1773_s30 + $0x68] sm:$0xff] %v633_v6  ;;  %v1010_v8 = vadd.f32 %v1009_v61, %v633_v6  ;;  %v1049_v9 = vmul.f32 %v633_v6, %v633_v6  ;;  %v858_v10 = vpop.f32.mrb[15].mxu1 }
 0x116   : > { %v1187_v11 = vadd.f32 %v1186_v4, %v1156_v3  ;;  %979 = vst [vmem:[%s1778_s13 + $0x68] sm:$0xff] %v858_v10  ;;  %v1118_v12 = vadd.f32 %v1117_v2, %v858_v10  ;;  %v1157_v13 = vmul.f32 %v858_v10, %v858_v10  ;;  %v1158_v17 = vmul.f32 %v1575_v58, %v1575_v58 }
 0x117   : > { %v1011_v15 = vadd.f32 %v1527_v54, %v1010_v8  ;;  %v1080_v16 = vadd.f32 %v1079_v7, %v1049_v9  ;;  %v1051_v20 = vmul.f32 %v1528_v1, %v1528_v1  ;;  %v1159_v24 = vmul.f32 %v1576_v5, %v1576_v5 }
 0x118   : > { %v1119_v18 = vadd.f32 %v1575_v58, %v1118_v12  ;;  %v1188_v19 = vadd.f32 %v1187_v11, %v1157_v13 }
 0x119   : > { %v1081_v21 = vadd.f32 %v1080_v16, %v1050_v14  ;;  %v1531_v22 = vpop.f32.mrb[16].mxu0  ;;  %v1012_v23 = vadd.f32 %v1528_v1, %v1011_v15 }
 0x11a   : > { %v1189_v25 = vadd.f32 %v1188_v19, %v1158_v17  ;;  %952 = vst [vmem:[%s1773_s30 + $0x90] sm:$0xff] %v1531_v22  ;;  %v1579_v26 = vpop.f32.mrb[16].mxu1  ;;  %v646_v27 = vpop.f32.mrb[17].mxu0  ;;  %v1120_v28 = vadd.f32 %v1576_v5, %v1119_v18  ;;  %v1054_v46 = vmul.f32 %v1531_v22, %v1531_v22 }
 0x11b   : > { %984 = vst [vmem:[%s1778_s13 + $0x90] sm:$0xff] %v1579_v26  ;;  %950 = vst [vmem:[%s1773_s30 + $0x80] sm:$0xff] %v646_v27  ;;  %v1013_v29 = vadd.f32 %v1012_v23, %v646_v27  ;;  %v1052_v30 = vmul.f32 %v646_v27, %v646_v27  ;;  %v1082_v31 = vadd.f32 %v1081_v21, %v1051_v20  ;;  %v871_v32 = vpop.f32.mrb[17].mxu1  ;;  %v1532_v33 = vpop.f32.mrb[18].mxu0 }
 0x11c   : > { %982 = vst [vmem:[%s1778_s13 + $0x80] sm:$0xff] %v871_v32  ;;  %v1121_v34 = vadd.f32 %v1120_v28, %v871_v32  ;;  %v1160_v35 = vmul.f32 %v871_v32, %v871_v32  ;;  %v1190_v36 = vadd.f32 %v1189_v25, %v1159_v24  ;;  %953 = vst [vmem:[%s1773_s30 + $0x98] sm:$0xff] %v1532_v33  ;;  %v1580_v37 = vpop.f32.mrb[18].mxu1  ;;  %v649_v38 = vpop.f32.mrb[19].mxu0 }
 0x11d   : > { %v1083_v39 = vadd.f32 %v1082_v31, %v1052_v30  ;;  %985 = vst [vmem:[%s1778_s13 + $0x98] sm:$0xff] %v1580_v37  ;;  %951 = vst [vmem:[%s1773_s30 + $0x88] sm:$0xff] %v649_v38  ;;  %v1014_v40 = vadd.f32 %v1013_v29, %v649_v38  ;;  %v1053_v41 = vmul.f32 %v649_v38, %v649_v38  ;;  %v874_v42 = vpop.f32.mrb[19].mxu1 }
 0x11e   : > { %v1191_v43 = vadd.f32 %v1190_v36, %v1160_v35  ;;  %983 = vst [vmem:[%s1778_s13 + $0x88] sm:$0xff] %v874_v42  ;;  %v1122_v44 = vadd.f32 %v1121_v34, %v874_v42  ;;  %v1161_v45 = vmul.f32 %v874_v42, %v874_v42  ;;  %v1162_v49 = vmul.f32 %v1579_v26, %v1579_v26 }
 0x11f   : > { %v1015_v47 = vadd.f32 %v1531_v22, %v1014_v40  ;;  %v1084_v48 = vadd.f32 %v1083_v39, %v1053_v41  ;;  %v1055_v52 = vmul.f32 %v1532_v33, %v1532_v33  ;;  %v1163_v56 = vmul.f32 %v1580_v37, %v1580_v37 }
 0x120   : > { %v1123_v50 = vadd.f32 %v1579_v26, %v1122_v44  ;;  %v1192_v51 = vadd.f32 %v1191_v43, %v1161_v45 }
 0x121   : > { %v1085_v53 = vadd.f32 %v1084_v48, %v1054_v46  ;;  %v1535_v54 = vpop.f32.mrb[20].mxu0  ;;  %v1016_v55 = vadd.f32 %v1532_v33, %v1015_v47 }
 0x122   : > { %v1193_v57 = vadd.f32 %v1192_v51, %v1162_v49  ;;  %956 = vst [vmem:[%s1773_s30 + $0xb0] sm:$0xff] %v1535_v54  ;;  %v1583_v58 = vpop.f32.mrb[20].mxu1  ;;  %v662_v59 = vpop.f32.mrb[21].mxu0  ;;  %v1124_v60 = vadd.f32 %v1580_v37, %v1123_v50  ;;  %v1058_v14 = vmul.f32 %v1535_v54, %v1535_v54 }
 0x123   : > { %988 = vst [vmem:[%s1778_s13 + $0xb0] sm:$0xff] %v1583_v58  ;;  %954 = vst [vmem:[%s1773_s30 + $0xa0] sm:$0xff] %v662_v59  ;;  %v1017_v61 = vadd.f32 %v1016_v55, %v662_v59  ;;  %v1056_v62 = vmul.f32 %v662_v59, %v662_v59  ;;  %v1086_v63 = vadd.f32 %v1085_v53, %v1055_v52  ;;  %v887_v0 = vpop.f32.mrb[21].mxu1  ;;  %v1536_v1 = vpop.f32.mrb[22].mxu0 }
 0x124   : > { %986 = vst [vmem:[%s1778_s13 + $0xa0] sm:$0xff] %v887_v0  ;;  %v1125_v2 = vadd.f32 %v1124_v60, %v887_v0  ;;  %v1164_v3 = vmul.f32 %v887_v0, %v887_v0  ;;  %v1194_v4 = vadd.f32 %v1193_v57, %v1163_v56  ;;  %957 = vst [vmem:[%s1773_s30 + $0xb8] sm:$0xff] %v1536_v1  ;;  %v1584_v5 = vpop.f32.mrb[22].mxu1  ;;  %v665_v6 = vpop.f32.mrb[23].mxu0 }
 0x125   : > { %v1087_v7 = vadd.f32 %v1086_v63, %v1056_v62  ;;  %989 = vst [vmem:[%s1778_s13 + $0xb8] sm:$0xff] %v1584_v5  ;;  %955 = vst [vmem:[%s1773_s30 + $0xa8] sm:$0xff] %v665_v6  ;;  %v1018_v8 = vadd.f32 %v1017_v61, %v665_v6  ;;  %v1057_v9 = vmul.f32 %v665_v6, %v665_v6  ;;  %v890_v10 = vpop.f32.mrb[23].mxu1 }
 0x126   : > { %v1195_v11 = vadd.f32 %v1194_v4, %v1164_v3  ;;  %987 = vst [vmem:[%s1778_s13 + $0xa8] sm:$0xff] %v890_v10  ;;  %v1126_v12 = vadd.f32 %v1125_v2, %v890_v10  ;;  %v1165_v13 = vmul.f32 %v890_v10, %v890_v10  ;;  %v1166_v17 = vmul.f32 %v1583_v58, %v1583_v58 }
 0x127   : > { %v1019_v15 = vadd.f32 %v1535_v54, %v1018_v8  ;;  %v1088_v16 = vadd.f32 %v1087_v7, %v1057_v9  ;;  %v1059_v20 = vmul.f32 %v1536_v1, %v1536_v1  ;;  %v1167_v24 = vmul.f32 %v1584_v5, %v1584_v5 }
 0x128   : > { %v1127_v18 = vadd.f32 %v1583_v58, %v1126_v12  ;;  %v1196_v19 = vadd.f32 %v1195_v11, %v1165_v13 }
 0x129   : > { %v1089_v21 = vadd.f32 %v1088_v16, %v1058_v14  ;;  %v1539_v22 = vpop.f32.mrb[24].mxu0  ;;  %v1020_v23 = vadd.f32 %v1536_v1, %v1019_v15 }
 0x12a   : > { %v1197_v25 = vadd.f32 %v1196_v19, %v1166_v17  ;;  %960 = vst [vmem:[%s1773_s30 + $0xd0] sm:$0xff] %v1539_v22  ;;  %v1587_v26 = vpop.f32.mrb[24].mxu1  ;;  %v678_v27 = vpop.f32.mrb[25].mxu0  ;;  %v1128_v28 = vadd.f32 %v1584_v5, %v1127_v18  ;;  %v1062_v46 = vmul.f32 %v1539_v22, %v1539_v22 }
 0x12b   : > { %992 = vst [vmem:[%s1778_s13 + $0xd0] sm:$0xff] %v1587_v26  ;;  %958 = vst [vmem:[%s1773_s30 + $0xc0] sm:$0xff] %v678_v27  ;;  %v1021_v29 = vadd.f32 %v1020_v23, %v678_v27  ;;  %v1060_v30 = vmul.f32 %v678_v27, %v678_v27  ;;  %v1090_v31 = vadd.f32 %v1089_v21, %v1059_v20  ;;  %v903_v32 = vpop.f32.mrb[25].mxu1  ;;  %v1540_v33 = vpop.f32.mrb[26].mxu0 }
 0x12c   : > { %990 = vst [vmem:[%s1778_s13 + $0xc0] sm:$0xff] %v903_v32  ;;  %v1129_v34 = vadd.f32 %v1128_v28, %v903_v32  ;;  %v1168_v35 = vmul.f32 %v903_v32, %v903_v32  ;;  %v1198_v36 = vadd.f32 %v1197_v25, %v1167_v24  ;;  %961 = vst [vmem:[%s1773_s30 + $0xd8] sm:$0xff] %v1540_v33  ;;  %v1588_v37 = vpop.f32.mrb[26].mxu1  ;;  %v681_v38 = vpop.f32.mrb[27].mxu0 }
 0x12d   : > { %v1091_v39 = vadd.f32 %v1090_v31, %v1060_v30  ;;  %993 = vst [vmem:[%s1778_s13 + $0xd8] sm:$0xff] %v1588_v37  ;;  %959 = vst [vmem:[%s1773_s30 + $0xc8] sm:$0xff] %v681_v38  ;;  %v1022_v40 = vadd.f32 %v1021_v29, %v681_v38  ;;  %v1061_v41 = vmul.f32 %v681_v38, %v681_v38  ;;  %v906_v42 = vpop.f32.mrb[27].mxu1 }
 0x12e   : > { %v1199_v43 = vadd.f32 %v1198_v36, %v1168_v35  ;;  %991 = vst [vmem:[%s1778_s13 + $0xc8] sm:$0xff] %v906_v42  ;;  %v1130_v44 = vadd.f32 %v1129_v34, %v906_v42  ;;  %v1169_v45 = vmul.f32 %v906_v42, %v906_v42  ;;  %v1170_v49 = vmul.f32 %v1587_v26, %v1587_v26 }
 0x12f   : > { %v1023_v47 = vadd.f32 %v1539_v22, %v1022_v40  ;;  %v1092_v48 = vadd.f32 %v1091_v39, %v1061_v41  ;;  %v1063_v52 = vmul.f32 %v1540_v33, %v1540_v33  ;;  %v1171_v56 = vmul.f32 %v1588_v37, %v1588_v37 }
 0x130   : > { %v1131_v50 = vadd.f32 %v1587_v26, %v1130_v44  ;;  %v1200_v51 = vadd.f32 %v1199_v43, %v1169_v45 }
 0x131   : > { %v1093_v53 = vadd.f32 %v1092_v48, %v1062_v46  ;;  %v1543_v54 = vpop.f32.mrb[28].mxu0  ;;  %v1024_v55 = vadd.f32 %v1540_v33, %v1023_v47 }
 0x132   : > { %v1201_v57 = vadd.f32 %v1200_v51, %v1170_v49  ;;  %964 = vst [vmem:[%s1773_s30 + $0xf0] sm:$0xff] %v1543_v54  ;;  %v1591_v58 = vpop.f32.mrb[28].mxu1  ;;  %v694_v59 = vpop.f32.mrb[29].mxu0  ;;  %v1132_v60 = vadd.f32 %v1588_v37, %v1131_v50  ;;  %v1066_v14 = vmul.f32 %v1543_v54, %v1543_v54 }
 0x133   : > { %996 = vst [vmem:[%s1778_s13 + $0xf0] sm:$0xff] %v1591_v58  ;;  %962 = vst [vmem:[%s1773_s30 + $0xe0] sm:$0xff] %v694_v59  ;;  %v1025_v61 = vadd.f32 %v1024_v55, %v694_v59  ;;  %v1064_v62 = vmul.f32 %v694_v59, %v694_v59  ;;  %v1094_v63 = vadd.f32 %v1093_v53, %v1063_v52  ;;  %v919_v0 = vpop.f32.mrb[29].mxu1  ;;  %v1544_v1 = vpop.f32.mrb[30].mxu0 }
 0x134   : > { %994 = vst [vmem:[%s1778_s13 + $0xe0] sm:$0xff] %v919_v0  ;;  %v1133_v2 = vadd.f32 %v1132_v60, %v919_v0  ;;  %v1172_v3 = vmul.f32 %v919_v0, %v919_v0  ;;  %v1202_v4 = vadd.f32 %v1201_v57, %v1171_v56  ;;  %965 = vst [vmem:[%s1773_s30 + $0xf8] sm:$0xff] %v1544_v1  ;;  %v1592_v5 = vpop.f32.mrb[30].mxu1  ;;  %v697_v6 = vpop.f32.mrb[31].mxu0 }
 0x135   : > { %v1095_v7 = vadd.f32 %v1094_v63, %v1064_v62  ;;  %997 = vst [vmem:[%s1778_s13 + $0xf8] sm:$0xff] %v1592_v5  ;;  %963 = vst [vmem:[%s1773_s30 + $0xe8] sm:$0xff] %v697_v6  ;;  %v1026_v8 = vadd.f32 %v1025_v61, %v697_v6  ;;  %v1065_v9 = vmul.f32 %v697_v6, %v697_v6  ;;  %v922_v10 = vpop.f32.mrb[31].mxu1 }
 0x136   : > { %v1203_v11 = vadd.f32 %v1202_v4, %v1172_v3  ;;  %995 = vst [vmem:[%s1778_s13 + $0xe8] sm:$0xff] %v922_v10  ;;  %v1134_v12 = vadd.f32 %v1133_v2, %v922_v10  ;;  %v1173_v13 = vmul.f32 %v922_v10, %v922_v10  ;;  %v1174_v17 = vmul.f32 %v1591_v58, %v1591_v58 }
 0x137   : > { %v1027_v15 = vadd.f32 %v1543_v54, %v1026_v8  ;;  %v1096_v16 = vadd.f32 %v1095_v7, %v1065_v9  ;;  %v1067_v20 = vmul.f32 %v1544_v1, %v1544_v1  ;;  %v1175_v23 = vmul.f32 %v1592_v5, %v1592_v5 }
 0x138   : > { %v1135_v18 = vadd.f32 %v1591_v58, %v1134_v12  ;;  %v1204_v19 = vadd.f32 %v1203_v11, %v1173_v13 }
 0x139   : > { %v1028_v21 = vadd.f32 %v1544_v1, %v1027_v15  ;;  %v1097_v22 = vadd.f32 %v1096_v16, %v1066_v14 }
 0x13a   : > { %v1136_v24 = vadd.f32 %v1592_v5, %v1135_v18  ;;  %v1205_v25 = vadd.f32 %v1204_v19, %v1174_v17 }
 0x13b   : > { %v1029_v26 = vrot.slane %v1028_v21, 4  ;;  %v1098_v27 = vadd.f32 %v1097_v22, %v1067_v20 }
 0x13c   : > { %v1137_v28 = vrot.slane %v1136_v24, 4  ;;  %v1206_v29 = vadd.f32 %v1205_v25, %v1175_v23 }
 0x13d   : > { %v1030_v30 = vadd.f32 %v1029_v26, %v1028_v21  ;;  %v1099_v31 = vrot.slane %v1098_v27, 4 }
 0x13e   : > { %v1138_v32 = vadd.f32 %v1137_v28, %v1136_v24  ;;  %v1207_v33 = vrot.slane %v1206_v29, 4 }
 0x13f   : > { %v1031_v34 = vrot.slane %v1030_v30, 2  ;;  %v1100_v35 = vadd.f32 %v1099_v31, %v1098_v27 }
 0x140   : > { %v1139_v36 = vrot.slane %v1138_v32, 2  ;;  %v1208_v37 = vadd.f32 %v1207_v33, %v1206_v29 }
 0x141   : > { %v1032_v38 = vadd.f32 %v1031_v34, %v1030_v30  ;;  %v1101_v39 = vrot.slane %v1100_v35, 2 }
 0x142   : > { %v1140_v40 = vadd.f32 %v1139_v36, %v1138_v32  ;;  %v1209_v41 = vrot.slane %v1208_v37, 2 }
 0x143   : > { %v1033_v42 = vrot.slane %v1032_v38, 1  ;;  %v1102_v43 = vadd.f32 %v1101_v39, %v1100_v35 }
 0x144   : > { %v1141_v44 = vrot.slane %v1140_v40, 1  ;;  %v1210_v45 = vadd.f32 %v1209_v41, %v1208_v37 }
 0x145   : > { %v1034_v46 = vadd.f32 %v1033_v42, %v1032_v38  ;;  %v1103_v47 = vrot.slane %v1102_v43, 1 }
 0x146   : > { %v1142_v48 = vadd.f32 %v1141_v44, %v1140_v40  ;;  %v1211_v49 = vrot.slane %v1210_v45, 1 }
 0x147   : > { %1035 = vst [vmem:[%s345_s14] sm:$0x1] %v1034_v46  ;;  %v1104_v50 = vadd.f32 %v1103_v47, %v1102_v43 }
 0x148   : > { %1143 = vst [vmem:[%s351_s17] sm:$0x1] %v1142_v48  ;;  %v1212_v51 = vadd.f32 %v1211_v49, %v1210_v45 }
 0x149   : > { %1105 = vst [vmem:[%s348_s20] sm:$0x1] %v1104_v50 }
 0x14a   : > { %1213 = vst [vmem:[%s354_s23] sm:$0x1] %v1212_v51 }
 0x14b PF: > { %s19_s27 = sadd.s32 1, %s1639_s27  }
 0x14c   : > { %p16_p5 = scmp.ge.s32.totalorder %s19_s27, 4  }
 0x14e   :  { %18 = sbr.rel (!%p16_p5) target bundleno = 1 (0x1), region = 122 }

// kernel: _lambda_.15
= control target key start
LH: loop header
LB: loop body
LE: loop exit
PB: predicated region body
PF: predicated region fallthrough
CT: control target
= control target key end

     0   :  { %s805_s12 = smov 0   ;;  %s1117_s0 = inlined_call_operand.vmem [shape: f32[512,128], index: 0, kind: input, shape index: {}, may-alias: {0,3}]   ;;  %s1118_s1 = inlined_call_operand.vmem [shape: f32[1,128], index: 1, kind: input, shape index: {}]   ;;  %s1119_s2 = inlined_call_operand.vmem [shape: f32[1,128], index: 2, kind: input, shape index: {}]   ;;  %s1120_s3 = inlined_call_operand.vmem [shape: f32[512,128], index: 3, kind: output, shape index: {}, may-alias: {0,3}]  }
   0x1 LB: > { %s596_s13 = sadd.s32 4294967295, %s783_s12   ;;  %p600_p0 = scmp.ge.s32.totalorder %s783_s12, 1  ;;  %s783_s12 = sphi %s805_s12, %s13_s12  }
   0x2   : > { %p138_p1 = scmp.lt.s32.totalorder %s783_s12, 3 }
   0x4   : > { %p139_p2 = pnand %p600_p0, %p138_p1 }
   0x5   : > { %s601_s14 = sshll.u32 (!%p139_p2), %s596_s13, 5  ;;  %v819_v0 = vld [vmem:[%s1118_s1] ss:$0 sm:$0xff] (!%p139_p2) }
   0x6   : > { %142 = sbr.rel (%p139_p2) target bundleno = 107 (0x6b), region = 32  ;;  %p163_p3 = scmp.lt.s32.totalorder (!%p139_p2), %s601_s14, 63  ;;  %v831_v1 = vld [vmem:[%s1119_s2] ss:$0 sm:$0xff] (!%p139_p2) }
   0xd   : > { %s1122_s14 = smov (!%p163_p3, %s601_s14), 63 }
   0xe   : > { %s602_s15 = sshll.u32 %s1122_s14, 3 }
   0xf   : > { %s826_s20 = scalar_lea.vmem %s1117_s0, %s602_s15  ;;  %s957_s25 = scalar_lea.vmem %s1120_s3, %s602_s15 }
  0x10   : > { %v174_v2 = vld [vmem:[%s826_s20] sm:$0xff]  ;;  %v175_v3 = vld [vmem:[%s826_s20 + $0x8] sm:$0xff]  ;;  %v176_v4 = vld [vmem:[%s826_s20 + $0x10] sm:$0xff] }
  0x11   : > { %v177_v5 = vld [vmem:[%s826_s20 + $0x18] sm:$0xff]  ;;  %v178_v6 = vld [vmem:[%s826_s20 + $0x20] sm:$0xff]  ;;  %v179_v7 = vld [vmem:[%s826_s20 + $0x28] sm:$0xff]  ;;  %v214_v8 = vmul.f32 %v819_v0, %v174_v2  ;;  %v215_v9 = vmul.f32 %v819_v0, %v175_v3  ;;  %v216_v10 = vmul.f32 %v819_v0, %v176_v4 }
  0x12   : > { %v180_v11 = vld [vmem:[%s826_s20 + $0x30] sm:$0xff]  ;;  %v181_v12 = vld [vmem:[%s826_s20 + $0x38] sm:$0xff]  ;;  %v182_v13 = vld [vmem:[%s826_s20 + $0x40] sm:$0xff]  ;;  %v217_v14 = vmul.f32 %v819_v0, %v177_v5  ;;  %v218_v15 = vmul.f32 %v819_v0, %v178_v6  ;;  %v219_v16 = vmul.f32 %v819_v0, %v179_v7 }
  0x13   : > { %v183_v17 = vld [vmem:[%s826_s20 + $0x48] sm:$0xff]  ;;  %v184_v18 = vld [vmem:[%s826_s20 + $0x50] sm:$0xff]  ;;  %v185_v19 = vld [vmem:[%s826_s20 + $0x58] sm:$0xff]  ;;  %v852_v20 = vadd.f32 %v831_v1, %v214_v8  ;;  %v855_v21 = vadd.f32 %v831_v1, %v215_v9  ;;  %v858_v22 = vadd.f32 %v831_v1, %v216_v10  ;;  %v220_v23 = vmul.f32 %v819_v0, %v180_v11 }
  0x14   : > { %v862_v24 = vadd.f32 %v831_v1, %v217_v14  ;;  %v865_v25 = vadd.f32 %v831_v1, %v218_v15  ;;  %v221_v26 = vmul.f32 %v819_v0, %v181_v12  ;;  %v870_v28 = vadd.f32 %v831_v1, %v219_v16  ;;  %v186_v31 = vld [vmem:[%s826_s20 + $0x60] sm:$0xff]  ;;  %v187_v52 = vld [vmem:[%s826_s20 + $0x68] sm:$0xff]  ;;  %v188_v54 = vld [vmem:[%s826_s20 + $0x70] sm:$0xff] }
  0x15   : > { %v607_v27 = vmul.f32 -1.442695, %v852_v20  ;;  %v222_v29 = vmul.f32 %v819_v0, %v182_v13  ;;  %v223_v30 = vmul.f32 %v819_v0, %v183_v17  ;;  %v608_v32 = vmul.f32 -1.442695, %v855_v21  ;;  %v189_v56 = vld [vmem:[%s826_s20 + $0x78] sm:$0xff]  ;;  %v190_v58 = vld [vmem:[%s826_s20 + $0x80] sm:$0xff] }
  0x16   : > { %v877_v33 = vadd.f32 %v831_v1, %v220_v23  ;;  %v224_v34 = vmul.f32 %v819_v0, %v184_v18  ;;  %v225_v35 = vmul.f32 %v819_v0, %v185_v19  ;;  %v609_v36 = vmul.f32 -1.442695, %v858_v22  ;;  %v191_v61 = vld [vmem:[%s826_s20 + $0x88] sm:$0xff]  ;;  %v192_v16 = vld [vmem:[%s826_s20 + $0x90] sm:$0xff]  ;;  %v193_v23 = vld [vmem:[%s826_s20 + $0x98] sm:$0xff] }
  0x17   : > { %649 = vpow2.f32 %v607_v27  ;;  %v883_v37 = vadd.f32 %v831_v1, %v221_v26  ;;  %v886_v38 = vadd.f32 %v831_v1, %v222_v29  ;;  %v610_v39 = vmul.f32 -1.442695, %v862_v24 }
  0x18   : > { %651 = vpow2.f32 %v608_v32  ;;  %v890_v40 = vadd.f32 %v831_v1, %v223_v30  ;;  %v611_v41 = vmul.f32 -1.442695, %v865_v25  ;;  %v894_v42 = vadd.f32 %v831_v1, %v224_v34  ;;  %v194_v30 = vld [vmem:[%s826_s20 + $0xa0] sm:$0xff] }
  0x19   : > { %653 = vpow2.f32 %v609_v36  ;;  %v226_v43 = vmul.f32 %v819_v0, %v186_v31  ;;  %v612_v44 = vmul.f32 -1.442695, %v870_v28  ;;  %v613_v45 = vmul.f32 -1.442695, %v877_v33  ;;  %v195_v36 = vld [vmem:[%s826_s20 + $0xa8] sm:$0xff] }
  0x1a   : > { %655 = vpow2.f32 %v610_v39  ;;  %v900_v46 = vadd.f32 %v831_v1, %v225_v35  ;;  %v614_v47 = vmul.f32 -1.442695, %v883_v37  ;;  %v615_v48 = vmul.f32 -1.442695, %v886_v38 }
  0x1b   : > { %657 = vpow2.f32 %v611_v41  ;;  %v616_v49 = vmul.f32 -1.442695, %v890_v40  ;;  %v906_v50 = vadd.f32 %v831_v1, %v226_v43  ;;  %v617_v51 = vmul.f32 -1.442695, %v894_v42 }
  0x1c   : > { %659 = vpow2.f32 %v612_v44  ;;  %v618_v53 = vmul.f32 -1.442695, %v900_v46  ;;  %v227_v59 = vmul.f32 %v819_v0, %v187_v52  ;;  %v228_v63 = vmul.f32 %v819_v0, %v188_v54  ;;  %v197_v52 = vld [vmem:[%s826_s20 + $0xb8] sm:$0xff] }
  0x1d   : > { %661 = vpow2.f32 %v613_v45  ;;  %v619_v55 = vmul.f32 -1.442695, %v906_v50  ;;  %v229_v4 = vmul.f32 %v819_v0, %v189_v56  ;;  %v230_v7 = vmul.f32 %v819_v0, %v190_v58  ;;  %v196_v45 = vld [vmem:[%s826_s20 + $0xb0] sm:$0xff] }
  0x1e   : > { %663 = vpow2.f32 %v614_v47  ;;  %v921_v10 = vadd.f32 %v831_v1, %v227_v59  ;;  %v231_v11 = vmul.f32 %v819_v0, %v191_v61  ;;  %v925_v14 = vadd.f32 %v831_v1, %v228_v63 }
  0x1f   : > { %665 = vpow2.f32 %v615_v48  ;;  %v929_v18 = vadd.f32 %v831_v1, %v229_v4  ;;  %v933_v27 = vadd.f32 %v831_v1, %v230_v7  ;;  %v232_v43 = vmul.f32 %v819_v0, %v192_v16  ;;  %v971_v7 = vld [vmem:[%s826_s20 + $0xe0] sm:$0xff]  ;;  %v985_v16 = vld [vmem:[%s826_s20 + $0xf8] sm:$0xff] }
  0x20   : > { %667 = vpow2.f32 %v616_v49  ;;  %v620_v32 = vmul.f32 -1.442695, %v921_v10  ;;  %v938_v34 = vadd.f32 %v831_v1, %v231_v11  ;;  %v621_v41 = vmul.f32 -1.442695, %v925_v14 }
  0x21   : > { %v650_v57 = vpop.eup %649  ;;  %669 = vpow2.f32 %v617_v51  ;;  %v622_v48 = vmul.f32 -1.442695, %v929_v18  ;;  %v233_v49 = vmul.f32 %v819_v0, %v193_v23  ;;  %v623_v54 = vmul.f32 -1.442695, %v933_v27 }
  0x22   : > { %v652_v60 = vpop.eup %651  ;;  %v380_v62 = vadd.f32 1.0, %v650_v57  ;;  %671 = vpow2.f32 %v618_v53  ;;  %v198_v57 = vld [vmem:[%s826_s20 + $0xc0] sm:$0xff]  ;;  %v624_v59 = vmul.f32 -1.442695, %v938_v34  ;;  %v237_v11 = vmul.f32 %v819_v0, %v197_v52 }
  0x23   : > { %v654_v2 = vpop.eup %653  ;;  %v381_v3 = vadd.f32 1.0, %v652_v60  ;;  %673 = vpow2.f32 %v619_v55  ;;  %v234_v55 = vmul.f32 %v819_v0, %v194_v30  ;;  %v235_v60 = vmul.f32 %v819_v0, %v195_v36 }
  0x24   : > { %v656_v5 = vpop.eup %655  ;;  %675 = vrcp.f32 %v380_v62  ;;  %v382_v6 = vadd.f32 1.0, %v654_v2  ;;  %v199_v62 = vld [vmem:[%s826_s20 + $0xc8] sm:$0xff]  ;;  %v961_v2 = vadd.f32 %v831_v1, %v232_v43  ;;  %v1008_v43 = vadd.f32 %v831_v1, %v237_v11 }
  0x25   : > { %v658_v8 = vpop.eup %657  ;;  %677 = vrcp.f32 %v381_v3  ;;  %v383_v9 = vadd.f32 1.0, %v656_v5  ;;  %v236_v3 = vmul.f32 %v819_v0, %v196_v45  ;;  %v965_v5 = vld [vmem:[%s826_s20 + $0xd0] sm:$0xff]  ;;  %v239_v30 = vmul.f32 %v819_v0, %v199_v62 }
  0x26   : > { %v660_v12 = vpop.eup %659  ;;  %679 = vrcp.f32 %v382_v6  ;;  %v384_v13 = vadd.f32 1.0, %v658_v8  ;;  %v968_v6 = vld [vmem:[%s826_s20 + $0xd8] sm:$0xff] }
  0x27   : > { %v662_v15 = vpop.eup %661  ;;  %681 = vrcp.f32 %v383_v9  ;;  %v385_v17 = vadd.f32 1.0, %v660_v12  ;;  %v975_v9 = vadd.f32 %v831_v1, %v233_v49  ;;  %v1002_v36 = vadd.f32 %v831_v1, %v236_v3 }
  0x28   : > { %v664_v19 = vpop.eup %663  ;;  %683 = vrcp.f32 %v384_v13  ;;  %v386_v26 = vadd.f32 1.0, %v662_v15  ;;  %v979_v13 = vld [vmem:[%s826_s20 + $0xe8] sm:$0xff]  ;;  %v982_v15 = vld [vmem:[%s826_s20 + $0xf0] sm:$0xff]  ;;  %v1020_v49 = vadd.f32 %v831_v1, %v239_v30  ;;  %v242_v30 = vmul.f32 %v819_v0, %v971_v7 }
  0x29   : > { %v666_v29 = vpop.eup %665  ;;  %685 = vrcp.f32 %v385_v17  ;;  %v387_v31 = vadd.f32 1.0, %v664_v19  ;;  %v238_v19 = vmul.f32 %v819_v0, %v198_v57  ;;  %v629_v52 = vmul.f32 -1.442695, %v1002_v36 }
  0x2a   : > { %v668_v35 = vpop.eup %667  ;;  %687 = vrcp.f32 %v386_v26  ;;  %v388_v39 = vadd.f32 1.0, %v666_v29  ;;  %v995_v29 = vadd.f32 %v831_v1, %v235_v60 }
  0x2b   : > { %v670_v44 = vpop.eup %669  ;;  %689 = vrcp.f32 %v387_v31  ;;  %v389_v47 = vadd.f32 1.0, %v668_v35  ;;  %v625_v35 = vmul.f32 -1.442695, %v961_v2  ;;  %v1014_v45 = vadd.f32 %v831_v1, %v238_v19 }
  0x2c   : > { %v672_v51 = vpop.eup %671  ;;  %691 = vrcp.f32 %v388_v39  ;;  %v390_v53 = vadd.f32 1.0, %v670_v44  ;;  %v241_v19 = vmul.f32 %v819_v0, %v968_v6  ;;  %v244_v6 = vmul.f32 %v819_v0, %v982_v15 }
  0x2d   : > { %v674_v56 = vpop.eup %673  ;;  %693 = vrcp.f32 %v389_v47  ;;  %v391_v58 = vadd.f32 1.0, %v672_v51 }
  0x2e   : > { %v676_v61 = vpop.eup %675  ;;  %695 = vrcp.f32 %v390_v53  ;;  %v392_v63 = vadd.f32 1.0, %v674_v56  ;;  %v1054_v7 = vadd.f32 %v831_v1, %v241_v19 }
  0x2f   : > { %v678_v4 = vpop.eup %677  ;;  %v476_v8 = vmul.f32 %v676_v61, %v852_v20  ;;  %697 = vrcp.f32 %v391_v58  ;;  %v989_v20 = vadd.f32 %v831_v1, %v234_v55 }
  0x30   : > { %v680_v12 = vpop.eup %679  ;;  %v477_v17 = vmul.f32 %v678_v4, %v855_v21  ;;  %699 = vrcp.f32 %v392_v63 }
  0x31   : > { %v682_v23 = vpop.eup %681  ;;  %508 = vst [vmem:[%s957_s25] sm:$0xff] %v476_v8  ;;  %v478_v26 = vmul.f32 %v680_v12, %v858_v22  ;;  %701 = vpow2.f32 %v620_v32  ;;  %v626_v32 = vmul.f32 -1.442695, %v975_v9  ;;  %v240_v12 = vmul.f32 %v819_v0, %v965_v5 }
  0x32   : > { %v684_v31 = vpop.eup %683  ;;  %509 = vst [vmem:[%s957_s25 + $0x8] sm:$0xff] %v477_v17  ;;  %v479_v21 = vmul.f32 %v682_v23, %v862_v24  ;;  %703 = vpow2.f32 %v621_v41  ;;  %v627_v41 = vmul.f32 -1.442695, %v989_v20 }
  0x33   : > { %v686_v39 = vpop.eup %685  ;;  %510 = vst [vmem:[%s957_s25 + $0x10] sm:$0xff] %v478_v26  ;;  %v480_v22 = vmul.f32 %v684_v31, %v865_v25  ;;  %705 = vpow2.f32 %v622_v48  ;;  %v628_v48 = vmul.f32 -1.442695, %v995_v29 }
  0x34   : > { %v688_v44 = vpop.eup %687  ;;  %511 = vst [vmem:[%s957_s25 + $0x18] sm:$0xff] %v479_v21  ;;  %v481_v24 = vmul.f32 %v686_v39, %v870_v28  ;;  %707 = vpow2.f32 %v623_v54 }
  0x35   : > { %v690_v47 = vpop.eup %689  ;;  %512 = vst [vmem:[%s957_s25 + $0x20] sm:$0xff] %v480_v22  ;;  %v482_v25 = vmul.f32 %v688_v44, %v877_v33  ;;  %709 = vpow2.f32 %v624_v59  ;;  %v630_v33 = vmul.f32 -1.442695, %v1008_v43  ;;  %v1049_v22 = vadd.f32 %v831_v1, %v240_v12 }
  0x36   : > { %v692_v51 = vpop.eup %691  ;;  %513 = vst [vmem:[%s957_s25 + $0x28] sm:$0xff] %v481_v24  ;;  %v483_v28 = vmul.f32 %v690_v47, %v883_v37  ;;  %711 = vpow2.f32 %v625_v35  ;;  %v631_v37 = vmul.f32 -1.442695, %v1014_v45  ;;  %v243_v35 = vmul.f32 %v819_v0, %v979_v13 }
  0x37   : > { %v694_v53 = vpop.eup %693  ;;  %514 = vst [vmem:[%s957_s25 + $0x30] sm:$0xff] %v482_v25  ;;  %v484_v54 = vmul.f32 %v692_v51, %v886_v38  ;;  %713 = vpow2.f32 %v626_v32  ;;  %v632_v38 = vmul.f32 -1.442695, %v1020_v49  ;;  %v245_v24 = vmul.f32 %v819_v0, %v985_v16 }
  0x38   : > { %v696_v55 = vpop.eup %695  ;;  %515 = vst [vmem:[%s957_s25 + $0x38] sm:$0xff] %v483_v28  ;;  %v485_v56 = vmul.f32 %v694_v53, %v890_v40  ;;  %715 = vpow2.f32 %v627_v41  ;;  %v1059_v47 = vadd.f32 %v831_v1, %v242_v30  ;;  %v1062_v15 = vadd.f32 %v831_v1, %v243_v35 }
  0x39   : > { %v698_v57 = vpop.eup %697  ;;  %516 = vst [vmem:[%s957_s25 + $0x40] sm:$0xff] %v484_v54  ;;  %v486_v58 = vmul.f32 %v696_v55, %v894_v42  ;;  %717 = vpow2.f32 %v628_v48  ;;  %v1066_v0 = vadd.f32 %v831_v1, %v244_v6  ;;  %v634_v54 = vmul.f32 -1.442695, %v1054_v7 }
  0x3a   : > { %v700_v59 = vpop.eup %699  ;;  %517 = vst [vmem:[%s957_s25 + $0x48] sm:$0xff] %v485_v56  ;;  %v487_v60 = vmul.f32 %v698_v57, %v900_v46  ;;  %719 = vpow2.f32 %v629_v52  ;;  %v633_v52 = vmul.f32 -1.442695, %v1049_v22 }
  0x3b   : > { %v702_v61 = vpop.eup %701  ;;  %518 = vst [vmem:[%s957_s25 + $0x50] sm:$0xff] %v486_v58  ;;  %v488_v40 = vmul.f32 %v700_v59, %v906_v50  ;;  %721 = vpow2.f32 %v630_v33  ;;  %v1070_v33 = vadd.f32 %v831_v1, %v245_v24  ;;  %v637_v1 = vmul.f32 -1.442695, %v1066_v0 }
  0x3c   : > { %v704_v62 = vpop.eup %703  ;;  %519 = vst [vmem:[%s957_s25 + $0x58] sm:$0xff] %v487_v60  ;;  %v393_v63 = vadd.f32 1.0, %v702_v61  ;;  %723 = vpow2.f32 %v631_v37  ;;  %v635_v37 = vmul.f32 -1.442695, %v1059_v47 }
  0x3d   : > { %v706_v3 = vpop.eup %705  ;;  %520 = vst [vmem:[%s957_s25 + $0x60] sm:$0xff] %v488_v40  ;;  %v394_v42 = vadd.f32 1.0, %v704_v62  ;;  %725 = vpow2.f32 %v632_v38  ;;  %v636_v38 = vmul.f32 -1.442695, %v1062_v15 }
  0x3e   : > { %v708_v4 = vpop.eup %707  ;;  %727 = vrcp.f32 %v393_v63  ;;  %v395_v8 = vadd.f32 1.0, %v706_v3 }
  0x3f   : > { %v710_v11 = vpop.eup %709  ;;  %729 = vrcp.f32 %v394_v42  ;;  %v396_v46 = vadd.f32 1.0, %v708_v4 }
  0x40   : > { %v712_v17 = vpop.eup %711  ;;  %731 = vrcp.f32 %v395_v8  ;;  %v397_v50 = vadd.f32 1.0, %v710_v11 }
  0x41   : > { %v714_v23 = vpop.eup %713  ;;  %733 = vrcp.f32 %v396_v46  ;;  %v398_v26 = vadd.f32 1.0, %v712_v17 }
  0x42   : > { %v716_v31 = vpop.eup %715  ;;  %735 = vrcp.f32 %v397_v50  ;;  %v399_v21 = vadd.f32 1.0, %v714_v23 }
  0x43   : > { %v718_v39 = vpop.eup %717  ;;  %737 = vrcp.f32 %v398_v26  ;;  %v400_v5 = vadd.f32 1.0, %v716_v31 }
  0x44   : > { %v720_v32 = vpop.eup %719  ;;  %739 = vrcp.f32 %v399_v21  ;;  %v401_v44 = vadd.f32 1.0, %v718_v39 }
  0x45   : > { %v722_v41 = vpop.eup %721  ;;  %741 = vrcp.f32 %v400_v5  ;;  %v402_v13 = vadd.f32 1.0, %v720_v32 }
  0x46   : > { %v724_v25 = vpop.eup %723  ;;  %743 = vrcp.f32 %v401_v44  ;;  %v403_v48 = vadd.f32 1.0, %v722_v41 }
  0x47   : > { %v726_v51 = vpop.eup %725  ;;  %745 = vrcp.f32 %v402_v13  ;;  %v404_v28 = vadd.f32 1.0, %v724_v25 }
  0x48   : > { %v728_v16 = vpop.eup %727  ;;  %747 = vrcp.f32 %v403_v48  ;;  %v405_v53 = vadd.f32 1.0, %v726_v51 }
  0x49   : > { %v730_v55 = vpop.eup %729  ;;  %v489_v56 = vmul.f32 %v728_v16, %v921_v10  ;;  %749 = vrcp.f32 %v404_v28 }
  0x4a   : > { %v732_v57 = vpop.eup %731  ;;  %v490_v58 = vmul.f32 %v730_v55, %v925_v14  ;;  %751 = vrcp.f32 %v405_v53  ;;  %v638_v14 = vmul.f32 -1.442695, %v1070_v33 }
  0x4b   : > { %v734_v59 = vpop.eup %733  ;;  %521 = vst [vmem:[%s957_s25 + $0x68] sm:$0xff] %v489_v56  ;;  %v491_v60 = vmul.f32 %v732_v57, %v929_v18  ;;  %753 = vpow2.f32 %v633_v52 }
  0x4c   : > { %v736_v10 = vpop.eup %735  ;;  %522 = vst [vmem:[%s957_s25 + $0x70] sm:$0xff] %v490_v58  ;;  %v492_v61 = vmul.f32 %v734_v59, %v933_v27  ;;  %755 = vpow2.f32 %v634_v54 }
  0x4d   : > { %v738_v40 = vpop.eup %737  ;;  %523 = vst [vmem:[%s957_s25 + $0x78] sm:$0xff] %v491_v60  ;;  %v493_v62 = vmul.f32 %v736_v10, %v938_v34  ;;  %757 = vpow2.f32 %v635_v37 }
  0x4e   : > { %v740_v63 = vpop.eup %739  ;;  %524 = vst [vmem:[%s957_s25 + $0x80] sm:$0xff] %v492_v61  ;;  %v494_v18 = vmul.f32 %v738_v40, %v961_v2  ;;  %759 = vpow2.f32 %v636_v38 }
  0x4f   : > { %v742_v3 = vpop.eup %741  ;;  %525 = vst [vmem:[%s957_s25 + $0x88] sm:$0xff] %v493_v62  ;;  %v495_v27 = vmul.f32 %v740_v63, %v975_v9  ;;  %761 = vpow2.f32 %v637_v1 }
  0x50   : > { %v744_v42 = vpop.eup %743  ;;  %526 = vst [vmem:[%s957_s25 + $0x90] sm:$0xff] %v494_v18  ;;  %v496_v4 = vmul.f32 %v742_v3, %v989_v20  ;;  %763 = vpow2.f32 %v638_v14 }
  0x51   : > { %v746_v34 = vpop.eup %745  ;;  %527 = vst [vmem:[%s957_s25 + $0x98] sm:$0xff] %v495_v27  ;;  %v497_v8 = vmul.f32 %v744_v42, %v995_v29 }
  0x52   : > { %v748_v2 = vpop.eup %747  ;;  %528 = vst [vmem:[%s957_s25 + $0xa0] sm:$0xff] %v496_v4  ;;  %v498_v11 = vmul.f32 %v746_v34, %v1002_v36 }
  0x53   : > { %v750_v46 = vpop.eup %749  ;;  %529 = vst [vmem:[%s957_s25 + $0xa8] sm:$0xff] %v497_v8  ;;  %v499_v9 = vmul.f32 %v748_v2, %v1008_v43 }
  0x54   : > { %v752_v12 = vpop.eup %751  ;;  %530 = vst [vmem:[%s957_s25 + $0xb0] sm:$0xff] %v498_v11  ;;  %v500_v17 = vmul.f32 %v750_v46, %v1014_v45 }
  0x55   : > { %v754_v20 = vpop.eup %753  ;;  %531 = vst [vmem:[%s957_s25 + $0xb8] sm:$0xff] %v499_v9  ;;  %v501_v50 = vmul.f32 %v752_v12, %v1020_v49 }
  0x56   : > { %v756_v19 = vpop.eup %755  ;;  %532 = vst [vmem:[%s957_s25 + $0xc0] sm:$0xff] %v500_v17  ;;  %v406_v29 = vadd.f32 1.0, %v754_v20 }
  0x57   : > { %v758_v23 = vpop.eup %757  ;;  %533 = vst [vmem:[%s957_s25 + $0xc8] sm:$0xff] %v501_v50  ;;  %v407_v26 = vadd.f32 1.0, %v756_v19 }
  0x58   : > { %v760_v30 = vpop.eup %759  ;;  %765 = vrcp.f32 %v406_v29  ;;  %v408_v36 = vadd.f32 1.0, %v758_v23 }
  0x59   : > { %v762_v31 = vpop.eup %761  ;;  %767 = vrcp.f32 %v407_v26  ;;  %v409_v43 = vadd.f32 1.0, %v760_v30 }
  0x5a   : > { %v764_v21 = vpop.eup %763  ;;  %769 = vrcp.f32 %v408_v36  ;;  %v410_v45 = vadd.f32 1.0, %v762_v31 }
  0x5b   : > { %771 = vrcp.f32 %v409_v43  ;;  %v411_v49 = vadd.f32 1.0, %v764_v21 }
  0x5c   : > { %773 = vrcp.f32 %v410_v45 }
  0x5d   : > { %775 = vrcp.f32 %v411_v49 }
  0x62   : > { %v766_v35 = vpop.eup %765 }
  0x63   : > { %v768_v39 = vpop.eup %767  ;;  %v502_v5 = vmul.f32 %v766_v35, %v1049_v22 }
  0x64   : > { %v770_v6 = vpop.eup %769  ;;  %v503_v32 = vmul.f32 %v768_v39, %v1054_v7 }
  0x65   : > { %v772_v44 = vpop.eup %771  ;;  %534 = vst [vmem:[%s957_s25 + $0xd0] sm:$0xff] %v502_v5  ;;  %v504_v24 = vmul.f32 %v770_v6, %v1059_v47 }
  0x66   : > { %v774_v41 = vpop.eup %773  ;;  %535 = vst [vmem:[%s957_s25 + $0xd8] sm:$0xff] %v503_v32  ;;  %v505_v13 = vmul.f32 %v772_v44, %v1062_v15 }
  0x67   : > { %v776_v25 = vpop.eup %775  ;;  %536 = vst [vmem:[%s957_s25 + $0xe0] sm:$0xff] %v504_v24  ;;  %v506_v48 = vmul.f32 %v774_v41, %v1066_v0 }
  0x68   : > { %537 = vst [vmem:[%s957_s25 + $0xe8] sm:$0xff] %v505_v13  ;;  %v507_v51 = vmul.f32 %v776_v25, %v1070_v33 }
  0x69   : > { %538 = vst [vmem:[%s957_s25 + $0xf0] sm:$0xff] %v506_v48 }
  0x6a   : > { %539 = vst [vmem:[%s957_s25 + $0xf8] sm:$0xff] %v507_v51 }
  0x6b PF: > { %s13_s12 = sadd.s32 1, %s783_s12  }
  0x6c   : > { %p10_p4 = scmp.ge.s32.totalorder %s13_s12, 4  }
  0x6e   :  { %12 = sbr.rel (!%p10_p4) target bundleno = 1 (0x1), region = 62 }

// kernel: _lambda_.10
= control target key start
LH: loop header
LB: loop body
LE: loop exit
PB: predicated region body
PF: predicated region fallthrough
CT: control target
= control target key end

     0   :  { %s5055_s21 = smov 0   ;;  %s5829_s0 = inlined_call_operand.vmem [shape: f32[2,16,16,128], index: 0, kind: input, shape index: {}]   ;;  %s5830_s1 = inlined_call_operand.vmem [shape: f32[1,128], index: 1, kind: input, shape index: {}]   ;;  %s5831_s2 = inlined_call_operand.vmem [shape: f32[1,128], index: 2, kind: input, shape index: {}]   ;;  %s5832_s3 = inlined_call_operand.vmem [shape: bf16[9,128,128], index: 3, kind: input, shape index: {}]   ;;  %s5833_s4 = inlined_call_operand.vmem [shape: f32[2,16,16,128], index: 4, kind: output, shape index: {0}]   ;;  %s5834_s5 = inlined_call_operand.vmem [shape: f32[2,1,128], index: 5, kind: output, shape index: {1}]   ;;  %s5835_s6 = inlined_call_operand.vmem [shape: f32[2,1,128], index: 6, kind: output, shape index: {2}]  }
   0x1 LB: > { %s3626_s22 = sadd.s32 4294967295, %s5017_s21   ;;  %p3630_p0 = scmp.ge.s32.totalorder %s5017_s21, 1  ;;  %s5017_s21 = sphi %s5055_s21, %s17_s21  }
   0x2   : > { %p217_p1 = scmp.lt.s32.totalorder %s5017_s21, 3 }
   0x4   : > { %p218_p2 = pnand %p3630_p0, %p217_p1 }
   0x5   : > { %v4802_v0 = vld [vmem:[%s5832_s3 + $0x40] sm:$0xff] (!%p218_p2)   ;;  %v5019_v2 = vmov (!%p218_p2), 0.0   ;;  %v4804_v3 = vld [vmem:[%s5832_s3 + $0x48] sm:$0xff] (!%p218_p2)   ;;  %p253_p3 = scmp.lt.s32.totalorder (!%p218_p2), %s3626_s22, 1  ;;  %v4806_v5 = vld [vmem:[%s5832_s3 + $0x50] sm:$0xff] (!%p218_p2)  }
   0x6   : > { %221 = sbr.rel (%p218_p2) target bundleno = 574 (0x23e), region = 36  ;;  %v4803_v1 = vld [vmem:[%s5832_s3 + $0x100] sm:$0xff] (!%p218_p2)   ;;  %604 = vst [vmem:[#allocation2] sm:$0xff] (!%p218_p2), %v5019_v2  ;;  %605 = vst [vmem:[#allocation2 + $0x8] sm:$0xff] (!%p218_p2), %v5019_v2  ;;  %4089 = vmatprep.subr.bf16.mxu1 (!%p218_p2), %v4802_v0  ;;  %v4805_v4 = vld [vmem:[%s5832_s3 + $0x108] sm:$0xff] (!%p218_p2)  }
   0x7   : > { %606 = vst [vmem:[#allocation2 + $0x10] sm:$0x3] (!%p218_p2), %v5019_v2  ;;  %607 = vst [vmem:[#allocation2 + $0x18] sm:$0xff] (!%p218_p2), %v5019_v2  ;;  %4281 = vmatprep.subr.bf16.mxu0 (!%p218_p2), %v4803_v1  ;;  %4090 = vmatpush3.bf16.msra.mxu1 (!%p218_p2), %v4802_v0  ;;  %v4807_v6 = vld [vmem:[%s5832_s3 + $0x110] sm:$0xff] (!%p218_p2)   ;;  %v4808_v7 = vld [vmem:[%s5832_s3 + $0x58] sm:$0xff] (!%p218_p2)  }
   0x8   : > { %608 = vst [vmem:[#allocation2 + $0x20] sm:$0xff] (!%p218_p2), %v5019_v2  ;;  %609 = vst [vmem:[#allocation2 + $0x28] sm:$0x3] (!%p218_p2), %v5019_v2  ;;  %4282 = vmatpush3.bf16.msra.mxu0 (!%p218_p2), %v4803_v1  ;;  %4091 = vmatprep.subr.bf16.mxu1 (!%p218_p2), %v4804_v3  ;;  %v4809_v8 = vld [vmem:[%s5832_s3 + $0x118] sm:$0xff] (!%p218_p2)   ;;  %v4810_v9 = vld [vmem:[%s5832_s3 + $0x60] sm:$0xff] (!%p218_p2)  }
   0x9   : > { %610 = vst [vmem:[#allocation2 + $0x30] sm:$0xff] (!%p218_p2), %v5019_v2  ;;  %611 = vst [vmem:[#allocation2 + $0x38] sm:$0xff] (!%p218_p2), %v5019_v2  ;;  %4283 = vmatprep.subr.bf16.mxu0 (!%p218_p2), %v4805_v4  ;;  %v4811_v10 = vld [vmem:[%s5832_s3 + $0x120] sm:$0xff] (!%p218_p2)   ;;  %v4812_v11 = vld [vmem:[%s5832_s3 + $0x68] sm:$0xff] (!%p218_p2)  }
   0xa   : > { %612 = vst [vmem:[#allocation2 + $0x40] sm:$0x3] (!%p218_p2), %v5019_v2  ;;  %613 = vst [vmem:[#allocation2 + $0x48] sm:$0xff] (!%p218_p2), %v5019_v2  ;;  %v4813_v12 = vld [vmem:[%s5832_s3 + $0x128] sm:$0xff] (!%p218_p2)   ;;  %v5118_v18 = vld [vmem:[%s5830_s1] ss:$0 sm:$0xff] (!%p218_p2) }
   0xb   : > { %614 = vst [vmem:[#allocation2 + $0x50] sm:$0xff] (!%p218_p2), %v5019_v2  ;;  %615 = vst [vmem:[#allocation2 + $0x58] sm:$0x3] (!%p218_p2), %v5019_v2  ;;  %4092 = vmatpush3.bf16.msra.mxu1 (!%p218_p2), %v4804_v3  ;;  %v5123_v19 = vld [vmem:[%s5831_s2] ss:$0 sm:$0xff] (!%p218_p2)  ;;  %v4814_v22 = vld [vmem:[%s5832_s3 + $0x70] sm:$0xff] (!%p218_p2)  }
   0xc   : > { %616 = vst [vmem:[#allocation2 + $0x60] sm:$0xff] (!%p218_p2), %v5019_v2  ;;  %617 = vst [vmem:[#allocation2 + $0x68] sm:$0xff] (!%p218_p2), %v5019_v2  ;;  %4284 = vmatpush3.bf16.msra.mxu0 (!%p218_p2), %v4805_v4  ;;  %4093 = vmatprep.subr.bf16.mxu1 (!%p218_p2), %v4806_v5  ;;  %v4815_v27 = vld [vmem:[%s5832_s3 + $0x130] sm:$0xff] (!%p218_p2)   ;;  %v4816_v38 = vld [vmem:[%s5832_s3 + $0x78] sm:$0xff] (!%p218_p2)  }
   0xd   : > { %618 = vst [vmem:[#allocation2 + $0x70] sm:$0x3] %v5019_v2  ;;  %619 = vst [vmem:[#allocation2 + $0x78] sm:$0xff] %v5019_v2  ;;  %s5837_s22 = smov (!%p253_p3, %s3626_s22), 1  ;;  %4285 = vmatprep.subr.bf16.mxu0 %v4807_v6  ;;  %v755_v13 = vld [vmem:[#allocation2 + $0x1] sm:$0xff]  ;;  %v4817_v41 = vld [vmem:[%s5832_s3 + $0x138] sm:$0xff]  }
   0xe   : > { %620 = vst [vmem:[#allocation2 + $0x80] sm:$0xff] %v5019_v2  ;;  %621 = vst [vmem:[#allocation2 + $0x88] sm:$0x3] %v5019_v2  ;;  %s3871_s15 = sshll.u32 %s5837_s22, 8  ;;  %v756_v14 = vld [vmem:[#allocation2 + $0x9] sm:$0xff]  ;;  %v5180_v52 = vld [vmem:[%s5832_s3] sm:$0xff]   ;;  %s265_s27 = scalar_lea.vmem %s5834_s5, %s5837_s22 }
   0xf   : > { %622 = vst [vmem:[#allocation2 + $0x90] sm:$0xff] %v5019_v2  ;;  %623 = vst [vmem:[#allocation2 + $0x98] sm:$0xff] %v5019_v2  ;;  %4094 = vmatpush3.bf16.msra.mxu1 %v4806_v5  ;;  %s5105_s24 = scalar_lea.vmem %s5829_s0, %s3871_s15  ;;  %v787_v16 = vpack.c.bf16 %v756_v14, %v755_v13  ;;  %v5192_v56 = vld [vmem:[%s5832_s3 + $0x140] sm:$0xff]   ;;  %s5779_s25 = scalar_lea.vmem %s5833_s4, %s3871_s15 }
  0x10   : > { %624 = vst [vmem:[#allocation2 + $0xa0] sm:$0x3] %v5019_v2  ;;  %625 = vst [vmem:[#allocation2 + $0xa8] sm:$0xff] %v5019_v2  ;;  %4286 = vmatpush3.bf16.msra.mxu0 %v4807_v6  ;;  %4095 = vmatprep.subr.bf16.mxu1 %v4808_v7  ;;  %v270_v15 = vld [vmem:[%s5105_s24] sm:$0xff]  ;;  %v271_v17 = vld [vmem:[%s5105_s24 + $0x8] sm:$0xff]  ;;  %s268_s30 = scalar_lea.vmem %s5835_s6, %s5837_s22 }
  0x11   : > { %626 = vst [vmem:[#allocation2 + $0xb0] sm:$0xff] %v5019_v2  ;;  %627 = vst [vmem:[#allocation2 + $0xb8] sm:$0x3] %v5019_v2  ;;  %4287 = vmatprep.subr.bf16.mxu0 %v4809_v8  ;;  %v310_v20 = vmul.f32 %v5118_v18, %v270_v15  ;;  %v311_v21 = vmul.f32 %v5118_v18, %v271_v17  ;;  %4105 = vmatprep.mubr.bf16.mxu1 %v787_v16  ;;  %v272_v25 = vld [vmem:[%s5105_s24 + $0x10] sm:$0xff]  ;;  %v273_v26 = vld [vmem:[%s5105_s24 + $0x18] sm:$0xff] }
  0x12   : > { %628 = vst [vmem:[#allocation2 + $0xc0] sm:$0xff] %v5019_v2  ;;  %629 = vst [vmem:[#allocation2 + $0xc8] sm:$0xff] %v5019_v2  ;;  %v312_v28 = vmul.f32 %v5118_v18, %v272_v25  ;;  %v313_v29 = vmul.f32 %v5118_v18, %v273_v26  ;;  %v274_v30 = vld [vmem:[%s5105_s24 + $0x20] sm:$0xff]  ;;  %v275_v33 = vld [vmem:[%s5105_s24 + $0x28] sm:$0xff] }
  0x13   : > { %630 = vst [vmem:[#allocation2 + $0xd0] sm:$0x3] %v5019_v2  ;;  %631 = vst [vmem:[#allocation2 + $0xd8] sm:$0xff] %v5019_v2  ;;  %4096 = vmatpush3.bf16.msra.mxu1 %v4808_v7  ;;  %v5131_v23 = vadd.f32 %v5123_v19, %v310_v20  ;;  %v5134_v24 = vadd.f32 %v5123_v19, %v311_v21  ;;  %v314_v34 = vmul.f32 %v5118_v18, %v274_v30  ;;  %v276_v40 = vld [vmem:[%s5105_s24 + $0x30] sm:$0xff]  ;;  %v277_v45 = vld [vmem:[%s5105_s24 + $0x38] sm:$0xff] }
  0x14   : > { %632 = vst [vmem:[#allocation2 + $0xe0] sm:$0xff] %v5019_v2  ;;  %633 = vst [vmem:[#allocation2 + $0xe8] sm:$0x3] %v5019_v2  ;;  %4288 = vmatpush3.bf16.msra.mxu0 %v4809_v8  ;;  %4097 = vmatprep.subr.bf16.mxu1 %v4810_v9  ;;  %v5149_v35 = vadd.f32 %v5123_v19, %v312_v28  ;;  %v5152_v36 = vadd.f32 %v5123_v19, %v313_v29  ;;  %v278_v50 = vld [vmem:[%s5105_s24 + $0x40] sm:$0xff]  ;;  %v279_v51 = vld [vmem:[%s5105_s24 + $0x48] sm:$0xff] }
  0x15   : > { %634 = vst [vmem:[#allocation2 + $0xf0] sm:$0xff] %v5019_v2  ;;  %635 = vst [vmem:[#allocation2 + $0xf8] sm:$0xff] %v5019_v2  ;;  %4289 = vmatprep.subr.bf16.mxu0 %v4811_v10  ;;  %v3637_v31 = vmul.f32 -1.442695, %v5131_v23  ;;  %v3638_v32 = vmul.f32 -1.442695, %v5134_v24  ;;  %v315_v37 = vmul.f32 %v5118_v18, %v275_v33  ;;  %v5159_v39 = vadd.f32 %v5123_v19, %v314_v34 }
  0x16   : > { %636 = vst [vmem:[#allocation2 + $0x100] sm:$0x3] %v5019_v2  ;;  %637 = vst [vmem:[#allocation2 + $0x108] sm:$0xff] %v5019_v2  ;;  %v3639_v42 = vmul.f32 -1.442695, %v5149_v35  ;;  %v316_v47 = vmul.f32 %v5118_v18, %v276_v40  ;;  %v317_v48 = vmul.f32 %v5118_v18, %v277_v45  ;;  %v318_v55 = vmul.f32 %v5118_v18, %v278_v50  ;;  %v280_v58 = vld [vmem:[%s5105_s24 + $0x50] sm:$0xff] }
  0x17   : > { %638 = vst [vmem:[#allocation2 + $0x110] sm:$0xff] %v5019_v2  ;;  %639 = vst [vmem:[#allocation2 + $0x118] sm:$0x3] %v5019_v2  ;;  %4098 = vmatpush3.bf16.msra.mxu1 %v4810_v9  ;;  %4874 = vpow2.f32 %v3637_v31  ;;  %v3640_v43 = vmul.f32 -1.442695, %v5152_v36  ;;  %v5168_v44 = vadd.f32 %v5123_v19, %v315_v37  ;;  %v319_v57 = vmul.f32 %v5118_v18, %v279_v51  ;;  %v281_v62 = vld [vmem:[%s5105_s24 + $0x58] sm:$0xff] }
  0x18   : > { %640 = vst [vmem:[#allocation2 + $0x120] sm:$0xff] %v5019_v2  ;;  %641 = vst [vmem:[#allocation2 + $0x128] sm:$0xff] %v5019_v2  ;;  %4290 = vmatpush3.bf16.msra.mxu0 %v4811_v10  ;;  %4099 = vmatprep.subr.bf16.mxu1 %v4812_v11  ;;  %4876 = vpow2.f32 %v3638_v32  ;;  %v3641_v46 = vmul.f32 -1.442695, %v5159_v39  ;;  %v5183_v53 = vadd.f32 %v5123_v19, %v316_v47  ;;  %v282_v3 = vld [vmem:[%s5105_s24 + $0x60] sm:$0xff]  ;;  %v283_v4 = vld [vmem:[%s5105_s24 + $0x68] sm:$0xff] }
  0x19   : > { %642 = vst [vmem:[#allocation2 + $0x130] sm:$0x3] %v5019_v2  ;;  %643 = vst [vmem:[#allocation2 + $0x138] sm:$0xff] %v5019_v2  ;;  %4291 = vmatprep.subr.bf16.mxu0 %v4813_v12  ;;  %4878 = vpow2.f32 %v3639_v42  ;;  %v3642_v49 = vmul.f32 -1.442695, %v5168_v44  ;;  %v5186_v54 = vadd.f32 %v5123_v19, %v317_v48  ;;  %v5199_v61 = vadd.f32 %v5123_v19, %v318_v55  ;;  %v284_v8 = vld [vmem:[%s5105_s24 + $0x70] sm:$0xff] }
  0x1a   : > { %644 = vst [vmem:[#allocation2 + $0x140] sm:$0xff] %v5019_v2  ;;  %645 = vst [vmem:[#allocation2 + $0x148] sm:$0x3] %v5019_v2  ;;  %4880 = vpow2.f32 %v3640_v43  ;;  %v3643_v59 = vmul.f32 -1.442695, %v5183_v53  ;;  %v5203_v63 = vadd.f32 %v5123_v19, %v319_v57  ;;  %v320_v0 = vmul.f32 %v5118_v18, %v280_v58  ;;  %v285_v13 = vld [vmem:[%s5105_s24 + $0x78] sm:$0xff] }
  0x1b   : > { %646 = vst [vmem:[#allocation2 + $0x150] sm:$0xff] %v5019_v2  ;;  %647 = vst [vmem:[#allocation2 + $0x158] sm:$0xff] %v5019_v2  ;;  %4100 = vmatpush3.bf16.msra.mxu1 %v4812_v11  ;;  %4882 = vpow2.f32 %v3641_v46  ;;  %v3644_v60 = vmul.f32 -1.442695, %v5186_v54  ;;  %v3645_v1 = vmul.f32 -1.442695, %v5199_v61  ;;  %v323_v16 = vmul.f32 %v5118_v18, %v283_v4 }
  0x1c   : > { %648 = vst [vmem:[#allocation2 + $0x160] sm:$0x3] %v5019_v2  ;;  %649 = vst [vmem:[#allocation2 + $0x168] sm:$0xff] %v5019_v2  ;;  %4292 = vmatpush3.bf16.msra.mxu0 %v4813_v12  ;;  %4101 = vmatprep.subr.bf16.mxu1 %v4814_v22  ;;  %4884 = vpow2.f32 %v3642_v49  ;;  %v3646_v5 = vmul.f32 -1.442695, %v5203_v63  ;;  %v5214_v6 = vadd.f32 %v5123_v19, %v320_v0  ;;  %v286_v21 = vld [vmem:[%s5105_s24 + $0x80] sm:$0xff] }
  0x1d   : > { %650 = vst [vmem:[#allocation2 + $0x170] sm:$0xff] %v5019_v2  ;;  %651 = vst [vmem:[#allocation2 + $0x178] sm:$0x3] %v5019_v2  ;;  %4293 = vmatprep.subr.bf16.mxu0 %v4815_v27  ;;  %4886 = vpow2.f32 %v3643_v59  ;;  %v322_v12 = vmul.f32 %v5118_v18, %v282_v3  ;;  %v324_v20 = vmul.f32 %v5118_v18, %v284_v8  ;;  %v288_v42 = vld [vmem:[%s5105_s24 + $0x90] sm:$0xff]  ;;  %v289_v50 = vld [vmem:[%s5105_s24 + $0x98] sm:$0xff] }
  0x1e   : > { %652 = vst [vmem:[#allocation2 + $0x180] sm:$0xff] %v5019_v2  ;;  %653 = vst [vmem:[#allocation2 + $0x188] sm:$0xff] %v5019_v2  ;;  %4888 = vpow2.f32 %v3644_v60  ;;  %v3647_v11 = vmul.f32 -1.442695, %v5214_v6  ;;  %v325_v26 = vmul.f32 %v5118_v18, %v285_v13  ;;  %v326_v31 = vmul.f32 %v5118_v18, %v286_v21  ;;  %v290_v59 = vld [vmem:[%s5105_s24 + $0xa0] sm:$0xff] }
  0x1f   : > { %654 = vst [vmem:[#allocation2 + $0x190] sm:$0x3] %v5019_v2  ;;  %655 = vst [vmem:[#allocation2 + $0x198] sm:$0xff] %v5019_v2  ;;  %4102 = vmatpush3.bf16.msra.mxu1 %v4814_v22  ;;  %4890 = vpow2.f32 %v3645_v1  ;;  %v5229_v30 = vadd.f32 %v5123_v19, %v322_v12  ;;  %v5234_v37 = vadd.f32 %v5123_v19, %v323_v16 }
  0x20   : > { %656 = vst [vmem:[#allocation2 + $0x1a0] sm:$0xff] %v5019_v2  ;;  %657 = vst [vmem:[#allocation2 + $0x1a8] sm:$0x3] %v5019_v2  ;;  %4294 = vmatpush3.bf16.msra.mxu0 %v4815_v27  ;;  %4103 = vmatprep.subr.bf16.mxu1 %v4816_v38  ;;  %v321_v2 = vmul.f32 %v5118_v18, %v281_v62  ;;  %4892 = vpow2.f32 %v3646_v5  ;;  %v287_v27 = vld [vmem:[%s5105_s24 + $0x88] sm:$0xff]  ;;  %v5237_v40 = vadd.f32 %v5123_v19, %v324_v20 }
  0x21   : > { %4295 = vmatprep.subr.bf16.mxu0 %v4817_v41  ;;  %v4875_v7 = vpop.eup %4874  ;;  %v5242_v45 = vadd.f32 %v5123_v19, %v325_v26  ;;  %v3649_v48 = vmul.f32 -1.442695, %v5229_v30  ;;  %v5246_v49 = vadd.f32 %v5123_v19, %v326_v31  ;;  %v3650_v57 = vmul.f32 -1.442695, %v5234_v37  ;;  %v293_v26 = vld [vmem:[%s5105_s24 + $0xb8] sm:$0xff] }
  0x22   : > { %v4877_v9 = vpop.eup %4876  ;;  %v476_v10 = vadd.f32 1.0, %v4875_v7  ;;  %v5221_v15 = vadd.f32 %v5123_v19, %v321_v2  ;;  %v328_v58 = vmul.f32 %v5118_v18, %v288_v42  ;;  %v3651_v0 = vmul.f32 -1.442695, %v5237_v40  ;;  %v291_v2 = vld [vmem:[%s5105_s24 + $0xa8] sm:$0xff]  ;;  %v292_v7 = vld [vmem:[%s5105_s24 + $0xb0] sm:$0xff] }
  0x23   : > { %4104 = vmatpush3.bf16.msra.mxu1 %v4816_v38  ;;  %v477_v14 = vadd.f32 1.0, %v4877_v9  ;;  %v4879_v17 = vpop.eup %4878  ;;  %v3652_v4 = vmul.f32 -1.442695, %v5242_v45  ;;  %v329_v5 = vmul.f32 %v5118_v18, %v289_v50  ;;  %v3653_v9 = vmul.f32 -1.442695, %v5246_v49  ;;  %v5301_v50 = vld [vmem:[%s5832_s3 + $0x10] sm:$0xff]  }
  0x24   : > { %4296 = vmatpush3.bf16.msra.mxu0 %v4817_v41  ;;  %4137 = vmatprep.subr.bf16.mxu1 %v5180_v52  ;;  %4894 = vrcp.f32 %v476_v10  ;;  %v4881_v22 = vpop.eup %4880  ;;  %v478_v25 = vadd.f32 1.0, %v4879_v17  ;;  %v3648_v34 = vmul.f32 -1.442695, %v5221_v15  ;;  %v327_v41 = vmul.f32 %v5118_v18, %v287_v27 }
  0x25   : > { %4329 = vmatprep.subr.bf16.mxu0 %v5192_v56  ;;  %4896 = vrcp.f32 %v477_v14  ;;  %v4883_v28 = vpop.eup %4882  ;;  %v479_v29 = vadd.f32 1.0, %v4881_v22  ;;  %v330_v10 = vmul.f32 %v5118_v18, %v290_v59  ;;  %v5264_v13 = vadd.f32 %v5123_v19, %v328_v58 }
  0x26   : > { %4898 = vpow2.f32 %v3647_v11  ;;  %v4885_v32 = vpop.eup %4884  ;;  %v480_v33 = vadd.f32 1.0, %v4883_v28  ;;  %v5254_v1 = vadd.f32 %v5123_v19, %v327_v41  ;;  %v331_v14 = vmul.f32 %v5118_v18, %v291_v2 }
  0x27   : > { %4900 = vrcp.f32 %v478_v25  ;;  %v481_v38 = vadd.f32 1.0, %v4885_v32  ;;  %v4887_v43 = vpop.eup %4886  ;;  %v332_v21 = vmul.f32 %v5118_v18, %v292_v7  ;;  %v5279_v31 = vadd.f32 %v5123_v19, %v330_v10 }
  0x28   : > { %4902 = vrcp.f32 %v479_v29  ;;  %v4889_v46 = vpop.eup %4888  ;;  %v482_v47 = vadd.f32 1.0, %v4887_v43  ;;  %v3654_v20 = vmul.f32 -1.442695, %v5254_v1 }
  0x29   : > { %4904 = vrcp.f32 %v480_v33  ;;  %v4891_v51 = vpop.eup %4890  ;;  %v483_v55 = vadd.f32 1.0, %v4889_v46  ;;  %v5294_v43 = vadd.f32 %v5123_v19, %v332_v21 }
  0x2a   : > { %4906 = vrcp.f32 %v481_v38  ;;  %v4893_v60 = vpop.eup %4892  ;;  %v484_v62 = vadd.f32 1.0, %v4891_v51  ;;  %v3655_v38 = vmul.f32 -1.442695, %v5264_v13 }
  0x2b   : > { %4908 = vpow2.f32 %v3648_v34  ;;  %v485_v3 = vadd.f32 1.0, %v4893_v60  ;;  %v5285_v34 = vld [vmem:[%s5832_s3 + $0x148] sm:$0xff]  }
  0x2c   : > { %4910 = vrcp.f32 %v482_v47 }
  0x2d   : > { %4912 = vrcp.f32 %v483_v55 }
  0x2e   : > { %v4895_v8 = vpop.eup %4894  ;;  %4914 = vrcp.f32 %v484_v62  ;;  %v295_v62 = vld [vmem:[%s5105_s24 + $0xc8] sm:$0xff] }
  0x2f   : > { %v4897_v11 = vpop.eup %4896  ;;  %v572_v12 = vmul.f32 %v4895_v8, %v5131_v23  ;;  %4916 = vrcp.f32 %v485_v3  ;;  %v5271_v23 = vadd.f32 %v5123_v19, %v329_v5  ;;  %v3659_v5 = vmul.f32 -1.442695, %v5294_v43 }
  0x30   : > { %v4899_v16 = vpop.eup %4898  ;;  %v573_v17 = vmul.f32 %v4897_v11, %v5134_v24  ;;  %4918 = vpow2.f32 %v3649_v48  ;;  %v4821_v24 = vld [vmem:[%s5832_s3 + $0x8] sm:$0xff]   ;;  %v335_v10 = vmul.f32 %v5118_v18, %v295_v62 }
  0x31   : > { %v4901_v22 = vpop.eup %4900  ;;  %659 = vst [vmem:[#allocation2 + $0x19] sm:$0xff] %v572_v12  ;;  %v486_v25 = vadd.f32 1.0, %v4899_v16  ;;  %4920 = vpow2.f32 %v3650_v57  ;;  %v294_v57 = vld [vmem:[%s5105_s24 + $0xc0] sm:$0xff] }
  0x32   : > { %v4903_v27 = vpop.eup %4902  ;;  %660 = vst [vmem:[#allocation2 + $0x21] sm:$0xff] %v573_v17  ;;  %v788_v28 = vpack.c.bf16 %v573_v17, %v572_v12  ;;  %v574_v29 = vmul.f32 %v4901_v22, %v5149_v35  ;;  %4922 = vpow2.f32 %v3651_v0  ;;  %v5289_v35 = vadd.f32 %v5123_v19, %v331_v14  ;;  %v296_v0 = vld [vmem:[%s5105_s24 + $0xd0] sm:$0xff] }
  0x33   : > { %v4905_v32 = vpop.eup %4904  ;;  %v575_v33 = vmul.f32 %v4903_v27, %v5152_v36  ;;  %4924 = vrcp.f32 %v486_v25  ;;  %v333_v36 = vmul.f32 %v5118_v18, %v293_v26  ;;  %v336_v16 = vmul.f32 %v5118_v18, %v296_v0  ;;  %v297_v25 = vld [vmem:[%s5105_s24 + $0xd8] sm:$0xff] }
  0x34   : > { %v4907_v41 = vpop.eup %4906  ;;  %4106 = vmatmul.mubr.bf16.vlgmr.msra.gmra.mrb[0].mxu1 %v788_v28  ;;  %4297 = vmatprep.mubr.bf16.mxu0 %v788_v28  ;;  %661 = vst [vmem:[#allocation2 + $0x31] sm:$0xff] %v574_v29  ;;  %v576_v42 = vmul.f32 %v4905_v32, %v5159_v39  ;;  %4926 = vpow2.f32 %v3652_v4  ;;  %v3656_v39 = vmul.f32 -1.442695, %v5271_v23  ;;  %v3658_v60 = vmul.f32 -1.442695, %v5289_v35 }
  0x35   : > { %v4909_v46 = vpop.eup %4908  ;;  %4138 = vmatpush3.bf16.msra.mxu1 %v5180_v52  ;;  %662 = vst [vmem:[#allocation2 + $0x39] sm:$0xff] %v575_v33  ;;  %v1883_v47 = vpack.c.bf16 %v575_v33, %v574_v29  ;;  %v577_v48 = vmul.f32 %v4907_v41, %v5168_v44  ;;  %4928 = vpow2.f32 %v3653_v9  ;;  %v3657_v52 = vmul.f32 -1.442695, %v5279_v31  ;;  %v298_v29 = vld [vmem:[%s5105_s24 + $0xe0] sm:$0xff] }
  0x36   : > { %v4911_v51 = vpop.eup %4910  ;;  %663 = vst [vmem:[#allocation2 + $0x49] sm:$0xff] %v576_v42  ;;  %4139 = vmatprep.subr.bf16.mxu1 %v4821_v24  ;;  %v487_v55 = vadd.f32 1.0, %v4909_v46  ;;  %4930 = vpow2.f32 %v3654_v20  ;;  %v5313_v4 = vadd.f32 %v5123_v19, %v333_v36  ;;  %v5342_v33 = vadd.f32 %v5123_v19, %v335_v10  ;;  %v4830_v41 = vld [vmem:[%s5832_s3 + $0x20] sm:$0xff]   ;;  %v299_v46 = vld [vmem:[%s5105_s24 + $0xe8] sm:$0xff] }
  0x37   : > { %v4913_v58 = vpop.eup %4912  ;;  %4298 = vmatmul.mubr.bf16.vlgmr.msra.gmra.mrb[0].mxu0 %v1883_v47  ;;  %4109 = vmatprep.mubr.bf16.mxu1 %v1883_v47  ;;  %664 = vst [vmem:[#allocation2 + $0x51] sm:$0xff] %v577_v48  ;;  %v790_v44 = vpack.c.bf16 %v577_v48, %v576_v42  ;;  %v578_v59 = vmul.f32 %v4911_v51, %v5183_v53  ;;  %4932 = vpow2.f32 %v3655_v38  ;;  %v4822_v53 = vld [vmem:[%s5832_s3 + $0x150] sm:$0xff]  }
  0x38   : > { %v4915_v2 = vpop.eup %4914  ;;  %4330 = vmatpush3.bf16.msra.mxu0 %v5192_v56  ;;  %v579_v3 = vmul.f32 %v4913_v58, %v5186_v54  ;;  %4934 = vrcp.f32 %v487_v55  ;;  %v334_v54 = vmul.f32 %v5118_v18, %v294_v57  ;;  %v3660_v22 = vmul.f32 -1.442695, %v5313_v4 }
  0x39   : > { %v4917_v7 = vpop.eup %4916  ;;  %4331 = vmatprep.subr.bf16.mxu0 %v5285_v34  ;;  %4301 = vmatprep.mubr.bf16.mxu0 %v790_v44  ;;  %665 = vst [vmem:[#allocation2 + $0x61] sm:$0xff] %v578_v59  ;;  %v580_v8 = vmul.f32 %v4915_v2, %v5199_v61  ;;  %4936 = vpow2.f32 %v3656_v39  ;;  %v4827_v61 = vld [vmem:[%s5832_s3 + $0x18] sm:$0xff]   ;;  %v337_v42 = vmul.f32 %v5118_v18, %v297_v25  ;;  %v4825_v39 = vld [vmem:[%s5832_s3 + $0x160] sm:$0xff]   ;;  %v3662_v58 = vmul.f32 -1.442695, %v5342_v33 }
  0x3a   : > { %v4919_v56 = vpop.eup %4918  ;;  %4140 = vmatpush3.bf16.msra.mxu1 %v4821_v24  ;;  %666 = vst [vmem:[#allocation2 + $0x69] sm:$0xff] %v579_v3  ;;  %v581_v9 = vmul.f32 %v4917_v7, %v5203_v63  ;;  %4938 = vpow2.f32 %v3657_v52  ;;  %v1885_v12 = vpack.c.bf16 %v579_v3, %v578_v59  ;;  %v4823_v63 = vld [vmem:[%s5832_s3 + $0x158] sm:$0xff]   ;;  %v5336_v28 = vadd.f32 %v5123_v19, %v334_v54  ;;  %v300_v59 = vld [vmem:[%s5105_s24 + $0xf0] sm:$0xff] }
  0x3b   : > { %v4921_v11 = vpop.eup %4920  ;;  %667 = vst [vmem:[#allocation2 + $0x79] sm:$0xff] %v580_v8  ;;  %4141 = vmatprep.subr.bf16.mxu1 %v5301_v50  ;;  %v488_v14 = vadd.f32 1.0, %v4919_v56  ;;  %4940 = vpow2.f32 %v3658_v60  ;;  %v5349_v36 = vadd.f32 %v5123_v19, %v336_v16  ;;  %v338_v48 = vmul.f32 %v5118_v18, %v298_v29  ;;  %v301_v60 = vld [vmem:[%s5105_s24 + $0xf8] sm:$0xff] }
  0x3c   : > { %v4923_v17 = vpop.eup %4922  ;;  %4332 = vmatpush3.bf16.msra.mxu0 %v5285_v34  ;;  %4110 = vmatmul.mubr.bf16.gmra.mrb[4].mxu1 %v790_v44  ;;  %668 = vst [vmem:[#allocation2 + $0x81] sm:$0xff] %v581_v9  ;;  %v792_v20 = vpack.c.bf16 %v581_v9, %v580_v8  ;;  %v489_v21 = vadd.f32 1.0, %v4921_v11  ;;  %4942 = vpow2.f32 %v3659_v5  ;;  %v3661_v55 = vmul.f32 -1.442695, %v5336_v28  ;;  %v4826_v9 = vld [vmem:[%s5832_s3 + $0x168] sm:$0xff]   ;;  %v2156_v25 = vld [vmem:[#allocation2 + $0x1a] sm:$0xff] }
  0x3d   : > { %v4925_v26 = vpop.eup %4924  ;;  %4333 = vmatprep.subr.bf16.mxu0 %v4822_v53  ;;  %4113 = vmatprep.mubr.bf16.mxu1 %v1885_v12  ;;  %4944 = vrcp.f32 %v488_v14  ;;  %v490_v27 = vadd.f32 1.0, %v4923_v17  ;;  %v339_v44 = vmul.f32 %v5118_v18, %v299_v46  ;;  %v5363_v2 = vadd.f32 %v5123_v19, %v337_v42 }
  0x3e   : > { %v4927_v24 = vpop.eup %4926  ;;  %4142 = vmatpush3.bf16.msra.mxu1 %v5301_v50  ;;  %v582_v32 = vmul.f32 %v4925_v26, %v5214_v6  ;;  %4946 = vrcp.f32 %v489_v21  ;;  %v3663_v3 = vmul.f32 -1.442695, %v5349_v36  ;;  %v5370_v8 = vadd.f32 %v5123_v19, %v338_v48  ;;  %v2157_v26 = vld [vmem:[#allocation2 + $0x22] sm:$0xff] }
  0x3f   : > { %v4929_v34 = vpop.eup %4928  ;;  %4302 = vmatmul.mubr.bf16.gmra.mrb[4].mxu0 %v1885_v12  ;;  %4143 = vmatprep.subr.bf16.mxu1 %v4827_v61  ;;  %v491_v38 = vadd.f32 1.0, %v4927_v24  ;;  %4948 = vrcp.f32 %v490_v27  ;;  %v341_v11 = vmul.f32 %v5118_v18, %v301_v60 }
  0x40   : > { %v4931_v6 = vpop.eup %4930  ;;  %4334 = vmatpush3.bf16.msra.mxu0 %v4822_v53  ;;  %4305 = vmatprep.mubr.bf16.mxu0 %v792_v20  ;;  %669 = vst [vmem:[#allocation2 + $0x91] sm:$0xff] %v582_v32  ;;  %v492_v47 = vadd.f32 1.0, %v4929_v34  ;;  %4950 = vpow2.f32 %v3660_v22  ;;  %v4832_v53 = vld [vmem:[%s5832_s3 + $0x28] sm:$0xff]   ;;  %v4828_v22 = vld [vmem:[%s5832_s3 + $0x170] sm:$0xff]   ;;  %v3665_v27 = vmul.f32 -1.442695, %v5370_v8 }
  0x41   : > { %v4933_v50 = vpop.eup %4932  ;;  %4335 = vmatprep.subr.bf16.mxu0 %v4823_v63  ;;  %4952 = vrcp.f32 %v491_v38  ;;  %v493_v51 = vadd.f32 1.0, %v4931_v6 }
  0x42   : > { %v4935_v52 = vpop.eup %4934  ;;  %4144 = vmatpush3.bf16.msra.mxu1 %v4827_v61  ;;  %4954 = vrcp.f32 %v492_v47  ;;  %v494_v57 = vadd.f32 1.0, %v4933_v50  ;;  %v5378_v61 = vadd.f32 %v5123_v19, %v339_v44  ;;  %v5415_v44 = vld [vmem:[%s5832_s3 + $0x80] sm:$0xff]  }
  0x43   : > { %v4937_v62 = vpop.eup %4936  ;;  %v583_v0 = vmul.f32 %v4935_v52, %v5221_v15  ;;  %4956 = vrcp.f32 %v493_v51  ;;  %4145 = vmatprep.subr.bf16.mxu1 %v4830_v41  ;;  %v340_v15 = vmul.f32 %v5118_v18, %v300_v59 }
  0x44   : > { %v4939_v5 = vpop.eup %4938  ;;  %4336 = vmatpush3.bf16.msra.mxu0 %v4823_v63  ;;  %4114 = vmatmul.mubr.bf16.gmra.mrb[8].mxu1 %v792_v20  ;;  %v495_v7 = vadd.f32 1.0, %v4937_v62  ;;  %4958 = vrcp.f32 %v494_v57  ;;  %v4834_v63 = vld [vmem:[%s5832_s3 + $0x30] sm:$0xff]   ;;  %v3664_v20 = vmul.f32 -1.442695, %v5363_v2 }
  0x45   : > { %v4941_v54 = vpop.eup %4940  ;;  %4337 = vmatprep.subr.bf16.mxu0 %v4825_v39  ;;  %670 = vst [vmem:[#allocation2 + $0x99] sm:$0xff] %v583_v0  ;;  %v1887_v56 = vpack.c.bf16 %v583_v0, %v582_v32  ;;  %v496_v10 = vadd.f32 1.0, %v4939_v5  ;;  %4960 = vpow2.f32 %v3661_v55  ;;  %v5390_v29 = vadd.f32 %v5123_v19, %v340_v15  ;;  %v2158_v0 = vld [vmem:[#allocation2 + $0x32] sm:$0xff]  ;;  %v2160_v15 = vld [vmem:[#allocation2 + $0x4a] sm:$0xff] }
  0x46   : > { %v4943_v12 = vpop.eup %4942  ;;  %4146 = vmatpush3.bf16.msra.mxu1 %v4830_v41  ;;  %4962 = vrcp.f32 %v495_v7  ;;  %v497_v14 = vadd.f32 1.0, %v4941_v54  ;;  %v3666_v41 = vmul.f32 -1.442695, %v5378_v61  ;;  %v4831_v7 = vld [vmem:[%s5832_s3 + $0x180] sm:$0xff]   ;;  %v2161_v54 = vld [vmem:[#allocation2 + $0x52] sm:$0xff] }
  0x47   : > { %v4945_v16 = vpop.eup %4944  ;;  %4306 = vmatmul.mubr.bf16.gmra.mrb[8].mxu0 %v1887_v56  ;;  %4117 = vmatprep.mubr.bf16.mxu1 %v1887_v56  ;;  %4964 = vrcp.f32 %v496_v10  ;;  %v498_v17 = vadd.f32 1.0, %v4943_v12 }
  0x48   : > { %v4947_v21 = vpop.eup %4946  ;;  %4338 = vmatpush3.bf16.msra.mxu0 %v4825_v39  ;;  %v584_v18 = vmul.f32 %v4945_v16, %v5229_v30  ;;  %4966 = vrcp.f32 %v497_v14  ;;  %4147 = vmatprep.subr.bf16.mxu1 %v4832_v53  ;;  %v5394_v30 = vadd.f32 %v5123_v19, %v341_v11  ;;  %v5404_v39 = vpack.c.bf16 %v2157_v26, %v2156_v25 }
  0x49   : > { %v4949_v24 = vpop.eup %4948  ;;  %4339 = vmatprep.subr.bf16.mxu0 %v4826_v9  ;;  %v585_v32 = vmul.f32 %v4947_v21, %v5234_v37  ;;  %4968 = vrcp.f32 %v498_v17  ;;  %v4836_v37 = vld [vmem:[%s5832_s3 + $0x38] sm:$0xff]  }
  0x4a   : > { %v4951_v34 = vpop.eup %4950  ;;  %671 = vst [vmem:[#allocation2 + $0xa9] sm:$0xff] %v584_v18  ;;  %v586_v38 = vmul.f32 %v4949_v24, %v5237_v40  ;;  %4148 = vmatpush3.bf16.msra.mxu1 %v4832_v53  ;;  %4970 = vpow2.f32 %v3662_v58  ;;  %v3667_v40 = vmul.f32 -1.442695, %v5390_v29  ;;  %v3668_v51 = vmul.f32 -1.442695, %v5394_v30 }
  0x4b   : > { %v4953_v42 = vpop.eup %4952  ;;  %672 = vst [vmem:[#allocation2 + $0xb1] sm:$0xff] %v585_v32  ;;  %v794_v46 = vpack.c.bf16 %v585_v32, %v584_v18  ;;  %v499_v6 = vadd.f32 1.0, %v4951_v34  ;;  %4149 = vmatprep.subr.bf16.mxu1 %v4834_v63  ;;  %4972 = vpow2.f32 %v3663_v3  ;;  %v2162_v18 = vld [vmem:[#allocation2 + $0x62] sm:$0xff] }
  0x4c   : > { %v4955_v19 = vpop.eup %4954  ;;  %4340 = vmatpush3.bf16.msra.mxu0 %v4826_v9  ;;  %v587_v47 = vmul.f32 %v4953_v42, %v5242_v45  ;;  %673 = vst [vmem:[#allocation2 + $0xc1] sm:$0xff] %v586_v38  ;;  %4974 = vpow2.f32 %v3664_v20  ;;  %v4829_v45 = vld [vmem:[%s5832_s3 + $0x178] sm:$0xff]   ;;  %v4835_v42 = vld [vmem:[%s5832_s3 + $0x190] sm:$0xff]  }
  0x4d   : > { %v4957_v48 = vpop.eup %4956  ;;  %4118 = vmatmul.mubr.bf16.gmra.mrb[12].mxu1 %v794_v46  ;;  %4309 = vmatprep.mubr.bf16.mxu0 %v794_v46  ;;  %v588_v50 = vmul.f32 %v4955_v19, %v5246_v49  ;;  %4976 = vrcp.f32 %v499_v6 }
  0x4e   : > { %v4959_v55 = vpop.eup %4958  ;;  %4341 = vmatprep.subr.bf16.mxu0 %v4828_v22  ;;  %674 = vst [vmem:[#allocation2 + $0xc9] sm:$0xff] %v587_v47  ;;  %v1889_v52 = vpack.c.bf16 %v587_v47, %v586_v38  ;;  %v589_v57 = vmul.f32 %v4957_v48, %v5254_v1  ;;  %4150 = vmatpush3.bf16.msra.mxu1 %v4834_v63  ;;  %4978 = vpow2.f32 %v3665_v27  ;;  %v2163_v27 = vld [vmem:[#allocation2 + $0x6a] sm:$0xff]  ;;  %v2164_v38 = vld [vmem:[#allocation2 + $0x7a] sm:$0xff] }
  0x4f   : > { %v4961_v58 = vpop.eup %4960  ;;  %675 = vst [vmem:[#allocation2 + $0xd9] sm:$0xff] %v588_v50  ;;  %v590_v49 = vmul.f32 %v4959_v55, %v5264_v13  ;;  %4980 = vpow2.f32 %v3666_v41  ;;  %4151 = vmatprep.subr.bf16.mxu1 %v4836_v37  ;;  %v2159_v13 = vld [vmem:[#allocation2 + $0x3a] sm:$0xff]  ;;  %v2165_v41 = vld [vmem:[#allocation2 + $0x82] sm:$0xff]  ;;  %v5439_v19 = vpack.c.bf16 %v2163_v27, %v2162_v18  ;;  %v2166_v55 = vld [vmem:[#allocation2 + $0x92] sm:$0xff] }
  0x50   : > { %v4963_v59 = vpop.eup %4962  ;;  %4310 = vmatmul.mubr.bf16.gmra.mrb[12].mxu0 %v1889_v52  ;;  %4121 = vmatprep.mubr.bf16.mxu1 %v1889_v52  ;;  %676 = vst [vmem:[#allocation2 + $0xe1] sm:$0xff] %v589_v57  ;;  %v500_v60 = vadd.f32 1.0, %v4961_v58  ;;  %4982 = vpow2.f32 %v3667_v40  ;;  %v796_v62 = vpack.c.bf16 %v589_v57, %v588_v50  ;;  %v5425_v11 = vpack.c.bf16 %v2159_v13, %v2158_v0  ;;  %v4837_v50 = vld [vmem:[%s5832_s3 + $0x198] sm:$0xff]   ;;  %v5494_v27 = vld [vmem:[%s5832_s3 + $0x1c0] sm:$0xff]  }
  0x51   : > { %v4965_v1 = vpop.eup %4964  ;;  %4342 = vmatpush3.bf16.msra.mxu0 %v4828_v22  ;;  %4345 = vmatprep.mubr.bf16.mxu0 %v5404_v39  ;;  %v591_v3 = vmul.f32 %v4963_v59, %v5271_v23  ;;  %677 = vst [vmem:[#allocation2 + $0xf1] sm:$0xff] %v590_v49  ;;  %4984 = vpow2.f32 %v3668_v51  ;;  %v5442_v48 = vpack.c.bf16 %v2165_v41, %v2164_v38  ;;  %v2167_v52 = vld [vmem:[#allocation2 + $0x9a] sm:$0xff]  ;;  %v697_v41 = vld [vmem:[#allocation2 + $0x48] sm:$0xff] }
  0x52   : > { %v4967_v5 = vpop.eup %4966  ;;  %4343 = vmatprep.subr.bf16.mxu0 %v4829_v45  ;;  %v592_v53 = vmul.f32 %v4965_v1, %v5279_v31  ;;  %4986 = vrcp.f32 %v500_v60  ;;  %4152 = vmatpush3.bf16.msra.mxu1 %v4836_v37  ;;  %v5428_v31 = vpack.c.bf16 %v2161_v54, %v2160_v15  ;;  %v2168_v58 = vld [vmem:[#allocation2 + $0xaa] sm:$0xff] }
  0x53   : > { %v4969_v56 = vpop.eup %4968  ;;  %678 = vst [vmem:[#allocation2 + $0xf9] sm:$0xff] %v591_v3  ;;  %v797_v9 = vpack.c.bf16 %v591_v3, %v590_v49  ;;  %v593_v10 = vmul.f32 %v4967_v5, %v5289_v35  ;;  %4185 = vmatprep.subr.bf16.mxu1 %v5415_v44  ;;  %v4833_v35 = vld [vmem:[%s5832_s3 + $0x188] sm:$0xff]   ;;  %v2169_v49 = vld [vmem:[#allocation2 + $0xb2] sm:$0xff] }
  0x54   : > { %v4971_v23 = vpop.eup %4970  ;;  %679 = vst [vmem:[#allocation2 + $0x109] sm:$0xff] %v592_v53  ;;  %v594_v12 = vmul.f32 %v4969_v56, %v5294_v43  ;;  %v5457_v3 = vpack.c.bf16 %v2169_v49, %v2168_v58  ;;  %v703_v58 = vld [vmem:[#allocation2 + $0x90] sm:$0xff]  ;;  %v704_v49 = vld [vmem:[#allocation2 + $0x98] sm:$0xff] }
  0x55   : > { %v4973_v14 = vpop.eup %4972  ;;  %4344 = vmatpush3.bf16.msra.mxu0 %v4829_v45  ;;  %4122 = vmatmul.mubr.bf16.gmra.mrb[16].mxu1 %v796_v62  ;;  %680 = vst [vmem:[#allocation2 + $0x111] sm:$0xff] %v593_v10  ;;  %v501_v16 = vadd.f32 1.0, %v4971_v23  ;;  %v798_v26 = vpack.c.bf16 %v593_v10, %v592_v53  ;;  %v5454_v62 = vpack.c.bf16 %v2167_v52, %v2166_v55  ;;  %v2171_v54 = vld [vmem:[#allocation2 + $0xca] sm:$0xff]  ;;  %v4844_v52 = vld [vmem:[%s5832_s3 + $0x98] sm:$0xff]  }
  0x56   : > { %v4975_v17 = vpop.eup %4974  ;;  %4377 = vmatprep.subr.bf16.mxu0 %v4831_v7  ;;  %4125 = vmatprep.mubr.bf16.mxu1 %v797_v9  ;;  %681 = vst [vmem:[#allocation2 + $0x121] sm:$0xff] %v594_v12  ;;  %v502_v63 = vadd.f32 1.0, %v4973_v14  ;;  %v5002_v14 = vld [vmem:[#allocation2] sm:$0xff] }
  0x57   : > { %v4977_v20 = vpop.eup %4976  ;;  %4988 = vrcp.f32 %v501_v16  ;;  %v503_v21 = vadd.f32 1.0, %v4975_v17  ;;  %v2172_v9 = vld [vmem:[#allocation2 + $0xda] sm:$0xff]  ;;  %v2173_v10 = vld [vmem:[#allocation2 + $0xe2] sm:$0xff]  ;;  %v5476_v16 = vpack.c.bf16 %v5002_v14, %v5002_v14 }
  0x58   : > { %v4979_v43 = vpop.eup %4978  ;;  %4346 = vmatmul.mubr.bf16.vlgmr.msra.gmra.mrb[0].mxu0 %v5425_v11  ;;  %v595_v22 = vmul.f32 %v4977_v20, %v5313_v4  ;;  %4990 = vrcp.f32 %v502_v63  ;;  %v694_v63 = vld [vmem:[#allocation2 + $0x20] sm:$0xff] }
  0x59   : > { %v4981_v25 = vpop.eup %4980  ;;  %4378 = vmatpush3.bf16.msra.mxu0 %v4831_v7  ;;  %4349 = vmatprep.mubr.bf16.mxu0 %v5428_v31  ;;  %4992 = vrcp.f32 %v503_v21  ;;  %v504_v24 = vadd.f32 1.0, %v4979_v43  ;;  %v695_v21 = vld [vmem:[#allocation2 + $0x30] sm:$0xff]  ;;  %v696_v43 = vld [vmem:[#allocation2 + $0x38] sm:$0xff] }
  0x5a   : > { %v4983_v32 = vpop.eup %4982  ;;  %4379 = vmatprep.subr.bf16.mxu0 %v4833_v35  ;;  %682 = vst [vmem:[#allocation2 + $0x129] sm:$0xff] %v595_v22  ;;  %v799_v34 = vpack.c.bf16 %v595_v22, %v594_v12  ;;  %v505_v4 = vadd.f32 1.0, %v4981_v25  ;;  %v2174_v20 = vld [vmem:[#allocation2 + $0xf2] sm:$0xff]  ;;  %v2175_v18 = vld [vmem:[#allocation2 + $0xfa] sm:$0xff] }
  0x5b   : > { %v4985_v46 = vpop.eup %4984  ;;  %4994 = vrcp.f32 %v504_v24  ;;  %v506_v6 = vadd.f32 1.0, %v4983_v32  ;;  %v5496_v24 = vpack.c.bf16 %v696_v43, %v695_v21  ;;  %v5498_v32 = vpack.c.bf16 %v2175_v18, %v2174_v20  ;;  %v709_v20 = vld [vmem:[#allocation2 + $0xd8] sm:$0xff]  ;;  %v710_v21 = vld [vmem:[#allocation2 + $0xe0] sm:$0xff]  ;;  %v711_v43 = vld [vmem:[#allocation2 + $0xf0] sm:$0xff] }
  0x5c   : > { %v4987_v37 = vpop.eup %4986  ;;  %4996 = vrcp.f32 %v505_v4  ;;  %v507_v47 = vadd.f32 1.0, %v4985_v46  ;;  %v2176_v25 = vld [vmem:[#allocation2 + $0x10a] sm:$0xff]  ;;  %v699_v4 = vld [vmem:[#allocation2 + $0x60] sm:$0xff]  ;;  %v712_v18 = vld [vmem:[#allocation2 + $0xf8] sm:$0xff] }
  0x5d   : > { %4126 = vmatmul.mubr.bf16.gmra.mrb[20].mxu1 %v798_v26  ;;  %4380 = vmatpush3.bf16.msra.mxu0 %v4833_v35  ;;  %v596_v40 = vmul.f32 %v4987_v37, %v5336_v28  ;;  %4998 = vrcp.f32 %v506_v6  ;;  %v4839_v28 = vld [vmem:[%s5832_s3 + $0x1a0] sm:$0xff]   ;;  %v693_v35 = vld [vmem:[#allocation2 + $0x18] sm:$0xff]  ;;  %v700_v46 = vld [vmem:[#allocation2 + $0x68] sm:$0xff] }
  0x5e   : > { %4129 = vmatprep.mubr.bf16.mxu1 %v799_v34  ;;  %4381 = vmatprep.subr.bf16.mxu0 %v4835_v42  ;;  %5000 = vrcp.f32 %v507_v47  ;;  %v5489_v22 = vpack.c.bf16 %v694_v63, %v693_v35  ;;  %v2177_v26 = vld [vmem:[#allocation2 + $0x112] sm:$0xff]  ;;  %v4840_v34 = vld [vmem:[%s5832_s3 + $0x88] sm:$0xff]  }
  0x5f   : > { %683 = vst [vmem:[#allocation2 + $0x139] sm:$0xff] %v596_v40  ;;  %v5503_v38 = vpack.c.bf16 %v2177_v26, %v2176_v25  ;;  %v4842_v6 = vld [vmem:[%s5832_s3 + $0x90] sm:$0xff]   ;;  %v4852_v35 = vld [vmem:[%s5832_s3 + $0xb8] sm:$0xff]   ;;  %v5564_v25 = vld [vmem:[%s5832_s3 + $0xc0] sm:$0xff]   ;;  %v5567_v26 = vpack.c.bf16 %v710_v21, %v709_v20 }
  0x60   : > { %4350 = vmatmul.mubr.bf16.gmra.mrb[4].mxu0 %v5439_v19  ;;  %v2769_v21 = vld [vmem:[#allocation2 + $0x31] sm:$0xff] }
  0x61   : > { %v4989_v51 = vpop.eup %4988  ;;  %4353 = vmatprep.mubr.bf16.mxu0 %v5442_v48  ;;  %4382 = vmatpush3.bf16.msra.mxu0 %v4835_v42  ;;  %v698_v42 = vld [vmem:[#allocation2 + $0x50] sm:$0xff]  ;;  %v2178_v37 = vld [vmem:[#allocation2 + $0x122] sm:$0xff] }
  0x62   : > { %v4991_v45 = vpop.eup %4990  ;;  %v597_v57 = vmul.f32 %v4989_v51, %v5342_v33  ;;  %4383 = vmatprep.subr.bf16.mxu0 %v4837_v50  ;;  %v2179_v47 = vld [vmem:[#allocation2 + $0x12a] sm:$0xff]  ;;  %v5516_v51 = vpack.c.bf16 %v700_v46, %v699_v4  ;;  %v715_v46 = vld [vmem:[#allocation2 + $0x120] sm:$0xff] }
  0x63   : > { %v4993_v59 = vpop.eup %4992  ;;  %v598_v60 = vmul.f32 %v4991_v45, %v5349_v36  ;;  %v4841_v36 = vld [vmem:[%s5832_s3 + $0x1a8] sm:$0xff]   ;;  %v5518_v55 = vpack.c.bf16 %v2179_v47, %v2178_v37  ;;  %v701_v45 = vld [vmem:[#allocation2 + $0x78] sm:$0xff]  ;;  %v714_v4 = vld [vmem:[#allocation2 + $0x110] sm:$0xff] }
  0x64   : > { %684 = vst [vmem:[#allocation2 + $0x141] sm:$0xff] %v597_v57  ;;  %v800_v1 = vpack.c.bf16 %v597_v57, %v596_v40  ;;  %v599_v0 = vmul.f32 %v4993_v59, %v5363_v2  ;;  %v2170_v2 = vld [vmem:[#allocation2 + $0xc2] sm:$0xff]  ;;  %v5514_v40 = vpack.c.bf16 %v698_v42, %v697_v41  ;;  %v4851_v47 = vld [vmem:[%s5832_s3 + $0x1d0] sm:$0xff]  }
  0x65   : > { %v4995_v13 = vpop.eup %4994  ;;  %685 = vst [vmem:[#allocation2 + $0x151] sm:$0xff] %v598_v60  ;;  %4384 = vmatpush3.bf16.msra.mxu0 %v4837_v50  ;;  %v5479_v17 = vpack.c.bf16 %v2171_v54, %v2170_v2  ;;  %v702_v57 = vld [vmem:[#allocation2 + $0x80] sm:$0xff]  ;;  %v706_v2 = vld [vmem:[#allocation2 + $0xb0] sm:$0xff]  ;;  %v4849_v41 = vld [vmem:[%s5832_s3 + $0x1c8] sm:$0xff]  }
  0x66   : > { %v4997_v5 = vpop.eup %4996  ;;  %4130 = vmatmul.mubr.bf16.gmra.mrb[24].mxu1 %v800_v1  ;;  %686 = vst [vmem:[#allocation2 + $0x159] sm:$0xff] %v599_v0  ;;  %v801_v33 = vpack.c.bf16 %v599_v0, %v598_v60  ;;  %v600_v7 = vmul.f32 %v4995_v13, %v5370_v8  ;;  %4385 = vmatprep.subr.bf16.mxu0 %v4839_v28  ;;  %v4843_v8 = vld [vmem:[%s5832_s3 + $0x1b0] sm:$0xff]   ;;  %v4846_v59 = vld [vmem:[%s5832_s3 + $0xa0] sm:$0xff]   ;;  %v713_v42 = vld [vmem:[#allocation2 + $0x108] sm:$0xff] }
  0x67   : > { %v4999_v53 = vpop.eup %4998  ;;  %v601_v15 = vmul.f32 %v4997_v5, %v5378_v61  ;;  %v5532_v0 = vpack.c.bf16 %v702_v57, %v701_v45  ;;  %v707_v54 = vld [vmem:[#allocation2 + $0xc0] sm:$0xff]  ;;  %v5580_v37 = vpack.c.bf16 %v714_v4, %v713_v42  ;;  %v2774_v42 = vld [vmem:[#allocation2 + $0x69] sm:$0xff] }
  0x68   : > { %v5001_v56 = vpop.eup %5000  ;;  %4354 = vmatmul.mubr.bf16.gmra.mrb[8].mxu0 %v5454_v62  ;;  %4133 = vmatprep.mubr.bf16.mxu1 %v801_v33  ;;  %687 = vst [vmem:[#allocation2 + $0x169] sm:$0xff] %v600_v7  ;;  %v5469_v23 = vmul.f32 %v4999_v53, %v5390_v29  ;;  %v5481_v29 = vpack.c.bf16 %v2173_v10, %v2172_v9  ;;  %v4850_v9 = vld [vmem:[%s5832_s3 + $0xb0] sm:$0xff]  }
  0x69   : > { %688 = vst [vmem:[#allocation2 + $0x171] sm:$0xff] %v601_v15  ;;  %4357 = vmatprep.mubr.bf16.mxu0 %v5457_v3  ;;  %4386 = vmatpush3.bf16.msra.mxu0 %v4839_v28  ;;  %v5473_v61 = vmul.f32 %v5001_v56, %v5394_v30  ;;  %v802_v12 = vpack.c.bf16 %v601_v15, %v600_v7  ;;  %v4845_v30 = vld [vmem:[%s5832_s3 + $0x1b8] sm:$0xff]   ;;  %v705_v15 = vld [vmem:[#allocation2 + $0xa8] sm:$0xff] }
  0x6a   : > { %4387 = vmatprep.subr.bf16.mxu0 %v4841_v36  ;;  %689 = vst [vmem:[#allocation2 + $0x181] sm:$0xff] %v5469_v23  ;;  %v5534_v33 = vpack.c.bf16 %v704_v49, %v703_v58  ;;  %v708_v56 = vld [vmem:[#allocation2 + $0xc8] sm:$0xff]  ;;  %v4855_v49 = vld [vmem:[%s5832_s3 + $0x1e0] sm:$0xff]  }
  0x6b   : > { %690 = vst [vmem:[#allocation2 + $0x189] sm:$0xff] %v5473_v61  ;;  %v2181_v50 = vld [vmem:[#allocation2 + $0x142] sm:$0xff]  ;;  %v5552_v14 = vpack.c.bf16 %v708_v56, %v707_v54  ;;  %v2815_v63 = vpack.c.bf16 %v5473_v61, %v5469_v23  ;;  %v4861_v56 = vld [vmem:[%s5832_s3 + $0x1f8] sm:$0xff]   ;;  %v3077_v61 = vld [vmem:[#allocation2 + $0x4a] sm:$0xff] }
  0x6c   : > { %v719_v45 = vld [vmem:[#allocation2 + $0x150] sm:$0xff]  ;;  %v5010_v23 = vld [vmem:[%s5832_s3 + $0x138] sm:$0xff]  }
  0x6d   : > { %4388 = vmatpush3.bf16.msra.mxu0 %v4841_v36  ;;  %v2182_v60 = vld [vmem:[#allocation2 + $0x152] sm:$0xff]  ;;  %v2183_v1 = vld [vmem:[#allocation2 + $0x15a] sm:$0xff]  ;;  %v4848_v36 = vld [vmem:[%s5832_s3 + $0xa8] sm:$0xff]  }
  0x6e   : > { %4134 = vmatmul.mubr.bf16.gmra.mrb[28].mxu1 %v802_v12  ;;  %4389 = vmatprep.subr.bf16.mxu0 %v4843_v8  ;;  %v5536_v7 = vpack.c.bf16 %v2183_v1, %v2182_v60  ;;  %v5550_v12 = vpack.c.bf16 %v706_v2, %v705_v15  ;;  %v720_v57 = vld [vmem:[#allocation2 + $0x158] sm:$0xff]  ;;  %v4857_v60 = vld [vmem:[%s5832_s3 + $0x1e8] sm:$0xff]   ;;  %v4859_v2 = vld [vmem:[%s5832_s3 + $0x1f0] sm:$0xff]  }
  0x6f   : > { %4153 = vmatprep.mubr.bf16.mxu1 %v5476_v16  ;;  %v721_v1 = vld [vmem:[#allocation2 + $0x168] sm:$0xff] }
  0x70   : > { %4358 = vmatmul.mubr.bf16.gmra.mrb[12].mxu0 %v5479_v17  ;;  %v2184_v13 = vld [vmem:[#allocation2 + $0x16a] sm:$0xff]  ;;  %v2185_v5 = vld [vmem:[#allocation2 + $0x172] sm:$0xff] }
  0x71   : > { %4361 = vmatprep.mubr.bf16.mxu0 %v5481_v29  ;;  %4390 = vmatpush3.bf16.msra.mxu0 %v4843_v8  ;;  %v5541_v53 = vpack.c.bf16 %v2185_v5, %v2184_v13  ;;  %v722_v13 = vld [vmem:[#allocation2 + $0x170] sm:$0xff]  ;;  %v1238_v5 = vld [vmem:[#allocation2 + $0x2] sm:$0xff] }
  0x72   : > { %4391 = vmatprep.subr.bf16.mxu0 %v4845_v30  ;;  %v2186_v10 = vld [vmem:[#allocation2 + $0x182] sm:$0xff]  ;;  %v2187_v8 = vld [vmem:[#allocation2 + $0x18a] sm:$0xff]  ;;  %v5608_v15 = vpack.c.bf16 %v722_v13, %v721_v1 }
  0x73   : > { %v4870_v1 = vld [vmem:[%s5832_s3 + $0x220] sm:$0xff]  }
  0x75   : > { %4392 = vmatpush3.bf16.msra.mxu0 %v4845_v30  ;;  %v2203_v30 = vpack.c.bf16 %v2187_v8, %v2186_v10  ;;  %v4856_v10 = vld [vmem:[%s5832_s3 + $0xc8] sm:$0xff]   ;;  %v4858_v8 = vld [vmem:[%s5832_s3 + $0xd0] sm:$0xff]  }
  0x76   : > { %4154 = vmatmul.mubr.bf16.vlgmr.msra.gmra.mrb[0].mxu1 %v5489_v22  ;;  %4425 = vmatprep.subr.bf16.mxu0 %v5494_v27 }
  0x77   : > { %4186 = vmatpush3.bf16.msra.mxu1 %v5415_v44  ;;  %4157 = vmatprep.mubr.bf16.mxu1 %v5496_v24  ;;  %v2180_v44 = vld [vmem:[#allocation2 + $0x13a] sm:$0xff] }
  0x78   : > { %4362 = vmatmul.mubr.bf16.gmra.mrb[16].mxu0 %v5498_v32  ;;  %4187 = vmatprep.subr.bf16.mxu1 %v4840_v34  ;;  %v5523_v28 = vpack.c.bf16 %v2181_v50, %v2180_v44  ;;  %v4853_v50 = vld [vmem:[%s5832_s3 + $0x1d8] sm:$0xff]  }
  0x79   : > { %4365 = vmatprep.mubr.bf16.mxu0 %v5503_v38 }
  0x7b   : > { %4188 = vmatpush3.bf16.msra.mxu1 %v4840_v34  ;;  %v5569_v34 = vpack.c.bf16 %v712_v18, %v711_v43  ;;  %v2770_v43 = vld [vmem:[#allocation2 + $0x39] sm:$0xff] }
  0x7c   : > { %4189 = vmatprep.subr.bf16.mxu1 %v4842_v6  ;;  %v2801_v18 = vpack.c.bf16 %v2770_v43, %v2769_v21  ;;  %v2794_v21 = vld [vmem:[#allocation2 + $0x159] sm:$0xff] }
  0x7e   : > { %4158 = vmatmul.mubr.bf16.gmra.mrb[4].mxu1 %v5514_v40 }
  0x7f   : > { %4161 = vmatprep.mubr.bf16.mxu1 %v5516_v51  ;;  %4190 = vmatpush3.bf16.msra.mxu1 %v4842_v6  ;;  %v716_v6 = vld [vmem:[#allocation2 + $0x128] sm:$0xff] }
  0x80   : > { %4366 = vmatmul.mubr.bf16.gmra.mrb[20].mxu0 %v5518_v55  ;;  %4191 = vmatprep.subr.bf16.mxu1 %v4844_v52  ;;  %v5585_v44 = vpack.c.bf16 %v716_v6, %v715_v46  ;;  %v5664_v46 = vld [vmem:[%s5832_s3 + $0x100] sm:$0xff]  }
  0x81   : > { %4369 = vmatprep.mubr.bf16.mxu0 %v5523_v28  ;;  %v2776_v6 = vld [vmem:[#allocation2 + $0x81] sm:$0xff] }
  0x83   : > { %4192 = vmatpush3.bf16.msra.mxu1 %v4844_v52  ;;  %v718_v52 = vld [vmem:[#allocation2 + $0x140] sm:$0xff] }
  0x84   : > { %4193 = vmatprep.subr.bf16.mxu1 %v4846_v59 }
  0x86   : > { %4162 = vmatmul.mubr.bf16.gmra.mrb[8].mxu1 %v5532_v0 }
  0x87   : > { %4165 = vmatprep.mubr.bf16.mxu1 %v5534_v33  ;;  %4194 = vmatpush3.bf16.msra.mxu1 %v4846_v59  ;;  %v5599_v59 = vpack.c.bf16 %v720_v57, %v719_v45  ;;  %v2779_v45 = vld [vmem:[#allocation2 + $0xa9] sm:$0xff]  ;;  %v2780_v57 = vld [vmem:[#allocation2 + $0xb1] sm:$0xff] }
  0x88   : > { %4370 = vmatmul.mubr.bf16.gmra.mrb[24].mxu0 %v5536_v7  ;;  %4195 = vmatprep.subr.bf16.mxu1 %v4848_v36 }
  0x89   : > { %4373 = vmatprep.mubr.bf16.mxu0 %v5541_v53 }
  0x8b   : > { %4196 = vmatpush3.bf16.msra.mxu1 %v4848_v36  ;;  %v1239_v36 = vld [vmem:[#allocation2 + $0xa] sm:$0xff] }
  0x8c   : > { %4197 = vmatprep.subr.bf16.mxu1 %v4850_v9  ;;  %v1270_v54 = vpack.c.bf16 %v1239_v36, %v1238_v5  ;;  %v2783_v5 = vld [vmem:[#allocation2 + $0xd9] sm:$0xff]  ;;  %v2784_v36 = vld [vmem:[#allocation2 + $0xe1] sm:$0xff] }
  0x8e   : > { %4166 = vmatmul.mubr.bf16.gmra.mrb[12].mxu1 %v5550_v12 }
  0x8f   : > { %4169 = vmatprep.mubr.bf16.mxu1 %v5552_v14  ;;  %4198 = vmatpush3.bf16.msra.mxu1 %v4850_v9  ;;  %v4863_v9 = vld [vmem:[%s5832_s3 + $0x200] sm:$0xff]  }
  0x90   : > { %4374 = vmatmul.mubr.bf16.gmra.mrb[28].mxu0 %v2203_v30  ;;  %4199 = vmatprep.subr.bf16.mxu1 %v4852_v35  ;;  %v2491_v30 = vld [vmem:[#allocation2 + $0x180] sm:$0xff] }
  0x91   : > { %4393 = vmatprep.mubr.bf16.mxu0 %v5496_v24 }
  0x93   : > { %4200 = vmatpush3.bf16.msra.mxu1 %v4852_v35  ;;  %v2492_v35 = vld [vmem:[#allocation2 + $0x188] sm:$0xff] }
  0x94   : > { %4233 = vmatprep.subr.bf16.mxu1 %v5564_v25  ;;  %v5646_v20 = vpack.c.bf16 %v2492_v35, %v2491_v30  ;;  %v2791_v35 = vld [vmem:[#allocation2 + $0x139] sm:$0xff] }
  0x96   : > { %4170 = vmatmul.mubr.bf16.gmra.mrb[16].mxu1 %v5567_v26 }
  0x97   : > { %4173 = vmatprep.mubr.bf16.mxu1 %v5569_v34 }
  0x98   : > { %4394 = vmatmul.mubr.bf16.vlgmr.msra.gmra.mrb[0].mxu0 %v5514_v40 }
  0x99   : > { %4426 = vmatpush3.bf16.msra.mxu0 %v5494_v27  ;;  %4397 = vmatprep.mubr.bf16.mxu0 %v5516_v51  ;;  %v717_v27 = vld [vmem:[#allocation2 + $0x138] sm:$0xff] }
  0x9a   : > { %4427 = vmatprep.subr.bf16.mxu0 %v4849_v41  ;;  %v5594_v58 = vpack.c.bf16 %v718_v52, %v717_v27  ;;  %v4867_v27 = vld [vmem:[%s5832_s3 + $0x210] sm:$0xff]  }
  0x9d   : > { %4428 = vmatpush3.bf16.msra.mxu0 %v4849_v41  ;;  %v2773_v41 = vld [vmem:[#allocation2 + $0x61] sm:$0xff] }
  0x9e   : > { %4174 = vmatmul.mubr.bf16.gmra.mrb[20].mxu1 %v5580_v37  ;;  %4429 = vmatprep.subr.bf16.mxu0 %v4851_v47 }
  0x9f   : > { %4177 = vmatprep.mubr.bf16.mxu1 %v5585_v44 }
  0xa0   : > { %4398 = vmatmul.mubr.bf16.gmra.mrb[4].mxu0 %v5532_v0 }
  0xa1   : > { %4401 = vmatprep.mubr.bf16.mxu0 %v5534_v33  ;;  %4430 = vmatpush3.bf16.msra.mxu0 %v4851_v47  ;;  %v2777_v47 = vld [vmem:[#allocation2 + $0x91] sm:$0xff] }
  0xa2   : > { %4431 = vmatprep.subr.bf16.mxu0 %v4853_v50 }
  0xa5   : > { %4432 = vmatpush3.bf16.msra.mxu0 %v4853_v50  ;;  %v2778_v50 = vld [vmem:[#allocation2 + $0x99] sm:$0xff] }
  0xa6   : > { %4178 = vmatmul.mubr.bf16.gmra.mrb[24].mxu1 %v5594_v58  ;;  %4433 = vmatprep.subr.bf16.mxu0 %v4855_v49 }
  0xa7   : > { %4181 = vmatprep.mubr.bf16.mxu1 %v5599_v59 }
  0xa8   : > { %4402 = vmatmul.mubr.bf16.gmra.mrb[8].mxu0 %v5550_v12 }
  0xa9   : > { %4405 = vmatprep.mubr.bf16.mxu0 %v5552_v14  ;;  %4434 = vmatpush3.bf16.msra.mxu0 %v4855_v49  ;;  %v2781_v49 = vld [vmem:[#allocation2 + $0xc1] sm:$0xff] }
  0xaa   : > { %4435 = vmatprep.subr.bf16.mxu0 %v4857_v60 }
  0xad   : > { %4436 = vmatpush3.bf16.msra.mxu0 %v4857_v60  ;;  %v2782_v60 = vld [vmem:[#allocation2 + $0xc9] sm:$0xff] }
  0xae   : > { %4182 = vmatmul.mubr.bf16.gmra.mrb[28].mxu1 %v5608_v15  ;;  %4437 = vmatprep.subr.bf16.mxu0 %v4859_v2  ;;  %v2807_v13 = vpack.c.bf16 %v2782_v60, %v2781_v49  ;;  %v3089_v60 = vld [vmem:[#allocation2 + $0xda] sm:$0xff] }
  0xaf   : > { %4201 = vmatprep.mubr.bf16.mxu1 %v1270_v54  ;;  %v2786_v54 = vld [vmem:[#allocation2 + $0xf9] sm:$0xff] }
  0xb0   : > { %4406 = vmatmul.mubr.bf16.gmra.mrb[12].mxu0 %v5567_v26 }
  0xb1   : > { %4409 = vmatprep.mubr.bf16.mxu0 %v5569_v34  ;;  %4438 = vmatpush3.bf16.msra.mxu0 %v4859_v2  ;;  %v2785_v2 = vld [vmem:[#allocation2 + $0xf1] sm:$0xff] }
  0xb2   : > { %4439 = vmatprep.subr.bf16.mxu0 %v4861_v56 }
  0xb5   : > { %4440 = vmatpush3.bf16.msra.mxu0 %v4861_v56  ;;  %v4872_v56 = vld [vmem:[%s5832_s3 + $0x230] sm:$0xff]  }
  0xb6   : > { %4202 = vmatmul.mubr.bf16.vlgmr.msra.gmra.mrb[0].mxu1 %v5404_v39  ;;  %4473 = vmatprep.subr.bf16.mxu0 %v4863_v9  ;;  %v4860_v39 = vld [vmem:[%s5832_s3 + $0xd8] sm:$0xff]  }
  0xb7   : > { %4234 = vmatpush3.bf16.msra.mxu1 %v5564_v25  ;;  %4205 = vmatprep.mubr.bf16.mxu1 %v5425_v11  ;;  %v4862_v11 = vld [vmem:[%s5832_s3 + $0xe0] sm:$0xff]   ;;  %v2772_v25 = vld [vmem:[#allocation2 + $0x51] sm:$0xff] }
  0xb8   : > { %4410 = vmatmul.mubr.bf16.gmra.mrb[16].mxu0 %v5580_v37  ;;  %4235 = vmatprep.subr.bf16.mxu1 %v4856_v10 }
  0xb9   : > { %4413 = vmatprep.mubr.bf16.mxu0 %v5585_v44 }
  0xbb   : > { %4236 = vmatpush3.bf16.msra.mxu1 %v4856_v10  ;;  %v2787_v10 = vld [vmem:[#allocation2 + $0x109] sm:$0xff] }
  0xbc   : > { %4237 = vmatprep.subr.bf16.mxu1 %v4858_v8 }
  0xbe   : > { %4206 = vmatmul.mubr.bf16.gmra.mrb[4].mxu1 %v5428_v31  ;;  %v4864_v31 = vld [vmem:[%s5832_s3 + $0xe8] sm:$0xff]  }
  0xbf   : > { %4209 = vmatprep.mubr.bf16.mxu1 %v5439_v19  ;;  %4238 = vmatpush3.bf16.msra.mxu1 %v4858_v8  ;;  %v4866_v19 = vld [vmem:[%s5832_s3 + $0xf0] sm:$0xff]  }
  0xc0   : > { %4414 = vmatmul.mubr.bf16.gmra.mrb[20].mxu0 %v5594_v58  ;;  %4239 = vmatprep.subr.bf16.mxu1 %v4860_v39  ;;  %v2788_v8 = vld [vmem:[#allocation2 + $0x111] sm:$0xff] }
  0xc1   : > { %4417 = vmatprep.mubr.bf16.mxu0 %v5599_v59  ;;  %v5702_v30 = vpack.c.bf16 %v2788_v8, %v2787_v10  ;;  %v3101_v8 = vld [vmem:[#allocation2 + $0x16a] sm:$0xff] }
  0xc3   : > { %4240 = vmatpush3.bf16.msra.mxu1 %v4860_v39  ;;  %v2789_v39 = vld [vmem:[#allocation2 + $0x121] sm:$0xff] }
  0xc4   : > { %4241 = vmatprep.subr.bf16.mxu1 %v4862_v11 }
  0xc6   : > { %4210 = vmatmul.mubr.bf16.gmra.mrb[8].mxu1 %v5442_v48  ;;  %v4868_v48 = vld [vmem:[%s5832_s3 + $0xf8] sm:$0xff]  }
  0xc7   : > { %4213 = vmatprep.mubr.bf16.mxu1 %v5454_v62  ;;  %4242 = vmatpush3.bf16.msra.mxu1 %v4862_v11  ;;  %v2771_v62 = vld [vmem:[#allocation2 + $0x49] sm:$0xff] }
  0xc8   : > { %4418 = vmatmul.mubr.bf16.gmra.mrb[24].mxu0 %v5608_v15  ;;  %4243 = vmatprep.subr.bf16.mxu1 %v4864_v31  ;;  %v2802_v4 = vpack.c.bf16 %v2772_v25, %v2771_v62  ;;  %v2790_v11 = vld [vmem:[#allocation2 + $0x129] sm:$0xff]  ;;  %v2796_v62 = vld [vmem:[#allocation2 + $0x171] sm:$0xff] }
  0xc9   : > { %4421 = vmatprep.mubr.bf16.mxu0 %v5646_v20 }
  0xcb   : > { %4244 = vmatpush3.bf16.msra.mxu1 %v4864_v31  ;;  %v2792_v31 = vld [vmem:[#allocation2 + $0x141] sm:$0xff] }
  0xcc   : > { %4245 = vmatprep.subr.bf16.mxu1 %v4866_v19  ;;  %v5714_v43 = vpack.c.bf16 %v2792_v31, %v2791_v35  ;;  %v1880_v35 = vld [vmem:[#allocation2 + $0x181] sm:$0xff]  ;;  %v1881_v31 = vld [vmem:[#allocation2 + $0x189] sm:$0xff] }
  0xce   : > { %4214 = vmatmul.mubr.bf16.gmra.mrb[12].mxu1 %v5457_v3  ;;  %v2803_v3 = vpack.c.bf16 %v2774_v42, %v2773_v41  ;;  %v2799_v41 = vld [vmem:[#allocation2 + $0x199] sm:$0xff]  ;;  %v2800_v42 = vld [vmem:[#allocation2 + $0x1a1] sm:$0xff] }
  0xcf   : > { %4217 = vmatprep.mubr.bf16.mxu1 %v5479_v17  ;;  %4246 = vmatpush3.bf16.msra.mxu1 %v4866_v19  ;;  %v2775_v17 = vld [vmem:[#allocation2 + $0x79] sm:$0xff]  ;;  %v2793_v19 = vld [vmem:[#allocation2 + $0x151] sm:$0xff] }
  0xd0   : > { %4422 = vmatmul.mubr.bf16.gmra.mrb[28].mxu0 %v5476_v16  ;;  %4247 = vmatprep.subr.bf16.mxu1 %v4868_v48  ;;  %v4865_v16 = vld [vmem:[%s5832_s3 + $0x208] sm:$0xff]   ;;  %v2804_v52 = vpack.c.bf16 %v2776_v6, %v2775_v17 }
  0xd1   : > { %4441 = vmatprep.mubr.bf16.mxu0 %v2801_v18  ;;  %v2795_v18 = vld [vmem:[#allocation2 + $0x169] sm:$0xff] }
  0xd2   : > { %v5728_v25 = vpack.c.bf16 %v2796_v62, %v2795_v18  ;;  %v3080_v17 = vld [vmem:[#allocation2 + $0x6a] sm:$0xff] }
  0xd3   : > { %4248 = vmatpush3.bf16.msra.mxu1 %v4868_v48  ;;  %v5006_v48 = vld [vmem:[%s5832_s3 + $0x118] sm:$0xff]  }
  0xd4   : > { %4521 = vmatprep.subr.bf16.mxu1 %v5664_v46 }
  0xd6   : > { %4218 = vmatmul.mubr.bf16.gmra.mrb[16].mxu1 %v5481_v29  ;;  %v2805_v29 = vpack.c.bf16 %v2778_v50, %v2777_v47  ;;  %v3083_v50 = vld [vmem:[#allocation2 + $0x92] sm:$0xff] }
  0xd7   : > { %4221 = vmatprep.mubr.bf16.mxu1 %v5498_v32  ;;  %v4869_v32 = vld [vmem:[%s5832_s3 + $0x218] sm:$0xff]  }
  0xd8   : > { %4442 = vmatmul.mubr.bf16.vlgmr.msra.gmra.mrb[0].mxu0 %v2802_v4  ;;  %v3075_v4 = vld [vmem:[#allocation2 + $0x32] sm:$0xff] }
  0xd9   : > { %4474 = vmatpush3.bf16.msra.mxu0 %v4863_v9  ;;  %4445 = vmatprep.mubr.bf16.mxu0 %v2803_v3  ;;  %v5693_v9 = vpack.c.bf16 %v2786_v54, %v2785_v2  ;;  %v3097_v54 = vld [vmem:[#allocation2 + $0x13a] sm:$0xff] }
  0xda   : > { %4475 = vmatprep.subr.bf16.mxu0 %v4865_v16 }
  0xdd   : > { %4476 = vmatpush3.bf16.msra.mxu0 %v4865_v16  ;;  %v3079_v16 = vld [vmem:[#allocation2 + $0x62] sm:$0xff] }
  0xde   : > { %4222 = vmatmul.mubr.bf16.gmra.mrb[20].mxu1 %v5503_v38  ;;  %4477 = vmatprep.subr.bf16.mxu0 %v4867_v27  ;;  %v2806_v38 = vpack.c.bf16 %v2780_v57, %v2779_v45  ;;  %v3109_v47 = vpack.c.bf16 %v3080_v17, %v3079_v16  ;;  %v3086_v45 = vld [vmem:[#allocation2 + $0xb2] sm:$0xff]  ;;  %v3087_v57 = vld [vmem:[#allocation2 + $0xc2] sm:$0xff] }
  0xdf   : > { %4225 = vmatprep.mubr.bf16.mxu1 %v5518_v55  ;;  %v4871_v55 = vld [vmem:[%s5832_s3 + $0x228] sm:$0xff]  }
  0xe0   : > { %4446 = vmatmul.mubr.bf16.gmra.mrb[4].mxu0 %v2804_v52 }
  0xe1   : > { %4449 = vmatprep.mubr.bf16.mxu0 %v2805_v29  ;;  %4478 = vmatpush3.bf16.msra.mxu0 %v4867_v27  ;;  %v3084_v27 = vld [vmem:[#allocation2 + $0x9a] sm:$0xff] }
  0xe2   : > { %4479 = vmatprep.subr.bf16.mxu0 %v4869_v32  ;;  %v3111_v29 = vpack.c.bf16 %v3084_v27, %v3083_v50 }
  0xe5   : > { %4480 = vmatpush3.bf16.msra.mxu0 %v4869_v32  ;;  %v3085_v32 = vld [vmem:[#allocation2 + $0xaa] sm:$0xff] }
  0xe6   : > { %4226 = vmatmul.mubr.bf16.gmra.mrb[24].mxu1 %v5523_v28  ;;  %4481 = vmatprep.subr.bf16.mxu0 %v4870_v1  ;;  %v5691_v28 = vpack.c.bf16 %v2784_v36, %v2783_v5  ;;  %v3112_v49 = vpack.c.bf16 %v3086_v45, %v3085_v32  ;;  %v3094_v5 = vld [vmem:[#allocation2 + $0x112] sm:$0xff]  ;;  %v3095_v36 = vld [vmem:[#allocation2 + $0x122] sm:$0xff] }
  0xe7   : > { %4229 = vmatprep.mubr.bf16.mxu1 %v5536_v7  ;;  %v4873_v7 = vld [vmem:[%s5832_s3 + $0x238] sm:$0xff]  }
  0xe8   : > { %4450 = vmatmul.mubr.bf16.gmra.mrb[8].mxu0 %v2806_v38  ;;  %v3091_v38 = vld [vmem:[#allocation2 + $0xf2] sm:$0xff] }
  0xe9   : > { %4453 = vmatprep.mubr.bf16.mxu0 %v2807_v13  ;;  %4482 = vmatpush3.bf16.msra.mxu0 %v4870_v1  ;;  %v3090_v1 = vld [vmem:[#allocation2 + $0xe2] sm:$0xff] }
  0xea   : > { %4483 = vmatprep.subr.bf16.mxu0 %v4871_v55  ;;  %v3114_v13 = vpack.c.bf16 %v3090_v1, %v3089_v60 }
  0xed   : > { %4484 = vmatpush3.bf16.msra.mxu0 %v4871_v55  ;;  %v3093_v55 = vld [vmem:[#allocation2 + $0x10a] sm:$0xff] }
  0xee   : > { %4230 = vmatmul.mubr.bf16.gmra.mrb[28].mxu1 %v5541_v53  ;;  %4485 = vmatprep.subr.bf16.mxu0 %v4872_v56  ;;  %v5704_v53 = vpack.c.bf16 %v2790_v11, %v2789_v39  ;;  %v3116_v2 = vpack.c.bf16 %v3094_v5, %v3093_v55  ;;  %v3102_v39 = vld [vmem:[#allocation2 + $0x172] sm:$0xff]  ;;  %v3103_v11 = vld [vmem:[#allocation2 + $0x182] sm:$0xff] }
  0xef   : > { %4249 = vmatprep.mubr.bf16.mxu1 %v5489_v22  ;;  %v5004_v22 = vld [vmem:[%s5832_s3 + $0x108] sm:$0xff]  }
  0xf0   : > { %4454 = vmatmul.mubr.bf16.gmra.mrb[12].mxu0 %v5691_v28 }
  0xf1   : > { %4457 = vmatprep.mubr.bf16.mxu0 %v5693_v9  ;;  %4486 = vmatpush3.bf16.msra.mxu0 %v4872_v56  ;;  %v3098_v56 = vld [vmem:[#allocation2 + $0x142] sm:$0xff] }
  0xf2   : > { %4487 = vmatprep.subr.bf16.mxu0 %v4873_v7  ;;  %v3118_v10 = vpack.c.bf16 %v3098_v56, %v3097_v54 }
  0xf5   : > { %4488 = vmatpush3.bf16.msra.mxu0 %v4873_v7  ;;  %v3099_v7 = vld [vmem:[#allocation2 + $0x152] sm:$0xff] }
  0xf6   : > { %4250 = vmatmul.mubr.bf16.vlgmr.msra.gmra.mrb[0].mxu1 %v5496_v24  ;;  %v5005_v24 = vld [vmem:[%s5832_s3 + $0x110] sm:$0xff]  }
  0xf7   : > { %4529 = vmatpush3.bf16.msra.mxu1 %v5664_v46  ;;  %4253 = vmatprep.mubr.bf16.mxu1 %v5514_v40  ;;  %v5719_v40 = vpack.c.bf16 %v2794_v21, %v2793_v19  ;;  %v3076_v46 = vld [vmem:[#allocation2 + $0x3a] sm:$0xff]  ;;  %v1897_v21 = vpack.c.bf16 %v1881_v31, %v1880_v35 }
  0xf8   : > { %4458 = vmatmul.mubr.bf16.gmra.mrb[16].mxu0 %v5702_v30  ;;  %4522 = vmatprep.subr.bf16.mxu1 %v5004_v22  ;;  %v3107_v3 = vpack.c.bf16 %v3076_v46, %v3075_v4  ;;  %v3105_v19 = vld [vmem:[#allocation2 + $0x19a] sm:$0xff] }
  0xf9   : > { %4461 = vmatprep.mubr.bf16.mxu0 %v5704_v53 }
  0xfb   : > { %4530 = vmatpush3.bf16.msra.mxu1 %v5004_v22  ;;  %v3120_v22 = vpack.c.bf16 %v3102_v39, %v3101_v8 }
  0xfc   : > { %4523 = vmatprep.subr.bf16.mxu1 %v5005_v24 }
  0xfe   : > { %4254 = vmatmul.mubr.bf16.gmra.mrb[4].mxu1 %v5516_v51  ;;  %v5007_v51 = vld [vmem:[%s5832_s3 + $0x120] sm:$0xff]  }
  0xff   : > { %4257 = vmatprep.mubr.bf16.mxu1 %v5532_v0  ;;  %4531 = vmatpush3.bf16.msra.mxu1 %v5005_v24  ;;  %v5008_v0 = vld [vmem:[%s5832_s3 + $0x128] sm:$0xff]  }
 0x100   : > { %4462 = vmatmul.mubr.bf16.gmra.mrb[20].mxu0 %v5714_v43  ;;  %4524 = vmatprep.subr.bf16.mxu1 %v5006_v48 }
 0x101   : > { %4465 = vmatprep.mubr.bf16.mxu0 %v5719_v40 }
 0x103   : > { %4532 = vmatpush3.bf16.msra.mxu1 %v5006_v48 }
 0x104   : > { %4525 = vmatprep.subr.bf16.mxu1 %v5007_v51 }
 0x106   : > { %4258 = vmatmul.mubr.bf16.gmra.mrb[8].mxu1 %v5534_v33  ;;  %v2816_v33 = vpack.c.bf16 %v2800_v42, %v2799_v41 }
 0x107   : > { %4261 = vmatprep.mubr.bf16.mxu1 %v5550_v12  ;;  %4533 = vmatpush3.bf16.msra.mxu1 %v5007_v51  ;;  %v5009_v12 = vld [vmem:[%s5832_s3 + $0x130] sm:$0xff]  }
 0x108   : > { %4466 = vmatmul.mubr.bf16.gmra.mrb[24].mxu0 %v5728_v25  ;;  %4526 = vmatprep.subr.bf16.mxu1 %v5008_v0 }
 0x109   : > { %4469 = vmatprep.mubr.bf16.mxu0 %v2815_v63  ;;  %v3078_v63 = vld [vmem:[#allocation2 + $0x52] sm:$0xff] }
 0x10a   : > { %v3108_v6 = vpack.c.bf16 %v3078_v63, %v3077_v61 }
 0x10b   : > { %4534 = vmatpush3.bf16.msra.mxu1 %v5008_v0 }
 0x10c   : > { %4527 = vmatprep.subr.bf16.mxu1 %v5009_v12 }
 0x10e   : > { %4262 = vmatmul.mubr.bf16.gmra.mrb[12].mxu1 %v5552_v14  ;;  %v3081_v14 = vld [vmem:[#allocation2 + $0x7a] sm:$0xff] }
 0x10f   : > { %4265 = vmatprep.mubr.bf16.mxu1 %v5567_v26  ;;  %4535 = vmatpush3.bf16.msra.mxu1 %v5009_v12  ;;  %v3082_v26 = vld [vmem:[#allocation2 + $0x82] sm:$0xff] }
 0x110   : > { %4470 = vmatmul.mubr.bf16.gmra.mrb[28].mxu0 %v2816_v33  ;;  %4528 = vmatprep.subr.bf16.mxu1 %v5010_v23  ;;  %v3110_v52 = vpack.c.bf16 %v3082_v26, %v3081_v14 }
 0x111   : > { %4489 = vmatprep.mubr.bf16.mxu0 %v3107_v3 }
 0x113   : > { %4536 = vmatpush3.bf16.msra.mxu1 %v5010_v23 }
 0x116   : > { %4266 = vmatmul.mubr.bf16.gmra.mrb[16].mxu1 %v5569_v34  ;;  %v3088_v34 = vld [vmem:[#allocation2 + $0xca] sm:$0xff] }
 0x117   : > { %4269 = vmatprep.mubr.bf16.mxu1 %v5580_v37  ;;  %v3113_v37 = vpack.c.bf16 %v3088_v34, %v3087_v57 }
 0x118   : > { %4490 = vmatmul.mubr.bf16.vlgmr.msra.gmra.mrb[0].mxu0 %v3108_v6 }
 0x119   : > { %4493 = vmatprep.mubr.bf16.mxu0 %v3109_v47 }
 0x11e   : > { %4270 = vmatmul.mubr.bf16.gmra.mrb[20].mxu1 %v5585_v44  ;;  %v3092_v44 = vld [vmem:[#allocation2 + $0xfa] sm:$0xff] }
 0x11f   : > { %4273 = vmatprep.mubr.bf16.mxu1 %v5594_v58  ;;  %v3115_v58 = vpack.c.bf16 %v3092_v44, %v3091_v38 }
 0x120   : > { %4494 = vmatmul.mubr.bf16.gmra.mrb[4].mxu0 %v3110_v52 }
 0x121   : > { %4497 = vmatprep.mubr.bf16.mxu0 %v3111_v29 }
 0x126   : > { %4274 = vmatmul.mubr.bf16.gmra.mrb[24].mxu1 %v5599_v59  ;;  %v3096_v59 = vld [vmem:[#allocation2 + $0x12a] sm:$0xff] }
 0x127   : > { %4277 = vmatprep.mubr.bf16.mxu1 %v5608_v15  ;;  %v3117_v15 = vpack.c.bf16 %v3096_v59, %v3095_v36 }
 0x128   : > { %4498 = vmatmul.mubr.bf16.gmra.mrb[8].mxu0 %v3112_v49 }
 0x129   : > { %4501 = vmatprep.mubr.bf16.mxu0 %v3113_v37 }
 0x12e   : > { %4278 = vmatmul.mubr.bf16.gmra.mrb[28].mxu1 %v5646_v20  ;;  %v3100_v20 = vld [vmem:[#allocation2 + $0x15a] sm:$0xff] }
 0x12f   : > { %4313 = vmatprep.mubr.bf16.mxu1 %v5691_v28  ;;  %v3119_v28 = vpack.c.bf16 %v3100_v20, %v3099_v7 }
 0x130   : > { %4502 = vmatmul.mubr.bf16.gmra.mrb[12].mxu0 %v3114_v13 }
 0x131   : > { %4505 = vmatprep.mubr.bf16.mxu0 %v3115_v58 }
 0x136   : > { %4314 = vmatmul.mubr.bf16.vlgmr.msra.gmra.mrb[16].mxu1 %v5693_v9  ;;  %v3104_v9 = vld [vmem:[#allocation2 + $0x18a] sm:$0xff] }
 0x137   : > { %4317 = vmatprep.mubr.bf16.mxu1 %v5702_v30  ;;  %v3121_v30 = vpack.c.bf16 %v3104_v9, %v3103_v11 }
 0x138   : > { %4506 = vmatmul.mubr.bf16.gmra.mrb[16].mxu0 %v3116_v2 }
 0x139   : > { %4509 = vmatprep.mubr.bf16.mxu0 %v3117_v15 }
 0x13e   : > { %4318 = vmatmul.mubr.bf16.gmra.mrb[20].mxu1 %v5704_v53  ;;  %v3106_v53 = vld [vmem:[#allocation2 + $0x1a2] sm:$0xff] }
 0x13f   : > { %4321 = vmatprep.mubr.bf16.mxu1 %v5714_v43  ;;  %v3122_v43 = vpack.c.bf16 %v3106_v53, %v3105_v19 }
 0x140   : > { %4510 = vmatmul.mubr.bf16.gmra.mrb[20].mxu0 %v3118_v10 }
 0x141   : > { %4513 = vmatprep.mubr.bf16.mxu0 %v3119_v28 }
 0x146   : > { %4322 = vmatmul.mubr.bf16.gmra.mrb[24].mxu1 %v5719_v40 }
 0x147   : > { %4325 = vmatprep.mubr.bf16.mxu1 %v5728_v25 }
 0x148   : > { %4514 = vmatmul.mubr.bf16.gmra.mrb[24].mxu0 %v3120_v22 }
 0x149   : > { %4517 = vmatprep.mubr.bf16.mxu0 %v3121_v30 }
 0x14e   : > { %4326 = vmatmul.mubr.bf16.gmra.mrb[28].mxu1 %v1897_v21 }
 0x150   : > { %4518 = vmatmul.mubr.bf16.gmra.mrb[28].mxu0 %v3122_v43 }
 0x1c9   : > { %v4251_v24 = vpop.f32.mrb[0].mxu1 }
 0x1ca   : > { %v1691_v48 = vpop.f32.mrb[1].mxu1 }
 0x1cb   : > { %v4252_v18 = vpop.f32.mrb[2].mxu1 }
 0x1cc   : > { %v1694_v62 = vpop.f32.mrb[3].mxu1 }
 0x1d1   : > { %v4255_v51 = vpop.f32.mrb[4].mxu1 }
 0x1d2   : > { %v1707_v0 = vpop.f32.mrb[5].mxu1 }
 0x1d3   : > { %v4256_v40 = vpop.f32.mrb[6].mxu1 }
 0x1d4   : > { %v1710_v41 = vpop.f32.mrb[7].mxu1 }
 0x1d9   : > { %v4259_v25 = vpop.f32.mrb[8].mxu1 }
 0x1da   : > { %v1723_v42 = vpop.f32.mrb[9].mxu1 }
 0x1db   : > { %v4260_v4 = vpop.f32.mrb[10].mxu1 }
 0x1dc   : > { %v5764_v46 = vpop.f32.mrb[11].mxu1 }
 0x1e1   : > { %v5766_v33 = vpop.f32.mrb[12].mxu1 }
 0x1e2   : > { %v5768_v12 = vpop.f32.mrb[13].mxu1 }
 0x1e3   : > { %v5770_v3 = vpop.f32.mrb[14].mxu1 }
 0x1e4   : > { %v5772_v23 = vpop.f32.mrb[15].mxu1 }
 0x1eb   : > { %v4491_v61 = vpop.f32.mrb[0].mxu0 }
 0x1ec   : > { %v4537_v63 = vadd.f32 %v4491_v61, %v4251_v24  ;;  %v3222_v16 = vpop.f32.mrb[1].mxu0 }
 0x1ed   : > { %v4538_v17 = vadd.f32 %v3222_v16, %v1691_v48  ;;  %v4492_v6 = vpop.f32.mrb[2].mxu0 }
 0x1ee   : > { %3383 = vst [vmem:[%s5779_s25 + $0x10] sm:$0xff] %v4537_v63  ;;  %v4539_v47 = vadd.f32 %v4492_v6, %v4252_v18  ;;  %v3225_v14 = vpop.f32.mrb[3].mxu0  ;;  %v3453_v29 = vmul.f32 %v4537_v63, %v4537_v63 }
 0x1ef   : > { %3381 = vst [vmem:[%s5779_s25] sm:$0xff] %v4538_v17  ;;  %v4540_v26 = vadd.f32 %v3225_v14, %v1694_v62  ;;  %v3451_v50 = vmul.f32 %v4538_v17, %v4538_v17 }
 0x1f0   : > { %3384 = vst [vmem:[%s5779_s25 + $0x18] sm:$0xff] %v4539_v47  ;;  %v3454_v37 = vmul.f32 %v4539_v47, %v4539_v47 }
 0x1f1   : > { %3382 = vst [vmem:[%s5779_s25 + $0x8] sm:$0xff] %v4540_v26  ;;  %v3413_v27 = vadd.f32 %v4540_v26, %v4538_v17  ;;  %v3452_v52 = vmul.f32 %v4540_v26, %v4540_v26 }
 0x1f3   : > { %v3414_v32 = vadd.f32 %v4537_v63, %v3413_v27  ;;  %v3483_v45 = vadd.f32 %v3452_v52, %v3451_v50  ;;  %v4495_v57 = vpop.f32.mrb[4].mxu0 }
 0x1f4   : > { %v4541_v34 = vadd.f32 %v4495_v57, %v4255_v51  ;;  %v3238_v49 = vpop.f32.mrb[5].mxu0 }
 0x1f5   : > { %v3484_v60 = vadd.f32 %v3483_v45, %v3453_v29  ;;  %v4542_v1 = vadd.f32 %v3238_v49, %v1707_v0  ;;  %v3415_v38 = vadd.f32 %v4539_v47, %v3414_v32  ;;  %v4496_v44 = vpop.f32.mrb[6].mxu0 }
 0x1f6   : > { %3387 = vst [vmem:[%s5779_s25 + $0x30] sm:$0xff] %v4541_v34  ;;  %v4543_v13 = vadd.f32 %v4496_v44, %v4256_v40  ;;  %v3241_v58 = vpop.f32.mrb[7].mxu0  ;;  %v3457_v56 = vmul.f32 %v4541_v34, %v4541_v34 }
 0x1f7   : > { %3385 = vst [vmem:[%s5779_s25 + $0x20] sm:$0xff] %v4542_v1  ;;  %v3416_v55 = vadd.f32 %v4542_v1, %v3415_v38  ;;  %v3455_v5 = vmul.f32 %v4542_v1, %v4542_v1  ;;  %v3485_v36 = vadd.f32 %v3484_v60, %v3454_v37  ;;  %v4544_v59 = vadd.f32 %v3241_v58, %v1710_v41 }
 0x1f8   : > { %3388 = vst [vmem:[%s5779_s25 + $0x38] sm:$0xff] %v4543_v13  ;;  %v3458_v39 = vmul.f32 %v4543_v13, %v4543_v13 }
 0x1f9   : > { %v3486_v2 = vadd.f32 %v3485_v36, %v3455_v5  ;;  %3386 = vst [vmem:[%s5779_s25 + $0x28] sm:$0xff] %v4544_v59  ;;  %v3417_v15 = vadd.f32 %v4544_v59, %v3416_v55  ;;  %v3456_v54 = vmul.f32 %v4544_v59, %v4544_v59 }
 0x1fb   : > { %v3418_v7 = vadd.f32 %v4541_v34, %v3417_v15  ;;  %v3487_v20 = vadd.f32 %v3486_v2, %v3456_v54  ;;  %v4499_v10 = vpop.f32.mrb[8].mxu0 }
 0x1fc   : > { %v4545_v28 = vadd.f32 %v4499_v10, %v4259_v25  ;;  %v3254_v8 = vpop.f32.mrb[9].mxu0 }
 0x1fd   : > { %v3488_v11 = vadd.f32 %v3487_v20, %v3457_v56  ;;  %v4546_v9 = vadd.f32 %v3254_v8, %v1723_v42  ;;  %v3419_v22 = vadd.f32 %v4543_v13, %v3418_v7  ;;  %v4500_v30 = vpop.f32.mrb[10].mxu0 }
 0x1fe   : > { %3391 = vst [vmem:[%s5779_s25 + $0x50] sm:$0xff] %v4545_v28  ;;  %v4547_v35 = vadd.f32 %v4500_v30, %v4260_v4  ;;  %v3257_v31 = vpop.f32.mrb[11].mxu0  ;;  %v3461_v62 = vmul.f32 %v4545_v28, %v4545_v28 }
 0x1ff   : > { %3389 = vst [vmem:[%s5779_s25 + $0x40] sm:$0xff] %v4546_v9  ;;  %v3420_v19 = vadd.f32 %v4546_v9, %v3419_v22  ;;  %v3459_v53 = vmul.f32 %v4546_v9, %v4546_v9  ;;  %v3489_v21 = vadd.f32 %v3488_v11, %v3458_v39  ;;  %v4548_v43 = vadd.f32 %v3257_v31, %v5764_v46 }
 0x200   : > { %3392 = vst [vmem:[%s5779_s25 + $0x58] sm:$0xff] %v4547_v35  ;;  %v3462_v42 = vmul.f32 %v4547_v35, %v4547_v35 }
 0x201   : > { %v3490_v24 = vadd.f32 %v3489_v21, %v3459_v53  ;;  %3390 = vst [vmem:[%s5779_s25 + $0x48] sm:$0xff] %v4548_v43  ;;  %v3421_v48 = vadd.f32 %v4548_v43, %v3420_v19  ;;  %v3460_v18 = vmul.f32 %v4548_v43, %v4548_v43 }
 0x203   : > { %v3422_v51 = vadd.f32 %v4545_v28, %v3421_v48  ;;  %v3491_v0 = vadd.f32 %v3490_v24, %v3460_v18  ;;  %v4503_v40 = vpop.f32.mrb[12].mxu0 }
 0x204   : > { %v4549_v41 = vadd.f32 %v4503_v40, %v5766_v33  ;;  %v3270_v25 = vpop.f32.mrb[13].mxu0 }
 0x205   : > { %v3492_v4 = vadd.f32 %v3491_v0, %v3461_v62  ;;  %v4550_v46 = vadd.f32 %v3270_v25, %v5768_v12  ;;  %v3423_v61 = vadd.f32 %v4547_v35, %v3422_v51  ;;  %v4504_v63 = vpop.f32.mrb[14].mxu0 }
 0x206   : > { %3395 = vst [vmem:[%s5779_s25 + $0x70] sm:$0xff] %v4549_v41  ;;  %v4551_v16 = vadd.f32 %v4504_v63, %v5770_v3  ;;  %v3273_v17 = vpop.f32.mrb[15].mxu0  ;;  %v3465_v29 = vmul.f32 %v4549_v41, %v4549_v41 }
 0x207   : > { %3393 = vst [vmem:[%s5779_s25 + $0x60] sm:$0xff] %v4550_v46  ;;  %v3424_v6 = vadd.f32 %v4550_v46, %v3423_v61  ;;  %v3463_v47 = vmul.f32 %v4550_v46, %v4550_v46  ;;  %v3493_v14 = vadd.f32 %v3492_v4, %v3462_v42  ;;  %v4552_v26 = vadd.f32 %v3273_v17, %v5772_v23 }
 0x208   : > { %3396 = vst [vmem:[%s5779_s25 + $0x78] sm:$0xff] %v4551_v16  ;;  %v3466_v23 = vmul.f32 %v4551_v16, %v4551_v16 }
 0x209   : > { %v3494_v33 = vadd.f32 %v3493_v14, %v3463_v47  ;;  %3394 = vst [vmem:[%s5779_s25 + $0x68] sm:$0xff] %v4552_v26  ;;  %v3425_v50 = vadd.f32 %v4552_v26, %v3424_v6  ;;  %v3464_v27 = vmul.f32 %v4552_v26, %v4552_v26  ;;  %v4315_v52 = vpop.f32.mrb[16].mxu1 }
 0x20a   : > { %v2061_v12 = vpop.f32.mrb[17].mxu1 }
 0x20b   : > { %v3426_v32 = vadd.f32 %v4549_v41, %v3425_v50  ;;  %v3495_v45 = vadd.f32 %v3494_v33, %v3464_v27  ;;  %v4507_v3 = vpop.f32.mrb[16].mxu0  ;;  %v4316_v57 = vpop.f32.mrb[18].mxu1 }
 0x20c   : > { %v4553_v34 = vadd.f32 %v4507_v3, %v4315_v52  ;;  %v3286_v49 = vpop.f32.mrb[17].mxu0  ;;  %v2064_v37 = vpop.f32.mrb[19].mxu1 }
 0x20d   : > { %v3496_v60 = vadd.f32 %v3495_v45, %v3465_v29  ;;  %v4554_v1 = vadd.f32 %v3286_v49, %v2061_v12  ;;  %v3427_v38 = vadd.f32 %v4551_v16, %v3426_v32  ;;  %v4508_v44 = vpop.f32.mrb[18].mxu0 }
 0x20e   : > { %3399 = vst [vmem:[%s5779_s25 + $0x90] sm:$0xff] %v4553_v34  ;;  %v4555_v13 = vadd.f32 %v4508_v44, %v4316_v57  ;;  %v3289_v58 = vpop.f32.mrb[19].mxu0  ;;  %v3469_v20 = vmul.f32 %v4553_v34, %v4553_v34 }
 0x20f   : > { %3397 = vst [vmem:[%s5779_s25 + $0x80] sm:$0xff] %v4554_v1  ;;  %v3428_v55 = vadd.f32 %v4554_v1, %v3427_v38  ;;  %v3467_v5 = vmul.f32 %v4554_v1, %v4554_v1  ;;  %v3497_v36 = vadd.f32 %v3496_v60, %v3466_v23  ;;  %v4556_v59 = vadd.f32 %v3289_v58, %v2064_v37 }
 0x210   : > { %3400 = vst [vmem:[%s5779_s25 + $0x98] sm:$0xff] %v4555_v13  ;;  %v3470_v30 = vmul.f32 %v4555_v13, %v4555_v13 }
 0x211   : > { %v3498_v2 = vadd.f32 %v3497_v36, %v3467_v5  ;;  %3398 = vst [vmem:[%s5779_s25 + $0x88] sm:$0xff] %v4556_v59  ;;  %v3429_v15 = vadd.f32 %v4556_v59, %v3428_v55  ;;  %v3468_v54 = vmul.f32 %v4556_v59, %v4556_v59  ;;  %v4319_v56 = vpop.f32.mrb[20].mxu1 }
 0x212   : > { %v2077_v7 = vpop.f32.mrb[21].mxu1 }
 0x213   : > { %v3430_v10 = vadd.f32 %v4553_v34, %v3429_v15  ;;  %v3499_v28 = vadd.f32 %v3498_v2, %v3468_v54  ;;  %v4511_v8 = vpop.f32.mrb[20].mxu0  ;;  %v4320_v39 = vpop.f32.mrb[22].mxu1 }
 0x214   : > { %v4557_v11 = vadd.f32 %v4511_v8, %v4319_v56  ;;  %v3302_v9 = vpop.f32.mrb[21].mxu0  ;;  %v2080_v22 = vpop.f32.mrb[23].mxu1 }
 0x215   : > { %v3500_v35 = vadd.f32 %v3499_v28, %v3469_v20  ;;  %v4558_v31 = vadd.f32 %v3302_v9, %v2077_v7  ;;  %v3431_v19 = vadd.f32 %v4555_v13, %v3430_v10  ;;  %v4512_v53 = vpop.f32.mrb[22].mxu0 }
 0x216   : > { %3403 = vst [vmem:[%s5779_s25 + $0xb0] sm:$0xff] %v4557_v11  ;;  %v4559_v21 = vadd.f32 %v4512_v53, %v4320_v39  ;;  %v3305_v43 = vpop.f32.mrb[23].mxu0  ;;  %v3473_v42 = vmul.f32 %v4557_v11, %v4557_v11 }
 0x217   : > { %3401 = vst [vmem:[%s5779_s25 + $0xa0] sm:$0xff] %v4558_v31  ;;  %v3432_v24 = vadd.f32 %v4558_v31, %v3431_v19  ;;  %v3471_v48 = vmul.f32 %v4558_v31, %v4558_v31  ;;  %v3501_v18 = vadd.f32 %v3500_v35, %v3470_v30  ;;  %v4560_v62 = vadd.f32 %v3305_v43, %v2080_v22 }
 0x218   : > { %3404 = vst [vmem:[%s5779_s25 + $0xb8] sm:$0xff] %v4559_v21  ;;  %v3474_v47 = vmul.f32 %v4559_v21, %v4559_v21 }
 0x219   : > { %v3502_v51 = vadd.f32 %v3501_v18, %v3471_v48  ;;  %3402 = vst [vmem:[%s5779_s25 + $0xa8] sm:$0xff] %v4560_v62  ;;  %v3433_v0 = vadd.f32 %v4560_v62, %v3432_v24  ;;  %v3472_v40 = vmul.f32 %v4560_v62, %v4560_v62  ;;  %v4323_v41 = vpop.f32.mrb[24].mxu1 }
 0x21a   : > { %v2093_v25 = vpop.f32.mrb[25].mxu1 }
 0x21b   : > { %v3434_v4 = vadd.f32 %v4557_v11, %v3433_v0  ;;  %v3503_v46 = vadd.f32 %v3502_v51, %v3472_v40  ;;  %v4515_v61 = vpop.f32.mrb[24].mxu0  ;;  %v4324_v63 = vpop.f32.mrb[26].mxu1 }
 0x21c   : > { %v4561_v16 = vadd.f32 %v4515_v61, %v4323_v41  ;;  %v3318_v17 = vpop.f32.mrb[25].mxu0  ;;  %v2096_v6 = vpop.f32.mrb[27].mxu1 }
 0x21d   : > { %v3504_v14 = vadd.f32 %v3503_v46, %v3473_v42  ;;  %v4562_v26 = vadd.f32 %v3318_v17, %v2093_v25  ;;  %v3435_v33 = vadd.f32 %v4559_v21, %v3434_v4  ;;  %v4516_v50 = vpop.f32.mrb[26].mxu0 }
 0x21e   : > { %3407 = vst [vmem:[%s5779_s25 + $0xd0] sm:$0xff] %v4561_v16  ;;  %v4563_v27 = vadd.f32 %v4516_v50, %v4324_v63  ;;  %v3321_v52 = vpop.f32.mrb[27].mxu0  ;;  %v3477_v23 = vmul.f32 %v4561_v16, %v4561_v16 }
 0x21f   : > { %3405 = vst [vmem:[%s5779_s25 + $0xc0] sm:$0xff] %v4562_v26  ;;  %v3436_v12 = vadd.f32 %v4562_v26, %v3435_v33  ;;  %v3475_v29 = vmul.f32 %v4562_v26, %v4562_v26  ;;  %v3505_v32 = vadd.f32 %v3504_v14, %v3474_v47  ;;  %v4564_v45 = vadd.f32 %v3321_v52, %v2096_v6 }
 0x220   : > { %3408 = vst [vmem:[%s5779_s25 + $0xd8] sm:$0xff] %v4563_v27  ;;  %v3478_v5 = vmul.f32 %v4563_v27, %v4563_v27 }
 0x221   : > { %v3506_v3 = vadd.f32 %v3505_v32, %v3475_v29  ;;  %3406 = vst [vmem:[%s5779_s25 + $0xc8] sm:$0xff] %v4564_v45  ;;  %v3437_v57 = vadd.f32 %v4564_v45, %v3436_v12  ;;  %v3476_v34 = vmul.f32 %v4564_v45, %v4564_v45  ;;  %v4327_v49 = vpop.f32.mrb[28].mxu1 }
 0x222   : > { %v2109_v37 = vpop.f32.mrb[29].mxu1 }
 0x223   : > { %v3438_v60 = vadd.f32 %v4561_v16, %v3437_v57  ;;  %v3507_v1 = vadd.f32 %v3506_v3, %v3476_v34  ;;  %v4519_v38 = vpop.f32.mrb[28].mxu0  ;;  %v4328_v44 = vpop.f32.mrb[30].mxu1 }
 0x224   : > { %v4565_v13 = vadd.f32 %v4519_v38, %v4327_v49  ;;  %v3334_v58 = vpop.f32.mrb[29].mxu0  ;;  %v2112_v55 = vpop.f32.mrb[31].mxu1 }
 0x225   : > { %v3508_v36 = vadd.f32 %v3507_v1, %v3477_v23  ;;  %v4566_v59 = vadd.f32 %v3334_v58, %v2109_v37  ;;  %v3439_v2 = vadd.f32 %v4563_v27, %v3438_v60  ;;  %v4520_v15 = vpop.f32.mrb[30].mxu0 }
 0x226   : > { %3411 = vst [vmem:[%s5779_s25 + $0xf0] sm:$0xff] %v4565_v13  ;;  %v4567_v54 = vadd.f32 %v4520_v15, %v4328_v44  ;;  %v3337_v56 = vpop.f32.mrb[31].mxu0  ;;  %v3481_v9 = vmul.f32 %v4565_v13, %v4565_v13 }
 0x227   : > { %3409 = vst [vmem:[%s5779_s25 + $0xe0] sm:$0xff] %v4566_v59  ;;  %v3440_v7 = vadd.f32 %v4566_v59, %v3439_v2  ;;  %v3479_v20 = vmul.f32 %v4566_v59, %v4566_v59  ;;  %v3509_v10 = vadd.f32 %v3508_v36, %v3478_v5  ;;  %v4568_v28 = vadd.f32 %v3337_v56, %v2112_v55 }
 0x228   : > { %3412 = vst [vmem:[%s5779_s25 + $0xf8] sm:$0xff] %v4567_v54  ;;  %v3482_v35 = vmul.f32 %v4567_v54, %v4567_v54 }
 0x229   : > { %v3510_v8 = vadd.f32 %v3509_v10, %v3479_v20  ;;  %3410 = vst [vmem:[%s5779_s25 + $0xe8] sm:$0xff] %v4568_v28  ;;  %v3441_v39 = vadd.f32 %v4568_v28, %v3440_v7  ;;  %v3480_v11 = vmul.f32 %v4568_v28, %v4568_v28 }
 0x22b   : > { %v3442_v22 = vadd.f32 %v4565_v13, %v3441_v39  ;;  %v3511_v30 = vadd.f32 %v3510_v8, %v3480_v11 }
 0x22d   : > { %v3443_v31 = vadd.f32 %v4567_v54, %v3442_v22  ;;  %v3512_v19 = vadd.f32 %v3511_v30, %v3481_v9 }
 0x22f   : > { %v3444_v53 = vrot.slane %v3443_v31, 4  ;;  %v3513_v21 = vadd.f32 %v3512_v19, %v3482_v35 }
 0x231   : > { %v3445_v43 = vadd.f32 %v3444_v53, %v3443_v31  ;;  %v3514_v24 = vrot.slane %v3513_v21, 4 }
 0x233   : > { %v3446_v48 = vrot.slane %v3445_v43, 2  ;;  %v3515_v18 = vadd.f32 %v3514_v24, %v3513_v21 }
 0x235   : > { %v3447_v62 = vadd.f32 %v3446_v48, %v3445_v43  ;;  %v3516_v51 = vrot.slane %v3515_v18, 2 }
 0x237   : > { %v3448_v0 = vrot.slane %v3447_v62, 1  ;;  %v3517_v40 = vadd.f32 %v3516_v51, %v3515_v18 }
 0x239   : > { %v3449_v41 = vadd.f32 %v3448_v0, %v3447_v62  ;;  %v3518_v25 = vrot.slane %v3517_v40, 1 }
 0x23b   : > { %3450 = vst [vmem:[%s265_s27] sm:$0x1] %v3449_v41  ;;  %v3519_v42 = vadd.f32 %v3518_v25, %v3517_v40 }
 0x23d   : > { %3520 = vst [vmem:[%s268_s30] sm:$0x1] %v3519_v42 }
 0x23e PF: > { %s17_s21 = sadd.s32 1, %s5017_s21  }
 0x23f   : > { %p14_p4 = scmp.ge.s32.totalorder %s17_s21, 4  }
 0x241   :  { %16 = sbr.rel (!%p14_p4) target bundleno = 1 (0x1), region = 100 }

// kernel: _lambda_.14
= control target key start
LH: loop header
LB: loop body
LE: loop exit
PB: predicated region body
PF: predicated region fallthrough
CT: control target
= control target key end

     0   :  { %s2431_s13 = smov 0   ;;  %s3041_s0 = inlined_call_operand.vmem [shape: f32[512,128], index: 0, kind: input, shape index: {}]   ;;  %s3042_s1 = inlined_call_operand.vmem [shape: f32[512,128], index: 1, kind: input, shape index: {}]   ;;  %s3043_s2 = inlined_call_operand.vmem [shape: f32[1,128], index: 2, kind: input, shape index: {}]   ;;  %s3044_s3 = inlined_call_operand.vmem [shape: f32[1,128], index: 3, kind: input, shape index: {}]   ;;  %s3045_s4 = inlined_call_operand.vmem [shape: f32[1,128], index: 4, kind: input, shape index: {}]   ;;  %s3046_s5 = inlined_call_operand.vmem [shape: f32[1,128], index: 5, kind: input, shape index: {}]   ;;  %s3047_s6 = inlined_call_operand.vmem [shape: bf16[128,128], index: 6, kind: input, shape index: {}]   ;;  %s3048_s7 = inlined_call_operand.vmem [shape: bf16[128,128], index: 7, kind: input, shape index: {}]   ;;  %s3049_s8 = inlined_call_operand.vmem [shape: f32[512,128], index: 8, kind: output, shape index: {0}]   ;;  %s3050_s9 = inlined_call_operand.vmem [shape: f32[2,1,128], index: 9, kind: output, shape index: {1}]   ;;  %s3051_s10 = inlined_call_operand.vmem [shape: f32[2,1,128], index: 10, kind: output, shape index: {2}]  }
   0x1 LB: > { %s2437_s14 = sadd.s32 4294967295, %s2374_s13   ;;  %p1815_p0 = scmp.ge.s32.totalorder %s2374_s13, 1  ;;  %s2374_s13 = sphi %s2431_s13, %s21_s13  }
   0x2   : > { %p329_p1 = scmp.lt.s32.totalorder %s2374_s13, 3 }
   0x4   : > { %p330_p2 = pnand %p1815_p0, %p329_p1 }
   0x5   : > { %v2092_v0 = vld [vmem:[%s3048_s7] sm:$0xff] (!%p330_p2)   ;;  %s1816_s17 = sshll.u32 (!%p330_p2), %s2437_s14, 5  ;;  %v2094_v2 = vld [vmem:[%s3048_s7 + $0x8] sm:$0xff] (!%p330_p2)   ;;  %v2096_v4 = vld [vmem:[%s3048_s7 + $0x10] sm:$0xff] (!%p330_p2)   ;;  %p396_p4 = scmp.lt.s32.totalorder (!%p330_p2), %s2437_s14, 1 }
   0x6   : > { %333 = sbr.rel (%p330_p2) target bundleno = 404 (0x194), region = 52  ;;  %v2093_v1 = vld [vmem:[%s3047_s6] sm:$0xff] (!%p330_p2)   ;;  %1956 = vmatprep.subr.bf16.mxu1 (!%p330_p2), %v2092_v0  ;;  %p379_p3 = scmp.lt.s32.totalorder (!%p330_p2), %s1816_s17, 63  ;;  %v2095_v3 = vld [vmem:[%s3047_s6 + $0x8] sm:$0xff] (!%p330_p2)   ;;  %v2097_v5 = vld [vmem:[%s3047_s6 + $0x10] sm:$0xff] (!%p330_p2)  }
   0x7   : > { %2004 = vmatprep.subr.bf16.mxu0 (!%p330_p2), %v2093_v1  ;;  %1957 = vmatpush3.bf16.msra.mxu1 (!%p330_p2), %v2092_v0  ;;  %v2098_v6 = vld [vmem:[%s3048_s7 + $0x18] sm:$0xff] (!%p330_p2)   ;;  %v2100_v8 = vld [vmem:[%s3048_s7 + $0x20] sm:$0xff] (!%p330_p2)   ;;  %v2102_v10 = vld [vmem:[%s3048_s7 + $0x28] sm:$0xff] (!%p330_p2)  }
   0x8   : > { %2005 = vmatpush3.bf16.msra.mxu0 (!%p330_p2), %v2093_v1  ;;  %1958 = vmatprep.subr.bf16.mxu1 (!%p330_p2), %v2094_v2  ;;  %v2099_v7 = vld [vmem:[%s3047_s6 + $0x18] sm:$0xff] (!%p330_p2)   ;;  %v2101_v9 = vld [vmem:[%s3047_s6 + $0x20] sm:$0xff] (!%p330_p2)   ;;  %v2103_v11 = vld [vmem:[%s3047_s6 + $0x28] sm:$0xff] (!%p330_p2)  }
   0x9   : > { %2006 = vmatprep.subr.bf16.mxu0 (!%p330_p2), %v2095_v3  ;;  %v2497_v14 = vld [vmem:[%s3045_s4] ss:$0 sm:$0xff] (!%p330_p2)  ;;  %v2104_v30 = vld [vmem:[%s3048_s7 + $0x30] sm:$0xff] (!%p330_p2)   ;;  %v2106_v50 = vld [vmem:[%s3048_s7 + $0x38] sm:$0xff] (!%p330_p2)  }
   0xa   : > { %v2502_v15 = vld [vmem:[%s3046_s5] ss:$0 sm:$0xff] (!%p330_p2)  ;;  %v2105_v35 = vld [vmem:[%s3047_s6 + $0x30] sm:$0xff] (!%p330_p2)   ;;  %v2107_v55 = vld [vmem:[%s3047_s6 + $0x38] sm:$0xff] (!%p330_p2)  }
   0xb   : > { %1959 = vmatpush3.bf16.msra.mxu1 (!%p330_p2), %v2094_v2  ;;  %v2511_v20 = vld [vmem:[%s3043_s2] ss:$0 sm:$0xff] (!%p330_p2) }
   0xc   : > { %2007 = vmatpush3.bf16.msra.mxu0 (!%p330_p2), %v2095_v3  ;;  %1960 = vmatprep.subr.bf16.mxu1 (!%p330_p2), %v2096_v4  ;;  %v2516_v21 = vld [vmem:[%s3044_s3] ss:$0 sm:$0xff] (!%p330_p2) }
   0xd   : > { %s3053_s17 = smov (!%p379_p3, %s1816_s17), 63  ;;  %2008 = vmatprep.subr.bf16.mxu0 %v2097_v5  ;;  %s3055_s14 = smov (!%p396_p4, %s2437_s14), 1 }
   0xe   : > { %s2466_s12 = sshll.u32 %s3053_s17, 3  ;;  %s398_s24 = scalar_lea.vmem %s3050_s9, %s3055_s14 }
   0xf   : > { %1961 = vmatpush3.bf16.msra.mxu1 %v2096_v4  ;;  %s2478_s22 = scalar_lea.vmem %s3042_s1, %s2466_s12  ;;  %s2487_s26 = scalar_lea.vmem %s3041_s0, %s2466_s12 }
  0x10   : > { %2009 = vmatpush3.bf16.msra.mxu0 %v2097_v5  ;;  %1962 = vmatprep.subr.bf16.mxu1 %v2098_v6  ;;  %v769_v12 = vld [vmem:[%s2478_s22] sm:$0xff]  ;;  %v770_v13 = vld [vmem:[%s2478_s22 + $0x8] sm:$0xff]  ;;  %v771_v22 = vld [vmem:[%s2478_s22 + $0x10] sm:$0xff]  ;;  %s2996_s17 = scalar_lea.vmem %s3049_s8, %s2466_s12  ;;  %s401_s28 = scalar_lea.vmem %s3051_s10, %s3055_s14 }
  0x11   : > { %2010 = vmatprep.subr.bf16.mxu0 %v2099_v7  ;;  %v809_v16 = vmul.f32 %v2497_v14, %v769_v12  ;;  %v810_v17 = vmul.f32 %v2497_v14, %v770_v13  ;;  %v403_v18 = vld [vmem:[%s2487_s26] sm:$0xff]  ;;  %v404_v19 = vld [vmem:[%s2487_s26 + $0x8] sm:$0xff]  ;;  %v772_v27 = vld [vmem:[%s2478_s22 + $0x18] sm:$0xff]  ;;  %v811_v31 = vmul.f32 %v2497_v14, %v771_v22 }
  0x12   : > { %v443_v25 = vmul.f32 %v2511_v20, %v403_v18  ;;  %v444_v26 = vmul.f32 %v2511_v20, %v404_v19  ;;  %v405_v28 = vld [vmem:[%s2487_s26 + $0x10] sm:$0xff]  ;;  %v406_v29 = vld [vmem:[%s2487_s26 + $0x18] sm:$0xff]  ;;  %v812_v32 = vmul.f32 %v2497_v14, %v772_v27  ;;  %v773_v34 = vld [vmem:[%s2478_s22 + $0x20] sm:$0xff] }
  0x13   : > { %1963 = vmatpush3.bf16.msra.mxu1 %v2098_v6  ;;  %v2520_v23 = vadd.f32 %v2502_v15, %v809_v16  ;;  %v2523_v24 = vadd.f32 %v2502_v15, %v810_v17  ;;  %v445_v33 = vmul.f32 %v2511_v20, %v405_v28  ;;  %v2549_v40 = vadd.f32 %v2502_v15, %v811_v31  ;;  %v774_v44 = vld [vmem:[%s2478_s22 + $0x28] sm:$0xff]  ;;  %v407_v48 = vld [vmem:[%s2487_s26 + $0x20] sm:$0xff]  ;;  %v775_v54 = vld [vmem:[%s2478_s22 + $0x30] sm:$0xff] }
  0x14   : > { %2011 = vmatpush3.bf16.msra.mxu0 %v2099_v7  ;;  %1964 = vmatprep.subr.bf16.mxu1 %v2100_v8  ;;  %v2543_v38 = vadd.f32 %v2516_v21, %v443_v25  ;;  %v2546_v39 = vadd.f32 %v2516_v21, %v444_v26  ;;  %v2552_v41 = vadd.f32 %v2502_v15, %v812_v32  ;;  %v408_v49 = vld [vmem:[%s2487_s26 + $0x28] sm:$0xff]  ;;  %v776_v7 = vld [vmem:[%s2478_s22 + $0x38] sm:$0xff]  ;;  %v777_v16 = vld [vmem:[%s2478_s22 + $0x40] sm:$0xff] }
  0x15   : > { %2012 = vmatprep.subr.bf16.mxu0 %v2101_v9  ;;  %v1858_v36 = vmul.f32 -1.442695, %v2520_v23  ;;  %v1859_v37 = vmul.f32 -1.442695, %v2523_v24  ;;  %v446_v42 = vmul.f32 %v2511_v20, %v406_v29  ;;  %v2556_v43 = vadd.f32 %v2516_v21, %v445_v33  ;;  %v778_v26 = vld [vmem:[%s2478_s22 + $0x48] sm:$0xff]  ;;  %v411_v27 = vld [vmem:[%s2487_s26 + $0x40] sm:$0xff] }
  0x16   : > { %v1824_v45 = vmul.f32 -1.442695, %v2543_v38  ;;  %v1825_v46 = vmul.f32 -1.442695, %v2546_v39  ;;  %v813_v47 = vmul.f32 %v2497_v14, %v773_v34  ;;  %v1860_v51 = vmul.f32 -1.442695, %v2549_v40 }
  0x17   : > { %1965 = vmatpush3.bf16.msra.mxu1 %v2100_v8  ;;  %2108 = vpow2.f32 %v1858_v36  ;;  %v1861_v52 = vmul.f32 -1.442695, %v2552_v41  ;;  %v2570_v53 = vadd.f32 %v2516_v21, %v446_v42  ;;  %v1826_v56 = vmul.f32 -1.442695, %v2556_v43  ;;  %v409_v8 = vld [vmem:[%s2487_s26 + $0x30] sm:$0xff] }
  0x18   : > { %2013 = vmatpush3.bf16.msra.mxu0 %v2101_v9  ;;  %1966 = vmatprep.subr.bf16.mxu1 %v2102_v10  ;;  %2110 = vpow2.f32 %v1859_v37  ;;  %v814_v57 = vmul.f32 %v2497_v14, %v774_v44  ;;  %v2579_v58 = vadd.f32 %v2502_v15, %v813_v47  ;;  %v447_v60 = vmul.f32 %v2511_v20, %v407_v48 }
  0x19   : > { %2014 = vmatprep.subr.bf16.mxu0 %v2103_v11  ;;  %2112 = vpow2.f32 %v1824_v45  ;;  %v1827_v59 = vmul.f32 -1.442695, %v2570_v53  ;;  %v448_v61 = vmul.f32 %v2511_v20, %v408_v49  ;;  %v815_v0 = vmul.f32 %v2497_v14, %v775_v54 }
  0x1a   : > { %2114 = vpow2.f32 %v1825_v46  ;;  %v2585_v62 = vadd.f32 %v2502_v15, %v814_v57  ;;  %v1862_v63 = vmul.f32 -1.442695, %v2579_v58  ;;  %v2590_v1 = vadd.f32 %v2516_v21, %v447_v60 }
  0x1b   : > { %1967 = vmatpush3.bf16.msra.mxu1 %v2102_v10  ;;  %2116 = vpow2.f32 %v1860_v51  ;;  %v2593_v2 = vadd.f32 %v2516_v21, %v448_v61  ;;  %v2597_v4 = vadd.f32 %v2502_v15, %v815_v0  ;;  %v410_v10 = vld [vmem:[%s2487_s26 + $0x38] sm:$0xff]  ;;  %v816_v12 = vmul.f32 %v2497_v14, %v776_v7 }
  0x1c   : > { %2015 = vmatpush3.bf16.msra.mxu0 %v2103_v11  ;;  %1968 = vmatprep.subr.bf16.mxu1 %v2104_v30  ;;  %2118 = vpow2.f32 %v1861_v52  ;;  %v1863_v3 = vmul.f32 -1.442695, %v2585_v62  ;;  %v1828_v5 = vmul.f32 -1.442695, %v2590_v1  ;;  %v449_v13 = vmul.f32 %v2511_v20, %v409_v8  ;;  %v779_v52 = vld [vmem:[%s2478_s22 + $0x50] sm:$0xff]  ;;  %v780_v0 = vld [vmem:[%s2478_s22 + $0x58] sm:$0xff] }
  0x1d   : > { %2016 = vmatprep.subr.bf16.mxu0 %v2105_v35  ;;  %2120 = vpow2.f32 %v1826_v56  ;;  %v1829_v6 = vmul.f32 -1.442695, %v2593_v2  ;;  %v1864_v9 = vmul.f32 -1.442695, %v2597_v4  ;;  %v450_v25 = vmul.f32 %v2511_v20, %v410_v10 }
  0x1e   : > { %2122 = vpow2.f32 %v1827_v59  ;;  %v2613_v33 = vadd.f32 %v2502_v15, %v816_v12  ;;  %v2616_v34 = vadd.f32 %v2516_v21, %v449_v13  ;;  %v818_v42 = vmul.f32 %v2497_v14, %v778_v26  ;;  %v414_v13 = vld [vmem:[%s2487_s26 + $0x58] sm:$0xff] }
  0x1f   : > { %1969 = vmatpush3.bf16.msra.mxu1 %v2104_v30  ;;  %2124 = vpow2.f32 %v1862_v63  ;;  %v817_v30 = vmul.f32 %v2497_v14, %v777_v16  ;;  %v451_v44 = vmul.f32 %v2511_v20, %v411_v27  ;;  %v2622_v47 = vadd.f32 %v2516_v21, %v450_v25 }
  0x20   : > { %2017 = vmatpush3.bf16.msra.mxu0 %v2105_v35  ;;  %1970 = vmatprep.subr.bf16.mxu1 %v2106_v50  ;;  %2126 = vpow2.f32 %v1863_v3  ;;  %v412_v35 = vld [vmem:[%s2487_s26 + $0x48] sm:$0xff]  ;;  %v1865_v56 = vmul.f32 -1.442695, %v2613_v33  ;;  %v1830_v57 = vmul.f32 -1.442695, %v2616_v34  ;;  %v2632_v61 = vadd.f32 %v2502_v15, %v818_v42  ;;  %v413_v3 = vld [vmem:[%s2487_s26 + $0x50] sm:$0xff] }
  0x21   : > { %2018 = vmatprep.subr.bf16.mxu0 %v2107_v55  ;;  %v2109_v11 = vpop.eup %2108  ;;  %2128 = vpow2.f32 %v1828_v5  ;;  %v452_v51 = vmul.f32 %v2511_v20, %v412_v35  ;;  %v2635_v63 = vadd.f32 %v2516_v21, %v451_v44  ;;  %v1831_v7 = vmul.f32 -1.442695, %v2622_v47  ;;  %v782_v35 = vld [vmem:[%s2478_s22 + $0x68] sm:$0xff] }
  0x22   : > { %v2111_v17 = vpop.eup %2110  ;;  %v975_v18 = vadd.f32 1.0, %v2109_v11  ;;  %2130 = vpow2.f32 %v1829_v6  ;;  %v819_v8 = vmul.f32 %v2497_v14, %v779_v52  ;;  %v1867_v27 = vmul.f32 -1.442695, %v2632_v61 }
  0x23   : > { %1971 = vmatpush3.bf16.msra.mxu1 %v2106_v50  ;;  %v2113_v19 = vpop.eup %2112  ;;  %v976_v22 = vadd.f32 1.0, %v2111_v17  ;;  %2132 = vpow2.f32 %v1864_v9  ;;  %v2625_v50 = vadd.f32 %v2502_v15, %v817_v30  ;;  %v2643_v12 = vadd.f32 %v2516_v21, %v452_v51 }
  0x24   : > { %2019 = vmatpush3.bf16.msra.mxu0 %v2107_v55  ;;  %v2115_v28 = vpop.eup %2114  ;;  %2134 = vrcp.f32 %v975_v18  ;;  %v609_v29 = vadd.f32 1.0, %v2113_v19  ;;  %v820_v18 = vmul.f32 %v2497_v14, %v780_v0  ;;  %v453_v19 = vmul.f32 %v2511_v20, %v413_v3 }
  0x25   : > { %v2117_v31 = vpop.eup %2116  ;;  %2136 = vrcp.f32 %v976_v22  ;;  %v610_v32 = vadd.f32 1.0, %v2115_v28  ;;  %v1866_v11 = vmul.f32 -1.442695, %v2625_v50  ;;  %v781_v22 = vld [vmem:[%s2478_s22 + $0x60] sm:$0xff]  ;;  %v1832_v28 = vmul.f32 -1.442695, %v2635_v63 }
  0x26   : > { %v2119_v36 = vpop.eup %2118  ;;  %2138 = vrcp.f32 %v609_v29  ;;  %v977_v37 = vadd.f32 1.0, %v2117_v31  ;;  %v2653_v31 = vadd.f32 %v2502_v15, %v819_v8  ;;  %v1833_v42 = vmul.f32 -1.442695, %v2643_v12 }
  0x27   : > { %v2121_v45 = vpop.eup %2120  ;;  %2140 = vrcp.f32 %v610_v32  ;;  %v978_v46 = vadd.f32 1.0, %v2119_v36  ;;  %v454_v32 = vmul.f32 %v2511_v20, %v414_v13  ;;  %v821_v44 = vmul.f32 %v2497_v14, %v781_v22 }
  0x28   : > { %v2123_v48 = vpop.eup %2122  ;;  %2142 = vrcp.f32 %v977_v37  ;;  %v611_v49 = vadd.f32 1.0, %v2121_v45 }
  0x29   : > { %v2125_v54 = vpop.eup %2124  ;;  %2144 = vrcp.f32 %v978_v46  ;;  %v612_v55 = vadd.f32 1.0, %v2123_v48  ;;  %v2665_v48 = vadd.f32 %v2516_v21, %v453_v19 }
  0x2a   : > { %v2127_v59 = vpop.eup %2126  ;;  %2146 = vrcp.f32 %v611_v49  ;;  %v979_v60 = vadd.f32 1.0, %v2125_v54 }
  0x2b   : > { %v2129_v5 = vpop.eup %2128  ;;  %2148 = vrcp.f32 %v612_v55  ;;  %v980_v6 = vadd.f32 1.0, %v2127_v59 }
  0x2c   : > { %v2131_v9 = vpop.eup %2130  ;;  %2150 = vrcp.f32 %v979_v60  ;;  %v613_v10 = vadd.f32 1.0, %v2129_v5  ;;  %v1834_v5 = vmul.f32 -1.442695, %v2665_v48 }
  0x2d   : > { %v2133_v16 = vpop.eup %2132  ;;  %2152 = vrcp.f32 %v980_v6  ;;  %v614_v17 = vadd.f32 1.0, %v2131_v9  ;;  %v415_v9 = vld [vmem:[%s2487_s26 + $0x60] sm:$0xff] }
  0x2e   : > { %v2135_v25 = vpop.eup %2134  ;;  %2154 = vrcp.f32 %v613_v10  ;;  %v981_v26 = vadd.f32 1.0, %v2133_v16 }
  0x2f   : > { %v2137_v29 = vpop.eup %2136  ;;  %v1071_v30 = vmul.f32 %v2135_v25, %v2520_v23  ;;  %2156 = vrcp.f32 %v614_v17  ;;  %v2662_v23 = vadd.f32 %v2502_v15, %v820_v18  ;;  %v416_v18 = vld [vmem:[%s2487_s26 + $0x68] sm:$0xff]  ;;  %v783_v25 = vld [vmem:[%s2478_s22 + $0x70] sm:$0xff] }
  0x30   : > { %v2139_v36 = vpop.eup %2138  ;;  %v1072_v37 = vmul.f32 %v2137_v29, %v2523_v24  ;;  %2158 = vpow2.f32 %v1865_v56  ;;  %v822_v24 = vmul.f32 %v2497_v14, %v782_v35  ;;  %v2672_v56 = vadd.f32 %v2516_v21, %v454_v32  ;;  %v784_v29 = vld [vmem:[%s2478_s22 + $0x78] sm:$0xff] }
  0x31   : > { %v2141_v45 = vpop.eup %2140  ;;  %v705_v46 = vmul.f32 %v2139_v36, %v2543_v38  ;;  %2160 = vrcp.f32 %v981_v26  ;;  %v1868_v38 = vmul.f32 -1.442695, %v2653_v31  ;;  %v456_v35 = vmul.f32 %v2511_v20, %v416_v18 }
  0x32   : > { %v2143_v49 = vpop.eup %2142  ;;  %v1103_v51 = vpack.c.bf16 %v1072_v37, %v1071_v30  ;;  %v706_v52 = vmul.f32 %v2141_v45, %v2546_v39  ;;  %2162 = vpow2.f32 %v1830_v57  ;;  %v2676_v39 = vadd.f32 %v2502_v15, %v821_v44 }
  0x33   : > { %v2145_v54 = vpop.eup %2144  ;;  %v1073_v55 = vmul.f32 %v2143_v49, %v2549_v40  ;;  %2164 = vpow2.f32 %v1831_v7  ;;  %v1869_v40 = vmul.f32 -1.442695, %v2662_v23  ;;  %v824_v45 = vmul.f32 %v2497_v14, %v784_v29 }
  0x34   : > { %v2147_v59 = vpop.eup %2146  ;;  %1972 = vmatprep.mubr.bf16.mxu1 %v1103_v51  ;;  %v737_v60 = vpack.c.bf16 %v706_v52, %v705_v46  ;;  %v1074_v0 = vmul.f32 %v2145_v54, %v2552_v41  ;;  %2166 = vpow2.f32 %v1866_v11  ;;  %v2683_v41 = vadd.f32 %v2502_v15, %v822_v24  ;;  %v418_v46 = vld [vmem:[%s2487_s26 + $0x78] sm:$0xff] }
  0x35   : > { %v2149_v57 = vpop.eup %2148  ;;  %v707_v3 = vmul.f32 %v2147_v59, %v2556_v43  ;;  %2168 = vpow2.f32 %v1867_v27  ;;  %v1835_v11 = vmul.f32 -1.442695, %v2672_v56 }
  0x36   : > { %v2151_v6 = vpop.eup %2150  ;;  %2020 = vmatprep.mubr.bf16.mxu0 %v737_v60  ;;  %v1104_v7 = vpack.c.bf16 %v1074_v0, %v1073_v55  ;;  %v708_v8 = vmul.f32 %v2149_v57, %v2570_v53  ;;  %2170 = vpow2.f32 %v1832_v28  ;;  %v1870_v53 = vmul.f32 -1.442695, %v2676_v39 }
  0x37   : > { %v2153_v10 = vpop.eup %2152  ;;  %v1075_v43 = vmul.f32 %v2151_v6, %v2579_v58  ;;  %2172 = vpow2.f32 %v1833_v42  ;;  %v455_v58 = vmul.f32 %v2511_v20, %v415_v9  ;;  %v823_v42 = vmul.f32 %v2497_v14, %v783_v25 }
  0x38   : > { %v2155_v13 = vpop.eup %2154  ;;  %1973 = vmatmul.mubr.bf16.vlgmr.msra.gmra.mrb[0].mxu1 %v1104_v7  ;;  %v738_v16 = vpack.c.bf16 %v708_v8, %v707_v3  ;;  %v1076_v17 = vmul.f32 %v2153_v10, %v2585_v62  ;;  %2174 = vpow2.f32 %v1868_v38  ;;  %v1871_v62 = vmul.f32 -1.442695, %v2683_v41  ;;  %v785_v3 = vld [vmem:[%s2478_s22 + $0x80] sm:$0xff] }
  0x39   : > { %v2157_v19 = vpop.eup %2156  ;;  %v709_v22 = vmul.f32 %v2155_v13, %v2590_v1  ;;  %2176 = vpow2.f32 %v1869_v40  ;;  %v417_v1 = vld [vmem:[%s2487_s26 + $0x70] sm:$0xff]  ;;  %v2703_v52 = vadd.f32 %v2516_v21, %v455_v58  ;;  %v2707_v38 = vadd.f32 %v2516_v21, %v456_v35  ;;  %v419_v58 = vld [vmem:[%s2487_s26 + $0x80] sm:$0xff] }
  0x3a   : > { %v2159_v26 = vpop.eup %2158  ;;  %2021 = vmatmul.mubr.bf16.vlgmr.msra.gmra.mrb[0].mxu0 %v738_v16  ;;  %v1105_v27 = vpack.c.bf16 %v1076_v17, %v1075_v43  ;;  %v710_v28 = vmul.f32 %v2157_v19, %v2593_v2  ;;  %2178 = vpow2.f32 %v1834_v5  ;;  %v457_v24 = vmul.f32 %v2511_v20, %v417_v1  ;;  %v786_v43 = vld [vmem:[%s2478_s22 + $0x88] sm:$0xff] }
  0x3b   : > { %v2161_v30 = vpop.eup %2160  ;;  %v982_v32 = vadd.f32 1.0, %v2159_v26  ;;  %2180 = vpow2.f32 %v1835_v11  ;;  %v2710_v0 = vadd.f32 %v2502_v15, %v823_v42  ;;  %v458_v57 = vmul.f32 %v2511_v20, %v418_v46 }
  0x3c   : > { %v2163_v36 = vpop.eup %2162  ;;  %1976 = vmatprep.mubr.bf16.mxu1 %v1105_v27  ;;  %v739_v37 = vpack.c.bf16 %v710_v28, %v709_v22  ;;  %2182 = vpow2.f32 %v1870_v53  ;;  %v2715_v6 = vadd.f32 %v2502_v15, %v824_v45  ;;  %v1836_v9 = vmul.f32 -1.442695, %v2703_v52  ;;  %v788_v45 = vld [vmem:[%s2478_s22 + $0x98] sm:$0xff] }
  0x3d   : > { %v2165_v44 = vpop.eup %2164  ;;  %2184 = vrcp.f32 %v982_v32  ;;  %v615_v2 = vadd.f32 1.0, %v2163_v36  ;;  %v2719_v10 = vadd.f32 %v2516_v21, %v457_v24  ;;  %v1837_v16 = vmul.f32 -1.442695, %v2707_v38  ;;  %v787_v36 = vld [vmem:[%s2478_s22 + $0x90] sm:$0xff] }
  0x3e   : > { %v2167_v49 = vpop.eup %2166  ;;  %2024 = vmatprep.mubr.bf16.mxu0 %v739_v37  ;;  %v616_v51 = vadd.f32 1.0, %v2165_v44  ;;  %2186 = vpow2.f32 %v1871_v62  ;;  %v825_v17 = vmul.f32 %v2497_v14, %v785_v3  ;;  %v1872_v19 = vmul.f32 -1.442695, %v2710_v0  ;;  %v420_v62 = vld [vmem:[%s2487_s26 + $0x88] sm:$0xff] }
  0x3f   : > { %v2169_v54 = vpop.eup %2168  ;;  %2188 = vrcp.f32 %v615_v2  ;;  %v983_v55 = vadd.f32 1.0, %v2167_v49  ;;  %v2726_v22 = vadd.f32 %v2516_v21, %v458_v57  ;;  %v1873_v27 = vmul.f32 -1.442695, %v2715_v6 }
  0x40   : > { %v2171_v59 = vpop.eup %2170  ;;  %2190 = vrcp.f32 %v616_v51  ;;  %v984_v60 = vadd.f32 1.0, %v2169_v54  ;;  %v826_v28 = vmul.f32 %v2497_v14, %v786_v43  ;;  %v1077_v32 = vmul.f32 %v2161_v30, %v2597_v4 }
  0x41   : > { %v2173_v40 = vpop.eup %2172  ;;  %2192 = vrcp.f32 %v983_v55  ;;  %v617_v5 = vadd.f32 1.0, %v2171_v59  ;;  %v1838_v1 = vmul.f32 -1.442695, %v2719_v10  ;;  %v2736_v44 = vadd.f32 %v2502_v15, %v825_v17  ;;  %v421_v59 = vld [vmem:[%s2487_s26 + $0x90] sm:$0xff] }
  0x42   : > { %v2175_v7 = vpop.eup %2174  ;;  %2194 = vrcp.f32 %v984_v60  ;;  %v618_v8 = vadd.f32 1.0, %v2173_v40  ;;  %v459_v2 = vmul.f32 %v2511_v20, %v419_v58  ;;  %v1839_v4 = vmul.f32 -1.442695, %v2726_v22 }
  0x43   : > { %v2177_v11 = vpop.eup %2176  ;;  %2196 = vrcp.f32 %v617_v5  ;;  %v985_v13 = vadd.f32 1.0, %v2175_v7  ;;  %v460_v30 = vmul.f32 %v2511_v20, %v420_v62  ;;  %v2744_v54 = vadd.f32 %v2502_v15, %v826_v28 }
  0x44   : > { %v2179_v53 = vpop.eup %2178  ;;  %2198 = vrcp.f32 %v618_v8  ;;  %v986_v18 = vadd.f32 1.0, %v2177_v11  ;;  %v827_v55 = vmul.f32 %v2497_v14, %v787_v36  ;;  %v1874_v7 = vmul.f32 -1.442695, %v2736_v44 }
  0x45   : > { %v2181_v25 = vpop.eup %2180  ;;  %2200 = vrcp.f32 %v985_v13  ;;  %v619_v26 = vadd.f32 1.0, %v2179_v53  ;;  %v2753_v8 = vadd.f32 %v2516_v21, %v459_v2  ;;  %v2757_v13 = vadd.f32 %v2516_v21, %v460_v30 }
  0x46   : > { %v2183_v29 = vpop.eup %2182  ;;  %2202 = vrcp.f32 %v986_v18  ;;  %v620_v35 = vadd.f32 1.0, %v2181_v25  ;;  %v2762_v53 = vadd.f32 %v2502_v15, %v827_v55 }
  0x47   : > { %v2185_v37 = vpop.eup %2184  ;;  %2204 = vrcp.f32 %v619_v26  ;;  %v987_v42 = vadd.f32 1.0, %v2183_v29 }
  0x48   : > { %v2187_v46 = vpop.eup %2186  ;;  %v1078_v49 = vmul.f32 %v2185_v37, %v2613_v33  ;;  %2206 = vrcp.f32 %v620_v35  ;;  %v828_v33 = vmul.f32 %v2497_v14, %v788_v45 }
  0x49   : > { %v2189_v51 = vpop.eup %2188  ;;  %v988_v24 = vadd.f32 1.0, %v2187_v46  ;;  %2208 = vrcp.f32 %v987_v42  ;;  %v789_v42 = vld [vmem:[%s2478_s22 + $0xa0] sm:$0xff] }
  0x4a   : > { %v2191_v60 = vpop.eup %2190  ;;  %v1106_v57 = vpack.c.bf16 %v1078_v49, %v1077_v32  ;;  %v711_v3 = vmul.f32 %v2189_v51, %v2616_v34  ;;  %2210 = vpow2.f32 %v1836_v9  ;;  %v461_v34 = vmul.f32 %v2511_v20, %v421_v59 }
  0x4b   : > { %v2193_v40 = vpop.eup %2192  ;;  %v712_v5 = vmul.f32 %v2191_v60, %v2622_v47  ;;  %2212 = vrcp.f32 %v988_v24  ;;  %v829_v59 = vmul.f32 %v2497_v14, %v789_v42 }
  0x4c   : > { %v2195_v43 = vpop.eup %2194  ;;  %1977 = vmatmul.mubr.bf16.gmra.mrb[4].mxu1 %v1106_v57  ;;  %v1079_v11 = vmul.f32 %v2193_v40, %v2625_v50  ;;  %2214 = vpow2.f32 %v1837_v16  ;;  %v1875_v50 = vmul.f32 -1.442695, %v2744_v54  ;;  %v2767_v16 = vadd.f32 %v2502_v15, %v828_v33  ;;  %v424_v40 = vld [vmem:[%s2487_s26 + $0xa8] sm:$0xff] }
  0x4d   : > { %v2197_v9 = vpop.eup %2196  ;;  %v740_v17 = vpack.c.bf16 %v712_v5, %v711_v3  ;;  %v1080_v47 = vmul.f32 %v2195_v43, %v2632_v61  ;;  %2216 = vpow2.f32 %v1872_v19  ;;  %v1840_v61 = vmul.f32 -1.442695, %v2753_v8  ;;  %v791_v5 = vld [vmem:[%s2478_s22 + $0xb0] sm:$0xff] }
  0x4e   : > { %v2199_v18 = vpop.eup %2198  ;;  %v713_v58 = vmul.f32 %v2197_v9, %v2635_v63  ;;  %2218 = vpow2.f32 %v1873_v27  ;;  %v1841_v63 = vmul.f32 -1.442695, %v2757_v13  ;;  %v2774_v27 = vadd.f32 %v2516_v21, %v461_v34 }
  0x4f   : > { %v2201_v25 = vpop.eup %2200  ;;  %2025 = vmatmul.mubr.bf16.gmra.mrb[4].mxu0 %v740_v17  ;;  %v1107_v26 = vpack.c.bf16 %v1080_v47, %v1079_v11  ;;  %v714_v28 = vmul.f32 %v2199_v18, %v2643_v12  ;;  %2220 = vpow2.f32 %v1838_v1  ;;  %v1876_v12 = vmul.f32 -1.442695, %v2762_v53  ;;  %v422_v1 = vld [vmem:[%s2487_s26 + $0x98] sm:$0xff] }
  0x50   : > { %v2203_v19 = vpop.eup %2202  ;;  %v1081_v62 = vmul.f32 %v2201_v25, %v2653_v31  ;;  %2222 = vpow2.f32 %v1839_v4  ;;  %v1877_v31 = vmul.f32 -1.442695, %v2767_v16  ;;  %v462_v4 = vmul.f32 %v2511_v20, %v422_v1  ;;  %v792_v18 = vld [vmem:[%s2478_s22 + $0xb8] sm:$0xff] }
  0x51   : > { %v2205_v29 = vpop.eup %2204  ;;  %1980 = vmatprep.mubr.bf16.mxu1 %v1107_v26  ;;  %v741_v32 = vpack.c.bf16 %v714_v28, %v713_v58  ;;  %v1082_v35 = vmul.f32 %v2203_v19, %v2662_v23  ;;  %2224 = vpow2.f32 %v1874_v7  ;;  %v1842_v30 = vmul.f32 -1.442695, %v2774_v27 }
  0x52   : > { %v2207_v36 = vpop.eup %2206  ;;  %v715_v37 = vmul.f32 %v2205_v29, %v2665_v48  ;;  %2226 = vpow2.f32 %v1875_v50  ;;  %v790_v48 = vld [vmem:[%s2478_s22 + $0xa8] sm:$0xff]  ;;  %v2798_v47 = vadd.f32 %v2502_v15, %v829_v59  ;;  %v464_v25 = vmul.f32 %v2511_v20, %v424_v40 }
  0x53   : > { %v2209_v2 = vpop.eup %2208  ;;  %2028 = vmatprep.mubr.bf16.mxu0 %v741_v32  ;;  %v1108_v45 = vpack.c.bf16 %v1082_v35, %v1081_v62  ;;  %v716_v46 = vmul.f32 %v2207_v36, %v2672_v56  ;;  %2228 = vpow2.f32 %v1840_v61  ;;  %v423_v56 = vld [vmem:[%s2487_s26 + $0xa0] sm:$0xff]  ;;  %v830_v33 = vmul.f32 %v2497_v14, %v790_v48  ;;  %v425_v35 = vld [vmem:[%s2487_s26 + $0xb0] sm:$0xff] }
  0x54   : > { %v2211_v23 = vpop.eup %2210  ;;  %v1083_v49 = vmul.f32 %v2209_v2, %v2676_v39  ;;  %2230 = vpow2.f32 %v1841_v63  ;;  %v463_v34 = vmul.f32 %v2511_v20, %v423_v56  ;;  %v831_v26 = vmul.f32 %v2497_v14, %v791_v5  ;;  %v794_v56 = vld [vmem:[%s2478_s22 + $0xc8] sm:$0xff] }
  0x55   : > { %v2213_v51 = vpop.eup %2212  ;;  %1981 = vmatmul.mubr.bf16.gmra.mrb[8].mxu1 %v1108_v45  ;;  %v742_v24 = vpack.c.bf16 %v716_v46, %v715_v37  ;;  %v621_v55 = vadd.f32 1.0, %v2211_v23  ;;  %2232 = vpow2.f32 %v1876_v12  ;;  %v2804_v19 = vadd.f32 %v2502_v15, %v830_v33  ;;  %v426_v46 = vld [vmem:[%s2487_s26 + $0xb8] sm:$0xff]  ;;  %v793_v23 = vld [vmem:[%s2478_s22 + $0xc0] sm:$0xff] }
  0x56   : > { %v2215_v60 = vpop.eup %2214  ;;  %v1084_v57 = vmul.f32 %v2213_v51, %v2683_v41  ;;  %2234 = vpow2.f32 %v1877_v31  ;;  %v2795_v41 = vadd.f32 %v2516_v21, %v462_v4  ;;  %v2807_v29 = vadd.f32 %v2516_v21, %v463_v34  ;;  %v427_v33 = vld [vmem:[%s2487_s26 + $0xc0] sm:$0xff] }
  0x57   : > { %v2217_v39 = vpop.eup %2216  ;;  %2029 = vmatmul.mubr.bf16.gmra.mrb[8].mxu0 %v742_v24  ;;  %v622_v3 = vadd.f32 1.0, %v2215_v60  ;;  %2236 = vrcp.f32 %v621_v55  ;;  %v832_v32 = vmul.f32 %v2497_v14, %v792_v18  ;;  %v1878_v37 = vmul.f32 -1.442695, %v2798_v47  ;;  %v428_v18 = vld [vmem:[%s2487_s26 + $0xc8] sm:$0xff] }
  0x58   : > { %v2219_v7 = vpop.eup %2218  ;;  %v1109_v43 = vpack.c.bf16 %v1084_v57, %v1083_v49  ;;  %v989_v11 = vadd.f32 1.0, %v2217_v39  ;;  %2238 = vpow2.f32 %v1842_v30  ;;  %v1843_v36 = vmul.f32 -1.442695, %v2795_v41 }
  0x59   : > { %v2221_v9 = vpop.eup %2220  ;;  %2240 = vrcp.f32 %v622_v3  ;;  %v990_v17 = vadd.f32 1.0, %v2219_v7  ;;  %v2814_v2 = vadd.f32 %v2516_v21, %v464_v25  ;;  %v2817_v45 = vadd.f32 %v2502_v15, %v831_v26 }
  0x5a   : > { %v2223_v58 = vpop.eup %2222  ;;  %1984 = vmatprep.mubr.bf16.mxu1 %v1109_v43  ;;  %2242 = vrcp.f32 %v989_v11  ;;  %v623_v50 = vadd.f32 1.0, %v2221_v9  ;;  %v1879_v30 = vmul.f32 -1.442695, %v2804_v19  ;;  %v465_v48 = vmul.f32 %v2511_v20, %v425_v35 }
  0x5b   : > { %v2225_v28 = vpop.eup %2224  ;;  %2244 = vrcp.f32 %v990_v17  ;;  %v624_v61 = vadd.f32 1.0, %v2223_v58  ;;  %v1844_v55 = vmul.f32 -1.442695, %v2807_v29  ;;  %v2825_v59 = vadd.f32 %v2502_v15, %v832_v32 }
  0x5c   : > { %v2227_v62 = vpop.eup %2226  ;;  %2246 = vrcp.f32 %v623_v50  ;;  %v991_v63 = vadd.f32 1.0, %v2225_v28  ;;  %v466_v39 = vmul.f32 %v2511_v20, %v426_v46  ;;  %v833_v3 = vmul.f32 %v2497_v14, %v793_v23 }
  0x5d   : > { %v2229_v12 = vpop.eup %2228  ;;  %2248 = vrcp.f32 %v624_v61  ;;  %v992_v1 = vadd.f32 1.0, %v2227_v62  ;;  %v1845_v7 = vmul.f32 -1.442695, %v2814_v2  ;;  %v1880_v43 = vmul.f32 -1.442695, %v2817_v45 }
  0x5e   : > { %v2231_v31 = vpop.eup %2230  ;;  %2250 = vrcp.f32 %v991_v63  ;;  %v625_v42 = vadd.f32 1.0, %v2229_v12  ;;  %v2835_v9 = vadd.f32 %v2516_v21, %v465_v48  ;;  %v834_v17 = vmul.f32 %v2497_v14, %v794_v56 }
  0x5f   : > { %v2233_v49 = vpop.eup %2232  ;;  %2252 = vrcp.f32 %v992_v1  ;;  %v626_v4 = vadd.f32 1.0, %v2231_v31  ;;  %v467_v25 = vmul.f32 %v2511_v20, %v427_v33  ;;  %v2844_v61 = vadd.f32 %v2516_v21, %v466_v39 }
  0x60   : > { %v2235_v51 = vpop.eup %2234  ;;  %2254 = vrcp.f32 %v625_v42  ;;  %v993_v24 = vadd.f32 1.0, %v2233_v49  ;;  %v2847_v62 = vadd.f32 %v2502_v15, %v833_v3 }
  0x61   : > { %v2237_v60 = vpop.eup %2236  ;;  %2256 = vrcp.f32 %v626_v4  ;;  %v994_v57 = vadd.f32 1.0, %v2235_v51 }
  0x62   : > { %v2239_v40 = vpop.eup %2238  ;;  %v717_v5 = vmul.f32 %v2237_v60, %v2703_v52  ;;  %2258 = vrcp.f32 %v993_v24  ;;  %v1881_v52 = vmul.f32 -1.442695, %v2825_v59  ;;  %v1882_v23 = vmul.f32 -1.442695, %v2847_v62  ;;  %v796_v60 = vld [vmem:[%s2478_s22 + $0xd8] sm:$0xff] }
  0x63   : > { %v2241_v11 = vpop.eup %2240  ;;  %2260 = vrcp.f32 %v994_v57  ;;  %v627_v34 = vadd.f32 1.0, %v2239_v40 }
  0x64   : > { %v2243_v58 = vpop.eup %2242  ;;  %v718_v50 = vmul.f32 %v2241_v11, %v2707_v38  ;;  %2262 = vpow2.f32 %v1843_v36  ;;  %v468_v38 = vmul.f32 %v2511_v20, %v428_v18  ;;  %v2854_v36 = vadd.f32 %v2502_v15, %v834_v17  ;;  %v797_v18 = vld [vmem:[%s2478_s22 + $0xe0] sm:$0xff] }
  0x65   : > { %v2245_v26 = vpop.eup %2244  ;;  %v1085_v28 = vmul.f32 %v2243_v58, %v2710_v0  ;;  %2264 = vrcp.f32 %v627_v34  ;;  %v1846_v0 = vmul.f32 -1.442695, %v2835_v9 }
  0x66   : > { %v2247_v63 = vpop.eup %2246  ;;  %v743_v32 = vpack.c.bf16 %v718_v50, %v717_v5  ;;  %v1086_v35 = vmul.f32 %v2245_v26, %v2715_v6  ;;  %2266 = vpow2.f32 %v1878_v37  ;;  %v2858_v6 = vadd.f32 %v2516_v21, %v467_v25  ;;  %v430_v5 = vld [vmem:[%s2487_s26 + $0xd8] sm:$0xff] }
  0x67   : > { %v2249_v12 = vpop.eup %2248  ;;  %v719_v1 = vmul.f32 %v2247_v63, %v2719_v10  ;;  %2268 = vpow2.f32 %v1879_v30  ;;  %v1847_v10 = vmul.f32 -1.442695, %v2844_v61  ;;  %v795_v30 = vld [vmem:[%s2478_s22 + $0xd0] sm:$0xff]  ;;  %v1883_v51 = vmul.f32 -1.442695, %v2854_v36 }
  0x68   : > { %v2251_v31 = vpop.eup %2250  ;;  %2032 = vmatprep.mubr.bf16.mxu0 %v743_v32  ;;  %v1110_v42 = vpack.c.bf16 %v1086_v35, %v1085_v28  ;;  %v720_v46 = vmul.f32 %v2249_v12, %v2726_v22  ;;  %2270 = vpow2.f32 %v1844_v55  ;;  %v2865_v22 = vadd.f32 %v2516_v21, %v468_v38  ;;  %v2896_v28 = vld [vmem:[%s3046_s5] ss:$0 sm:$0xff]  ;;  %v798_v12 = vld [vmem:[%s2478_s22 + $0xe8] sm:$0xff] }
  0x69   : > { %v2253_v20 = vpop.eup %2252  ;;  %v1087_v37 = vmul.f32 %v2251_v31, %v2736_v44  ;;  %2272 = vpow2.f32 %v1845_v7  ;;  %v835_v39 = vmul.f32 %v2497_v14, %v795_v30 }
  0x6a   : > { %v2255_v15 = vpop.eup %2254  ;;  %1985 = vmatmul.mubr.bf16.gmra.mrb[12].mxu1 %v1110_v42  ;;  %v744_v49 = vpack.c.bf16 %v720_v46, %v719_v1  ;;  %v1088_v4 = vmul.f32 %v2253_v20, %v2744_v54  ;;  %2274 = vpow2.f32 %v1880_v43  ;;  %v1848_v54 = vmul.f32 -1.442695, %v2858_v6  ;;  %v2909_v42 = vld [vmem:[%s3044_s3] ss:$0 sm:$0xff] }
  0x6b   : > { %v2257_v48 = vpop.eup %2256  ;;  %v721_v44 = vmul.f32 %v2255_v15, %v2753_v8  ;;  %2276 = vpow2.f32 %v1881_v52  ;;  %v429_v8 = vld [vmem:[%s2487_s26 + $0xd0] sm:$0xff]  ;;  %v2899_v63 = vadd.f32 %v2896_v28, %v835_v39 }
  0x6c   : > { %v2259_v24 = vpop.eup %2258  ;;  %2033 = vmatmul.mubr.bf16.gmra.mrb[12].mxu0 %v744_v49  ;;  %v1111_v55 = vpack.c.bf16 %v1088_v4, %v1087_v37  ;;  %v722_v56 = vmul.f32 %v2257_v48, %v2757_v13  ;;  %2278 = vpow2.f32 %v1846_v0  ;;  %v1849_v13 = vmul.f32 -1.442695, %v2865_v22  ;;  %v432_v48 = vld [vmem:[%s2487_s26 + $0xe8] sm:$0xff] }
  0x6d   : > { %v2261_v21 = vpop.eup %2260  ;;  %v1089_v57 = vmul.f32 %v2259_v24, %v2762_v53  ;;  %2280 = vpow2.f32 %v1847_v10  ;;  %v2882_v53 = vld [vmem:[%s3045_s4] ss:$0 sm:$0xff]  ;;  %v1884_v4 = vmul.f32 -1.442695, %v2899_v63 }
  0x6e   : > { %v2263_v3 = vpop.eup %2262  ;;  %1988 = vmatprep.mubr.bf16.mxu1 %v1111_v55  ;;  %v745_v33 = vpack.c.bf16 %v722_v56, %v721_v44  ;;  %v1090_v40 = vmul.f32 %v2261_v21, %v2767_v16  ;;  %2282 = vpow2.f32 %v1882_v23  ;;  %v836_v14 = vmul.f32 %v2882_v53, %v796_v60  ;;  %v2888_v16 = vld [vmem:[%s3043_s2] ss:$0 sm:$0xff] }
  0x6f   : > { %v2265_v7 = vpop.eup %2264  ;;  %v628_v43 = vadd.f32 1.0, %v2263_v3  ;;  %2284 = vpow2.f32 %v1883_v51  ;;  %v469_v17 = vmul.f32 %v2888_v16, %v429_v8  ;;  %v470_v52 = vmul.f32 %v2888_v16, %v430_v5  ;;  %v431_v23 = vld [vmem:[%s2487_s26 + $0xe0] sm:$0xff] }
  0x70   : > { %v2267_v11 = vpop.eup %2266  ;;  %2036 = vmatprep.mubr.bf16.mxu0 %v745_v33  ;;  %v1112_v34 = vpack.c.bf16 %v1090_v40, %v1089_v57  ;;  %2286 = vpow2.f32 %v1848_v54  ;;  %v2902_v38 = vadd.f32 %v2896_v28, %v836_v14  ;;  %v837_v1 = vmul.f32 %v2882_v53, %v797_v18  ;;  %v799_v57 = vld [vmem:[%s2478_s22 + $0xf0] sm:$0xff]  ;;  %v800_v40 = vld [vmem:[%s2478_s22 + $0xf8] sm:$0xff] }
  0x71   : > { %v2269_v58 = vpop.eup %2268  ;;  %2288 = vrcp.f32 %v628_v43  ;;  %v995_v50 = vadd.f32 1.0, %v2267_v11  ;;  %v2912_v46 = vadd.f32 %v2909_v42, %v469_v17  ;;  %v2915_v10 = vadd.f32 %v2909_v42, %v470_v52  ;;  %v433_v11 = vld [vmem:[%s2487_s26 + $0xf0] sm:$0xff] }
  0x72   : > { %v2271_v25 = vpop.eup %2270  ;;  %1989 = vmatmul.mubr.bf16.gmra.mrb[16].mxu1 %v1112_v34  ;;  %v996_v26 = vadd.f32 1.0, %v2269_v58  ;;  %2290 = vpow2.f32 %v1849_v13  ;;  %v838_v30 = vmul.f32 %v2882_v53, %v798_v12  ;;  %v1885_v24 = vmul.f32 -1.442695, %v2902_v38 }
  0x73   : > { %v2273_v32 = vpop.eup %2272  ;;  %2292 = vrcp.f32 %v995_v50  ;;  %v629_v35 = vadd.f32 1.0, %v2271_v25  ;;  %v2923_v55 = vadd.f32 %v2896_v28, %v837_v1  ;;  %v1850_v60 = vmul.f32 -1.442695, %v2912_v46  ;;  %v434_v50 = vld [vmem:[%s2487_s26 + $0xf8] sm:$0xff] }
  0x74   : > { %v2275_v0 = vpop.eup %2274  ;;  %2294 = vrcp.f32 %v996_v26  ;;  %v630_v31 = vadd.f32 1.0, %v2273_v32  ;;  %v471_v21 = vmul.f32 %v2888_v16, %v431_v23  ;;  %v1851_v3 = vmul.f32 -1.442695, %v2915_v10 }
  0x75   : > { %v2277_v20 = vpop.eup %2276  ;;  %2296 = vrcp.f32 %v629_v35  ;;  %v997_v37 = vadd.f32 1.0, %v2275_v0  ;;  %v472_v33 = vmul.f32 %v2888_v16, %v432_v48  ;;  %v723_v5 = vmul.f32 %v2265_v7, %v2774_v27 }
  0x76   : > { %v2279_v15 = vpop.eup %2278  ;;  %2298 = vrcp.f32 %v630_v31  ;;  %v998_v49 = vadd.f32 1.0, %v2277_v20  ;;  %v2933_v14 = vadd.f32 %v2896_v28, %v838_v30  ;;  %v1886_v18 = vmul.f32 -1.442695, %v2923_v55 }
  0x77   : > { %v2281_v44 = vpop.eup %2280  ;;  %2300 = vrcp.f32 %v997_v37  ;;  %v631_v51 = vadd.f32 1.0, %v2279_v15  ;;  %v839_v58 = vmul.f32 %v2882_v53, %v799_v57  ;;  %v2941_v27 = vadd.f32 %v2909_v42, %v471_v21 }
  0x78   : > { %v2283_v56 = vpop.eup %2282  ;;  %2302 = vrcp.f32 %v998_v49  ;;  %v632_v54 = vadd.f32 1.0, %v2281_v44  ;;  %v840_v7 = vmul.f32 %v2882_v53, %v800_v40  ;;  %v2945_v35 = vadd.f32 %v2909_v42, %v472_v33 }
  0x79   : > { %v2285_v39 = vpop.eup %2284  ;;  %2304 = vrcp.f32 %v631_v51  ;;  %v999_v8 = vadd.f32 1.0, %v2283_v56  ;;  %v473_v12 = vmul.f32 %v2888_v16, %v433_v11  ;;  %v1887_v53 = vmul.f32 -1.442695, %v2933_v14 }
  0x7a   : > { %v2287_v13 = vpop.eup %2286  ;;  %2306 = vrcp.f32 %v632_v54  ;;  %v1000_v43 = vadd.f32 1.0, %v2285_v39  ;;  %v2953_v23 = vadd.f32 %v2896_v28, %v839_v58  ;;  %v1852_v30 = vmul.f32 -1.442695, %v2941_v27 }
  0x7b   : > { %v2289_v34 = vpop.eup %2288  ;;  %2308 = vrcp.f32 %v999_v8  ;;  %v633_v17 = vadd.f32 1.0, %v2287_v13  ;;  %v2962_v48 = vadd.f32 %v2909_v42, %v473_v12 }
  0x7c   : > { %v2291_v52 = vpop.eup %2290  ;;  %v724_v25 = vmul.f32 %v2289_v34, %v2795_v41  ;;  %2310 = vrcp.f32 %v1000_v43  ;;  %v474_v41 = vmul.f32 %v2888_v16, %v434_v50 }
  0x7d   : > { %v2293_v26 = vpop.eup %2292  ;;  %v634_v32 = vadd.f32 1.0, %v2291_v52  ;;  %2312 = vrcp.f32 %v633_v17  ;;  %v1854_v8 = vmul.f32 -1.442695, %v2962_v48 }
  0x7e   : > { %v2295_v1 = vpop.eup %2294  ;;  %v746_v0 = vpack.c.bf16 %v724_v25, %v723_v5  ;;  %v1091_v31 = vmul.f32 %v2293_v26, %v2798_v47  ;;  %2314 = vpow2.f32 %v1884_v4  ;;  %v2958_v47 = vadd.f32 %v2896_v28, %v840_v7 }
  0x7f   : > { %v2297_v20 = vpop.eup %2296  ;;  %v1092_v37 = vmul.f32 %v2295_v1, %v2804_v19  ;;  %2316 = vrcp.f32 %v634_v32 }
  0x80   : > { %v2299_v15 = vpop.eup %2298  ;;  %2037 = vmatmul.mubr.bf16.gmra.mrb[16].mxu0 %v746_v0  ;;  %v725_v49 = vmul.f32 %v2297_v20, %v2807_v29  ;;  %2318 = vpow2.f32 %v1885_v24  ;;  %v1853_v29 = vmul.f32 -1.442695, %v2945_v35  ;;  %v2967_v24 = vadd.f32 %v2909_v42, %v474_v41 }
  0x81   : > { %v2301_v16 = vpop.eup %2300  ;;  %v1113_v4 = vpack.c.bf16 %v1092_v37, %v1091_v31  ;;  %v726_v19 = vmul.f32 %v2299_v15, %v2814_v2  ;;  %2320 = vpow2.f32 %v1850_v60  ;;  %v1888_v2 = vmul.f32 -1.442695, %v2953_v23 }
  0x82   : > { %v2303_v44 = vpop.eup %2302  ;;  %v1093_v51 = vmul.f32 %v2301_v16, %v2817_v45  ;;  %2322 = vpow2.f32 %v1851_v3  ;;  %v1889_v45 = vmul.f32 -1.442695, %v2958_v47  ;;  %v1855_v33 = vmul.f32 -1.442695, %v2967_v24 }
  0x83   : > { %v2305_v56 = vpop.eup %2304  ;;  %1992 = vmatprep.mubr.bf16.mxu1 %v1113_v4  ;;  %v747_v28 = vpack.c.bf16 %v726_v19, %v725_v49  ;;  %v1094_v54 = vmul.f32 %v2303_v44, %v2825_v59  ;;  %2324 = vpow2.f32 %v1886_v18 }
  0x84   : > { %v2307_v60 = vpop.eup %2306  ;;  %v727_v21 = vmul.f32 %v2305_v56, %v2835_v9  ;;  %2326 = vpow2.f32 %v1887_v53 }
  0x85   : > { %v2309_v57 = vpop.eup %2308  ;;  %2040 = vmatprep.mubr.bf16.mxu0 %v747_v28  ;;  %v1114_v39 = vpack.c.bf16 %v1094_v54, %v1093_v51  ;;  %v728_v42 = vmul.f32 %v2307_v60, %v2844_v61  ;;  %2328 = vpow2.f32 %v1852_v30 }
  0x86   : > { %v2311_v3 = vpop.eup %2310  ;;  %v1095_v59 = vmul.f32 %v2309_v57, %v2847_v62  ;;  %2330 = vpow2.f32 %v1853_v29 }
  0x87   : > { %v2313_v40 = vpop.eup %2312  ;;  %1993 = vmatmul.mubr.bf16.gmra.mrb[20].mxu1 %v1114_v39  ;;  %v748_v9 = vpack.c.bf16 %v728_v42, %v727_v21  ;;  %v1096_v13 = vmul.f32 %v2311_v3, %v2854_v36  ;;  %2332 = vpow2.f32 %v1888_v2 }
  0x88   : > { %v2315_v5 = vpop.eup %2314  ;;  %v729_v43 = vmul.f32 %v2313_v40, %v2858_v6  ;;  %2334 = vpow2.f32 %v1889_v45 }
  0x89   : > { %v2317_v61 = vpop.eup %2316  ;;  %2041 = vmatmul.mubr.bf16.gmra.mrb[20].mxu0 %v748_v9  ;;  %v1115_v11 = vpack.c.bf16 %v1096_v13, %v1095_v59  ;;  %v1001_v34 = vadd.f32 1.0, %v2315_v5  ;;  %2336 = vpow2.f32 %v1854_v8 }
  0x8a   : > { %v2319_v17 = vpop.eup %2318  ;;  %v730_v62 = vmul.f32 %v2317_v61, %v2865_v22  ;;  %2338 = vpow2.f32 %v1855_v33 }
  0x8b   : > { %v2321_v18 = vpop.eup %2320  ;;  %1996 = vmatprep.mubr.bf16.mxu1 %v1115_v11  ;;  %v1002_v58 = vadd.f32 1.0, %v2319_v17  ;;  %2340 = vrcp.f32 %v1001_v34 }
  0x8c   : > { %v2323_v50 = vpop.eup %2322  ;;  %v749_v36 = vpack.c.bf16 %v730_v62, %v729_v43  ;;  %v635_v52 = vadd.f32 1.0, %v2321_v18 }
  0x8d   : > { %v2325_v25 = vpop.eup %2324  ;;  %2342 = vrcp.f32 %v1002_v58  ;;  %v636_v6 = vadd.f32 1.0, %v2323_v50 }
  0x8e   : > { %v2327_v7 = vpop.eup %2326  ;;  %2044 = vmatprep.mubr.bf16.mxu0 %v749_v36  ;;  %2344 = vrcp.f32 %v635_v52  ;;  %v1003_v26 = vadd.f32 1.0, %v2325_v25 }
  0x8f   : > { %v2329_v32 = vpop.eup %2328  ;;  %2346 = vrcp.f32 %v636_v6  ;;  %v1004_v12 = vadd.f32 1.0, %v2327_v7 }
  0x90   : > { %v2331_v1 = vpop.eup %2330  ;;  %2348 = vrcp.f32 %v1003_v26  ;;  %v637_v22 = vadd.f32 1.0, %v2329_v32 }
  0x91   : > { %v2333_v0 = vpop.eup %2332  ;;  %2350 = vrcp.f32 %v1004_v12  ;;  %v638_v31 = vadd.f32 1.0, %v2331_v1 }
  0x92   : > { %v2335_v41 = vpop.eup %2334  ;;  %2352 = vrcp.f32 %v637_v22  ;;  %v1005_v20 = vadd.f32 1.0, %v2333_v0 }
  0x93   : > { %v2337_v37 = vpop.eup %2336  ;;  %2354 = vrcp.f32 %v638_v31  ;;  %v1006_v53 = vadd.f32 1.0, %v2335_v41 }
  0x94   : > { %v2339_v15 = vpop.eup %2338  ;;  %2356 = vrcp.f32 %v1005_v20  ;;  %v639_v49 = vadd.f32 1.0, %v2337_v37 }
  0x95   : > { %v2341_v30 = vpop.eup %2340  ;;  %2358 = vrcp.f32 %v1006_v53  ;;  %v640_v16 = vadd.f32 1.0, %v2339_v15 }
  0x96   : > { %v1097_v4 = vmul.f32 %v2341_v30, %v2899_v63  ;;  %2360 = vrcp.f32 %v639_v49 }
  0x97   : > { %v2343_v19 = vpop.eup %2342  ;;  %2362 = vrcp.f32 %v640_v16 }
  0x98   : > { %v2345_v44 = vpop.eup %2344  ;;  %v1098_v51 = vmul.f32 %v2343_v19, %v2902_v38 }
  0x99   : > { %v2347_v29 = vpop.eup %2346  ;;  %v731_v56 = vmul.f32 %v2345_v44, %v2912_v46 }
  0x9a   : > { %v2349_v28 = vpop.eup %2348  ;;  %v1116_v54 = vpack.c.bf16 %v1098_v51, %v1097_v4  ;;  %v732_v2 = vmul.f32 %v2347_v29, %v2915_v10 }
  0x9b   : > { %v2351_v60 = vpop.eup %2350  ;;  %v1099_v21 = vmul.f32 %v2349_v28, %v2923_v55 }
  0x9c   : > { %v2353_v45 = vpop.eup %2352  ;;  %1997 = vmatmul.mubr.bf16.gmra.mrb[24].mxu1 %v1116_v54  ;;  %v750_v57 = vpack.c.bf16 %v732_v2, %v731_v56  ;;  %v1100_v63 = vmul.f32 %v2351_v60, %v2933_v14 }
  0x9d   : > { %v2355_v39 = vpop.eup %2354  ;;  %v733_v42 = vmul.f32 %v2353_v45, %v2941_v27 }
  0x9e   : > { %v2357_v8 = vpop.eup %2356  ;;  %2045 = vmatmul.mubr.bf16.gmra.mrb[24].mxu0 %v750_v57  ;;  %v1117_v38 = vpack.c.bf16 %v1100_v63, %v1099_v21  ;;  %v734_v46 = vmul.f32 %v2355_v39, %v2945_v35 }
  0x9f   : > { %v2359_v3 = vpop.eup %2358  ;;  %v1101_v10 = vmul.f32 %v2357_v8, %v2953_v23 }
  0xa0   : > { %v2361_v59 = vpop.eup %2360  ;;  %2000 = vmatprep.mubr.bf16.mxu1 %v1117_v38  ;;  %v751_v55 = vpack.c.bf16 %v734_v46, %v733_v42  ;;  %v1102_v33 = vmul.f32 %v2359_v3, %v2958_v47 }
  0xa1   : > { %v2363_v40 = vpop.eup %2362  ;;  %v735_v14 = vmul.f32 %v2361_v59, %v2962_v48 }
  0xa2   : > { %2048 = vmatprep.mubr.bf16.mxu0 %v751_v55  ;;  %v1118_v9 = vpack.c.bf16 %v1102_v33, %v1101_v10  ;;  %v736_v27 = vmul.f32 %v2363_v40, %v2967_v24 }
  0xa4   : > { %2001 = vmatmul.mubr.bf16.gmra.mrb[28].mxu1 %v1118_v9  ;;  %v752_v13 = vpack.c.bf16 %v736_v27, %v735_v14 }
  0xa6   : > { %2049 = vmatmul.mubr.bf16.gmra.mrb[28].mxu0 %v752_v13 }
 0x10b   : > { %v1974_v35 = vpop.f32.mrb[0].mxu1 }
 0x10c   : > { %v1217_v5 = vpop.f32.mrb[1].mxu1 }
 0x10d   : > { %v2022_v23 = vpop.f32.mrb[0].mxu0  ;;  %v1975_v47 = vpop.f32.mrb[2].mxu1 }
 0x10e   : > { %v1435_v48 = vadd.f32 %v2022_v23, %v1974_v35  ;;  %v1426_v43 = vpop.f32.mrb[1].mxu0  ;;  %v1220_v61 = vpop.f32.mrb[3].mxu1 }
 0x10f   : > { %v1427_v24 = vadd.f32 %v1426_v43, %v1217_v5  ;;  %v2023_v11 = vpop.f32.mrb[2].mxu0 }
 0x110   : > { %1555 = vst [vmem:[%s2996_s17 + $0x10] sm:$0xff] %v1435_v48  ;;  %v1438_v34 = vadd.f32 %v2023_v11, %v1975_v47  ;;  %v1429_v17 = vpop.f32.mrb[3].mxu0  ;;  %v1625_v36 = vmul.f32 %v1435_v48, %v1435_v48 }
 0x111   : > { %1553 = vst [vmem:[%s2996_s17] sm:$0xff] %v1427_v24  ;;  %v1430_v62 = vadd.f32 %v1429_v17, %v1220_v61  ;;  %v1623_v18 = vmul.f32 %v1427_v24, %v1427_v24 }
 0x112   : > { %1556 = vst [vmem:[%s2996_s17 + $0x18] sm:$0xff] %v1438_v34  ;;  %v1626_v6 = vmul.f32 %v1438_v34, %v1438_v34 }
 0x113   : > { %1554 = vst [vmem:[%s2996_s17 + $0x8] sm:$0xff] %v1430_v62  ;;  %v1585_v58 = vadd.f32 %v1430_v62, %v1427_v24  ;;  %v1624_v50 = vmul.f32 %v1430_v62, %v1430_v62 }
 0x115   : > { %v1586_v52 = vadd.f32 %v1585_v58, %v1435_v48  ;;  %v1655_v25 = vadd.f32 %v1624_v50, %v1623_v18 }
 0x117   : > { %v1656_v7 = vadd.f32 %v1655_v25, %v1625_v36  ;;  %v1587_v26 = vadd.f32 %v1586_v52, %v1438_v34 }
 0x119   : > { %v1657_v32 = vadd.f32 %v1656_v7, %v1626_v6 }
 0x11f   : > { %v1978_v12 = vpop.f32.mrb[4].mxu1 }
 0x120   : > { %v1233_v1 = vpop.f32.mrb[5].mxu1 }
 0x121   : > { %v1979_v22 = vpop.f32.mrb[6].mxu1 }
 0x122   : > { %v2026_v0 = vpop.f32.mrb[4].mxu0  ;;  %v1236_v31 = vpop.f32.mrb[7].mxu1 }
 0x123   : > { %v1451_v41 = vadd.f32 %v2026_v0, %v1978_v12  ;;  %v1442_v20 = vpop.f32.mrb[5].mxu0 }
 0x124   : > { %v1443_v37 = vadd.f32 %v1442_v20, %v1233_v1  ;;  %v2027_v53 = vpop.f32.mrb[6].mxu0 }
 0x125   : > { %1559 = vst [vmem:[%s2996_s17 + $0x30] sm:$0xff] %v1451_v41  ;;  %v1454_v15 = vadd.f32 %v2027_v53, %v1979_v22  ;;  %v1445_v49 = vpop.f32.mrb[7].mxu0  ;;  %v1629_v28 = vmul.f32 %v1451_v41, %v1451_v41 }
 0x126   : > { %1557 = vst [vmem:[%s2996_s17 + $0x20] sm:$0xff] %v1443_v37  ;;  %v1588_v30 = vadd.f32 %v1587_v26, %v1443_v37  ;;  %v1627_v16 = vmul.f32 %v1443_v37, %v1443_v37  ;;  %v1446_v4 = vadd.f32 %v1445_v49, %v1236_v31 }
 0x127   : > { %1560 = vst [vmem:[%s2996_s17 + $0x38] sm:$0xff] %v1454_v15  ;;  %v1630_v39 = vmul.f32 %v1454_v15, %v1454_v15 }
 0x128   : > { %v1658_v19 = vadd.f32 %v1657_v32, %v1627_v16  ;;  %1558 = vst [vmem:[%s2996_s17 + $0x28] sm:$0xff] %v1446_v4  ;;  %v1589_v44 = vadd.f32 %v1588_v30, %v1446_v4  ;;  %v1628_v51 = vmul.f32 %v1446_v4, %v1446_v4  ;;  %v1982_v29 = vpop.f32.mrb[8].mxu1 }
 0x129   : > { %v1249_v56 = vpop.f32.mrb[9].mxu1 }
 0x12a   : > { %v1590_v54 = vadd.f32 %v1589_v44, %v1451_v41  ;;  %v1659_v2 = vadd.f32 %v1658_v19, %v1628_v51  ;;  %v2030_v60 = vpop.f32.mrb[8].mxu0  ;;  %v1983_v21 = vpop.f32.mrb[10].mxu1 }
 0x12b   : > { %v1467_v45 = vadd.f32 %v2030_v60, %v1982_v29  ;;  %v1458_v57 = vpop.f32.mrb[9].mxu0  ;;  %v1252_v63 = vpop.f32.mrb[11].mxu1 }
 0x12c   : > { %v1660_v42 = vadd.f32 %v1659_v2, %v1629_v28  ;;  %v1459_v8 = vadd.f32 %v1458_v57, %v1249_v56  ;;  %v1591_v38 = vadd.f32 %v1590_v54, %v1454_v15  ;;  %v2031_v46 = vpop.f32.mrb[10].mxu0 }
 0x12d   : > { %1563 = vst [vmem:[%s2996_s17 + $0x50] sm:$0xff] %v1467_v45  ;;  %v1470_v3 = vadd.f32 %v2031_v46, %v1983_v21  ;;  %v1461_v10 = vpop.f32.mrb[11].mxu0  ;;  %v1633_v13 = vmul.f32 %v1467_v45, %v1467_v45 }
 0x12e   : > { %1561 = vst [vmem:[%s2996_s17 + $0x40] sm:$0xff] %v1459_v8  ;;  %v1592_v59 = vadd.f32 %v1591_v38, %v1459_v8  ;;  %v1631_v55 = vmul.f32 %v1459_v8, %v1459_v8  ;;  %v1661_v33 = vadd.f32 %v1660_v42, %v1630_v39  ;;  %v1462_v40 = vadd.f32 %v1461_v10, %v1252_v63 }
 0x12f   : > { %1564 = vst [vmem:[%s2996_s17 + $0x58] sm:$0xff] %v1470_v3  ;;  %v1634_v23 = vmul.f32 %v1470_v3, %v1470_v3 }
 0x130   : > { %v1662_v14 = vadd.f32 %v1661_v33, %v1631_v55  ;;  %1562 = vst [vmem:[%s2996_s17 + $0x48] sm:$0xff] %v1462_v40  ;;  %v1593_v9 = vadd.f32 %v1592_v59, %v1462_v40  ;;  %v1632_v27 = vmul.f32 %v1462_v40, %v1462_v40 }
 0x132   : > { %v1594_v35 = vadd.f32 %v1593_v9, %v1467_v45  ;;  %v1663_v5 = vadd.f32 %v1662_v14, %v1632_v27 }
 0x134   : > { %v1664_v47 = vadd.f32 %v1663_v5, %v1633_v13  ;;  %v1595_v48 = vadd.f32 %v1594_v35, %v1470_v3 }
 0x136   : > { %v1665_v43 = vadd.f32 %v1664_v47, %v1634_v23 }
 0x13d   : > { %v1986_v61 = vpop.f32.mrb[12].mxu1 }
 0x13e   : > { %v1265_v24 = vpop.f32.mrb[13].mxu1 }
 0x13f   : > { %v2034_v11 = vpop.f32.mrb[12].mxu0  ;;  %v1987_v34 = vpop.f32.mrb[14].mxu1 }
 0x140   : > { %v1483_v17 = vadd.f32 %v2034_v11, %v1986_v61  ;;  %v1474_v62 = vpop.f32.mrb[13].mxu0  ;;  %v1268_v18 = vpop.f32.mrb[15].mxu1 }
 0x141   : > { %v1475_v58 = vadd.f32 %v1474_v62, %v1265_v24  ;;  %v2035_v50 = vpop.f32.mrb[14].mxu0 }
 0x142   : > { %1567 = vst [vmem:[%s2996_s17 + $0x70] sm:$0xff] %v1483_v17  ;;  %v1486_v36 = vadd.f32 %v2035_v50, %v1987_v34  ;;  %v1477_v52 = vpop.f32.mrb[15].mxu0  ;;  %v1637_v0 = vmul.f32 %v1483_v17, %v1483_v17 }
 0x143   : > { %1565 = vst [vmem:[%s2996_s17 + $0x60] sm:$0xff] %v1475_v58  ;;  %v1596_v25 = vadd.f32 %v1595_v48, %v1475_v58  ;;  %v1635_v6 = vmul.f32 %v1475_v58, %v1475_v58  ;;  %v1478_v7 = vadd.f32 %v1477_v52, %v1268_v18 }
 0x144   : > { %1568 = vst [vmem:[%s2996_s17 + $0x78] sm:$0xff] %v1486_v36  ;;  %v1638_v53 = vmul.f32 %v1486_v36, %v1486_v36 }
 0x145   : > { %v1666_v26 = vadd.f32 %v1665_v43, %v1635_v6  ;;  %1566 = vst [vmem:[%s2996_s17 + $0x68] sm:$0xff] %v1478_v7  ;;  %v1597_v32 = vadd.f32 %v1596_v25, %v1478_v7  ;;  %v1636_v12 = vmul.f32 %v1478_v7, %v1478_v7  ;;  %v1990_v1 = vpop.f32.mrb[16].mxu1 }
 0x146   : > { %v1281_v22 = vpop.f32.mrb[17].mxu1 }
 0x147   : > { %v1598_v31 = vadd.f32 %v1597_v32, %v1483_v17  ;;  %v1667_v41 = vadd.f32 %v1666_v26, %v1636_v12  ;;  %v1991_v20 = vpop.f32.mrb[18].mxu1 }
 0x148   : > { %v1284_v37 = vpop.f32.mrb[19].mxu1 }
 0x149   : > { %v1668_v15 = vadd.f32 %v1667_v41, %v1637_v0  ;;  %v1599_v49 = vadd.f32 %v1598_v31, %v1486_v36 }
 0x14b   : > { %v1669_v30 = vadd.f32 %v1668_v15, %v1638_v53 }
 0x153   : > { %v2038_v16 = vpop.f32.mrb[16].mxu0 }
 0x154   : > { %v1499_v4 = vadd.f32 %v2038_v16, %v1990_v1  ;;  %v1490_v19 = vpop.f32.mrb[17].mxu0 }
 0x155   : > { %v1491_v44 = vadd.f32 %v1490_v19, %v1281_v22  ;;  %v2039_v51 = vpop.f32.mrb[18].mxu0 }
 0x156   : > { %1571 = vst [vmem:[%s2996_s17 + $0x90] sm:$0xff] %v1499_v4  ;;  %v1502_v29 = vadd.f32 %v2039_v51, %v1991_v20  ;;  %v1493_v56 = vpop.f32.mrb[19].mxu0  ;;  %v1641_v63 = vmul.f32 %v1499_v4, %v1499_v4 }
 0x157   : > { %1569 = vst [vmem:[%s2996_s17 + $0x80] sm:$0xff] %v1491_v44  ;;  %v1600_v28 = vadd.f32 %v1599_v49, %v1491_v44  ;;  %v1639_v54 = vmul.f32 %v1491_v44, %v1491_v44  ;;  %v1494_v2 = vadd.f32 %v1493_v56, %v1284_v37 }
 0x158   : > { %1572 = vst [vmem:[%s2996_s17 + $0x98] sm:$0xff] %v1502_v29  ;;  %v1642_v3 = vmul.f32 %v1502_v29, %v1502_v29 }
 0x159   : > { %v1670_v60 = vadd.f32 %v1669_v30, %v1639_v54  ;;  %1570 = vst [vmem:[%s2996_s17 + $0x88] sm:$0xff] %v1494_v2  ;;  %v1601_v21 = vadd.f32 %v1600_v28, %v1494_v2  ;;  %v1640_v45 = vmul.f32 %v1494_v2, %v1494_v2 }
 0x15a   : > { %v1994_v57 = vpop.f32.mrb[20].mxu1 }
 0x15b   : > { %v1602_v39 = vadd.f32 %v1601_v21, %v1499_v4  ;;  %v1671_v42 = vadd.f32 %v1670_v60, %v1640_v45  ;;  %v1297_v8 = vpop.f32.mrb[21].mxu1 }
 0x15c   : > { %v2042_v38 = vpop.f32.mrb[20].mxu0  ;;  %v1995_v46 = vpop.f32.mrb[22].mxu1 }
 0x15d   : > { %v1672_v10 = vadd.f32 %v1671_v42, %v1641_v63  ;;  %v1515_v59 = vadd.f32 %v2042_v38, %v1994_v57  ;;  %v1506_v55 = vpop.f32.mrb[21].mxu0  ;;  %v1603_v33 = vadd.f32 %v1602_v39, %v1502_v29  ;;  %v1300_v40 = vpop.f32.mrb[23].mxu1 }
 0x15e   : > { %v1507_v14 = vadd.f32 %v1506_v55, %v1297_v8  ;;  %v2043_v9 = vpop.f32.mrb[22].mxu0 }
 0x15f   : > { %1575 = vst [vmem:[%s2996_s17 + $0xb0] sm:$0xff] %v1515_v59  ;;  %v1673_v27 = vadd.f32 %v1672_v10, %v1642_v3  ;;  %v1518_v13 = vadd.f32 %v2043_v9, %v1995_v46  ;;  %v1509_v35 = vpop.f32.mrb[23].mxu0  ;;  %v1645_v24 = vmul.f32 %v1515_v59, %v1515_v59 }
 0x160   : > { %1573 = vst [vmem:[%s2996_s17 + $0xa0] sm:$0xff] %v1507_v14  ;;  %v1604_v5 = vadd.f32 %v1603_v33, %v1507_v14  ;;  %v1643_v23 = vmul.f32 %v1507_v14, %v1507_v14  ;;  %v1510_v47 = vadd.f32 %v1509_v35, %v1300_v40 }
 0x161   : > { %1576 = vst [vmem:[%s2996_s17 + $0xb8] sm:$0xff] %v1518_v13  ;;  %v1646_v17 = vmul.f32 %v1518_v13, %v1518_v13 }
 0x162   : > { %v1674_v48 = vadd.f32 %v1673_v27, %v1643_v23  ;;  %1574 = vst [vmem:[%s2996_s17 + $0xa8] sm:$0xff] %v1510_v47  ;;  %v1605_v43 = vadd.f32 %v1604_v5, %v1510_v47  ;;  %v1644_v61 = vmul.f32 %v1510_v47, %v1510_v47 }
 0x164   : > { %v1606_v11 = vadd.f32 %v1605_v43, %v1515_v59  ;;  %v1675_v34 = vadd.f32 %v1674_v48, %v1644_v61 }
 0x166   : > { %v1676_v62 = vadd.f32 %v1675_v34, %v1645_v24  ;;  %v1607_v18 = vadd.f32 %v1606_v11, %v1518_v13 }
 0x168   : > { %v1677_v58 = vadd.f32 %v1676_v62, %v1646_v17 }
 0x16f   : > { %v1998_v50 = vpop.f32.mrb[24].mxu1 }
 0x170   : > { %v1313_v36 = vpop.f32.mrb[25].mxu1 }
 0x171   : > { %v2046_v52 = vpop.f32.mrb[24].mxu0  ;;  %v1999_v25 = vpop.f32.mrb[26].mxu1 }
 0x172   : > { %v1531_v6 = vadd.f32 %v2046_v52, %v1998_v50  ;;  %v1522_v7 = vpop.f32.mrb[25].mxu0  ;;  %v1316_v26 = vpop.f32.mrb[27].mxu1 }
 0x173   : > { %v1523_v32 = vadd.f32 %v1522_v7, %v1313_v36  ;;  %v2047_v12 = vpop.f32.mrb[26].mxu0 }
 0x174   : > { %1579 = vst [vmem:[%s2996_s17 + $0xd0] sm:$0xff] %v1531_v6  ;;  %v1534_v1 = vadd.f32 %v2047_v12, %v1999_v25  ;;  %v1525_v22 = vpop.f32.mrb[27].mxu0  ;;  %v1649_v30 = vmul.f32 %v1531_v6, %v1531_v6 }
 0x175   : > { %1577 = vst [vmem:[%s2996_s17 + $0xc0] sm:$0xff] %v1523_v32  ;;  %v1608_v0 = vadd.f32 %v1607_v18, %v1523_v32  ;;  %v1647_v31 = vmul.f32 %v1523_v32, %v1523_v32  ;;  %v1526_v41 = vadd.f32 %v1525_v22, %v1316_v26 }
 0x176   : > { %1580 = vst [vmem:[%s2996_s17 + $0xd8] sm:$0xff] %v1534_v1  ;;  %v1650_v28 = vmul.f32 %v1534_v1, %v1534_v1 }
 0x177   : > { %v1678_v20 = vadd.f32 %v1677_v58, %v1647_v31  ;;  %1578 = vst [vmem:[%s2996_s17 + $0xc8] sm:$0xff] %v1526_v41  ;;  %v1609_v37 = vadd.f32 %v1608_v0, %v1526_v41  ;;  %v1648_v53 = vmul.f32 %v1526_v41, %v1526_v41  ;;  %v2002_v15 = vpop.f32.mrb[28].mxu1 }
 0x178   : > { %v1329_v49 = vpop.f32.mrb[29].mxu1 }
 0x179   : > { %v1610_v16 = vadd.f32 %v1609_v37, %v1531_v6  ;;  %v1679_v4 = vadd.f32 %v1678_v20, %v1648_v53  ;;  %v2050_v19 = vpop.f32.mrb[28].mxu0  ;;  %v2003_v44 = vpop.f32.mrb[30].mxu1 }
 0x17a   : > { %v1547_v51 = vadd.f32 %v2050_v19, %v2002_v15  ;;  %v1538_v29 = vpop.f32.mrb[29].mxu0  ;;  %v1332_v56 = vpop.f32.mrb[31].mxu1 }
 0x17b   : > { %v1680_v54 = vadd.f32 %v1679_v4, %v1649_v30  ;;  %v1539_v2 = vadd.f32 %v1538_v29, %v1329_v49  ;;  %v1611_v60 = vadd.f32 %v1610_v16, %v1534_v1  ;;  %v2051_v21 = vpop.f32.mrb[30].mxu0 }
 0x17c   : > { %1583 = vst [vmem:[%s2996_s17 + $0xf0] sm:$0xff] %v1547_v51  ;;  %v1550_v45 = vadd.f32 %v2051_v21, %v2003_v44  ;;  %v1541_v57 = vpop.f32.mrb[31].mxu0  ;;  %v1653_v10 = vmul.f32 %v1547_v51, %v1547_v51 }
 0x17d   : > { %1581 = vst [vmem:[%s2996_s17 + $0xe0] sm:$0xff] %v1539_v2  ;;  %v1612_v63 = vadd.f32 %v1611_v60, %v1539_v2  ;;  %v1651_v39 = vmul.f32 %v1539_v2, %v1539_v2  ;;  %v1681_v42 = vadd.f32 %v1680_v54, %v1650_v28  ;;  %v1542_v8 = vadd.f32 %v1541_v57, %v1332_v56 }
 0x17e   : > { %1584 = vst [vmem:[%s2996_s17 + $0xf8] sm:$0xff] %v1550_v45  ;;  %v1654_v33 = vmul.f32 %v1550_v45, %v1550_v45 }
 0x17f   : > { %v1682_v38 = vadd.f32 %v1681_v42, %v1651_v39  ;;  %1582 = vst [vmem:[%s2996_s17 + $0xe8] sm:$0xff] %v1542_v8  ;;  %v1613_v46 = vadd.f32 %v1612_v63, %v1542_v8  ;;  %v1652_v3 = vmul.f32 %v1542_v8, %v1542_v8 }
 0x181   : > { %v1614_v59 = vadd.f32 %v1613_v46, %v1547_v51  ;;  %v1683_v55 = vadd.f32 %v1682_v38, %v1652_v3 }
 0x183   : > { %v1615_v40 = vadd.f32 %v1614_v59, %v1550_v45  ;;  %v1684_v14 = vadd.f32 %v1683_v55, %v1653_v10 }
 0x185   : > { %v1616_v9 = vrot.slane %v1615_v40, 4  ;;  %v1685_v27 = vadd.f32 %v1684_v14, %v1654_v33 }
 0x187   : > { %v1617_v13 = vadd.f32 %v1616_v9, %v1615_v40  ;;  %v1686_v35 = vrot.slane %v1685_v27, 4 }
 0x189   : > { %v1618_v5 = vrot.slane %v1617_v13, 2  ;;  %v1687_v23 = vadd.f32 %v1686_v35, %v1685_v27 }
 0x18b   : > { %v1619_v47 = vadd.f32 %v1618_v5, %v1617_v13  ;;  %v1688_v48 = vrot.slane %v1687_v23, 2 }
 0x18d   : > { %v1620_v43 = vrot.slane %v1619_v47, 1  ;;  %v1689_v61 = vadd.f32 %v1688_v48, %v1687_v23 }
 0x18f   : > { %v1621_v24 = vadd.f32 %v1620_v43, %v1619_v47  ;;  %v1690_v11 = vrot.slane %v1689_v61, 1 }
 0x191   : > { %1622 = vst [vmem:[%s398_s24] sm:$0x1] %v1621_v24  ;;  %v1691_v34 = vadd.f32 %v1690_v11, %v1689_v61 }
 0x193   : > { %1692 = vst [vmem:[%s401_s28] sm:$0x1] %v1691_v34 }
 0x194 PF: > { %s21_s13 = sadd.s32 1, %s2374_s13  }
 0x195   : > { %p18_p5 = scmp.ge.s32.totalorder %s21_s13, 4  }
 0x197   :  { %20 = sbr.rel (!%p18_p5) target bundleno = 1 (0x1), region = 109 }

</bundles_post_ra>
